<compile_context>
chip_gen: v7x
topology: tpu7x:2x2x1
jax: 0.10.0
libtpu: 0.0.40
codegen_flags: <defaults>
</compile_context>

<pallas_src>
import functools

import jax
import jax.numpy as jnp
from jax.experimental import pallas as pl
from jax.experimental.pallas import tpu as pltpu


# ---------------------------------------------------------------------------
# In-kernel helpers.  Activations are carried as a row-list: a Python list of
# (W, C) values with channels on the 128-lane axis.  Only bread-and-butter
# Mosaic ops are used: unit-stride static slices, 2-D jnp.dot, elementwise
# max/add, and static-slice VMEM stores — all of which lower cleanly.
# ---------------------------------------------------------------------------

def _conv3x3_relu_rows(in_rows, w_ref, b_ref):
    """Valid 3x3 conv (stride 1) + bias + ReLU.

    in_rows: list of H values, each (W, Cin).
    w_ref:   (3, 3, Cin, Cout) VMEM ref (PyTorch OIHW transposed at load time).
    b_ref:   (1, Cout) VMEM ref.
    Returns a list of H-2 values, each (W-2, Cout).
    """
    n_rows = len(in_rows)
    width, _ = in_rows[0].shape
    cout = w_ref.shape[-1]
    ho, wo = n_rows - 2, width - 2

    # Hoist all 9 weight-tap loads out of the row loop (stay resident in vregs).
    wk = [[w_ref[kh, kw] for kw in range(3)] for kh in range(3)]   # (Cin, Cout)
    b = b_ref[...]                                                 # (1, Cout)

    out_rows = []
    for h in range(ho):
        acc = jnp.zeros((wo, cout), jnp.float32)
        for kh in range(3):
            row = in_rows[h + kh]                                  # (W, Cin)
            for kw in range(3):
                acc = acc + jnp.dot(row[kw:kw + wo, :], wk[kh][kw],
                                    preferred_element_type=jnp.float32)
        out_rows.append(jnp.maximum(acc + b, 0.0))
    return out_rows


def _maxpool2x2_rows(in_rows, out_ref):
    """MaxPool2d(kernel=2, stride=2), floor mode.

    in_rows: list of values, each (W, C).
    out_ref: (Hp, Wp, C) VMEM scratch used to assemble the pooled rows
             (avoids any strided / reshape / sublane-concat ops).
    Returns a list of Hp values, each (Wp, C).
    """
    hp, wp, _ = out_ref.shape
    for i in range(hp):
        # Vertical pair max once per output row, then horizontal pair maxes.
        m = jnp.maximum(in_rows[2 * i], in_rows[2 * i + 1])        # (W, C)
        for j in range(wp):
            out_ref[i, pl.ds(j, 1), :] = jnp.maximum(m[2 * j:2 * j + 1, :],
                                                     m[2 * j + 1:2 * j + 2, :])
    return [out_ref[i] for i in range(hp)]


# ---------------------------------------------------------------------------
# Fused forward kernel: one image per grid step, all activations stay in VMEM.
# ---------------------------------------------------------------------------

def _fused_forward_kernel(x_ref, w1_ref, b1_ref, w2_ref, b2_ref, w3_ref, b3_ref,
                          fcw_ref, fcb_ref, fc2w_ref, fc2b_ref,
                          emb_ref, logp_ref,
                          pool1_ref, pool3_ref, *, num_classes):
    # Input image for this grid step: (H, W, 3), channels on the lane axis.
    xv = x_ref[0]
    rows = [xv[h] for h in range(xv.shape[0])]

    rows = _conv3x3_relu_rows(rows, w1_ref, b1_ref)      # conv1 + relu
    rows = _maxpool2x2_rows(rows, pool1_ref)             # pool1
    rows = _conv3x3_relu_rows(rows, w2_ref, b2_ref)      # conv2 + relu
    rows = _conv3x3_relu_rows(rows, w3_ref, b3_ref)      # conv3 + relu
    rows = _maxpool2x2_rows(rows, pool3_ref)             # pool3

    # Flatten in (h, w, c) order; fc weight rows were permuted at load time to
    # match, so no runtime transpose is needed.  (For the demo dims the pooled
    # map is 1x1 so this is a single slice; larger dims use a lane concat.)
    wp3 = pool3_ref.shape[1]
    pieces = [r[j:j + 1, :] for r in rows for j in range(wp3)]
    feat = pieces[0] if len(pieces) == 1 else jnp.concatenate(pieces, axis=-1)

    # fc -> relu -> fc2 (class dim zero-padded to a full 128-lane width so the
    # output stores are unmasked full-vreg stores).
    h1 = jnp.dot(feat, fcw_ref[...], preferred_element_type=jnp.float32) + fcb_ref[...]
    h1 = jnp.maximum(h1, 0.0)
    emb = jnp.dot(h1, fc2w_ref[...], preferred_element_type=jnp.float32) + fc2b_ref[...]
    emb_ref[0] = emb                                     # lane-dense (1, 128) store

    # log_softmax over the real classes only (padded lanes masked out).
    col = jax.lax.broadcasted_iota(jnp.int32, emb.shape, 1)
    masked = jnp.where(col < num_classes, emb, -jnp.inf)
    m = jnp.max(masked, axis=-1, keepdims=True)
    lse = m + jnp.log(jnp.sum(jnp.exp(masked - m), axis=-1, keepdims=True))
    logp_ref[0] = emb - lse

    # TODO(synk): nn.Dropout(p=0.1) in the reference forward acts on a dead
    # value (and is identity at inference), so it is intentionally omitted.


# ---------------------------------------------------------------------------
# Wrapper: single pallas_call for the whole forward pass
# ---------------------------------------------------------------------------

def target_forward(params_k, x_nchw, *, num_classes):
    """params_k: kernel-layout parameters from prepare_params()."""
    # PyTorch NCHW input -> NHWC (tiny, one-time transform of the raw input).
    x = jnp.transpose(x_nchw, (0, 2, 3, 1)).astype(jnp.float32)
    n, hh, ww, cin = x.shape

    # Static size flow (matches conv_out_shape in the reference module).
    h1, w1 = hh - 2, ww - 2                  # conv1 (valid 3x3)
    hp1, wp1 = h1 // 2, w1 // 2              # pool1
    h2, w2 = hp1 - 2, wp1 - 2                # conv2
    h3, w3 = h2 - 2, w2 - 2                  # conv3
    hp3, wp3 = h3 // 2, w3 // 2              # pool3
    c_pad = params_k["fc2_w"].shape[1]       # class dim padded to 128 lanes

    kernel = functools.partial(_fused_forward_kernel, num_classes=num_classes)

    def _const_spec(arr):
        zeros = (0,) * arr.ndim
        return pl.BlockSpec(arr.shape, lambda b, _z=zeros: _z)

    emb_pad, logp_pad = pl.pallas_call(
        kernel,
        out_shape=(jax.ShapeDtypeStruct((n, 1, c_pad), jnp.float32),
                   jax.ShapeDtypeStruct((n, 1, c_pad), jnp.float32)),
        grid=(n,),
        in_specs=[
            pl.BlockSpec((1, hh, ww, cin), lambda b: (b, 0, 0, 0)),
            _const_spec(params_k["conv1_w"]), _const_spec(params_k["conv1_b"]),
            _const_spec(params_k["conv2_w"]), _const_spec(params_k["conv2_b"]),
            _const_spec(params_k["conv3_w"]), _const_spec(params_k["conv3_b"]),
            _const_spec(params_k["fc_w"]), _const_spec(params_k["fc_b"]),
            _const_spec(params_k["fc2_w"]), _const_spec(params_k["fc2_b"]),
        ],
        out_specs=(pl.BlockSpec((1, 1, c_pad), lambda b: (b, 0, 0)),
                   pl.BlockSpec((1, 1, c_pad), lambda b: (b, 0, 0))),
        scratch_shapes=[
            pltpu.VMEM((hp1, wp1, 16), jnp.float32),   # pooled conv1 activations
            pltpu.VMEM((hp3, wp3, 64), jnp.float32),   # pooled conv3 activations
        ],
        compiler_params=pltpu.CompilerParams(
            dimension_semantics=("parallel",),          # batch axis -> both v7x TCs
            vmem_limit_bytes=32 * 1024 * 1024,          # safe on v5e/v6e/v7x
        ),
    )(x, params_k["conv1_w"], params_k["conv1_b"],
      params_k["conv2_w"], params_k["conv2_b"],
      params_k["conv3_w"], params_k["conv3_b"],
      params_k["fc_w"], params_k["fc_b"],
      params_k["fc2_w"], params_k["fc2_b"])

    # Slice the lane padding away once, at the very end.
    embedding = emb_pad[:, 0, :num_classes]
    log_probs = logp_pad[:, 0, :num_classes]
    return embedding, log_probs


# ---------------------------------------------------------------------------
# Parameters: PyTorch-convention init + one-time load-time relayout
# ---------------------------------------------------------------------------

def _uniform(key, shape, bound):
    return jax.random.uniform(key, shape, jnp.float32, -bound, bound)


def _feature_hw(dim):
    h, w = dim
    h, w = (h - 2) // 2, (w - 2) // 2        # conv1 + pool1
    h, w = h - 2, w - 2                      # conv2
    h, w = (h - 2) // 2, (w - 2) // 2        # conv3 + pool3
    return h, w


def init_params(key, dim, num_classes):
    """PyTorch-convention parameters (Conv2d OIHW, Linear (out, in))."""
    hp3, wp3 = _feature_hw(dim)
    fc_in = hp3 * wp3 * 64

    ks = jax.random.split(key, 10)
    p = {}
    b = 1.0 / (3 * 3 * 3) ** 0.5
    p["conv1_w"] = _uniform(ks[0], (16, 3, 3, 3), b)
    p["conv1_b"] = _uniform(ks[1], (16,), b)
    b = 1.0 / (16 * 3 * 3) ** 0.5
    p["conv2_w"] = _uniform(ks[2], (32, 16, 3, 3), b)
    p["conv2_b"] = _uniform(ks[3], (32,), b)
    b = 1.0 / (32 * 3 * 3) ** 0.5
    p["conv3_w"] = _uniform(ks[4], (64, 32, 3, 3), b)
    p["conv3_b"] = _uniform(ks[5], (64,), b)
    b = 1.0 / fc_in ** 0.5
    p["fc_w"] = _uniform(ks[6], (128, fc_in), b)
    p["fc_b"] = _uniform(ks[7], (128,), b)
    b = 1.0 / 128 ** 0.5
    p["fc2_w"] = _uniform(ks[8], (num_classes, 128), b)
    p["fc2_b"] = _uniform(ks[9], (num_classes,), b)
    return p


def prepare_params(p, dim, num_classes):
    """One-time (load-time) relayout for the kernel:
       conv weights -> (KH, KW, Cin, Cout); fc rows permuted from NCHW-flatten
       to NHWC-flatten order; class dim zero-padded to a full 128-lane width."""
    hp3, wp3 = _feature_hw(dim)
    fc_in = hp3 * wp3 * 64
    c_pad = ((num_classes + 127) // 128) * 128

    k = {}
    for i in (1, 2, 3):
        k[f"conv{i}_w"] = jnp.transpose(p[f"conv{i}_w"], (2, 3, 1, 0))
        k[f"conv{i}_b"] = p[f"conv{i}_b"].reshape(1, -1)

    fcw = p["fc_w"].reshape(128, 64, hp3, wp3)          # (out, c, h, w)
    fcw = jnp.transpose(fcw, (0, 2, 3, 1)).reshape(128, fc_in)  # rows now (h, w, c)
    k["fc_w"] = fcw.T                                   # (fc_in, 128)
    k["fc_b"] = p["fc_b"].reshape(1, 128)

    fc2w = jnp.zeros((128, c_pad), jnp.float32).at[:, :num_classes].set(p["fc2_w"].T)
    fc2b = jnp.zeros((1, c_pad), jnp.float32).at[0, :num_classes].set(p["fc2_b"])
    k["fc2_w"] = fc2w
    k["fc2_b"] = fc2b
    return k


# ---------------------------------------------------------------------------
# Plain-XLA reference of the same forward pass (for a numerical self-check)
# ---------------------------------------------------------------------------

def reference_forward(p, x_nchw):
    x = x_nchw.astype(jnp.float32)

    def conv(z, w, b):
        z = jax.lax.conv_general_dilated(z, w, (1, 1), "VALID",
                                         dimension_numbers=("NCHW", "OIHW", "NCHW"))
        return jax.nn.relu(z + b[None, :, None, None])

    def pool(z):
        return jax.lax.reduce_window(z, -jnp.inf, jax.lax.max,
                                     (1, 1, 2, 2), (1, 1, 2, 2), "VALID")

    z = pool(conv(x, p["conv1_w"], p["conv1_b"]))
    z = conv(z, p["conv2_w"], p["conv2_b"])
    z = pool(conv(z, p["conv3_w"], p["conv3_b"]))
    flat = z.reshape(x.shape[0], -1)
    emb = jax.nn.relu(flat @ p["fc_w"].T + p["fc_b"])
    emb = emb @ p["fc2_w"].T + p["fc2_b"]
    logp = jax.nn.log_softmax(emb, axis=1)
    return emb, logp


# ---------------------------------------------------------------------------
# Demo
# ---------------------------------------------------------------------------

if __name__ == "__main__":
    key = jax.random.PRNGKey(0)
    k_x, k_p = jax.random.split(key)

    batch_size = 2
    dim = (16, 16)        # input spatial size -> final feature map 1x1x64
    num_classes = 4

    x = jax.random.normal(k_x, (batch_size, 3, dim[0], dim[1]), dtype=jnp.float32)
    params = init_params(k_p, dim, num_classes)
    params_k = prepare_params(params, dim, num_classes)   # one-time relayout

    fwd = jax.jit(functools.partial(target_forward, num_classes=num_classes))
    embedding, log_probs = fwd(params_k, x)
    jax.block_until_ready((embedding, log_probs))

    assert embedding.shape == (batch_size, num_classes)
    assert log_probs.shape == (batch_size, num_classes)

    # Numerical self-check against the plain-XLA reference of the same model.
    emb_ref, logp_ref = reference_forward(params, x)
    assert jnp.allclose(embedding, emb_ref, atol=2e-2, rtol=2e-2), "embedding mismatch"
    assert jnp.allclose(log_probs, logp_ref, atol=2e-2, rtol=2e-2), "log_softmax mismatch"

    print("KERNEL_OK")
</pallas_src>

<mosaic_0001>
module attributes {stable_mosaic.version = 11 : i64} {
  func.func @_fused_forward_kernel(%arg0: i32, %arg1: memref<1x16x16x3xf32, #tpu.memory_space<vmem>>, %arg2: memref<3x3x3x16xf32, #tpu.memory_space<vmem>>, %arg3: memref<1x16xf32, #tpu.memory_space<vmem>>, %arg4: memref<3x3x16x32xf32, #tpu.memory_space<vmem>>, %arg5: memref<1x32xf32, #tpu.memory_space<vmem>>, %arg6: memref<3x3x32x64xf32, #tpu.memory_space<vmem>>, %arg7: memref<1x64xf32, #tpu.memory_space<vmem>>, %arg8: memref<64x128xf32, #tpu.memory_space<vmem>>, %arg9: memref<1x128xf32, #tpu.memory_space<vmem>>, %arg10: memref<128x128xf32, #tpu.memory_space<vmem>>, %arg11: memref<1x128xf32, #tpu.memory_space<vmem>>, %arg12: memref<1x1x128xf32, #tpu.memory_space<vmem>>, %arg13: memref<1x1x128xf32, #tpu.memory_space<vmem>>, %arg14: memref<7x7x16xf32, #tpu.memory_space<vmem>>, %arg15: memref<1x1x64xf32, #tpu.memory_space<vmem>>) attributes {dimension_semantics = [#tpu.dimension_semantics<parallel>], iteration_bounds = array<i64: 2>, scalar_prefetch = 0 : i64, scratch_operands = 2 : i64, tpu.core_type = #tpu.core_type<tc>, window_params = [{transform_indices = @transform_0, window_bounds = array<i64: 1, 16, 16, 3>}, {pipeline_mode = #tpu.pipeline_mode<synchronous>, transform_indices = @transform_1, window_bounds = array<i64: 3, 3, 3, 16>}, {pipeline_mode = #tpu.pipeline_mode<synchronous>, transform_indices = @transform_2, window_bounds = array<i64: 1, 16>}, {pipeline_mode = #tpu.pipeline_mode<synchronous>, transform_indices = @transform_3, window_bounds = array<i64: 3, 3, 16, 32>}, {pipeline_mode = #tpu.pipeline_mode<synchronous>, transform_indices = @transform_4, window_bounds = array<i64: 1, 32>}, {pipeline_mode = #tpu.pipeline_mode<synchronous>, transform_indices = @transform_5, window_bounds = array<i64: 3, 3, 32, 64>}, {pipeline_mode = #tpu.pipeline_mode<synchronous>, transform_indices = @transform_6, window_bounds = array<i64: 1, 64>}, {pipeline_mode = #tpu.pipeline_mode<synchronous>, transform_indices = @transform_7, window_bounds = array<i64: 64, 128>}, {pipeline_mode = #tpu.pipeline_mode<synchronous>, transform_indices = @transform_8, window_bounds = array<i64: 1, 128>}, {pipeline_mode = #tpu.pipeline_mode<synchronous>, transform_indices = @transform_9, window_bounds = array<i64: 128, 128>}, {pipeline_mode = #tpu.pipeline_mode<synchronous>, transform_indices = @transform_10, window_bounds = array<i64: 1, 128>}, {transform_indices = @transform_11, window_bounds = array<i64: 1, 1, 128>}, {transform_indices = @transform_12, window_bounds = array<i64: 1, 1, 128>}]} {
    %c0 = arith.constant 0 : index
    %c0_0 = arith.constant 0 : index
    %c0_1 = arith.constant 0 : index
    %c0_2 = arith.constant 0 : index
    %0 = vector.load %arg1[%c0, %c0_0, %c0_1, %c0_2] : memref<1x16x16x3xf32, #tpu.memory_space<vmem>>, vector<1x16x16x3xf32>
    %1 = vector.shape_cast %0 : vector<1x16x16x3xf32> to vector<16x16x3xf32>
    %2 = vector.extract_strided_slice %1 {offsets = [0, 0, 0], sizes = [1, 16, 3], strides = [1, 1, 1]} : vector<16x16x3xf32> to vector<1x16x3xf32>
    %3 = vector.shape_cast %2 : vector<1x16x3xf32> to vector<16x3xf32>
    %4 = vector.extract_strided_slice %1 {offsets = [1, 0, 0], sizes = [1, 16, 3], strides = [1, 1, 1]} : vector<16x16x3xf32> to vector<1x16x3xf32>
    %5 = vector.shape_cast %4 : vector<1x16x3xf32> to vector<16x3xf32>
    %6 = vector.extract_strided_slice %1 {offsets = [2, 0, 0], sizes = [1, 16, 3], strides = [1, 1, 1]} : vector<16x16x3xf32> to vector<1x16x3xf32>
    %7 = vector.shape_cast %6 : vector<1x16x3xf32> to vector<16x3xf32>
    %8 = vector.extract_strided_slice %1 {offsets = [3, 0, 0], sizes = [1, 16, 3], strides = [1, 1, 1]} : vector<16x16x3xf32> to vector<1x16x3xf32>
    %9 = vector.shape_cast %8 : vector<1x16x3xf32> to vector<16x3xf32>
    %10 = vector.extract_strided_slice %1 {offsets = [4, 0, 0], sizes = [1, 16, 3], strides = [1, 1, 1]} : vector<16x16x3xf32> to vector<1x16x3xf32>
    %11 = vector.shape_cast %10 : vector<1x16x3xf32> to vector<16x3xf32>
    %12 = vector.extract_strided_slice %1 {offsets = [5, 0, 0], sizes = [1, 16, 3], strides = [1, 1, 1]} : vector<16x16x3xf32> to vector<1x16x3xf32>
    %13 = vector.shape_cast %12 : vector<1x16x3xf32> to vector<16x3xf32>
    %14 = vector.extract_strided_slice %1 {offsets = [6, 0, 0], sizes = [1, 16, 3], strides = [1, 1, 1]} : vector<16x16x3xf32> to vector<1x16x3xf32>
    %15 = vector.shape_cast %14 : vector<1x16x3xf32> to vector<16x3xf32>
    %16 = vector.extract_strided_slice %1 {offsets = [7, 0, 0], sizes = [1, 16, 3], strides = [1, 1, 1]} : vector<16x16x3xf32> to vector<1x16x3xf32>
    %17 = vector.shape_cast %16 : vector<1x16x3xf32> to vector<16x3xf32>
    %18 = vector.extract_strided_slice %1 {offsets = [8, 0, 0], sizes = [1, 16, 3], strides = [1, 1, 1]} : vector<16x16x3xf32> to vector<1x16x3xf32>
    %19 = vector.shape_cast %18 : vector<1x16x3xf32> to vector<16x3xf32>
    %20 = vector.extract_strided_slice %1 {offsets = [9, 0, 0], sizes = [1, 16, 3], strides = [1, 1, 1]} : vector<16x16x3xf32> to vector<1x16x3xf32>
    %21 = vector.shape_cast %20 : vector<1x16x3xf32> to vector<16x3xf32>
    %22 = vector.extract_strided_slice %1 {offsets = [10, 0, 0], sizes = [1, 16, 3], strides = [1, 1, 1]} : vector<16x16x3xf32> to vector<1x16x3xf32>
    %23 = vector.shape_cast %22 : vector<1x16x3xf32> to vector<16x3xf32>
    %24 = vector.extract_strided_slice %1 {offsets = [11, 0, 0], sizes = [1, 16, 3], strides = [1, 1, 1]} : vector<16x16x3xf32> to vector<1x16x3xf32>
    %25 = vector.shape_cast %24 : vector<1x16x3xf32> to vector<16x3xf32>
    %26 = vector.extract_strided_slice %1 {offsets = [12, 0, 0], sizes = [1, 16, 3], strides = [1, 1, 1]} : vector<16x16x3xf32> to vector<1x16x3xf32>
    %27 = vector.shape_cast %26 : vector<1x16x3xf32> to vector<16x3xf32>
    %28 = vector.extract_strided_slice %1 {offsets = [13, 0, 0], sizes = [1, 16, 3], strides = [1, 1, 1]} : vector<16x16x3xf32> to vector<1x16x3xf32>
    %29 = vector.shape_cast %28 : vector<1x16x3xf32> to vector<16x3xf32>
    %30 = vector.extract_strided_slice %1 {offsets = [14, 0, 0], sizes = [1, 16, 3], strides = [1, 1, 1]} : vector<16x16x3xf32> to vector<1x16x3xf32>
    %31 = vector.shape_cast %30 : vector<1x16x3xf32> to vector<16x3xf32>
    %32 = vector.extract_strided_slice %1 {offsets = [15, 0, 0], sizes = [1, 16, 3], strides = [1, 1, 1]} : vector<16x16x3xf32> to vector<1x16x3xf32>
    %33 = vector.shape_cast %32 : vector<1x16x3xf32> to vector<16x3xf32>
    %c0_3 = arith.constant 0 : index
    %c0_4 = arith.constant 0 : index
    %c0_5 = arith.constant 0 : index
    %c0_6 = arith.constant 0 : index
    %34 = vector.load %arg2[%c0_3, %c0_4, %c0_5, %c0_6] : memref<3x3x3x16xf32, #tpu.memory_space<vmem>>, vector<1x1x3x16xf32>
    %35 = vector.shape_cast %34 : vector<1x1x3x16xf32> to vector<3x16xf32>
    %c0_7 = arith.constant 0 : index
    %c1 = arith.constant 1 : index
    %c0_8 = arith.constant 0 : index
    %c0_9 = arith.constant 0 : index
    %36 = vector.load %arg2[%c0_7, %c1, %c0_8, %c0_9] : memref<3x3x3x16xf32, #tpu.memory_space<vmem>>, vector<1x1x3x16xf32>
    %37 = vector.shape_cast %36 : vector<1x1x3x16xf32> to vector<3x16xf32>
    %c0_10 = arith.constant 0 : index
    %c2 = arith.constant 2 : index
    %c0_11 = arith.constant 0 : index
    %c0_12 = arith.constant 0 : index
    %38 = vector.load %arg2[%c0_10, %c2, %c0_11, %c0_12] : memref<3x3x3x16xf32, #tpu.memory_space<vmem>>, vector<1x1x3x16xf32>
    %39 = vector.shape_cast %38 : vector<1x1x3x16xf32> to vector<3x16xf32>
    %c1_13 = arith.constant 1 : index
    %c0_14 = arith.constant 0 : index
    %c0_15 = arith.constant 0 : index
    %c0_16 = arith.constant 0 : index
    %40 = vector.load %arg2[%c1_13, %c0_14, %c0_15, %c0_16] : memref<3x3x3x16xf32, #tpu.memory_space<vmem>>, vector<1x1x3x16xf32>
    %41 = vector.shape_cast %40 : vector<1x1x3x16xf32> to vector<3x16xf32>
    %c1_17 = arith.constant 1 : index
    %c1_18 = arith.constant 1 : index
    %c0_19 = arith.constant 0 : index
    %c0_20 = arith.constant 0 : index
    %42 = vector.load %arg2[%c1_17, %c1_18, %c0_19, %c0_20] : memref<3x3x3x16xf32, #tpu.memory_space<vmem>>, vector<1x1x3x16xf32>
    %43 = vector.shape_cast %42 : vector<1x1x3x16xf32> to vector<3x16xf32>
    %c1_21 = arith.constant 1 : index
    %c2_22 = arith.constant 2 : index
    %c0_23 = arith.constant 0 : index
    %c0_24 = arith.constant 0 : index
    %44 = vector.load %arg2[%c1_21, %c2_22, %c0_23, %c0_24] : memref<3x3x3x16xf32, #tpu.memory_space<vmem>>, vector<1x1x3x16xf32>
    %45 = vector.shape_cast %44 : vector<1x1x3x16xf32> to vector<3x16xf32>
    %c2_25 = arith.constant 2 : index
    %c0_26 = arith.constant 0 : index
    %c0_27 = arith.constant 0 : index
    %c0_28 = arith.constant 0 : index
    %46 = vector.load %arg2[%c2_25, %c0_26, %c0_27, %c0_28] : memref<3x3x3x16xf32, #tpu.memory_space<vmem>>, vector<1x1x3x16xf32>
    %47 = vector.shape_cast %46 : vector<1x1x3x16xf32> to vector<3x16xf32>
    %c2_29 = arith.constant 2 : index
    %c1_30 = arith.constant 1 : index
    %c0_31 = arith.constant 0 : index
    %c0_32 = arith.constant 0 : index
    %48 = vector.load %arg2[%c2_29, %c1_30, %c0_31, %c0_32] : memref<3x3x3x16xf32, #tpu.memory_space<vmem>>, vector<1x1x3x16xf32>
    %49 = vector.shape_cast %48 : vector<1x1x3x16xf32> to vector<3x16xf32>
    %c2_33 = arith.constant 2 : index
    %c2_34 = arith.constant 2 : index
    %c0_35 = arith.constant 0 : index
    %c0_36 = arith.constant 0 : index
    %50 = vector.load %arg2[%c2_33, %c2_34, %c0_35, %c0_36] : memref<3x3x3x16xf32, #tpu.memory_space<vmem>>, vector<1x1x3x16xf32>
    %51 = vector.shape_cast %50 : vector<1x1x3x16xf32> to vector<3x16xf32>
    %c0_37 = arith.constant 0 : index
    %c0_38 = arith.constant 0 : index
    %52 = vector.load %arg3[%c0_37, %c0_38] : memref<1x16xf32, #tpu.memory_space<vmem>>, vector<1x16xf32>
    %cst = arith.constant 0.000000e+00 : f32
    %53 = vector.broadcast %cst : f32 to vector<14x16xf32>
    %54 = vector.extract_strided_slice %3 {offsets = [0, 0], sizes = [14, 3], strides = [1, 1]} : vector<16x3xf32> to vector<14x3xf32>
    %cst_39 = arith.constant dense<0.000000e+00> : vector<14x16xf32>
    %55 = tpu.matmul %54, %35, %cst_39 {dimension_numbers = #tpu.dot_dimension_numbers<[1], [0], [0], [1], [0, 0, 1, 1], [], []>} : vector<14x3xf32>, vector<3x16xf32>, vector<14x16xf32> -> vector<14x16xf32>
    %56 = arith.addf %53, %55 : vector<14x16xf32>
    %57 = vector.extract_strided_slice %3 {offsets = [1, 0], sizes = [14, 3], strides = [1, 1]} : vector<16x3xf32> to vector<14x3xf32>
    %cst_40 = arith.constant dense<0.000000e+00> : vector<14x16xf32>
    %58 = tpu.matmul %57, %37, %cst_40 {dimension_numbers = #tpu.dot_dimension_numbers<[1], [0], [0], [1], [0, 0, 1, 1], [], []>} : vector<14x3xf32>, vector<3x16xf32>, vector<14x16xf32> -> vector<14x16xf32>
    %59 = arith.addf %56, %58 : vector<14x16xf32>
    %60 = vector.extract_strided_slice %3 {offsets = [2, 0], sizes = [14, 3], strides = [1, 1]} : vector<16x3xf32> to vector<14x3xf32>
    %cst_41 = arith.constant dense<0.000000e+00> : vector<14x16xf32>
    %61 = tpu.matmul %60, %39, %cst_41 {dimension_numbers = #tpu.dot_dimension_numbers<[1], [0], [0], [1], [0, 0, 1, 1], [], []>} : vector<14x3xf32>, vector<3x16xf32>, vector<14x16xf32> -> vector<14x16xf32>
    %62 = arith.addf %59, %61 : vector<14x16xf32>
    %63 = vector.extract_strided_slice %5 {offsets = [0, 0], sizes = [14, 3], strides = [1, 1]} : vector<16x3xf32> to vector<14x3xf32>
    %cst_42 = arith.constant dense<0.000000e+00> : vector<14x16xf32>
    %64 = tpu.matmul %63, %41, %cst_42 {dimension_numbers = #tpu.dot_dimension_numbers<[1], [0], [0], [1], [0, 0, 1, 1], [], []>} : vector<14x3xf32>, vector<3x16xf32>, vector<14x16xf32> -> vector<14x16xf32>
    %65 = arith.addf %62, %64 : vector<14x16xf32>
    %66 = vector.extract_strided_slice %5 {offsets = [1, 0], sizes = [14, 3], strides = [1, 1]} : vector<16x3xf32> to vector<14x3xf32>
    %cst_43 = arith.constant dense<0.000000e+00> : vector<14x16xf32>
    %67 = tpu.matmul %66, %43, %cst_43 {dimension_numbers = #tpu.dot_dimension_numbers<[1], [0], [0], [1], [0, 0, 1, 1], [], []>} : vector<14x3xf32>, vector<3x16xf32>, vector<14x16xf32> -> vector<14x16xf32>
    %68 = arith.addf %65, %67 : vector<14x16xf32>
    %69 = vector.extract_strided_slice %5 {offsets = [2, 0], sizes = [14, 3], strides = [1, 1]} : vector<16x3xf32> to vector<14x3xf32>
    %cst_44 = arith.constant dense<0.000000e+00> : vector<14x16xf32>
    %70 = tpu.matmul %69, %45, %cst_44 {dimension_numbers = #tpu.dot_dimension_numbers<[1], [0], [0], [1], [0, 0, 1, 1], [], []>} : vector<14x3xf32>, vector<3x16xf32>, vector<14x16xf32> -> vector<14x16xf32>
    %71 = arith.addf %68, %70 : vector<14x16xf32>
    %72 = vector.extract_strided_slice %7 {offsets = [0, 0], sizes = [14, 3], strides = [1, 1]} : vector<16x3xf32> to vector<14x3xf32>
    %cst_45 = arith.constant dense<0.000000e+00> : vector<14x16xf32>
    %73 = tpu.matmul %72, %47, %cst_45 {dimension_numbers = #tpu.dot_dimension_numbers<[1], [0], [0], [1], [0, 0, 1, 1], [], []>} : vector<14x3xf32>, vector<3x16xf32>, vector<14x16xf32> -> vector<14x16xf32>
    %74 = arith.addf %71, %73 : vector<14x16xf32>
    %75 = vector.extract_strided_slice %7 {offsets = [1, 0], sizes = [14, 3], strides = [1, 1]} : vector<16x3xf32> to vector<14x3xf32>
    %cst_46 = arith.constant dense<0.000000e+00> : vector<14x16xf32>
    %76 = tpu.matmul %75, %49, %cst_46 {dimension_numbers = #tpu.dot_dimension_numbers<[1], [0], [0], [1], [0, 0, 1, 1], [], []>} : vector<14x3xf32>, vector<3x16xf32>, vector<14x16xf32> -> vector<14x16xf32>
    %77 = arith.addf %74, %76 : vector<14x16xf32>
    %78 = vector.extract_strided_slice %7 {offsets = [2, 0], sizes = [14, 3], strides = [1, 1]} : vector<16x3xf32> to vector<14x3xf32>
    %cst_47 = arith.constant dense<0.000000e+00> : vector<14x16xf32>
    %79 = tpu.matmul %78, %51, %cst_47 {dimension_numbers = #tpu.dot_dimension_numbers<[1], [0], [0], [1], [0, 0, 1, 1], [], []>} : vector<14x3xf32>, vector<3x16xf32>, vector<14x16xf32> -> vector<14x16xf32>
    %80 = arith.addf %77, %79 : vector<14x16xf32>
    %81 = vector.broadcast %52 : vector<1x16xf32> to vector<14x16xf32>
    %82 = arith.addf %80, %81 : vector<14x16xf32>
    %cst_48 = arith.constant 0.000000e+00 : f32
    %83 = vector.broadcast %cst_48 : f32 to vector<14x16xf32>
    %84 = arith.maximumf %82, %83 : vector<14x16xf32>
    %cst_49 = arith.constant 0.000000e+00 : f32
    %85 = vector.broadcast %cst_49 : f32 to vector<14x16xf32>
    %86 = vector.extract_strided_slice %5 {offsets = [0, 0], sizes = [14, 3], strides = [1, 1]} : vector<16x3xf32> to vector<14x3xf32>
    %cst_50 = arith.constant dense<0.000000e+00> : vector<14x16xf32>
    %87 = tpu.matmul %86, %35, %cst_50 {dimension_numbers = #tpu.dot_dimension_numbers<[1], [0], [0], [1], [0, 0, 1, 1], [], []>} : vector<14x3xf32>, vector<3x16xf32>, vector<14x16xf32> -> vector<14x16xf32>
    %88 = arith.addf %85, %87 : vector<14x16xf32>
    %89 = vector.extract_strided_slice %5 {offsets = [1, 0], sizes = [14, 3], strides = [1, 1]} : vector<16x3xf32> to vector<14x3xf32>
    %cst_51 = arith.constant dense<0.000000e+00> : vector<14x16xf32>
    %90 = tpu.matmul %89, %37, %cst_51 {dimension_numbers = #tpu.dot_dimension_numbers<[1], [0], [0], [1], [0, 0, 1, 1], [], []>} : vector<14x3xf32>, vector<3x16xf32>, vector<14x16xf32> -> vector<14x16xf32>
    %91 = arith.addf %88, %90 : vector<14x16xf32>
    %92 = vector.extract_strided_slice %5 {offsets = [2, 0], sizes = [14, 3], strides = [1, 1]} : vector<16x3xf32> to vector<14x3xf32>
    %cst_52 = arith.constant dense<0.000000e+00> : vector<14x16xf32>
    %93 = tpu.matmul %92, %39, %cst_52 {dimension_numbers = #tpu.dot_dimension_numbers<[1], [0], [0], [1], [0, 0, 1, 1], [], []>} : vector<14x3xf32>, vector<3x16xf32>, vector<14x16xf32> -> vector<14x16xf32>
    %94 = arith.addf %91, %93 : vector<14x16xf32>
    %95 = vector.extract_strided_slice %7 {offsets = [0, 0], sizes = [14, 3], strides = [1, 1]} : vector<16x3xf32> to vector<14x3xf32>
    %cst_53 = arith.constant dense<0.000000e+00> : vector<14x16xf32>
    %96 = tpu.matmul %95, %41, %cst_53 {dimension_numbers = #tpu.dot_dimension_numbers<[1], [0], [0], [1], [0, 0, 1, 1], [], []>} : vector<14x3xf32>, vector<3x16xf32>, vector<14x16xf32> -> vector<14x16xf32>
    %97 = arith.addf %94, %96 : vector<14x16xf32>
    %98 = vector.extract_strided_slice %7 {offsets = [1, 0], sizes = [14, 3], strides = [1, 1]} : vector<16x3xf32> to vector<14x3xf32>
    %cst_54 = arith.constant dense<0.000000e+00> : vector<14x16xf32>
    %99 = tpu.matmul %98, %43, %cst_54 {dimension_numbers = #tpu.dot_dimension_numbers<[1], [0], [0], [1], [0, 0, 1, 1], [], []>} : vector<14x3xf32>, vector<3x16xf32>, vector<14x16xf32> -> vector<14x16xf32>
    %100 = arith.addf %97, %99 : vector<14x16xf32>
    %101 = vector.extract_strided_slice %7 {offsets = [2, 0], sizes = [14, 3], strides = [1, 1]} : vector<16x3xf32> to vector<14x3xf32>
    %cst_55 = arith.constant dense<0.000000e+00> : vector<14x16xf32>
    %102 = tpu.matmul %101, %45, %cst_55 {dimension_numbers = #tpu.dot_dimension_numbers<[1], [0], [0], [1], [0, 0, 1, 1], [], []>} : vector<14x3xf32>, vector<3x16xf32>, vector<14x16xf32> -> vector<14x16xf32>
    %103 = arith.addf %100, %102 : vector<14x16xf32>
    %104 = vector.extract_strided_slice %9 {offsets = [0, 0], sizes = [14, 3], strides = [1, 1]} : vector<16x3xf32> to vector<14x3xf32>
    %cst_56 = arith.constant dense<0.000000e+00> : vector<14x16xf32>
    %105 = tpu.matmul %104, %47, %cst_56 {dimension_numbers = #tpu.dot_dimension_numbers<[1], [0], [0], [1], [0, 0, 1, 1], [], []>} : vector<14x3xf32>, vector<3x16xf32>, vector<14x16xf32> -> vector<14x16xf32>
    %106 = arith.addf %103, %105 : vector<14x16xf32>
    %107 = vector.extract_strided_slice %9 {offsets = [1, 0], sizes = [14, 3], strides = [1, 1]} : vector<16x3xf32> to vector<14x3xf32>
    %cst_57 = arith.constant dense<0.000000e+00> : vector<14x16xf32>
    %108 = tpu.matmul %107, %49, %cst_57 {dimension_numbers = #tpu.dot_dimension_numbers<[1], [0], [0], [1], [0, 0, 1, 1], [], []>} : vector<14x3xf32>, vector<3x16xf32>, vector<14x16xf32> -> vector<14x16xf32>
    %109 = arith.addf %106, %108 : vector<14x16xf32>
    %110 = vector.extract_strided_slice %9 {offsets = [2, 0], sizes = [14, 3], strides = [1, 1]} : vector<16x3xf32> to vector<14x3xf32>
    %cst_58 = arith.constant dense<0.000000e+00> : vector<14x16xf32>
    %111 = tpu.matmul %110, %51, %cst_58 {dimension_numbers = #tpu.dot_dimension_numbers<[1], [0], [0], [1], [0, 0, 1, 1], [], []>} : vector<14x3xf32>, vector<3x16xf32>, vector<14x16xf32> -> vector<14x16xf32>
    %112 = arith.addf %109, %111 : vector<14x16xf32>
    %113 = vector.broadcast %52 : vector<1x16xf32> to vector<14x16xf32>
    %114 = arith.addf %112, %113 : vector<14x16xf32>
    %cst_59 = arith.constant 0.000000e+00 : f32
    %115 = vector.broadcast %cst_59 : f32 to vector<14x16xf32>
    %116 = arith.maximumf %114, %115 : vector<14x16xf32>
    %cst_60 = arith.constant 0.000000e+00 : f32
    %117 = vector.broadcast %cst_60 : f32 to vector<14x16xf32>
    %118 = vector.extract_strided_slice %7 {offsets = [0, 0], sizes = [14, 3], strides = [1, 1]} : vector<16x3xf32> to vector<14x3xf32>
    %cst_61 = arith.constant dense<0.000000e+00> : vector<14x16xf32>
    %119 = tpu.matmul %118, %35, %cst_61 {dimension_numbers = #tpu.dot_dimension_numbers<[1], [0], [0], [1], [0, 0, 1, 1], [], []>} : vector<14x3xf32>, vector<3x16xf32>, vector<14x16xf32> -> vector<14x16xf32>
    %120 = arith.addf %117, %119 : vector<14x16xf32>
    %121 = vector.extract_strided_slice %7 {offsets = [1, 0], sizes = [14, 3], strides = [1, 1]} : vector<16x3xf32> to vector<14x3xf32>
    %cst_62 = arith.constant dense<0.000000e+00> : vector<14x16xf32>
    %122 = tpu.matmul %121, %37, %cst_62 {dimension_numbers = #tpu.dot_dimension_numbers<[1], [0], [0], [1], [0, 0, 1, 1], [], []>} : vector<14x3xf32>, vector<3x16xf32>, vector<14x16xf32> -> vector<14x16xf32>
    %123 = arith.addf %120, %122 : vector<14x16xf32>
    %124 = vector.extract_strided_slice %7 {offsets = [2, 0], sizes = [14, 3], strides = [1, 1]} : vector<16x3xf32> to vector<14x3xf32>
    %cst_63 = arith.constant dense<0.000000e+00> : vector<14x16xf32>
    %125 = tpu.matmul %124, %39, %cst_63 {dimension_numbers = #tpu.dot_dimension_numbers<[1], [0], [0], [1], [0, 0, 1, 1], [], []>} : vector<14x3xf32>, vector<3x16xf32>, vector<14x16xf32> -> vector<14x16xf32>
    %126 = arith.addf %123, %125 : vector<14x16xf32>
    %127 = vector.extract_strided_slice %9 {offsets = [0, 0], sizes = [14, 3], strides = [1, 1]} : vector<16x3xf32> to vector<14x3xf32>
    %cst_64 = arith.constant dense<0.000000e+00> : vector<14x16xf32>
    %128 = tpu.matmul %127, %41, %cst_64 {dimension_numbers = #tpu.dot_dimension_numbers<[1], [0], [0], [1], [0, 0, 1, 1], [], []>} : vector<14x3xf32>, vector<3x16xf32>, vector<14x16xf32> -> vector<14x16xf32>
    %129 = arith.addf %126, %128 : vector<14x16xf32>
    %130 = vector.extract_strided_slice %9 {offsets = [1, 0], sizes = [14, 3], strides = [1, 1]} : vector<16x3xf32> to vector<14x3xf32>
    %cst_65 = arith.constant dense<0.000000e+00> : vector<14x16xf32>
    %131 = tpu.matmul %130, %43, %cst_65 {dimension_numbers = #tpu.dot_dimension_numbers<[1], [0], [0], [1], [0, 0, 1, 1], [], []>} : vector<14x3xf32>, vector<3x16xf32>, vector<14x16xf32> -> vector<14x16xf32>
    %132 = arith.addf %129, %131 : vector<14x16xf32>
    %133 = vector.extract_strided_slice %9 {offsets = [2, 0], sizes = [14, 3], strides = [1, 1]} : vector<16x3xf32> to vector<14x3xf32>
    %cst_66 = arith.constant dense<0.000000e+00> : vector<14x16xf32>
    %134 = tpu.matmul %133, %45, %cst_66 {dimension_numbers = #tpu.dot_dimension_numbers<[1], [0], [0], [1], [0, 0, 1, 1], [], []>} : vector<14x3xf32>, vector<3x16xf32>, vector<14x16xf32> -> vector<14x16xf32>
    %135 = arith.addf %132, %134 : vector<14x16xf32>
    %136 = vector.extract_strided_slice %11 {offsets = [0, 0], sizes = [14, 3], strides = [1, 1]} : vector<16x3xf32> to vector<14x3xf32>
    %cst_67 = arith.constant dense<0.000000e+00> : vector<14x16xf32>
    %137 = tpu.matmul %136, %47, %cst_67 {dimension_numbers = #tpu.dot_dimension_numbers<[1], [0], [0], [1], [0, 0, 1, 1], [], []>} : vector<14x3xf32>, vector<3x16xf32>, vector<14x16xf32> -> vector<14x16xf32>
    %138 = arith.addf %135, %137 : vector<14x16xf32>
    %139 = vector.extract_strided_slice %11 {offsets = [1, 0], sizes = [14, 3], strides = [1, 1]} : vector<16x3xf32> to vector<14x3xf32>
    %cst_68 = arith.constant dense<0.000000e+00> : vector<14x16xf32>
    %140 = tpu.matmul %139, %49, %cst_68 {dimension_numbers = #tpu.dot_dimension_numbers<[1], [0], [0], [1], [0, 0, 1, 1], [], []>} : vector<14x3xf32>, vector<3x16xf32>, vector<14x16xf32> -> vector<14x16xf32>
    %141 = arith.addf %138, %140 : vector<14x16xf32>
    %142 = vector.extract_strided_slice %11 {offsets = [2, 0], sizes = [14, 3], strides = [1, 1]} : vector<16x3xf32> to vector<14x3xf32>
    %cst_69 = arith.constant dense<0.000000e+00> : vector<14x16xf32>
    %143 = tpu.matmul %142, %51, %cst_69 {dimension_numbers = #tpu.dot_dimension_numbers<[1], [0], [0], [1], [0, 0, 1, 1], [], []>} : vector<14x3xf32>, vector<3x16xf32>, vector<14x16xf32> -> vector<14x16xf32>
    %144 = arith.addf %141, %143 : vector<14x16xf32>
    %145 = vector.broadcast %52 : vector<1x16xf32> to vector<14x16xf32>
    %146 = arith.addf %144, %145 : vector<14x16xf32>
    %cst_70 = arith.constant 0.000000e+00 : f32
    %147 = vector.broadcast %cst_70 : f32 to vector<14x16xf32>
    %148 = arith.maximumf %146, %147 : vector<14x16xf32>
    %cst_71 = arith.constant 0.000000e+00 : f32
    %149 = vector.broadcast %cst_71 : f32 to vector<14x16xf32>
    %150 = vector.extract_strided_slice %9 {offsets = [0, 0], sizes = [14, 3], strides = [1, 1]} : vector<16x3xf32> to vector<14x3xf32>
    %cst_72 = arith.constant dense<0.000000e+00> : vector<14x16xf32>
    %151 = tpu.matmul %150, %35, %cst_72 {dimension_numbers = #tpu.dot_dimension_numbers<[1], [0], [0], [1], [0, 0, 1, 1], [], []>} : vector<14x3xf32>, vector<3x16xf32>, vector<14x16xf32> -> vector<14x16xf32>
    %152 = arith.addf %149, %151 : vector<14x16xf32>
    %153 = vector.extract_strided_slice %9 {offsets = [1, 0], sizes = [14, 3], strides = [1, 1]} : vector<16x3xf32> to vector<14x3xf32>
    %cst_73 = arith.constant dense<0.000000e+00> : vector<14x16xf32>
    %154 = tpu.matmul %153, %37, %cst_73 {dimension_numbers = #tpu.dot_dimension_numbers<[1], [0], [0], [1], [0, 0, 1, 1], [], []>} : vector<14x3xf32>, vector<3x16xf32>, vector<14x16xf32> -> vector<14x16xf32>
    %155 = arith.addf %152, %154 : vector<14x16xf32>
    %156 = vector.extract_strided_slice %9 {offsets = [2, 0], sizes = [14, 3], strides = [1, 1]} : vector<16x3xf32> to vector<14x3xf32>
    %cst_74 = arith.constant dense<0.000000e+00> : vector<14x16xf32>
    %157 = tpu.matmul %156, %39, %cst_74 {dimension_numbers = #tpu.dot_dimension_numbers<[1], [0], [0], [1], [0, 0, 1, 1], [], []>} : vector<14x3xf32>, vector<3x16xf32>, vector<14x16xf32> -> vector<14x16xf32>
    %158 = arith.addf %155, %157 : vector<14x16xf32>
    %159 = vector.extract_strided_slice %11 {offsets = [0, 0], sizes = [14, 3], strides = [1, 1]} : vector<16x3xf32> to vector<14x3xf32>
    %cst_75 = arith.constant dense<0.000000e+00> : vector<14x16xf32>
    %160 = tpu.matmul %159, %41, %cst_75 {dimension_numbers = #tpu.dot_dimension_numbers<[1], [0], [0], [1], [0, 0, 1, 1], [], []>} : vector<14x3xf32>, vector<3x16xf32>, vector<14x16xf32> -> vector<14x16xf32>
    %161 = arith.addf %158, %160 : vector<14x16xf32>
    %162 = vector.extract_strided_slice %11 {offsets = [1, 0], sizes = [14, 3], strides = [1, 1]} : vector<16x3xf32> to vector<14x3xf32>
    %cst_76 = arith.constant dense<0.000000e+00> : vector<14x16xf32>
    %163 = tpu.matmul %162, %43, %cst_76 {dimension_numbers = #tpu.dot_dimension_numbers<[1], [0], [0], [1], [0, 0, 1, 1], [], []>} : vector<14x3xf32>, vector<3x16xf32>, vector<14x16xf32> -> vector<14x16xf32>
    %164 = arith.addf %161, %163 : vector<14x16xf32>
    %165 = vector.extract_strided_slice %11 {offsets = [2, 0], sizes = [14, 3], strides = [1, 1]} : vector<16x3xf32> to vector<14x3xf32>
    %cst_77 = arith.constant dense<0.000000e+00> : vector<14x16xf32>
    %166 = tpu.matmul %165, %45, %cst_77 {dimension_numbers = #tpu.dot_dimension_numbers<[1], [0], [0], [1], [0, 0, 1, 1], [], []>} : vector<14x3xf32>, vector<3x16xf32>, vector<14x16xf32> -> vector<14x16xf32>
    %167 = arith.addf %164, %166 : vector<14x16xf32>
    %168 = vector.extract_strided_slice %13 {offsets = [0, 0], sizes = [14, 3], strides = [1, 1]} : vector<16x3xf32> to vector<14x3xf32>
    %cst_78 = arith.constant dense<0.000000e+00> : vector<14x16xf32>
    %169 = tpu.matmul %168, %47, %cst_78 {dimension_numbers = #tpu.dot_dimension_numbers<[1], [0], [0], [1], [0, 0, 1, 1], [], []>} : vector<14x3xf32>, vector<3x16xf32>, vector<14x16xf32> -> vector<14x16xf32>
    %170 = arith.addf %167, %169 : vector<14x16xf32>
    %171 = vector.extract_strided_slice %13 {offsets = [1, 0], sizes = [14, 3], strides = [1, 1]} : vector<16x3xf32> to vector<14x3xf32>
    %cst_79 = arith.constant dense<0.000000e+00> : vector<14x16xf32>
    %172 = tpu.matmul %171, %49, %cst_79 {dimension_numbers = #tpu.dot_dimension_numbers<[1], [0], [0], [1], [0, 0, 1, 1], [], []>} : vector<14x3xf32>, vector<3x16xf32>, vector<14x16xf32> -> vector<14x16xf32>
    %173 = arith.addf %170, %172 : vector<14x16xf32>
    %174 = vector.extract_strided_slice %13 {offsets = [2, 0], sizes = [14, 3], strides = [1, 1]} : vector<16x3xf32> to vector<14x3xf32>
    %cst_80 = arith.constant dense<0.000000e+00> : vector<14x16xf32>
    %175 = tpu.matmul %174, %51, %cst_80 {dimension_numbers = #tpu.dot_dimension_numbers<[1], [0], [0], [1], [0, 0, 1, 1], [], []>} : vector<14x3xf32>, vector<3x16xf32>, vector<14x16xf32> -> vector<14x16xf32>
    %176 = arith.addf %173, %175 : vector<14x16xf32>
    %177 = vector.broadcast %52 : vector<1x16xf32> to vector<14x16xf32>
    %178 = arith.addf %176, %177 : vector<14x16xf32>
    %cst_81 = arith.constant 0.000000e+00 : f32
    %179 = vector.broadcast %cst_81 : f32 to vector<14x16xf32>
    %180 = arith.maximumf %178, %179 : vector<14x16xf32>
    %cst_82 = arith.constant 0.000000e+00 : f32
    %181 = vector.broadcast %cst_82 : f32 to vector<14x16xf32>
    %182 = vector.extract_strided_slice %11 {offsets = [0, 0], sizes = [14, 3], strides = [1, 1]} : vector<16x3xf32> to vector<14x3xf32>
    %cst_83 = arith.constant dense<0.000000e+00> : vector<14x16xf32>
    %183 = tpu.matmul %182, %35, %cst_83 {dimension_numbers = #tpu.dot_dimension_numbers<[1], [0], [0], [1], [0, 0, 1, 1], [], []>} : vector<14x3xf32>, vector<3x16xf32>, vector<14x16xf32> -> vector<14x16xf32>
    %184 = arith.addf %181, %183 : vector<14x16xf32>
    %185 = vector.extract_strided_slice %11 {offsets = [1, 0], sizes = [14, 3], strides = [1, 1]} : vector<16x3xf32> to vector<14x3xf32>
    %cst_84 = arith.constant dense<0.000000e+00> : vector<14x16xf32>
    %186 = tpu.matmul %185, %37, %cst_84 {dimension_numbers = #tpu.dot_dimension_numbers<[1], [0], [0], [1], [0, 0, 1, 1], [], []>} : vector<14x3xf32>, vector<3x16xf32>, vector<14x16xf32> -> vector<14x16xf32>
    %187 = arith.addf %184, %186 : vector<14x16xf32>
    %188 = vector.extract_strided_slice %11 {offsets = [2, 0], sizes = [14, 3], strides = [1, 1]} : vector<16x3xf32> to vector<14x3xf32>
    %cst_85 = arith.constant dense<0.000000e+00> : vector<14x16xf32>
    %189 = tpu.matmul %188, %39, %cst_85 {dimension_numbers = #tpu.dot_dimension_numbers<[1], [0], [0], [1], [0, 0, 1, 1], [], []>} : vector<14x3xf32>, vector<3x16xf32>, vector<14x16xf32> -> vector<14x16xf32>
    %190 = arith.addf %187, %189 : vector<14x16xf32>
    %191 = vector.extract_strided_slice %13 {offsets = [0, 0], sizes = [14, 3], strides = [1, 1]} : vector<16x3xf32> to vector<14x3xf32>
    %cst_86 = arith.constant dense<0.000000e+00> : vector<14x16xf32>
    %192 = tpu.matmul %191, %41, %cst_86 {dimension_numbers = #tpu.dot_dimension_numbers<[1], [0], [0], [1], [0, 0, 1, 1], [], []>} : vector<14x3xf32>, vector<3x16xf32>, vector<14x16xf32> -> vector<14x16xf32>
    %193 = arith.addf %190, %192 : vector<14x16xf32>
    %194 = vector.extract_strided_slice %13 {offsets = [1, 0], sizes = [14, 3], strides = [1, 1]} : vector<16x3xf32> to vector<14x3xf32>
    %cst_87 = arith.constant dense<0.000000e+00> : vector<14x16xf32>
    %195 = tpu.matmul %194, %43, %cst_87 {dimension_numbers = #tpu.dot_dimension_numbers<[1], [0], [0], [1], [0, 0, 1, 1], [], []>} : vector<14x3xf32>, vector<3x16xf32>, vector<14x16xf32> -> vector<14x16xf32>
    %196 = arith.addf %193, %195 : vector<14x16xf32>
    %197 = vector.extract_strided_slice %13 {offsets = [2, 0], sizes = [14, 3], strides = [1, 1]} : vector<16x3xf32> to vector<14x3xf32>
    %cst_88 = arith.constant dense<0.000000e+00> : vector<14x16xf32>
    %198 = tpu.matmul %197, %45, %cst_88 {dimension_numbers = #tpu.dot_dimension_numbers<[1], [0], [0], [1], [0, 0, 1, 1], [], []>} : vector<14x3xf32>, vector<3x16xf32>, vector<14x16xf32> -> vector<14x16xf32>
    %199 = arith.addf %196, %198 : vector<14x16xf32>
    %200 = vector.extract_strided_slice %15 {offsets = [0, 0], sizes = [14, 3], strides = [1, 1]} : vector<16x3xf32> to vector<14x3xf32>
    %cst_89 = arith.constant dense<0.000000e+00> : vector<14x16xf32>
    %201 = tpu.matmul %200, %47, %cst_89 {dimension_numbers = #tpu.dot_dimension_numbers<[1], [0], [0], [1], [0, 0, 1, 1], [], []>} : vector<14x3xf32>, vector<3x16xf32>, vector<14x16xf32> -> vector<14x16xf32>
    %202 = arith.addf %199, %201 : vector<14x16xf32>
    %203 = vector.extract_strided_slice %15 {offsets = [1, 0], sizes = [14, 3], strides = [1, 1]} : vector<16x3xf32> to vector<14x3xf32>
    %cst_90 = arith.constant dense<0.000000e+00> : vector<14x16xf32>
    %204 = tpu.matmul %203, %49, %cst_90 {dimension_numbers = #tpu.dot_dimension_numbers<[1], [0], [0], [1], [0, 0, 1, 1], [], []>} : vector<14x3xf32>, vector<3x16xf32>, vector<14x16xf32> -> vector<14x16xf32>
    %205 = arith.addf %202, %204 : vector<14x16xf32>
    %206 = vector.extract_strided_slice %15 {offsets = [2, 0], sizes = [14, 3], strides = [1, 1]} : vector<16x3xf32> to vector<14x3xf32>
    %cst_91 = arith.constant dense<0.000000e+00> : vector<14x16xf32>
    %207 = tpu.matmul %206, %51, %cst_91 {dimension_numbers = #tpu.dot_dimension_numbers<[1], [0], [0], [1], [0, 0, 1, 1], [], []>} : vector<14x3xf32>, vector<3x16xf32>, vector<14x16xf32> -> vector<14x16xf32>
    %208 = arith.addf %205, %207 : vector<14x16xf32>
    %209 = vector.broadcast %52 : vector<1x16xf32> to vector<14x16xf32>
    %210 = arith.addf %208, %209 : vector<14x16xf32>
    %cst_92 = arith.constant 0.000000e+00 : f32
    %211 = vector.broadcast %cst_92 : f32 to vector<14x16xf32>
    %212 = arith.maximumf %210, %211 : vector<14x16xf32>
    %cst_93 = arith.constant 0.000000e+00 : f32
    %213 = vector.broadcast %cst_93 : f32 to vector<14x16xf32>
    %214 = vector.extract_strided_slice %13 {offsets = [0, 0], sizes = [14, 3], strides = [1, 1]} : vector<16x3xf32> to vector<14x3xf32>
    %cst_94 = arith.constant dense<0.000000e+00> : vector<14x16xf32>
    %215 = tpu.matmul %214, %35, %cst_94 {dimension_numbers = #tpu.dot_dimension_numbers<[1], [0], [0], [1], [0, 0, 1, 1], [], []>} : vector<14x3xf32>, vector<3x16xf32>, vector<14x16xf32> -> vector<14x16xf32>
    %216 = arith.addf %213, %215 : vector<14x16xf32>
    %217 = vector.extract_strided_slice %13 {offsets = [1, 0], sizes = [14, 3], strides = [1, 1]} : vector<16x3xf32> to vector<14x3xf32>
    %cst_95 = arith.constant dense<0.000000e+00> : vector<14x16xf32>
    %218 = tpu.matmul %217, %37, %cst_95 {dimension_numbers = #tpu.dot_dimension_numbers<[1], [0], [0], [1], [0, 0, 1, 1], [], []>} : vector<14x3xf32>, vector<3x16xf32>, vector<14x16xf32> -> vector<14x16xf32>
    %219 = arith.addf %216, %218 : vector<14x16xf32>
    %220 = vector.extract_strided_slice %13 {offsets = [2, 0], sizes = [14, 3], strides = [1, 1]} : vector<16x3xf32> to vector<14x3xf32>
    %cst_96 = arith.constant dense<0.000000e+00> : vector<14x16xf32>
    %221 = tpu.matmul %220, %39, %cst_96 {dimension_numbers = #tpu.dot_dimension_numbers<[1], [0], [0], [1], [0, 0, 1, 1], [], []>} : vector<14x3xf32>, vector<3x16xf32>, vector<14x16xf32> -> vector<14x16xf32>
    %222 = arith.addf %219, %221 : vector<14x16xf32>
    %223 = vector.extract_strided_slice %15 {offsets = [0, 0], sizes = [14, 3], strides = [1, 1]} : vector<16x3xf32> to vector<14x3xf32>
    %cst_97 = arith.constant dense<0.000000e+00> : vector<14x16xf32>
    %224 = tpu.matmul %223, %41, %cst_97 {dimension_numbers = #tpu.dot_dimension_numbers<[1], [0], [0], [1], [0, 0, 1, 1], [], []>} : vector<14x3xf32>, vector<3x16xf32>, vector<14x16xf32> -> vector<14x16xf32>
    %225 = arith.addf %222, %224 : vector<14x16xf32>
    %226 = vector.extract_strided_slice %15 {offsets = [1, 0], sizes = [14, 3], strides = [1, 1]} : vector<16x3xf32> to vector<14x3xf32>
    %cst_98 = arith.constant dense<0.000000e+00> : vector<14x16xf32>
    %227 = tpu.matmul %226, %43, %cst_98 {dimension_numbers = #tpu.dot_dimension_numbers<[1], [0], [0], [1], [0, 0, 1, 1], [], []>} : vector<14x3xf32>, vector<3x16xf32>, vector<14x16xf32> -> vector<14x16xf32>
    %228 = arith.addf %225, %227 : vector<14x16xf32>
    %229 = vector.extract_strided_slice %15 {offsets = [2, 0], sizes = [14, 3], strides = [1, 1]} : vector<16x3xf32> to vector<14x3xf32>
    %cst_99 = arith.constant dense<0.000000e+00> : vector<14x16xf32>
    %230 = tpu.matmul %229, %45, %cst_99 {dimension_numbers = #tpu.dot_dimension_numbers<[1], [0], [0], [1], [0, 0, 1, 1], [], []>} : vector<14x3xf32>, vector<3x16xf32>, vector<14x16xf32> -> vector<14x16xf32>
    %231 = arith.addf %228, %230 : vector<14x16xf32>
    %232 = vector.extract_strided_slice %17 {offsets = [0, 0], sizes = [14, 3], strides = [1, 1]} : vector<16x3xf32> to vector<14x3xf32>
    %cst_100 = arith.constant dense<0.000000e+00> : vector<14x16xf32>
    %233 = tpu.matmul %232, %47, %cst_100 {dimension_numbers = #tpu.dot_dimension_numbers<[1], [0], [0], [1], [0, 0, 1, 1], [], []>} : vector<14x3xf32>, vector<3x16xf32>, vector<14x16xf32> -> vector<14x16xf32>
    %234 = arith.addf %231, %233 : vector<14x16xf32>
    %235 = vector.extract_strided_slice %17 {offsets = [1, 0], sizes = [14, 3], strides = [1, 1]} : vector<16x3xf32> to vector<14x3xf32>
    %cst_101 = arith.constant dense<0.000000e+00> : vector<14x16xf32>
    %236 = tpu.matmul %235, %49, %cst_101 {dimension_numbers = #tpu.dot_dimension_numbers<[1], [0], [0], [1], [0, 0, 1, 1], [], []>} : vector<14x3xf32>, vector<3x16xf32>, vector<14x16xf32> -> vector<14x16xf32>
    %237 = arith.addf %234, %236 : vector<14x16xf32>
    %238 = vector.extract_strided_slice %17 {offsets = [2, 0], sizes = [14, 3], strides = [1, 1]} : vector<16x3xf32> to vector<14x3xf32>
    %cst_102 = arith.constant dense<0.000000e+00> : vector<14x16xf32>
    %239 = tpu.matmul %238, %51, %cst_102 {dimension_numbers = #tpu.dot_dimension_numbers<[1], [0], [0], [1], [0, 0, 1, 1], [], []>} : vector<14x3xf32>, vector<3x16xf32>, vector<14x16xf32> -> vector<14x16xf32>
    %240 = arith.addf %237, %239 : vector<14x16xf32>
    %241 = vector.broadcast %52 : vector<1x16xf32> to vector<14x16xf32>
    %242 = arith.addf %240, %241 : vector<14x16xf32>
    %cst_103 = arith.constant 0.000000e+00 : f32
    %243 = vector.broadcast %cst_103 : f32 to vector<14x16xf32>
    %244 = arith.maximumf %242, %243 : vector<14x16xf32>
    %cst_104 = arith.constant 0.000000e+00 : f32
    %245 = vector.broadcast %cst_104 : f32 to vector<14x16xf32>
    %246 = vector.extract_strided_slice %15 {offsets = [0, 0], sizes = [14, 3], strides = [1, 1]} : vector<16x3xf32> to vector<14x3xf32>
    %cst_105 = arith.constant dense<0.000000e+00> : vector<14x16xf32>
    %247 = tpu.matmul %246, %35, %cst_105 {dimension_numbers = #tpu.dot_dimension_numbers<[1], [0], [0], [1], [0, 0, 1, 1], [], []>} : vector<14x3xf32>, vector<3x16xf32>, vector<14x16xf32> -> vector<14x16xf32>
    %248 = arith.addf %245, %247 : vector<14x16xf32>
    %249 = vector.extract_strided_slice %15 {offsets = [1, 0], sizes = [14, 3], strides = [1, 1]} : vector<16x3xf32> to vector<14x3xf32>
    %cst_106 = arith.constant dense<0.000000e+00> : vector<14x16xf32>
    %250 = tpu.matmul %249, %37, %cst_106 {dimension_numbers = #tpu.dot_dimension_numbers<[1], [0], [0], [1], [0, 0, 1, 1], [], []>} : vector<14x3xf32>, vector<3x16xf32>, vector<14x16xf32> -> vector<14x16xf32>
    %251 = arith.addf %248, %250 : vector<14x16xf32>
    %252 = vector.extract_strided_slice %15 {offsets = [2, 0], sizes = [14, 3], strides = [1, 1]} : vector<16x3xf32> to vector<14x3xf32>
    %cst_107 = arith.constant dense<0.000000e+00> : vector<14x16xf32>
    %253 = tpu.matmul %252, %39, %cst_107 {dimension_numbers = #tpu.dot_dimension_numbers<[1], [0], [0], [1], [0, 0, 1, 1], [], []>} : vector<14x3xf32>, vector<3x16xf32>, vector<14x16xf32> -> vector<14x16xf32>
    %254 = arith.addf %251, %253 : vector<14x16xf32>
    %255 = vector.extract_strided_slice %17 {offsets = [0, 0], sizes = [14, 3], strides = [1, 1]} : vector<16x3xf32> to vector<14x3xf32>
    %cst_108 = arith.constant dense<0.000000e+00> : vector<14x16xf32>
    %256 = tpu.matmul %255, %41, %cst_108 {dimension_numbers = #tpu.dot_dimension_numbers<[1], [0], [0], [1], [0, 0, 1, 1], [], []>} : vector<14x3xf32>, vector<3x16xf32>, vector<14x16xf32> -> vector<14x16xf32>
    %257 = arith.addf %254, %256 : vector<14x16xf32>
    %258 = vector.extract_strided_slice %17 {offsets = [1, 0], sizes = [14, 3], strides = [1, 1]} : vector<16x3xf32> to vector<14x3xf32>
    %cst_109 = arith.constant dense<0.000000e+00> : vector<14x16xf32>
    %259 = tpu.matmul %258, %43, %cst_109 {dimension_numbers = #tpu.dot_dimension_numbers<[1], [0], [0], [1], [0, 0, 1, 1], [], []>} : vector<14x3xf32>, vector<3x16xf32>, vector<14x16xf32> -> vector<14x16xf32>
    %260 = arith.addf %257, %259 : vector<14x16xf32>
    %261 = vector.extract_strided_slice %17 {offsets = [2, 0], sizes = [14, 3], strides = [1, 1]} : vector<16x3xf32> to vector<14x3xf32>
    %cst_110 = arith.constant dense<0.000000e+00> : vector<14x16xf32>
    %262 = tpu.matmul %261, %45, %cst_110 {dimension_numbers = #tpu.dot_dimension_numbers<[1], [0], [0], [1], [0, 0, 1, 1], [], []>} : vector<14x3xf32>, vector<3x16xf32>, vector<14x16xf32> -> vector<14x16xf32>
    %263 = arith.addf %260, %262 : vector<14x16xf32>
    %264 = vector.extract_strided_slice %19 {offsets = [0, 0], sizes = [14, 3], strides = [1, 1]} : vector<16x3xf32> to vector<14x3xf32>
    %cst_111 = arith.constant dense<0.000000e+00> : vector<14x16xf32>
    %265 = tpu.matmul %264, %47, %cst_111 {dimension_numbers = #tpu.dot_dimension_numbers<[1], [0], [0], [1], [0, 0, 1, 1], [], []>} : vector<14x3xf32>, vector<3x16xf32>, vector<14x16xf32> -> vector<14x16xf32>
    %266 = arith.addf %263, %265 : vector<14x16xf32>
    %267 = vector.extract_strided_slice %19 {offsets = [1, 0], sizes = [14, 3], strides = [1, 1]} : vector<16x3xf32> to vector<14x3xf32>
    %cst_112 = arith.constant dense<0.000000e+00> : vector<14x16xf32>
    %268 = tpu.matmul %267, %49, %cst_112 {dimension_numbers = #tpu.dot_dimension_numbers<[1], [0], [0], [1], [0, 0, 1, 1], [], []>} : vector<14x3xf32>, vector<3x16xf32>, vector<14x16xf32> -> vector<14x16xf32>
    %269 = arith.addf %266, %268 : vector<14x16xf32>
    %270 = vector.extract_strided_slice %19 {offsets = [2, 0], sizes = [14, 3], strides = [1, 1]} : vector<16x3xf32> to vector<14x3xf32>
    %cst_113 = arith.constant dense<0.000000e+00> : vector<14x16xf32>
    %271 = tpu.matmul %270, %51, %cst_113 {dimension_numbers = #tpu.dot_dimension_numbers<[1], [0], [0], [1], [0, 0, 1, 1], [], []>} : vector<14x3xf32>, vector<3x16xf32>, vector<14x16xf32> -> vector<14x16xf32>
    %272 = arith.addf %269, %271 : vector<14x16xf32>
    %273 = vector.broadcast %52 : vector<1x16xf32> to vector<14x16xf32>
    %274 = arith.addf %272, %273 : vector<14x16xf32>
    %cst_114 = arith.constant 0.000000e+00 : f32
    %275 = vector.broadcast %cst_114 : f32 to vector<14x16xf32>
    %276 = arith.maximumf %274, %275 : vector<14x16xf32>
    %cst_115 = arith.constant 0.000000e+00 : f32
    %277 = vector.broadcast %cst_115 : f32 to vector<14x16xf32>
    %278 = vector.extract_strided_slice %17 {offsets = [0, 0], sizes = [14, 3], strides = [1, 1]} : vector<16x3xf32> to vector<14x3xf32>
    %cst_116 = arith.constant dense<0.000000e+00> : vector<14x16xf32>
    %279 = tpu.matmul %278, %35, %cst_116 {dimension_numbers = #tpu.dot_dimension_numbers<[1], [0], [0], [1], [0, 0, 1, 1], [], []>} : vector<14x3xf32>, vector<3x16xf32>, vector<14x16xf32> -> vector<14x16xf32>
    %280 = arith.addf %277, %279 : vector<14x16xf32>
    %281 = vector.extract_strided_slice %17 {offsets = [1, 0], sizes = [14, 3], strides = [1, 1]} : vector<16x3xf32> to vector<14x3xf32>
    %cst_117 = arith.constant dense<0.000000e+00> : vector<14x16xf32>
    %282 = tpu.matmul %281, %37, %cst_117 {dimension_numbers = #tpu.dot_dimension_numbers<[1], [0], [0], [1], [0, 0, 1, 1], [], []>} : vector<14x3xf32>, vector<3x16xf32>, vector<14x16xf32> -> vector<14x16xf32>
    %283 = arith.addf %280, %282 : vector<14x16xf32>
    %284 = vector.extract_strided_slice %17 {offsets = [2, 0], sizes = [14, 3], strides = [1, 1]} : vector<16x3xf32> to vector<14x3xf32>
    %cst_118 = arith.constant dense<0.000000e+00> : vector<14x16xf32>
    %285 = tpu.matmul %284, %39, %cst_118 {dimension_numbers = #tpu.dot_dimension_numbers<[1], [0], [0], [1], [0, 0, 1, 1], [], []>} : vector<14x3xf32>, vector<3x16xf32>, vector<14x16xf32> -> vector<14x16xf32>
    %286 = arith.addf %283, %285 : vector<14x16xf32>
    %287 = vector.extract_strided_slice %19 {offsets = [0, 0], sizes = [14, 3], strides = [1, 1]} : vector<16x3xf32> to vector<14x3xf32>
    %cst_119 = arith.constant dense<0.000000e+00> : vector<14x16xf32>
    %288 = tpu.matmul %287, %41, %cst_119 {dimension_numbers = #tpu.dot_dimension_numbers<[1], [0], [0], [1], [0, 0, 1, 1], [], []>} : vector<14x3xf32>, vector<3x16xf32>, vector<14x16xf32> -> vector<14x16xf32>
    %289 = arith.addf %286, %288 : vector<14x16xf32>
    %290 = vector.extract_strided_slice %19 {offsets = [1, 0], sizes = [14, 3], strides = [1, 1]} : vector<16x3xf32> to vector<14x3xf32>
    %cst_120 = arith.constant dense<0.000000e+00> : vector<14x16xf32>
    %291 = tpu.matmul %290, %43, %cst_120 {dimension_numbers = #tpu.dot_dimension_numbers<[1], [0], [0], [1], [0, 0, 1, 1], [], []>} : vector<14x3xf32>, vector<3x16xf32>, vector<14x16xf32> -> vector<14x16xf32>
    %292 = arith.addf %289, %291 : vector<14x16xf32>
    %293 = vector.extract_strided_slice %19 {offsets = [2, 0], sizes = [14, 3], strides = [1, 1]} : vector<16x3xf32> to vector<14x3xf32>
    %cst_121 = arith.constant dense<0.000000e+00> : vector<14x16xf32>
    %294 = tpu.matmul %293, %45, %cst_121 {dimension_numbers = #tpu.dot_dimension_numbers<[1], [0], [0], [1], [0, 0, 1, 1], [], []>} : vector<14x3xf32>, vector<3x16xf32>, vector<14x16xf32> -> vector<14x16xf32>
    %295 = arith.addf %292, %294 : vector<14x16xf32>
    %296 = vector.extract_strided_slice %21 {offsets = [0, 0], sizes = [14, 3], strides = [1, 1]} : vector<16x3xf32> to vector<14x3xf32>
    %cst_122 = arith.constant dense<0.000000e+00> : vector<14x16xf32>
    %297 = tpu.matmul %296, %47, %cst_122 {dimension_numbers = #tpu.dot_dimension_numbers<[1], [0], [0], [1], [0, 0, 1, 1], [], []>} : vector<14x3xf32>, vector<3x16xf32>, vector<14x16xf32> -> vector<14x16xf32>
    %298 = arith.addf %295, %297 : vector<14x16xf32>
    %299 = vector.extract_strided_slice %21 {offsets = [1, 0], sizes = [14, 3], strides = [1, 1]} : vector<16x3xf32> to vector<14x3xf32>
    %cst_123 = arith.constant dense<0.000000e+00> : vector<14x16xf32>
    %300 = tpu.matmul %299, %49, %cst_123 {dimension_numbers = #tpu.dot_dimension_numbers<[1], [0], [0], [1], [0, 0, 1, 1], [], []>} : vector<14x3xf32>, vector<3x16xf32>, vector<14x16xf32> -> vector<14x16xf32>
    %301 = arith.addf %298, %300 : vector<14x16xf32>
    %302 = vector.extract_strided_slice %21 {offsets = [2, 0], sizes = [14, 3], strides = [1, 1]} : vector<16x3xf32> to vector<14x3xf32>
    %cst_124 = arith.constant dense<0.000000e+00> : vector<14x16xf32>
    %303 = tpu.matmul %302, %51, %cst_124 {dimension_numbers = #tpu.dot_dimension_numbers<[1], [0], [0], [1], [0, 0, 1, 1], [], []>} : vector<14x3xf32>, vector<3x16xf32>, vector<14x16xf32> -> vector<14x16xf32>
    %304 = arith.addf %301, %303 : vector<14x16xf32>
    %305 = vector.broadcast %52 : vector<1x16xf32> to vector<14x16xf32>
    %306 = arith.addf %304, %305 : vector<14x16xf32>
    %cst_125 = arith.constant 0.000000e+00 : f32
    %307 = vector.broadcast %cst_125 : f32 to vector<14x16xf32>
    %308 = arith.maximumf %306, %307 : vector<14x16xf32>
    %cst_126 = arith.constant 0.000000e+00 : f32
    %309 = vector.broadcast %cst_126 : f32 to vector<14x16xf32>
    %310 = vector.extract_strided_slice %19 {offsets = [0, 0], sizes = [14, 3], strides = [1, 1]} : vector<16x3xf32> to vector<14x3xf32>
    %cst_127 = arith.constant dense<0.000000e+00> : vector<14x16xf32>
    %311 = tpu.matmul %310, %35, %cst_127 {dimension_numbers = #tpu.dot_dimension_numbers<[1], [0], [0], [1], [0, 0, 1, 1], [], []>} : vector<14x3xf32>, vector<3x16xf32>, vector<14x16xf32> -> vector<14x16xf32>
    %312 = arith.addf %309, %311 : vector<14x16xf32>
    %313 = vector.extract_strided_slice %19 {offsets = [1, 0], sizes = [14, 3], strides = [1, 1]} : vector<16x3xf32> to vector<14x3xf32>
    %cst_128 = arith.constant dense<0.000000e+00> : vector<14x16xf32>
    %314 = tpu.matmul %313, %37, %cst_128 {dimension_numbers = #tpu.dot_dimension_numbers<[1], [0], [0], [1], [0, 0, 1, 1], [], []>} : vector<14x3xf32>, vector<3x16xf32>, vector<14x16xf32> -> vector<14x16xf32>
    %315 = arith.addf %312, %314 : vector<14x16xf32>
    %316 = vector.extract_strided_slice %19 {offsets = [2, 0], sizes = [14, 3], strides = [1, 1]} : vector<16x3xf32> to vector<14x3xf32>
    %cst_129 = arith.constant dense<0.000000e+00> : vector<14x16xf32>
    %317 = tpu.matmul %316, %39, %cst_129 {dimension_numbers = #tpu.dot_dimension_numbers<[1], [0], [0], [1], [0, 0, 1, 1], [], []>} : vector<14x3xf32>, vector<3x16xf32>, vector<14x16xf32> -> vector<14x16xf32>
    %318 = arith.addf %315, %317 : vector<14x16xf32>
    %319 = vector.extract_strided_slice %21 {offsets = [0, 0], sizes = [14, 3], strides = [1, 1]} : vector<16x3xf32> to vector<14x3xf32>
    %cst_130 = arith.constant dense<0.000000e+00> : vector<14x16xf32>
    %320 = tpu.matmul %319, %41, %cst_130 {dimension_numbers = #tpu.dot_dimension_numbers<[1], [0], [0], [1], [0, 0, 1, 1], [], []>} : vector<14x3xf32>, vector<3x16xf32>, vector<14x16xf32> -> vector<14x16xf32>
    %321 = arith.addf %318, %320 : vector<14x16xf32>
    %322 = vector.extract_strided_slice %21 {offsets = [1, 0], sizes = [14, 3], strides = [1, 1]} : vector<16x3xf32> to vector<14x3xf32>
    %cst_131 = arith.constant dense<0.000000e+00> : vector<14x16xf32>
    %323 = tpu.matmul %322, %43, %cst_131 {dimension_numbers = #tpu.dot_dimension_numbers<[1], [0], [0], [1], [0, 0, 1, 1], [], []>} : vector<14x3xf32>, vector<3x16xf32>, vector<14x16xf32> -> vector<14x16xf32>
    %324 = arith.addf %321, %323 : vector<14x16xf32>
    %325 = vector.extract_strided_slice %21 {offsets = [2, 0], sizes = [14, 3], strides = [1, 1]} : vector<16x3xf32> to vector<14x3xf32>
    %cst_132 = arith.constant dense<0.000000e+00> : vector<14x16xf32>
    %326 = tpu.matmul %325, %45, %cst_132 {dimension_numbers = #tpu.dot_dimension_numbers<[1], [0], [0], [1], [0, 0, 1, 1], [], []>} : vector<14x3xf32>, vector<3x16xf32>, vector<14x16xf32> -> vector<14x16xf32>
    %327 = arith.addf %324, %326 : vector<14x16xf32>
    %328 = vector.extract_strided_slice %23 {offsets = [0, 0], sizes = [14, 3], strides = [1, 1]} : vector<16x3xf32> to vector<14x3xf32>
    %cst_133 = arith.constant dense<0.000000e+00> : vector<14x16xf32>
    %329 = tpu.matmul %328, %47, %cst_133 {dimension_numbers = #tpu.dot_dimension_numbers<[1], [0], [0], [1], [0, 0, 1, 1], [], []>} : vector<14x3xf32>, vector<3x16xf32>, vector<14x16xf32> -> vector<14x16xf32>
    %330 = arith.addf %327, %329 : vector<14x16xf32>
    %331 = vector.extract_strided_slice %23 {offsets = [1, 0], sizes = [14, 3], strides = [1, 1]} : vector<16x3xf32> to vector<14x3xf32>
    %cst_134 = arith.constant dense<0.000000e+00> : vector<14x16xf32>
    %332 = tpu.matmul %331, %49, %cst_134 {dimension_numbers = #tpu.dot_dimension_numbers<[1], [0], [0], [1], [0, 0, 1, 1], [], []>} : vector<14x3xf32>, vector<3x16xf32>, vector<14x16xf32> -> vector<14x16xf32>
    %333 = arith.addf %330, %332 : vector<14x16xf32>
    %334 = vector.extract_strided_slice %23 {offsets = [2, 0], sizes = [14, 3], strides = [1, 1]} : vector<16x3xf32> to vector<14x3xf32>
    %cst_135 = arith.constant dense<0.000000e+00> : vector<14x16xf32>
    %335 = tpu.matmul %334, %51, %cst_135 {dimension_numbers = #tpu.dot_dimension_numbers<[1], [0], [0], [1], [0, 0, 1, 1], [], []>} : vector<14x3xf32>, vector<3x16xf32>, vector<14x16xf32> -> vector<14x16xf32>
    %336 = arith.addf %333, %335 : vector<14x16xf32>
    %337 = vector.broadcast %52 : vector<1x16xf32> to vector<14x16xf32>
    %338 = arith.addf %336, %337 : vector<14x16xf32>
    %cst_136 = arith.constant 0.000000e+00 : f32
    %339 = vector.broadcast %cst_136 : f32 to vector<14x16xf32>
    %340 = arith.maximumf %338, %339 : vector<14x16xf32>
    %cst_137 = arith.constant 0.000000e+00 : f32
    %341 = vector.broadcast %cst_137 : f32 to vector<14x16xf32>
    %342 = vector.extract_strided_slice %21 {offsets = [0, 0], sizes = [14, 3], strides = [1, 1]} : vector<16x3xf32> to vector<14x3xf32>
    %cst_138 = arith.constant dense<0.000000e+00> : vector<14x16xf32>
    %343 = tpu.matmul %342, %35, %cst_138 {dimension_numbers = #tpu.dot_dimension_numbers<[1], [0], [0], [1], [0, 0, 1, 1], [], []>} : vector<14x3xf32>, vector<3x16xf32>, vector<14x16xf32> -> vector<14x16xf32>
    %344 = arith.addf %341, %343 : vector<14x16xf32>
    %345 = vector.extract_strided_slice %21 {offsets = [1, 0], sizes = [14, 3], strides = [1, 1]} : vector<16x3xf32> to vector<14x3xf32>
    %cst_139 = arith.constant dense<0.000000e+00> : vector<14x16xf32>
    %346 = tpu.matmul %345, %37, %cst_139 {dimension_numbers = #tpu.dot_dimension_numbers<[1], [0], [0], [1], [0, 0, 1, 1], [], []>} : vector<14x3xf32>, vector<3x16xf32>, vector<14x16xf32> -> vector<14x16xf32>
    %347 = arith.addf %344, %346 : vector<14x16xf32>
    %348 = vector.extract_strided_slice %21 {offsets = [2, 0], sizes = [14, 3], strides = [1, 1]} : vector<16x3xf32> to vector<14x3xf32>
    %cst_140 = arith.constant dense<0.000000e+00> : vector<14x16xf32>
    %349 = tpu.matmul %348, %39, %cst_140 {dimension_numbers = #tpu.dot_dimension_numbers<[1], [0], [0], [1], [0, 0, 1, 1], [], []>} : vector<14x3xf32>, vector<3x16xf32>, vector<14x16xf32> -> vector<14x16xf32>
    %350 = arith.addf %347, %349 : vector<14x16xf32>
    %351 = vector.extract_strided_slice %23 {offsets = [0, 0], sizes = [14, 3], strides = [1, 1]} : vector<16x3xf32> to vector<14x3xf32>
    %cst_141 = arith.constant dense<0.000000e+00> : vector<14x16xf32>
    %352 = tpu.matmul %351, %41, %cst_141 {dimension_numbers = #tpu.dot_dimension_numbers<[1], [0], [0], [1], [0, 0, 1, 1], [], []>} : vector<14x3xf32>, vector<3x16xf32>, vector<14x16xf32> -> vector<14x16xf32>
    %353 = arith.addf %350, %352 : vector<14x16xf32>
    %354 = vector.extract_strided_slice %23 {offsets = [1, 0], sizes = [14, 3], strides = [1, 1]} : vector<16x3xf32> to vector<14x3xf32>
    %cst_142 = arith.constant dense<0.000000e+00> : vector<14x16xf32>
    %355 = tpu.matmul %354, %43, %cst_142 {dimension_numbers = #tpu.dot_dimension_numbers<[1], [0], [0], [1], [0, 0, 1, 1], [], []>} : vector<14x3xf32>, vector<3x16xf32>, vector<14x16xf32> -> vector<14x16xf32>
    %356 = arith.addf %353, %355 : vector<14x16xf32>
    %357 = vector.extract_strided_slice %23 {offsets = [2, 0], sizes = [14, 3], strides = [1, 1]} : vector<16x3xf32> to vector<14x3xf32>
    %cst_143 = arith.constant dense<0.000000e+00> : vector<14x16xf32>
    %358 = tpu.matmul %357, %45, %cst_143 {dimension_numbers = #tpu.dot_dimension_numbers<[1], [0], [0], [1], [0, 0, 1, 1], [], []>} : vector<14x3xf32>, vector<3x16xf32>, vector<14x16xf32> -> vector<14x16xf32>
    %359 = arith.addf %356, %358 : vector<14x16xf32>
    %360 = vector.extract_strided_slice %25 {offsets = [0, 0], sizes = [14, 3], strides = [1, 1]} : vector<16x3xf32> to vector<14x3xf32>
    %cst_144 = arith.constant dense<0.000000e+00> : vector<14x16xf32>
    %361 = tpu.matmul %360, %47, %cst_144 {dimension_numbers = #tpu.dot_dimension_numbers<[1], [0], [0], [1], [0, 0, 1, 1], [], []>} : vector<14x3xf32>, vector<3x16xf32>, vector<14x16xf32> -> vector<14x16xf32>
    %362 = arith.addf %359, %361 : vector<14x16xf32>
    %363 = vector.extract_strided_slice %25 {offsets = [1, 0], sizes = [14, 3], strides = [1, 1]} : vector<16x3xf32> to vector<14x3xf32>
    %cst_145 = arith.constant dense<0.000000e+00> : vector<14x16xf32>
    %364 = tpu.matmul %363, %49, %cst_145 {dimension_numbers = #tpu.dot_dimension_numbers<[1], [0], [0], [1], [0, 0, 1, 1], [], []>} : vector<14x3xf32>, vector<3x16xf32>, vector<14x16xf32> -> vector<14x16xf32>
    %365 = arith.addf %362, %364 : vector<14x16xf32>
    %366 = vector.extract_strided_slice %25 {offsets = [2, 0], sizes = [14, 3], strides = [1, 1]} : vector<16x3xf32> to vector<14x3xf32>
    %cst_146 = arith.constant dense<0.000000e+00> : vector<14x16xf32>
    %367 = tpu.matmul %366, %51, %cst_146 {dimension_numbers = #tpu.dot_dimension_numbers<[1], [0], [0], [1], [0, 0, 1, 1], [], []>} : vector<14x3xf32>, vector<3x16xf32>, vector<14x16xf32> -> vector<14x16xf32>
    %368 = arith.addf %365, %367 : vector<14x16xf32>
    %369 = vector.broadcast %52 : vector<1x16xf32> to vector<14x16xf32>
    %370 = arith.addf %368, %369 : vector<14x16xf32>
    %cst_147 = arith.constant 0.000000e+00 : f32
    %371 = vector.broadcast %cst_147 : f32 to vector<14x16xf32>
    %372 = arith.maximumf %370, %371 : vector<14x16xf32>
    %cst_148 = arith.constant 0.000000e+00 : f32
    %373 = vector.broadcast %cst_148 : f32 to vector<14x16xf32>
    %374 = vector.extract_strided_slice %23 {offsets = [0, 0], sizes = [14, 3], strides = [1, 1]} : vector<16x3xf32> to vector<14x3xf32>
    %cst_149 = arith.constant dense<0.000000e+00> : vector<14x16xf32>
    %375 = tpu.matmul %374, %35, %cst_149 {dimension_numbers = #tpu.dot_dimension_numbers<[1], [0], [0], [1], [0, 0, 1, 1], [], []>} : vector<14x3xf32>, vector<3x16xf32>, vector<14x16xf32> -> vector<14x16xf32>
    %376 = arith.addf %373, %375 : vector<14x16xf32>
    %377 = vector.extract_strided_slice %23 {offsets = [1, 0], sizes = [14, 3], strides = [1, 1]} : vector<16x3xf32> to vector<14x3xf32>
    %cst_150 = arith.constant dense<0.000000e+00> : vector<14x16xf32>
    %378 = tpu.matmul %377, %37, %cst_150 {dimension_numbers = #tpu.dot_dimension_numbers<[1], [0], [0], [1], [0, 0, 1, 1], [], []>} : vector<14x3xf32>, vector<3x16xf32>, vector<14x16xf32> -> vector<14x16xf32>
    %379 = arith.addf %376, %378 : vector<14x16xf32>
    %380 = vector.extract_strided_slice %23 {offsets = [2, 0], sizes = [14, 3], strides = [1, 1]} : vector<16x3xf32> to vector<14x3xf32>
    %cst_151 = arith.constant dense<0.000000e+00> : vector<14x16xf32>
    %381 = tpu.matmul %380, %39, %cst_151 {dimension_numbers = #tpu.dot_dimension_numbers<[1], [0], [0], [1], [0, 0, 1, 1], [], []>} : vector<14x3xf32>, vector<3x16xf32>, vector<14x16xf32> -> vector<14x16xf32>
    %382 = arith.addf %379, %381 : vector<14x16xf32>
    %383 = vector.extract_strided_slice %25 {offsets = [0, 0], sizes = [14, 3], strides = [1, 1]} : vector<16x3xf32> to vector<14x3xf32>
    %cst_152 = arith.constant dense<0.000000e+00> : vector<14x16xf32>
    %384 = tpu.matmul %383, %41, %cst_152 {dimension_numbers = #tpu.dot_dimension_numbers<[1], [0], [0], [1], [0, 0, 1, 1], [], []>} : vector<14x3xf32>, vector<3x16xf32>, vector<14x16xf32> -> vector<14x16xf32>
    %385 = arith.addf %382, %384 : vector<14x16xf32>
    %386 = vector.extract_strided_slice %25 {offsets = [1, 0], sizes = [14, 3], strides = [1, 1]} : vector<16x3xf32> to vector<14x3xf32>
    %cst_153 = arith.constant dense<0.000000e+00> : vector<14x16xf32>
    %387 = tpu.matmul %386, %43, %cst_153 {dimension_numbers = #tpu.dot_dimension_numbers<[1], [0], [0], [1], [0, 0, 1, 1], [], []>} : vector<14x3xf32>, vector<3x16xf32>, vector<14x16xf32> -> vector<14x16xf32>
    %388 = arith.addf %385, %387 : vector<14x16xf32>
    %389 = vector.extract_strided_slice %25 {offsets = [2, 0], sizes = [14, 3], strides = [1, 1]} : vector<16x3xf32> to vector<14x3xf32>
    %cst_154 = arith.constant dense<0.000000e+00> : vector<14x16xf32>
    %390 = tpu.matmul %389, %45, %cst_154 {dimension_numbers = #tpu.dot_dimension_numbers<[1], [0], [0], [1], [0, 0, 1, 1], [], []>} : vector<14x3xf32>, vector<3x16xf32>, vector<14x16xf32> -> vector<14x16xf32>
    %391 = arith.addf %388, %390 : vector<14x16xf32>
    %392 = vector.extract_strided_slice %27 {offsets = [0, 0], sizes = [14, 3], strides = [1, 1]} : vector<16x3xf32> to vector<14x3xf32>
    %cst_155 = arith.constant dense<0.000000e+00> : vector<14x16xf32>
    %393 = tpu.matmul %392, %47, %cst_155 {dimension_numbers = #tpu.dot_dimension_numbers<[1], [0], [0], [1], [0, 0, 1, 1], [], []>} : vector<14x3xf32>, vector<3x16xf32>, vector<14x16xf32> -> vector<14x16xf32>
    %394 = arith.addf %391, %393 : vector<14x16xf32>
    %395 = vector.extract_strided_slice %27 {offsets = [1, 0], sizes = [14, 3], strides = [1, 1]} : vector<16x3xf32> to vector<14x3xf32>
    %cst_156 = arith.constant dense<0.000000e+00> : vector<14x16xf32>
    %396 = tpu.matmul %395, %49, %cst_156 {dimension_numbers = #tpu.dot_dimension_numbers<[1], [0], [0], [1], [0, 0, 1, 1], [], []>} : vector<14x3xf32>, vector<3x16xf32>, vector<14x16xf32> -> vector<14x16xf32>
    %397 = arith.addf %394, %396 : vector<14x16xf32>
    %398 = vector.extract_strided_slice %27 {offsets = [2, 0], sizes = [14, 3], strides = [1, 1]} : vector<16x3xf32> to vector<14x3xf32>
    %cst_157 = arith.constant dense<0.000000e+00> : vector<14x16xf32>
    %399 = tpu.matmul %398, %51, %cst_157 {dimension_numbers = #tpu.dot_dimension_numbers<[1], [0], [0], [1], [0, 0, 1, 1], [], []>} : vector<14x3xf32>, vector<3x16xf32>, vector<14x16xf32> -> vector<14x16xf32>
    %400 = arith.addf %397, %399 : vector<14x16xf32>
    %401 = vector.broadcast %52 : vector<1x16xf32> to vector<14x16xf32>
    %402 = arith.addf %400, %401 : vector<14x16xf32>
    %cst_158 = arith.constant 0.000000e+00 : f32
    %403 = vector.broadcast %cst_158 : f32 to vector<14x16xf32>
    %404 = arith.maximumf %402, %403 : vector<14x16xf32>
    %cst_159 = arith.constant 0.000000e+00 : f32
    %405 = vector.broadcast %cst_159 : f32 to vector<14x16xf32>
    %406 = vector.extract_strided_slice %25 {offsets = [0, 0], sizes = [14, 3], strides = [1, 1]} : vector<16x3xf32> to vector<14x3xf32>
    %cst_160 = arith.constant dense<0.000000e+00> : vector<14x16xf32>
    %407 = tpu.matmul %406, %35, %cst_160 {dimension_numbers = #tpu.dot_dimension_numbers<[1], [0], [0], [1], [0, 0, 1, 1], [], []>} : vector<14x3xf32>, vector<3x16xf32>, vector<14x16xf32> -> vector<14x16xf32>
    %408 = arith.addf %405, %407 : vector<14x16xf32>
    %409 = vector.extract_strided_slice %25 {offsets = [1, 0], sizes = [14, 3], strides = [1, 1]} : vector<16x3xf32> to vector<14x3xf32>
    %cst_161 = arith.constant dense<0.000000e+00> : vector<14x16xf32>
    %410 = tpu.matmul %409, %37, %cst_161 {dimension_numbers = #tpu.dot_dimension_numbers<[1], [0], [0], [1], [0, 0, 1, 1], [], []>} : vector<14x3xf32>, vector<3x16xf32>, vector<14x16xf32> -> vector<14x16xf32>
    %411 = arith.addf %408, %410 : vector<14x16xf32>
    %412 = vector.extract_strided_slice %25 {offsets = [2, 0], sizes = [14, 3], strides = [1, 1]} : vector<16x3xf32> to vector<14x3xf32>
    %cst_162 = arith.constant dense<0.000000e+00> : vector<14x16xf32>
    %413 = tpu.matmul %412, %39, %cst_162 {dimension_numbers = #tpu.dot_dimension_numbers<[1], [0], [0], [1], [0, 0, 1, 1], [], []>} : vector<14x3xf32>, vector<3x16xf32>, vector<14x16xf32> -> vector<14x16xf32>
    %414 = arith.addf %411, %413 : vector<14x16xf32>
    %415 = vector.extract_strided_slice %27 {offsets = [0, 0], sizes = [14, 3], strides = [1, 1]} : vector<16x3xf32> to vector<14x3xf32>
    %cst_163 = arith.constant dense<0.000000e+00> : vector<14x16xf32>
    %416 = tpu.matmul %415, %41, %cst_163 {dimension_numbers = #tpu.dot_dimension_numbers<[1], [0], [0], [1], [0, 0, 1, 1], [], []>} : vector<14x3xf32>, vector<3x16xf32>, vector<14x16xf32> -> vector<14x16xf32>
    %417 = arith.addf %414, %416 : vector<14x16xf32>
    %418 = vector.extract_strided_slice %27 {offsets = [1, 0], sizes = [14, 3], strides = [1, 1]} : vector<16x3xf32> to vector<14x3xf32>
    %cst_164 = arith.constant dense<0.000000e+00> : vector<14x16xf32>
    %419 = tpu.matmul %418, %43, %cst_164 {dimension_numbers = #tpu.dot_dimension_numbers<[1], [0], [0], [1], [0, 0, 1, 1], [], []>} : vector<14x3xf32>, vector<3x16xf32>, vector<14x16xf32> -> vector<14x16xf32>
    %420 = arith.addf %417, %419 : vector<14x16xf32>
    %421 = vector.extract_strided_slice %27 {offsets = [2, 0], sizes = [14, 3], strides = [1, 1]} : vector<16x3xf32> to vector<14x3xf32>
    %cst_165 = arith.constant dense<0.000000e+00> : vector<14x16xf32>
    %422 = tpu.matmul %421, %45, %cst_165 {dimension_numbers = #tpu.dot_dimension_numbers<[1], [0], [0], [1], [0, 0, 1, 1], [], []>} : vector<14x3xf32>, vector<3x16xf32>, vector<14x16xf32> -> vector<14x16xf32>
    %423 = arith.addf %420, %422 : vector<14x16xf32>
    %424 = vector.extract_strided_slice %29 {offsets = [0, 0], sizes = [14, 3], strides = [1, 1]} : vector<16x3xf32> to vector<14x3xf32>
    %cst_166 = arith.constant dense<0.000000e+00> : vector<14x16xf32>
    %425 = tpu.matmul %424, %47, %cst_166 {dimension_numbers = #tpu.dot_dimension_numbers<[1], [0], [0], [1], [0, 0, 1, 1], [], []>} : vector<14x3xf32>, vector<3x16xf32>, vector<14x16xf32> -> vector<14x16xf32>
    %426 = arith.addf %423, %425 : vector<14x16xf32>
    %427 = vector.extract_strided_slice %29 {offsets = [1, 0], sizes = [14, 3], strides = [1, 1]} : vector<16x3xf32> to vector<14x3xf32>
    %cst_167 = arith.constant dense<0.000000e+00> : vector<14x16xf32>
    %428 = tpu.matmul %427, %49, %cst_167 {dimension_numbers = #tpu.dot_dimension_numbers<[1], [0], [0], [1], [0, 0, 1, 1], [], []>} : vector<14x3xf32>, vector<3x16xf32>, vector<14x16xf32> -> vector<14x16xf32>
    %429 = arith.addf %426, %428 : vector<14x16xf32>
    %430 = vector.extract_strided_slice %29 {offsets = [2, 0], sizes = [14, 3], strides = [1, 1]} : vector<16x3xf32> to vector<14x3xf32>
    %cst_168 = arith.constant dense<0.000000e+00> : vector<14x16xf32>
    %431 = tpu.matmul %430, %51, %cst_168 {dimension_numbers = #tpu.dot_dimension_numbers<[1], [0], [0], [1], [0, 0, 1, 1], [], []>} : vector<14x3xf32>, vector<3x16xf32>, vector<14x16xf32> -> vector<14x16xf32>
    %432 = arith.addf %429, %431 : vector<14x16xf32>
    %433 = vector.broadcast %52 : vector<1x16xf32> to vector<14x16xf32>
    %434 = arith.addf %432, %433 : vector<14x16xf32>
    %cst_169 = arith.constant 0.000000e+00 : f32
    %435 = vector.broadcast %cst_169 : f32 to vector<14x16xf32>
    %436 = arith.maximumf %434, %435 : vector<14x16xf32>
    %cst_170 = arith.constant 0.000000e+00 : f32
    %437 = vector.broadcast %cst_170 : f32 to vector<14x16xf32>
    %438 = vector.extract_strided_slice %27 {offsets = [0, 0], sizes = [14, 3], strides = [1, 1]} : vector<16x3xf32> to vector<14x3xf32>
    %cst_171 = arith.constant dense<0.000000e+00> : vector<14x16xf32>
    %439 = tpu.matmul %438, %35, %cst_171 {dimension_numbers = #tpu.dot_dimension_numbers<[1], [0], [0], [1], [0, 0, 1, 1], [], []>} : vector<14x3xf32>, vector<3x16xf32>, vector<14x16xf32> -> vector<14x16xf32>
    %440 = arith.addf %437, %439 : vector<14x16xf32>
    %441 = vector.extract_strided_slice %27 {offsets = [1, 0], sizes = [14, 3], strides = [1, 1]} : vector<16x3xf32> to vector<14x3xf32>
    %cst_172 = arith.constant dense<0.000000e+00> : vector<14x16xf32>
    %442 = tpu.matmul %441, %37, %cst_172 {dimension_numbers = #tpu.dot_dimension_numbers<[1], [0], [0], [1], [0, 0, 1, 1], [], []>} : vector<14x3xf32>, vector<3x16xf32>, vector<14x16xf32> -> vector<14x16xf32>
    %443 = arith.addf %440, %442 : vector<14x16xf32>
    %444 = vector.extract_strided_slice %27 {offsets = [2, 0], sizes = [14, 3], strides = [1, 1]} : vector<16x3xf32> to vector<14x3xf32>
    %cst_173 = arith.constant dense<0.000000e+00> : vector<14x16xf32>
    %445 = tpu.matmul %444, %39, %cst_173 {dimension_numbers = #tpu.dot_dimension_numbers<[1], [0], [0], [1], [0, 0, 1, 1], [], []>} : vector<14x3xf32>, vector<3x16xf32>, vector<14x16xf32> -> vector<14x16xf32>
    %446 = arith.addf %443, %445 : vector<14x16xf32>
    %447 = vector.extract_strided_slice %29 {offsets = [0, 0], sizes = [14, 3], strides = [1, 1]} : vector<16x3xf32> to vector<14x3xf32>
    %cst_174 = arith.constant dense<0.000000e+00> : vector<14x16xf32>
    %448 = tpu.matmul %447, %41, %cst_174 {dimension_numbers = #tpu.dot_dimension_numbers<[1], [0], [0], [1], [0, 0, 1, 1], [], []>} : vector<14x3xf32>, vector<3x16xf32>, vector<14x16xf32> -> vector<14x16xf32>
    %449 = arith.addf %446, %448 : vector<14x16xf32>
    %450 = vector.extract_strided_slice %29 {offsets = [1, 0], sizes = [14, 3], strides = [1, 1]} : vector<16x3xf32> to vector<14x3xf32>
    %cst_175 = arith.constant dense<0.000000e+00> : vector<14x16xf32>
    %451 = tpu.matmul %450, %43, %cst_175 {dimension_numbers = #tpu.dot_dimension_numbers<[1], [0], [0], [1], [0, 0, 1, 1], [], []>} : vector<14x3xf32>, vector<3x16xf32>, vector<14x16xf32> -> vector<14x16xf32>
    %452 = arith.addf %449, %451 : vector<14x16xf32>
    %453 = vector.extract_strided_slice %29 {offsets = [2, 0], sizes = [14, 3], strides = [1, 1]} : vector<16x3xf32> to vector<14x3xf32>
    %cst_176 = arith.constant dense<0.000000e+00> : vector<14x16xf32>
    %454 = tpu.matmul %453, %45, %cst_176 {dimension_numbers = #tpu.dot_dimension_numbers<[1], [0], [0], [1], [0, 0, 1, 1], [], []>} : vector<14x3xf32>, vector<3x16xf32>, vector<14x16xf32> -> vector<14x16xf32>
    %455 = arith.addf %452, %454 : vector<14x16xf32>
    %456 = vector.extract_strided_slice %31 {offsets = [0, 0], sizes = [14, 3], strides = [1, 1]} : vector<16x3xf32> to vector<14x3xf32>
    %cst_177 = arith.constant dense<0.000000e+00> : vector<14x16xf32>
    %457 = tpu.matmul %456, %47, %cst_177 {dimension_numbers = #tpu.dot_dimension_numbers<[1], [0], [0], [1], [0, 0, 1, 1], [], []>} : vector<14x3xf32>, vector<3x16xf32>, vector<14x16xf32> -> vector<14x16xf32>
    %458 = arith.addf %455, %457 : vector<14x16xf32>
    %459 = vector.extract_strided_slice %31 {offsets = [1, 0], sizes = [14, 3], strides = [1, 1]} : vector<16x3xf32> to vector<14x3xf32>
    %cst_178 = arith.constant dense<0.000000e+00> : vector<14x16xf32>
    %460 = tpu.matmul %459, %49, %cst_178 {dimension_numbers = #tpu.dot_dimension_numbers<[1], [0], [0], [1], [0, 0, 1, 1], [], []>} : vector<14x3xf32>, vector<3x16xf32>, vector<14x16xf32> -> vector<14x16xf32>
    %461 = arith.addf %458, %460 : vector<14x16xf32>
    %462 = vector.extract_strided_slice %31 {offsets = [2, 0], sizes = [14, 3], strides = [1, 1]} : vector<16x3xf32> to vector<14x3xf32>
    %cst_179 = arith.constant dense<0.000000e+00> : vector<14x16xf32>
    %463 = tpu.matmul %462, %51, %cst_179 {dimension_numbers = #tpu.dot_dimension_numbers<[1], [0], [0], [1], [0, 0, 1, 1], [], []>} : vector<14x3xf32>, vector<3x16xf32>, vector<14x16xf32> -> vector<14x16xf32>
    %464 = arith.addf %461, %463 : vector<14x16xf32>
    %465 = vector.broadcast %52 : vector<1x16xf32> to vector<14x16xf32>
    %466 = arith.addf %464, %465 : vector<14x16xf32>
    %cst_180 = arith.constant 0.000000e+00 : f32
    %467 = vector.broadcast %cst_180 : f32 to vector<14x16xf32>
    %468 = arith.maximumf %466, %467 : vector<14x16xf32>
    %cst_181 = arith.constant 0.000000e+00 : f32
    %469 = vector.broadcast %cst_181 : f32 to vector<14x16xf32>
    %470 = vector.extract_strided_slice %29 {offsets = [0, 0], sizes = [14, 3], strides = [1, 1]} : vector<16x3xf32> to vector<14x3xf32>
    %cst_182 = arith.constant dense<0.000000e+00> : vector<14x16xf32>
    %471 = tpu.matmul %470, %35, %cst_182 {dimension_numbers = #tpu.dot_dimension_numbers<[1], [0], [0], [1], [0, 0, 1, 1], [], []>} : vector<14x3xf32>, vector<3x16xf32>, vector<14x16xf32> -> vector<14x16xf32>
    %472 = arith.addf %469, %471 : vector<14x16xf32>
    %473 = vector.extract_strided_slice %29 {offsets = [1, 0], sizes = [14, 3], strides = [1, 1]} : vector<16x3xf32> to vector<14x3xf32>
    %cst_183 = arith.constant dense<0.000000e+00> : vector<14x16xf32>
    %474 = tpu.matmul %473, %37, %cst_183 {dimension_numbers = #tpu.dot_dimension_numbers<[1], [0], [0], [1], [0, 0, 1, 1], [], []>} : vector<14x3xf32>, vector<3x16xf32>, vector<14x16xf32> -> vector<14x16xf32>
    %475 = arith.addf %472, %474 : vector<14x16xf32>
    %476 = vector.extract_strided_slice %29 {offsets = [2, 0], sizes = [14, 3], strides = [1, 1]} : vector<16x3xf32> to vector<14x3xf32>
    %cst_184 = arith.constant dense<0.000000e+00> : vector<14x16xf32>
    %477 = tpu.matmul %476, %39, %cst_184 {dimension_numbers = #tpu.dot_dimension_numbers<[1], [0], [0], [1], [0, 0, 1, 1], [], []>} : vector<14x3xf32>, vector<3x16xf32>, vector<14x16xf32> -> vector<14x16xf32>
    %478 = arith.addf %475, %477 : vector<14x16xf32>
    %479 = vector.extract_strided_slice %31 {offsets = [0, 0], sizes = [14, 3], strides = [1, 1]} : vector<16x3xf32> to vector<14x3xf32>
    %cst_185 = arith.constant dense<0.000000e+00> : vector<14x16xf32>
    %480 = tpu.matmul %479, %41, %cst_185 {dimension_numbers = #tpu.dot_dimension_numbers<[1], [0], [0], [1], [0, 0, 1, 1], [], []>} : vector<14x3xf32>, vector<3x16xf32>, vector<14x16xf32> -> vector<14x16xf32>
    %481 = arith.addf %478, %480 : vector<14x16xf32>
    %482 = vector.extract_strided_slice %31 {offsets = [1, 0], sizes = [14, 3], strides = [1, 1]} : vector<16x3xf32> to vector<14x3xf32>
    %cst_186 = arith.constant dense<0.000000e+00> : vector<14x16xf32>
    %483 = tpu.matmul %482, %43, %cst_186 {dimension_numbers = #tpu.dot_dimension_numbers<[1], [0], [0], [1], [0, 0, 1, 1], [], []>} : vector<14x3xf32>, vector<3x16xf32>, vector<14x16xf32> -> vector<14x16xf32>
    %484 = arith.addf %481, %483 : vector<14x16xf32>
    %485 = vector.extract_strided_slice %31 {offsets = [2, 0], sizes = [14, 3], strides = [1, 1]} : vector<16x3xf32> to vector<14x3xf32>
    %cst_187 = arith.constant dense<0.000000e+00> : vector<14x16xf32>
    %486 = tpu.matmul %485, %45, %cst_187 {dimension_numbers = #tpu.dot_dimension_numbers<[1], [0], [0], [1], [0, 0, 1, 1], [], []>} : vector<14x3xf32>, vector<3x16xf32>, vector<14x16xf32> -> vector<14x16xf32>
    %487 = arith.addf %484, %486 : vector<14x16xf32>
    %488 = vector.extract_strided_slice %33 {offsets = [0, 0], sizes = [14, 3], strides = [1, 1]} : vector<16x3xf32> to vector<14x3xf32>
    %cst_188 = arith.constant dense<0.000000e+00> : vector<14x16xf32>
    %489 = tpu.matmul %488, %47, %cst_188 {dimension_numbers = #tpu.dot_dimension_numbers<[1], [0], [0], [1], [0, 0, 1, 1], [], []>} : vector<14x3xf32>, vector<3x16xf32>, vector<14x16xf32> -> vector<14x16xf32>
    %490 = arith.addf %487, %489 : vector<14x16xf32>
    %491 = vector.extract_strided_slice %33 {offsets = [1, 0], sizes = [14, 3], strides = [1, 1]} : vector<16x3xf32> to vector<14x3xf32>
    %cst_189 = arith.constant dense<0.000000e+00> : vector<14x16xf32>
    %492 = tpu.matmul %491, %49, %cst_189 {dimension_numbers = #tpu.dot_dimension_numbers<[1], [0], [0], [1], [0, 0, 1, 1], [], []>} : vector<14x3xf32>, vector<3x16xf32>, vector<14x16xf32> -> vector<14x16xf32>
    %493 = arith.addf %490, %492 : vector<14x16xf32>
    %494 = vector.extract_strided_slice %33 {offsets = [2, 0], sizes = [14, 3], strides = [1, 1]} : vector<16x3xf32> to vector<14x3xf32>
    %cst_190 = arith.constant dense<0.000000e+00> : vector<14x16xf32>
    %495 = tpu.matmul %494, %51, %cst_190 {dimension_numbers = #tpu.dot_dimension_numbers<[1], [0], [0], [1], [0, 0, 1, 1], [], []>} : vector<14x3xf32>, vector<3x16xf32>, vector<14x16xf32> -> vector<14x16xf32>
    %496 = arith.addf %493, %495 : vector<14x16xf32>
    %497 = vector.broadcast %52 : vector<1x16xf32> to vector<14x16xf32>
    %498 = arith.addf %496, %497 : vector<14x16xf32>
    %cst_191 = arith.constant 0.000000e+00 : f32
    %499 = vector.broadcast %cst_191 : f32 to vector<14x16xf32>
    %500 = arith.maximumf %498, %499 : vector<14x16xf32>
    %501 = arith.maximumf %84, %116 : vector<14x16xf32>
    %502 = vector.extract_strided_slice %501 {offsets = [0, 0], sizes = [1, 16], strides = [1, 1]} : vector<14x16xf32> to vector<1x16xf32>
    %503 = vector.extract_strided_slice %501 {offsets = [1, 0], sizes = [1, 16], strides = [1, 1]} : vector<14x16xf32> to vector<1x16xf32>
    %504 = arith.maximumf %502, %503 : vector<1x16xf32>
    %c0_192 = arith.constant 0 : index
    %c0_193 = arith.constant 0 : index
    %c0_194 = arith.constant 0 : index
    %505 = vector.load %arg14[%c0_192, %c0_193, %c0_194] : memref<7x7x16xf32, #tpu.memory_space<vmem>>, vector<1x1x16xf32>
    %506 = vector.shape_cast %505 : vector<1x1x16xf32> to vector<1x16xf32>
    %507 = vector.shape_cast %504 : vector<1x16xf32> to vector<1x1x16xf32>
    tpu.vector_store %arg14[%c0_192, %c0_193, %c0_194], %507 {strides = array<i32>} : memref<7x7x16xf32, #tpu.memory_space<vmem>>, vector<1x1x16xf32>,
    %508 = vector.extract_strided_slice %501 {offsets = [2, 0], sizes = [1, 16], strides = [1, 1]} : vector<14x16xf32> to vector<1x16xf32>
    %509 = vector.extract_strided_slice %501 {offsets = [3, 0], sizes = [1, 16], strides = [1, 1]} : vector<14x16xf32> to vector<1x16xf32>
    %510 = arith.maximumf %508, %509 : vector<1x16xf32>
    %c0_195 = arith.constant 0 : index
    %c1_196 = arith.constant 1 : index
    %c0_197 = arith.constant 0 : index
    %511 = vector.load %arg14[%c0_195, %c1_196, %c0_197] : memref<7x7x16xf32, #tpu.memory_space<vmem>>, vector<1x1x16xf32>
    %512 = vector.shape_cast %511 : vector<1x1x16xf32> to vector<1x16xf32>
    %513 = vector.shape_cast %510 : vector<1x16xf32> to vector<1x1x16xf32>
    tpu.vector_store %arg14[%c0_195, %c1_196, %c0_197], %513 {strides = array<i32>} : memref<7x7x16xf32, #tpu.memory_space<vmem>>, vector<1x1x16xf32>,
    %514 = vector.extract_strided_slice %501 {offsets = [4, 0], sizes = [1, 16], strides = [1, 1]} : vector<14x16xf32> to vector<1x16xf32>
    %515 = vector.extract_strided_slice %501 {offsets = [5, 0], sizes = [1, 16], strides = [1, 1]} : vector<14x16xf32> to vector<1x16xf32>
    %516 = arith.maximumf %514, %515 : vector<1x16xf32>
    %c0_198 = arith.constant 0 : index
    %c2_199 = arith.constant 2 : index
    %c0_200 = arith.constant 0 : index
    %517 = vector.load %arg14[%c0_198, %c2_199, %c0_200] : memref<7x7x16xf32, #tpu.memory_space<vmem>>, vector<1x1x16xf32>
    %518 = vector.shape_cast %517 : vector<1x1x16xf32> to vector<1x16xf32>
    %519 = vector.shape_cast %516 : vector<1x16xf32> to vector<1x1x16xf32>
    tpu.vector_store %arg14[%c0_198, %c2_199, %c0_200], %519 {strides = array<i32>} : memref<7x7x16xf32, #tpu.memory_space<vmem>>, vector<1x1x16xf32>,
    %520 = vector.extract_strided_slice %501 {offsets = [6, 0], sizes = [1, 16], strides = [1, 1]} : vector<14x16xf32> to vector<1x16xf32>
    %521 = vector.extract_strided_slice %501 {offsets = [7, 0], sizes = [1, 16], strides = [1, 1]} : vector<14x16xf32> to vector<1x16xf32>
    %522 = arith.maximumf %520, %521 : vector<1x16xf32>
    %c0_201 = arith.constant 0 : index
    %c3 = arith.constant 3 : index
    %c0_202 = arith.constant 0 : index
    %523 = vector.load %arg14[%c0_201, %c3, %c0_202] : memref<7x7x16xf32, #tpu.memory_space<vmem>>, vector<1x1x16xf32>
    %524 = vector.shape_cast %523 : vector<1x1x16xf32> to vector<1x16xf32>
    %525 = vector.shape_cast %522 : vector<1x16xf32> to vector<1x1x16xf32>
    tpu.vector_store %arg14[%c0_201, %c3, %c0_202], %525 {strides = array<i32>} : memref<7x7x16xf32, #tpu.memory_space<vmem>>, vector<1x1x16xf32>,
    %526 = vector.extract_strided_slice %501 {offsets = [8, 0], sizes = [1, 16], strides = [1, 1]} : vector<14x16xf32> to vector<1x16xf32>
    %527 = vector.extract_strided_slice %501 {offsets = [9, 0], sizes = [1, 16], strides = [1, 1]} : vector<14x16xf32> to vector<1x16xf32>
    %528 = arith.maximumf %526, %527 : vector<1x16xf32>
    %c0_203 = arith.constant 0 : index
    %c4 = arith.constant 4 : index
    %c0_204 = arith.constant 0 : index
    %529 = vector.load %arg14[%c0_203, %c4, %c0_204] : memref<7x7x16xf32, #tpu.memory_space<vmem>>, vector<1x1x16xf32>
    %530 = vector.shape_cast %529 : vector<1x1x16xf32> to vector<1x16xf32>
    %531 = vector.shape_cast %528 : vector<1x16xf32> to vector<1x1x16xf32>
    tpu.vector_store %arg14[%c0_203, %c4, %c0_204], %531 {strides = array<i32>} : memref<7x7x16xf32, #tpu.memory_space<vmem>>, vector<1x1x16xf32>,
    %532 = vector.extract_strided_slice %501 {offsets = [10, 0], sizes = [1, 16], strides = [1, 1]} : vector<14x16xf32> to vector<1x16xf32>
    %533 = vector.extract_strided_slice %501 {offsets = [11, 0], sizes = [1, 16], strides = [1, 1]} : vector<14x16xf32> to vector<1x16xf32>
    %534 = arith.maximumf %532, %533 : vector<1x16xf32>
    %c0_205 = arith.constant 0 : index
    %c5 = arith.constant 5 : index
    %c0_206 = arith.constant 0 : index
    %535 = vector.load %arg14[%c0_205, %c5, %c0_206] : memref<7x7x16xf32, #tpu.memory_space<vmem>>, vector<1x1x16xf32>
    %536 = vector.shape_cast %535 : vector<1x1x16xf32> to vector<1x16xf32>
    %537 = vector.shape_cast %534 : vector<1x16xf32> to vector<1x1x16xf32>
    tpu.vector_store %arg14[%c0_205, %c5, %c0_206], %537 {strides = array<i32>} : memref<7x7x16xf32, #tpu.memory_space<vmem>>, vector<1x1x16xf32>,
    %538 = vector.extract_strided_slice %501 {offsets = [12, 0], sizes = [1, 16], strides = [1, 1]} : vector<14x16xf32> to vector<1x16xf32>
    %539 = vector.extract_strided_slice %501 {offsets = [13, 0], sizes = [1, 16], strides = [1, 1]} : vector<14x16xf32> to vector<1x16xf32>
    %540 = arith.maximumf %538, %539 : vector<1x16xf32>
    %c0_207 = arith.constant 0 : index
    %c6 = arith.constant 6 : index
    %c0_208 = arith.constant 0 : index
    %541 = vector.load %arg14[%c0_207, %c6, %c0_208] : memref<7x7x16xf32, #tpu.memory_space<vmem>>, vector<1x1x16xf32>
    %542 = vector.shape_cast %541 : vector<1x1x16xf32> to vector<1x16xf32>
    %543 = vector.shape_cast %540 : vector<1x16xf32> to vector<1x1x16xf32>
    tpu.vector_store %arg14[%c0_207, %c6, %c0_208], %543 {strides = array<i32>} : memref<7x7x16xf32, #tpu.memory_space<vmem>>, vector<1x1x16xf32>,
    %544 = arith.maximumf %148, %180 : vector<14x16xf32>
    %545 = vector.extract_strided_slice %544 {offsets = [0, 0], sizes = [1, 16], strides = [1, 1]} : vector<14x16xf32> to vector<1x16xf32>
    %546 = vector.extract_strided_slice %544 {offsets = [1, 0], sizes = [1, 16], strides = [1, 1]} : vector<14x16xf32> to vector<1x16xf32>
    %547 = arith.maximumf %545, %546 : vector<1x16xf32>
    %c1_209 = arith.constant 1 : index
    %c0_210 = arith.constant 0 : index
    %c0_211 = arith.constant 0 : index
    %548 = vector.load %arg14[%c1_209, %c0_210, %c0_211] : memref<7x7x16xf32, #tpu.memory_space<vmem>>, vector<1x1x16xf32>
    %549 = vector.shape_cast %548 : vector<1x1x16xf32> to vector<1x16xf32>
    %550 = vector.shape_cast %547 : vector<1x16xf32> to vector<1x1x16xf32>
    tpu.vector_store %arg14[%c1_209, %c0_210, %c0_211], %550 {strides = array<i32>} : memref<7x7x16xf32, #tpu.memory_space<vmem>>, vector<1x1x16xf32>,
    %551 = vector.extract_strided_slice %544 {offsets = [2, 0], sizes = [1, 16], strides = [1, 1]} : vector<14x16xf32> to vector<1x16xf32>
    %552 = vector.extract_strided_slice %544 {offsets = [3, 0], sizes = [1, 16], strides = [1, 1]} : vector<14x16xf32> to vector<1x16xf32>
    %553 = arith.maximumf %551, %552 : vector<1x16xf32>
    %c1_212 = arith.constant 1 : index
    %c1_213 = arith.constant 1 : index
    %c0_214 = arith.constant 0 : index
    %554 = vector.load %arg14[%c1_212, %c1_213, %c0_214] : memref<7x7x16xf32, #tpu.memory_space<vmem>>, vector<1x1x16xf32>
    %555 = vector.shape_cast %554 : vector<1x1x16xf32> to vector<1x16xf32>
    %556 = vector.shape_cast %553 : vector<1x16xf32> to vector<1x1x16xf32>
    tpu.vector_store %arg14[%c1_212, %c1_213, %c0_214], %556 {strides = array<i32>} : memref<7x7x16xf32, #tpu.memory_space<vmem>>, vector<1x1x16xf32>,
    %557 = vector.extract_strided_slice %544 {offsets = [4, 0], sizes = [1, 16], strides = [1, 1]} : vector<14x16xf32> to vector<1x16xf32>
    %558 = vector.extract_strided_slice %544 {offsets = [5, 0], sizes = [1, 16], strides = [1, 1]} : vector<14x16xf32> to vector<1x16xf32>
    %559 = arith.maximumf %557, %558 : vector<1x16xf32>
    %c1_215 = arith.constant 1 : index
    %c2_216 = arith.constant 2 : index
    %c0_217 = arith.constant 0 : index
    %560 = vector.load %arg14[%c1_215, %c2_216, %c0_217] : memref<7x7x16xf32, #tpu.memory_space<vmem>>, vector<1x1x16xf32>
    %561 = vector.shape_cast %560 : vector<1x1x16xf32> to vector<1x16xf32>
    %562 = vector.shape_cast %559 : vector<1x16xf32> to vector<1x1x16xf32>
    tpu.vector_store %arg14[%c1_215, %c2_216, %c0_217], %562 {strides = array<i32>} : memref<7x7x16xf32, #tpu.memory_space<vmem>>, vector<1x1x16xf32>,
    %563 = vector.extract_strided_slice %544 {offsets = [6, 0], sizes = [1, 16], strides = [1, 1]} : vector<14x16xf32> to vector<1x16xf32>
    %564 = vector.extract_strided_slice %544 {offsets = [7, 0], sizes = [1, 16], strides = [1, 1]} : vector<14x16xf32> to vector<1x16xf32>
    %565 = arith.maximumf %563, %564 : vector<1x16xf32>
    %c1_218 = arith.constant 1 : index
    %c3_219 = arith.constant 3 : index
    %c0_220 = arith.constant 0 : index
    %566 = vector.load %arg14[%c1_218, %c3_219, %c0_220] : memref<7x7x16xf32, #tpu.memory_space<vmem>>, vector<1x1x16xf32>
    %567 = vector.shape_cast %566 : vector<1x1x16xf32> to vector<1x16xf32>
    %568 = vector.shape_cast %565 : vector<1x16xf32> to vector<1x1x16xf32>
    tpu.vector_store %arg14[%c1_218, %c3_219, %c0_220], %568 {strides = array<i32>} : memref<7x7x16xf32, #tpu.memory_space<vmem>>, vector<1x1x16xf32>,
    %569 = vector.extract_strided_slice %544 {offsets = [8, 0], sizes = [1, 16], strides = [1, 1]} : vector<14x16xf32> to vector<1x16xf32>
    %570 = vector.extract_strided_slice %544 {offsets = [9, 0], sizes = [1, 16], strides = [1, 1]} : vector<14x16xf32> to vector<1x16xf32>
    %571 = arith.maximumf %569, %570 : vector<1x16xf32>
    %c1_221 = arith.constant 1 : index
    %c4_222 = arith.constant 4 : index
    %c0_223 = arith.constant 0 : index
    %572 = vector.load %arg14[%c1_221, %c4_222, %c0_223] : memref<7x7x16xf32, #tpu.memory_space<vmem>>, vector<1x1x16xf32>
    %573 = vector.shape_cast %572 : vector<1x1x16xf32> to vector<1x16xf32>
    %574 = vector.shape_cast %571 : vector<1x16xf32> to vector<1x1x16xf32>
    tpu.vector_store %arg14[%c1_221, %c4_222, %c0_223], %574 {strides = array<i32>} : memref<7x7x16xf32, #tpu.memory_space<vmem>>, vector<1x1x16xf32>,
    %575 = vector.extract_strided_slice %544 {offsets = [10, 0], sizes = [1, 16], strides = [1, 1]} : vector<14x16xf32> to vector<1x16xf32>
    %576 = vector.extract_strided_slice %544 {offsets = [11, 0], sizes = [1, 16], strides = [1, 1]} : vector<14x16xf32> to vector<1x16xf32>
    %577 = arith.maximumf %575, %576 : vector<1x16xf32>
    %c1_224 = arith.constant 1 : index
    %c5_225 = arith.constant 5 : index
    %c0_226 = arith.constant 0 : index
    %578 = vector.load %arg14[%c1_224, %c5_225, %c0_226] : memref<7x7x16xf32, #tpu.memory_space<vmem>>, vector<1x1x16xf32>
    %579 = vector.shape_cast %578 : vector<1x1x16xf32> to vector<1x16xf32>
    %580 = vector.shape_cast %577 : vector<1x16xf32> to vector<1x1x16xf32>
    tpu.vector_store %arg14[%c1_224, %c5_225, %c0_226], %580 {strides = array<i32>} : memref<7x7x16xf32, #tpu.memory_space<vmem>>, vector<1x1x16xf32>,
    %581 = vector.extract_strided_slice %544 {offsets = [12, 0], sizes = [1, 16], strides = [1, 1]} : vector<14x16xf32> to vector<1x16xf32>
    %582 = vector.extract_strided_slice %544 {offsets = [13, 0], sizes = [1, 16], strides = [1, 1]} : vector<14x16xf32> to vector<1x16xf32>
    %583 = arith.maximumf %581, %582 : vector<1x16xf32>
    %c1_227 = arith.constant 1 : index
    %c6_228 = arith.constant 6 : index
    %c0_229 = arith.constant 0 : index
    %584 = vector.load %arg14[%c1_227, %c6_228, %c0_229] : memref<7x7x16xf32, #tpu.memory_space<vmem>>, vector<1x1x16xf32>
    %585 = vector.shape_cast %584 : vector<1x1x16xf32> to vector<1x16xf32>
    %586 = vector.shape_cast %583 : vector<1x16xf32> to vector<1x1x16xf32>
    tpu.vector_store %arg14[%c1_227, %c6_228, %c0_229], %586 {strides = array<i32>} : memref<7x7x16xf32, #tpu.memory_space<vmem>>, vector<1x1x16xf32>,
    %587 = arith.maximumf %212, %244 : vector<14x16xf32>
    %588 = vector.extract_strided_slice %587 {offsets = [0, 0], sizes = [1, 16], strides = [1, 1]} : vector<14x16xf32> to vector<1x16xf32>
    %589 = vector.extract_strided_slice %587 {offsets = [1, 0], sizes = [1, 16], strides = [1, 1]} : vector<14x16xf32> to vector<1x16xf32>
    %590 = arith.maximumf %588, %589 : vector<1x16xf32>
    %c2_230 = arith.constant 2 : index
    %c0_231 = arith.constant 0 : index
    %c0_232 = arith.constant 0 : index
    %591 = vector.load %arg14[%c2_230, %c0_231, %c0_232] : memref<7x7x16xf32, #tpu.memory_space<vmem>>, vector<1x1x16xf32>
    %592 = vector.shape_cast %591 : vector<1x1x16xf32> to vector<1x16xf32>
    %593 = vector.shape_cast %590 : vector<1x16xf32> to vector<1x1x16xf32>
    tpu.vector_store %arg14[%c2_230, %c0_231, %c0_232], %593 {strides = array<i32>} : memref<7x7x16xf32, #tpu.memory_space<vmem>>, vector<1x1x16xf32>,
    %594 = vector.extract_strided_slice %587 {offsets = [2, 0], sizes = [1, 16], strides = [1, 1]} : vector<14x16xf32> to vector<1x16xf32>
    %595 = vector.extract_strided_slice %587 {offsets = [3, 0], sizes = [1, 16], strides = [1, 1]} : vector<14x16xf32> to vector<1x16xf32>
    %596 = arith.maximumf %594, %595 : vector<1x16xf32>
    %c2_233 = arith.constant 2 : index
    %c1_234 = arith.constant 1 : index
    %c0_235 = arith.constant 0 : index
    %597 = vector.load %arg14[%c2_233, %c1_234, %c0_235] : memref<7x7x16xf32, #tpu.memory_space<vmem>>, vector<1x1x16xf32>
    %598 = vector.shape_cast %597 : vector<1x1x16xf32> to vector<1x16xf32>
    %599 = vector.shape_cast %596 : vector<1x16xf32> to vector<1x1x16xf32>
    tpu.vector_store %arg14[%c2_233, %c1_234, %c0_235], %599 {strides = array<i32>} : memref<7x7x16xf32, #tpu.memory_space<vmem>>, vector<1x1x16xf32>,
    %600 = vector.extract_strided_slice %587 {offsets = [4, 0], sizes = [1, 16], strides = [1, 1]} : vector<14x16xf32> to vector<1x16xf32>
    %601 = vector.extract_strided_slice %587 {offsets = [5, 0], sizes = [1, 16], strides = [1, 1]} : vector<14x16xf32> to vector<1x16xf32>
    %602 = arith.maximumf %600, %601 : vector<1x16xf32>
    %c2_236 = arith.constant 2 : index
    %c2_237 = arith.constant 2 : index
    %c0_238 = arith.constant 0 : index
    %603 = vector.load %arg14[%c2_236, %c2_237, %c0_238] : memref<7x7x16xf32, #tpu.memory_space<vmem>>, vector<1x1x16xf32>
    %604 = vector.shape_cast %603 : vector<1x1x16xf32> to vector<1x16xf32>
    %605 = vector.shape_cast %602 : vector<1x16xf32> to vector<1x1x16xf32>
    tpu.vector_store %arg14[%c2_236, %c2_237, %c0_238], %605 {strides = array<i32>} : memref<7x7x16xf32, #tpu.memory_space<vmem>>, vector<1x1x16xf32>,
    %606 = vector.extract_strided_slice %587 {offsets = [6, 0], sizes = [1, 16], strides = [1, 1]} : vector<14x16xf32> to vector<1x16xf32>
    %607 = vector.extract_strided_slice %587 {offsets = [7, 0], sizes = [1, 16], strides = [1, 1]} : vector<14x16xf32> to vector<1x16xf32>
    %608 = arith.maximumf %606, %607 : vector<1x16xf32>
    %c2_239 = arith.constant 2 : index
    %c3_240 = arith.constant 3 : index
    %c0_241 = arith.constant 0 : index
    %609 = vector.load %arg14[%c2_239, %c3_240, %c0_241] : memref<7x7x16xf32, #tpu.memory_space<vmem>>, vector<1x1x16xf32>
    %610 = vector.shape_cast %609 : vector<1x1x16xf32> to vector<1x16xf32>
    %611 = vector.shape_cast %608 : vector<1x16xf32> to vector<1x1x16xf32>
    tpu.vector_store %arg14[%c2_239, %c3_240, %c0_241], %611 {strides = array<i32>} : memref<7x7x16xf32, #tpu.memory_space<vmem>>, vector<1x1x16xf32>,
    %612 = vector.extract_strided_slice %587 {offsets = [8, 0], sizes = [1, 16], strides = [1, 1]} : vector<14x16xf32> to vector<1x16xf32>
    %613 = vector.extract_strided_slice %587 {offsets = [9, 0], sizes = [1, 16], strides = [1, 1]} : vector<14x16xf32> to vector<1x16xf32>
    %614 = arith.maximumf %612, %613 : vector<1x16xf32>
    %c2_242 = arith.constant 2 : index
    %c4_243 = arith.constant 4 : index
    %c0_244 = arith.constant 0 : index
    %615 = vector.load %arg14[%c2_242, %c4_243, %c0_244] : memref<7x7x16xf32, #tpu.memory_space<vmem>>, vector<1x1x16xf32>
    %616 = vector.shape_cast %615 : vector<1x1x16xf32> to vector<1x16xf32>
    %617 = vector.shape_cast %614 : vector<1x16xf32> to vector<1x1x16xf32>
    tpu.vector_store %arg14[%c2_242, %c4_243, %c0_244], %617 {strides = array<i32>} : memref<7x7x16xf32, #tpu.memory_space<vmem>>, vector<1x1x16xf32>,
    %618 = vector.extract_strided_slice %587 {offsets = [10, 0], sizes = [1, 16], strides = [1, 1]} : vector<14x16xf32> to vector<1x16xf32>
    %619 = vector.extract_strided_slice %587 {offsets = [11, 0], sizes = [1, 16], strides = [1, 1]} : vector<14x16xf32> to vector<1x16xf32>
    %620 = arith.maximumf %618, %619 : vector<1x16xf32>
    %c2_245 = arith.constant 2 : index
    %c5_246 = arith.constant 5 : index
    %c0_247 = arith.constant 0 : index
    %621 = vector.load %arg14[%c2_245, %c5_246, %c0_247] : memref<7x7x16xf32, #tpu.memory_space<vmem>>, vector<1x1x16xf32>
    %622 = vector.shape_cast %621 : vector<1x1x16xf32> to vector<1x16xf32>
    %623 = vector.shape_cast %620 : vector<1x16xf32> to vector<1x1x16xf32>
    tpu.vector_store %arg14[%c2_245, %c5_246, %c0_247], %623 {strides = array<i32>} : memref<7x7x16xf32, #tpu.memory_space<vmem>>, vector<1x1x16xf32>,
    %624 = vector.extract_strided_slice %587 {offsets = [12, 0], sizes = [1, 16], strides = [1, 1]} : vector<14x16xf32> to vector<1x16xf32>
    %625 = vector.extract_strided_slice %587 {offsets = [13, 0], sizes = [1, 16], strides = [1, 1]} : vector<14x16xf32> to vector<1x16xf32>
    %626 = arith.maximumf %624, %625 : vector<1x16xf32>
    %c2_248 = arith.constant 2 : index
    %c6_249 = arith.constant 6 : index
    %c0_250 = arith.constant 0 : index
    %627 = vector.load %arg14[%c2_248, %c6_249, %c0_250] : memref<7x7x16xf32, #tpu.memory_space<vmem>>, vector<1x1x16xf32>
    %628 = vector.shape_cast %627 : vector<1x1x16xf32> to vector<1x16xf32>
    %629 = vector.shape_cast %626 : vector<1x16xf32> to vector<1x1x16xf32>
    tpu.vector_store %arg14[%c2_248, %c6_249, %c0_250], %629 {strides = array<i32>} : memref<7x7x16xf32, #tpu.memory_space<vmem>>, vector<1x1x16xf32>,
    %630 = arith.maximumf %276, %308 : vector<14x16xf32>
    %631 = vector.extract_strided_slice %630 {offsets = [0, 0], sizes = [1, 16], strides = [1, 1]} : vector<14x16xf32> to vector<1x16xf32>
    %632 = vector.extract_strided_slice %630 {offsets = [1, 0], sizes = [1, 16], strides = [1, 1]} : vector<14x16xf32> to vector<1x16xf32>
    %633 = arith.maximumf %631, %632 : vector<1x16xf32>
    %c3_251 = arith.constant 3 : index
    %c0_252 = arith.constant 0 : index
    %c0_253 = arith.constant 0 : index
    %634 = vector.load %arg14[%c3_251, %c0_252, %c0_253] : memref<7x7x16xf32, #tpu.memory_space<vmem>>, vector<1x1x16xf32>
    %635 = vector.shape_cast %634 : vector<1x1x16xf32> to vector<1x16xf32>
    %636 = vector.shape_cast %633 : vector<1x16xf32> to vector<1x1x16xf32>
    tpu.vector_store %arg14[%c3_251, %c0_252, %c0_253], %636 {strides = array<i32>} : memref<7x7x16xf32, #tpu.memory_space<vmem>>, vector<1x1x16xf32>,
    %637 = vector.extract_strided_slice %630 {offsets = [2, 0], sizes = [1, 16], strides = [1, 1]} : vector<14x16xf32> to vector<1x16xf32>
    %638 = vector.extract_strided_slice %630 {offsets = [3, 0], sizes = [1, 16], strides = [1, 1]} : vector<14x16xf32> to vector<1x16xf32>
    %639 = arith.maximumf %637, %638 : vector<1x16xf32>
    %c3_254 = arith.constant 3 : index
    %c1_255 = arith.constant 1 : index
    %c0_256 = arith.constant 0 : index
    %640 = vector.load %arg14[%c3_254, %c1_255, %c0_256] : memref<7x7x16xf32, #tpu.memory_space<vmem>>, vector<1x1x16xf32>
    %641 = vector.shape_cast %640 : vector<1x1x16xf32> to vector<1x16xf32>
    %642 = vector.shape_cast %639 : vector<1x16xf32> to vector<1x1x16xf32>
    tpu.vector_store %arg14[%c3_254, %c1_255, %c0_256], %642 {strides = array<i32>} : memref<7x7x16xf32, #tpu.memory_space<vmem>>, vector<1x1x16xf32>,
    %643 = vector.extract_strided_slice %630 {offsets = [4, 0], sizes = [1, 16], strides = [1, 1]} : vector<14x16xf32> to vector<1x16xf32>
    %644 = vector.extract_strided_slice %630 {offsets = [5, 0], sizes = [1, 16], strides = [1, 1]} : vector<14x16xf32> to vector<1x16xf32>
    %645 = arith.maximumf %643, %644 : vector<1x16xf32>
    %c3_257 = arith.constant 3 : index
    %c2_258 = arith.constant 2 : index
    %c0_259 = arith.constant 0 : index
    %646 = vector.load %arg14[%c3_257, %c2_258, %c0_259] : memref<7x7x16xf32, #tpu.memory_space<vmem>>, vector<1x1x16xf32>
    %647 = vector.shape_cast %646 : vector<1x1x16xf32> to vector<1x16xf32>
    %648 = vector.shape_cast %645 : vector<1x16xf32> to vector<1x1x16xf32>
    tpu.vector_store %arg14[%c3_257, %c2_258, %c0_259], %648 {strides = array<i32>} : memref<7x7x16xf32, #tpu.memory_space<vmem>>, vector<1x1x16xf32>,
    %649 = vector.extract_strided_slice %630 {offsets = [6, 0], sizes = [1, 16], strides = [1, 1]} : vector<14x16xf32> to vector<1x16xf32>
    %650 = vector.extract_strided_slice %630 {offsets = [7, 0], sizes = [1, 16], strides = [1, 1]} : vector<14x16xf32> to vector<1x16xf32>
    %651 = arith.maximumf %649, %650 : vector<1x16xf32>
    %c3_260 = arith.constant 3 : index
    %c3_261 = arith.constant 3 : index
    %c0_262 = arith.constant 0 : index
    %652 = vector.load %arg14[%c3_260, %c3_261, %c0_262] : memref<7x7x16xf32, #tpu.memory_space<vmem>>, vector<1x1x16xf32>
    %653 = vector.shape_cast %652 : vector<1x1x16xf32> to vector<1x16xf32>
    %654 = vector.shape_cast %651 : vector<1x16xf32> to vector<1x1x16xf32>
    tpu.vector_store %arg14[%c3_260, %c3_261, %c0_262], %654 {strides = array<i32>} : memref<7x7x16xf32, #tpu.memory_space<vmem>>, vector<1x1x16xf32>,
    %655 = vector.extract_strided_slice %630 {offsets = [8, 0], sizes = [1, 16], strides = [1, 1]} : vector<14x16xf32> to vector<1x16xf32>
    %656 = vector.extract_strided_slice %630 {offsets = [9, 0], sizes = [1, 16], strides = [1, 1]} : vector<14x16xf32> to vector<1x16xf32>
    %657 = arith.maximumf %655, %656 : vector<1x16xf32>
    %c3_263 = arith.constant 3 : index
    %c4_264 = arith.constant 4 : index
    %c0_265 = arith.constant 0 : index
    %658 = vector.load %arg14[%c3_263, %c4_264, %c0_265] : memref<7x7x16xf32, #tpu.memory_space<vmem>>, vector<1x1x16xf32>
    %659 = vector.shape_cast %658 : vector<1x1x16xf32> to vector<1x16xf32>
    %660 = vector.shape_cast %657 : vector<1x16xf32> to vector<1x1x16xf32>
    tpu.vector_store %arg14[%c3_263, %c4_264, %c0_265], %660 {strides = array<i32>} : memref<7x7x16xf32, #tpu.memory_space<vmem>>, vector<1x1x16xf32>,
    %661 = vector.extract_strided_slice %630 {offsets = [10, 0], sizes = [1, 16], strides = [1, 1]} : vector<14x16xf32> to vector<1x16xf32>
    %662 = vector.extract_strided_slice %630 {offsets = [11, 0], sizes = [1, 16], strides = [1, 1]} : vector<14x16xf32> to vector<1x16xf32>
    %663 = arith.maximumf %661, %662 : vector<1x16xf32>
    %c3_266 = arith.constant 3 : index
    %c5_267 = arith.constant 5 : index
    %c0_268 = arith.constant 0 : index
    %664 = vector.load %arg14[%c3_266, %c5_267, %c0_268] : memref<7x7x16xf32, #tpu.memory_space<vmem>>, vector<1x1x16xf32>
    %665 = vector.shape_cast %664 : vector<1x1x16xf32> to vector<1x16xf32>
    %666 = vector.shape_cast %663 : vector<1x16xf32> to vector<1x1x16xf32>
    tpu.vector_store %arg14[%c3_266, %c5_267, %c0_268], %666 {strides = array<i32>} : memref<7x7x16xf32, #tpu.memory_space<vmem>>, vector<1x1x16xf32>,
    %667 = vector.extract_strided_slice %630 {offsets = [12, 0], sizes = [1, 16], strides = [1, 1]} : vector<14x16xf32> to vector<1x16xf32>
    %668 = vector.extract_strided_slice %630 {offsets = [13, 0], sizes = [1, 16], strides = [1, 1]} : vector<14x16xf32> to vector<1x16xf32>
    %669 = arith.maximumf %667, %668 : vector<1x16xf32>
    %c3_269 = arith.constant 3 : index
    %c6_270 = arith.constant 6 : index
    %c0_271 = arith.constant 0 : index
    %670 = vector.load %arg14[%c3_269, %c6_270, %c0_271] : memref<7x7x16xf32, #tpu.memory_space<vmem>>, vector<1x1x16xf32>
    %671 = vector.shape_cast %670 : vector<1x1x16xf32> to vector<1x16xf32>
    %672 = vector.shape_cast %669 : vector<1x16xf32> to vector<1x1x16xf32>
    tpu.vector_store %arg14[%c3_269, %c6_270, %c0_271], %672 {strides = array<i32>} : memref<7x7x16xf32, #tpu.memory_space<vmem>>, vector<1x1x16xf32>,
    %673 = arith.maximumf %340, %372 : vector<14x16xf32>
    %674 = vector.extract_strided_slice %673 {offsets = [0, 0], sizes = [1, 16], strides = [1, 1]} : vector<14x16xf32> to vector<1x16xf32>
    %675 = vector.extract_strided_slice %673 {offsets = [1, 0], sizes = [1, 16], strides = [1, 1]} : vector<14x16xf32> to vector<1x16xf32>
    %676 = arith.maximumf %674, %675 : vector<1x16xf32>
    %c4_272 = arith.constant 4 : index
    %c0_273 = arith.constant 0 : index
    %c0_274 = arith.constant 0 : index
    %677 = vector.load %arg14[%c4_272, %c0_273, %c0_274] : memref<7x7x16xf32, #tpu.memory_space<vmem>>, vector<1x1x16xf32>
    %678 = vector.shape_cast %677 : vector<1x1x16xf32> to vector<1x16xf32>
    %679 = vector.shape_cast %676 : vector<1x16xf32> to vector<1x1x16xf32>
    tpu.vector_store %arg14[%c4_272, %c0_273, %c0_274], %679 {strides = array<i32>} : memref<7x7x16xf32, #tpu.memory_space<vmem>>, vector<1x1x16xf32>,
    %680 = vector.extract_strided_slice %673 {offsets = [2, 0], sizes = [1, 16], strides = [1, 1]} : vector<14x16xf32> to vector<1x16xf32>
    %681 = vector.extract_strided_slice %673 {offsets = [3, 0], sizes = [1, 16], strides = [1, 1]} : vector<14x16xf32> to vector<1x16xf32>
    %682 = arith.maximumf %680, %681 : vector<1x16xf32>
    %c4_275 = arith.constant 4 : index
    %c1_276 = arith.constant 1 : index
    %c0_277 = arith.constant 0 : index
    %683 = vector.load %arg14[%c4_275, %c1_276, %c0_277] : memref<7x7x16xf32, #tpu.memory_space<vmem>>, vector<1x1x16xf32>
    %684 = vector.shape_cast %683 : vector<1x1x16xf32> to vector<1x16xf32>
    %685 = vector.shape_cast %682 : vector<1x16xf32> to vector<1x1x16xf32>
    tpu.vector_store %arg14[%c4_275, %c1_276, %c0_277], %685 {strides = array<i32>} : memref<7x7x16xf32, #tpu.memory_space<vmem>>, vector<1x1x16xf32>,
    %686 = vector.extract_strided_slice %673 {offsets = [4, 0], sizes = [1, 16], strides = [1, 1]} : vector<14x16xf32> to vector<1x16xf32>
    %687 = vector.extract_strided_slice %673 {offsets = [5, 0], sizes = [1, 16], strides = [1, 1]} : vector<14x16xf32> to vector<1x16xf32>
    %688 = arith.maximumf %686, %687 : vector<1x16xf32>
    %c4_278 = arith.constant 4 : index
    %c2_279 = arith.constant 2 : index
    %c0_280 = arith.constant 0 : index
    %689 = vector.load %arg14[%c4_278, %c2_279, %c0_280] : memref<7x7x16xf32, #tpu.memory_space<vmem>>, vector<1x1x16xf32>
    %690 = vector.shape_cast %689 : vector<1x1x16xf32> to vector<1x16xf32>
    %691 = vector.shape_cast %688 : vector<1x16xf32> to vector<1x1x16xf32>
    tpu.vector_store %arg14[%c4_278, %c2_279, %c0_280], %691 {strides = array<i32>} : memref<7x7x16xf32, #tpu.memory_space<vmem>>, vector<1x1x16xf32>,
    %692 = vector.extract_strided_slice %673 {offsets = [6, 0], sizes = [1, 16], strides = [1, 1]} : vector<14x16xf32> to vector<1x16xf32>
    %693 = vector.extract_strided_slice %673 {offsets = [7, 0], sizes = [1, 16], strides = [1, 1]} : vector<14x16xf32> to vector<1x16xf32>
    %694 = arith.maximumf %692, %693 : vector<1x16xf32>
    %c4_281 = arith.constant 4 : index
    %c3_282 = arith.constant 3 : index
    %c0_283 = arith.constant 0 : index
    %695 = vector.load %arg14[%c4_281, %c3_282, %c0_283] : memref<7x7x16xf32, #tpu.memory_space<vmem>>, vector<1x1x16xf32>
    %696 = vector.shape_cast %695 : vector<1x1x16xf32> to vector<1x16xf32>
    %697 = vector.shape_cast %694 : vector<1x16xf32> to vector<1x1x16xf32>
    tpu.vector_store %arg14[%c4_281, %c3_282, %c0_283], %697 {strides = array<i32>} : memref<7x7x16xf32, #tpu.memory_space<vmem>>, vector<1x1x16xf32>,
    %698 = vector.extract_strided_slice %673 {offsets = [8, 0], sizes = [1, 16], strides = [1, 1]} : vector<14x16xf32> to vector<1x16xf32>
    %699 = vector.extract_strided_slice %673 {offsets = [9, 0], sizes = [1, 16], strides = [1, 1]} : vector<14x16xf32> to vector<1x16xf32>
    %700 = arith.maximumf %698, %699 : vector<1x16xf32>
    %c4_284 = arith.constant 4 : index
    %c4_285 = arith.constant 4 : index
    %c0_286 = arith.constant 0 : index
    %701 = vector.load %arg14[%c4_284, %c4_285, %c0_286] : memref<7x7x16xf32, #tpu.memory_space<vmem>>, vector<1x1x16xf32>
    %702 = vector.shape_cast %701 : vector<1x1x16xf32> to vector<1x16xf32>
    %703 = vector.shape_cast %700 : vector<1x16xf32> to vector<1x1x16xf32>
    tpu.vector_store %arg14[%c4_284, %c4_285, %c0_286], %703 {strides = array<i32>} : memref<7x7x16xf32, #tpu.memory_space<vmem>>, vector<1x1x16xf32>,
    %704 = vector.extract_strided_slice %673 {offsets = [10, 0], sizes = [1, 16], strides = [1, 1]} : vector<14x16xf32> to vector<1x16xf32>
    %705 = vector.extract_strided_slice %673 {offsets = [11, 0], sizes = [1, 16], strides = [1, 1]} : vector<14x16xf32> to vector<1x16xf32>
    %706 = arith.maximumf %704, %705 : vector<1x16xf32>
    %c4_287 = arith.constant 4 : index
    %c5_288 = arith.constant 5 : index
    %c0_289 = arith.constant 0 : index
    %707 = vector.load %arg14[%c4_287, %c5_288, %c0_289] : memref<7x7x16xf32, #tpu.memory_space<vmem>>, vector<1x1x16xf32>
    %708 = vector.shape_cast %707 : vector<1x1x16xf32> to vector<1x16xf32>
    %709 = vector.shape_cast %706 : vector<1x16xf32> to vector<1x1x16xf32>
    tpu.vector_store %arg14[%c4_287, %c5_288, %c0_289], %709 {strides = array<i32>} : memref<7x7x16xf32, #tpu.memory_space<vmem>>, vector<1x1x16xf32>,
    %710 = vector.extract_strided_slice %673 {offsets = [12, 0], sizes = [1, 16], strides = [1, 1]} : vector<14x16xf32> to vector<1x16xf32>
    %711 = vector.extract_strided_slice %673 {offsets = [13, 0], sizes = [1, 16], strides = [1, 1]} : vector<14x16xf32> to vector<1x16xf32>
    %712 = arith.maximumf %710, %711 : vector<1x16xf32>
    %c4_290 = arith.constant 4 : index
    %c6_291 = arith.constant 6 : index
    %c0_292 = arith.constant 0 : index
    %713 = vector.load %arg14[%c4_290, %c6_291, %c0_292] : memref<7x7x16xf32, #tpu.memory_space<vmem>>, vector<1x1x16xf32>
    %714 = vector.shape_cast %713 : vector<1x1x16xf32> to vector<1x16xf32>
    %715 = vector.shape_cast %712 : vector<1x16xf32> to vector<1x1x16xf32>
    tpu.vector_store %arg14[%c4_290, %c6_291, %c0_292], %715 {strides = array<i32>} : memref<7x7x16xf32, #tpu.memory_space<vmem>>, vector<1x1x16xf32>,
    %716 = arith.maximumf %404, %436 : vector<14x16xf32>
    %717 = vector.extract_strided_slice %716 {offsets = [0, 0], sizes = [1, 16], strides = [1, 1]} : vector<14x16xf32> to vector<1x16xf32>
    %718 = vector.extract_strided_slice %716 {offsets = [1, 0], sizes = [1, 16], strides = [1, 1]} : vector<14x16xf32> to vector<1x16xf32>
    %719 = arith.maximumf %717, %718 : vector<1x16xf32>
    %c5_293 = arith.constant 5 : index
    %c0_294 = arith.constant 0 : index
    %c0_295 = arith.constant 0 : index
    %720 = vector.load %arg14[%c5_293, %c0_294, %c0_295] : memref<7x7x16xf32, #tpu.memory_space<vmem>>, vector<1x1x16xf32>
    %721 = vector.shape_cast %720 : vector<1x1x16xf32> to vector<1x16xf32>
    %722 = vector.shape_cast %719 : vector<1x16xf32> to vector<1x1x16xf32>
    tpu.vector_store %arg14[%c5_293, %c0_294, %c0_295], %722 {strides = array<i32>} : memref<7x7x16xf32, #tpu.memory_space<vmem>>, vector<1x1x16xf32>,
    %723 = vector.extract_strided_slice %716 {offsets = [2, 0], sizes = [1, 16], strides = [1, 1]} : vector<14x16xf32> to vector<1x16xf32>
    %724 = vector.extract_strided_slice %716 {offsets = [3, 0], sizes = [1, 16], strides = [1, 1]} : vector<14x16xf32> to vector<1x16xf32>
    %725 = arith.maximumf %723, %724 : vector<1x16xf32>
    %c5_296 = arith.constant 5 : index
    %c1_297 = arith.constant 1 : index
    %c0_298 = arith.constant 0 : index
    %726 = vector.load %arg14[%c5_296, %c1_297, %c0_298] : memref<7x7x16xf32, #tpu.memory_space<vmem>>, vector<1x1x16xf32>
    %727 = vector.shape_cast %726 : vector<1x1x16xf32> to vector<1x16xf32>
    %728 = vector.shape_cast %725 : vector<1x16xf32> to vector<1x1x16xf32>
    tpu.vector_store %arg14[%c5_296, %c1_297, %c0_298], %728 {strides = array<i32>} : memref<7x7x16xf32, #tpu.memory_space<vmem>>, vector<1x1x16xf32>,
    %729 = vector.extract_strided_slice %716 {offsets = [4, 0], sizes = [1, 16], strides = [1, 1]} : vector<14x16xf32> to vector<1x16xf32>
    %730 = vector.extract_strided_slice %716 {offsets = [5, 0], sizes = [1, 16], strides = [1, 1]} : vector<14x16xf32> to vector<1x16xf32>
    %731 = arith.maximumf %729, %730 : vector<1x16xf32>
    %c5_299 = arith.constant 5 : index
    %c2_300 = arith.constant 2 : index
    %c0_301 = arith.constant 0 : index
    %732 = vector.load %arg14[%c5_299, %c2_300, %c0_301] : memref<7x7x16xf32, #tpu.memory_space<vmem>>, vector<1x1x16xf32>
    %733 = vector.shape_cast %732 : vector<1x1x16xf32> to vector<1x16xf32>
    %734 = vector.shape_cast %731 : vector<1x16xf32> to vector<1x1x16xf32>
    tpu.vector_store %arg14[%c5_299, %c2_300, %c0_301], %734 {strides = array<i32>} : memref<7x7x16xf32, #tpu.memory_space<vmem>>, vector<1x1x16xf32>,
    %735 = vector.extract_strided_slice %716 {offsets = [6, 0], sizes = [1, 16], strides = [1, 1]} : vector<14x16xf32> to vector<1x16xf32>
    %736 = vector.extract_strided_slice %716 {offsets = [7, 0], sizes = [1, 16], strides = [1, 1]} : vector<14x16xf32> to vector<1x16xf32>
    %737 = arith.maximumf %735, %736 : vector<1x16xf32>
    %c5_302 = arith.constant 5 : index
    %c3_303 = arith.constant 3 : index
    %c0_304 = arith.constant 0 : index
    %738 = vector.load %arg14[%c5_302, %c3_303, %c0_304] : memref<7x7x16xf32, #tpu.memory_space<vmem>>, vector<1x1x16xf32>
    %739 = vector.shape_cast %738 : vector<1x1x16xf32> to vector<1x16xf32>
    %740 = vector.shape_cast %737 : vector<1x16xf32> to vector<1x1x16xf32>
    tpu.vector_store %arg14[%c5_302, %c3_303, %c0_304], %740 {strides = array<i32>} : memref<7x7x16xf32, #tpu.memory_space<vmem>>, vector<1x1x16xf32>,
    %741 = vector.extract_strided_slice %716 {offsets = [8, 0], sizes = [1, 16], strides = [1, 1]} : vector<14x16xf32> to vector<1x16xf32>
    %742 = vector.extract_strided_slice %716 {offsets = [9, 0], sizes = [1, 16], strides = [1, 1]} : vector<14x16xf32> to vector<1x16xf32>
    %743 = arith.maximumf %741, %742 : vector<1x16xf32>
    %c5_305 = arith.constant 5 : index
    %c4_306 = arith.constant 4 : index
    %c0_307 = arith.constant 0 : index
    %744 = vector.load %arg14[%c5_305, %c4_306, %c0_307] : memref<7x7x16xf32, #tpu.memory_space<vmem>>, vector<1x1x16xf32>
    %745 = vector.shape_cast %744 : vector<1x1x16xf32> to vector<1x16xf32>
    %746 = vector.shape_cast %743 : vector<1x16xf32> to vector<1x1x16xf32>
    tpu.vector_store %arg14[%c5_305, %c4_306, %c0_307], %746 {strides = array<i32>} : memref<7x7x16xf32, #tpu.memory_space<vmem>>, vector<1x1x16xf32>,
    %747 = vector.extract_strided_slice %716 {offsets = [10, 0], sizes = [1, 16], strides = [1, 1]} : vector<14x16xf32> to vector<1x16xf32>
    %748 = vector.extract_strided_slice %716 {offsets = [11, 0], sizes = [1, 16], strides = [1, 1]} : vector<14x16xf32> to vector<1x16xf32>
    %749 = arith.maximumf %747, %748 : vector<1x16xf32>
    %c5_308 = arith.constant 5 : index
    %c5_309 = arith.constant 5 : index
    %c0_310 = arith.constant 0 : index
    %750 = vector.load %arg14[%c5_308, %c5_309, %c0_310] : memref<7x7x16xf32, #tpu.memory_space<vmem>>, vector<1x1x16xf32>
    %751 = vector.shape_cast %750 : vector<1x1x16xf32> to vector<1x16xf32>
    %752 = vector.shape_cast %749 : vector<1x16xf32> to vector<1x1x16xf32>
    tpu.vector_store %arg14[%c5_308, %c5_309, %c0_310], %752 {strides = array<i32>} : memref<7x7x16xf32, #tpu.memory_space<vmem>>, vector<1x1x16xf32>,
    %753 = vector.extract_strided_slice %716 {offsets = [12, 0], sizes = [1, 16], strides = [1, 1]} : vector<14x16xf32> to vector<1x16xf32>
    %754 = vector.extract_strided_slice %716 {offsets = [13, 0], sizes = [1, 16], strides = [1, 1]} : vector<14x16xf32> to vector<1x16xf32>
    %755 = arith.maximumf %753, %754 : vector<1x16xf32>
    %c5_311 = arith.constant 5 : index
    %c6_312 = arith.constant 6 : index
    %c0_313 = arith.constant 0 : index
    %756 = vector.load %arg14[%c5_311, %c6_312, %c0_313] : memref<7x7x16xf32, #tpu.memory_space<vmem>>, vector<1x1x16xf32>
    %757 = vector.shape_cast %756 : vector<1x1x16xf32> to vector<1x16xf32>
    %758 = vector.shape_cast %755 : vector<1x16xf32> to vector<1x1x16xf32>
    tpu.vector_store %arg14[%c5_311, %c6_312, %c0_313], %758 {strides = array<i32>} : memref<7x7x16xf32, #tpu.memory_space<vmem>>, vector<1x1x16xf32>,
    %759 = arith.maximumf %468, %500 : vector<14x16xf32>
    %760 = vector.extract_strided_slice %759 {offsets = [0, 0], sizes = [1, 16], strides = [1, 1]} : vector<14x16xf32> to vector<1x16xf32>
    %761 = vector.extract_strided_slice %759 {offsets = [1, 0], sizes = [1, 16], strides = [1, 1]} : vector<14x16xf32> to vector<1x16xf32>
    %762 = arith.maximumf %760, %761 : vector<1x16xf32>
    %c6_314 = arith.constant 6 : index
    %c0_315 = arith.constant 0 : index
    %c0_316 = arith.constant 0 : index
    %763 = vector.load %arg14[%c6_314, %c0_315, %c0_316] : memref<7x7x16xf32, #tpu.memory_space<vmem>>, vector<1x1x16xf32>
    %764 = vector.shape_cast %763 : vector<1x1x16xf32> to vector<1x16xf32>
    %765 = vector.shape_cast %762 : vector<1x16xf32> to vector<1x1x16xf32>
    tpu.vector_store %arg14[%c6_314, %c0_315, %c0_316], %765 {strides = array<i32>} : memref<7x7x16xf32, #tpu.memory_space<vmem>>, vector<1x1x16xf32>,
    %766 = vector.extract_strided_slice %759 {offsets = [2, 0], sizes = [1, 16], strides = [1, 1]} : vector<14x16xf32> to vector<1x16xf32>
    %767 = vector.extract_strided_slice %759 {offsets = [3, 0], sizes = [1, 16], strides = [1, 1]} : vector<14x16xf32> to vector<1x16xf32>
    %768 = arith.maximumf %766, %767 : vector<1x16xf32>
    %c6_317 = arith.constant 6 : index
    %c1_318 = arith.constant 1 : index
    %c0_319 = arith.constant 0 : index
    %769 = vector.load %arg14[%c6_317, %c1_318, %c0_319] : memref<7x7x16xf32, #tpu.memory_space<vmem>>, vector<1x1x16xf32>
    %770 = vector.shape_cast %769 : vector<1x1x16xf32> to vector<1x16xf32>
    %771 = vector.shape_cast %768 : vector<1x16xf32> to vector<1x1x16xf32>
    tpu.vector_store %arg14[%c6_317, %c1_318, %c0_319], %771 {strides = array<i32>} : memref<7x7x16xf32, #tpu.memory_space<vmem>>, vector<1x1x16xf32>,
    %772 = vector.extract_strided_slice %759 {offsets = [4, 0], sizes = [1, 16], strides = [1, 1]} : vector<14x16xf32> to vector<1x16xf32>
    %773 = vector.extract_strided_slice %759 {offsets = [5, 0], sizes = [1, 16], strides = [1, 1]} : vector<14x16xf32> to vector<1x16xf32>
    %774 = arith.maximumf %772, %773 : vector<1x16xf32>
    %c6_320 = arith.constant 6 : index
    %c2_321 = arith.constant 2 : index
    %c0_322 = arith.constant 0 : index
    %775 = vector.load %arg14[%c6_320, %c2_321, %c0_322] : memref<7x7x16xf32, #tpu.memory_space<vmem>>, vector<1x1x16xf32>
    %776 = vector.shape_cast %775 : vector<1x1x16xf32> to vector<1x16xf32>
    %777 = vector.shape_cast %774 : vector<1x16xf32> to vector<1x1x16xf32>
    tpu.vector_store %arg14[%c6_320, %c2_321, %c0_322], %777 {strides = array<i32>} : memref<7x7x16xf32, #tpu.memory_space<vmem>>, vector<1x1x16xf32>,
    %778 = vector.extract_strided_slice %759 {offsets = [6, 0], sizes = [1, 16], strides = [1, 1]} : vector<14x16xf32> to vector<1x16xf32>
    %779 = vector.extract_strided_slice %759 {offsets = [7, 0], sizes = [1, 16], strides = [1, 1]} : vector<14x16xf32> to vector<1x16xf32>
    %780 = arith.maximumf %778, %779 : vector<1x16xf32>
    %c6_323 = arith.constant 6 : index
    %c3_324 = arith.constant 3 : index
    %c0_325 = arith.constant 0 : index
    %781 = vector.load %arg14[%c6_323, %c3_324, %c0_325] : memref<7x7x16xf32, #tpu.memory_space<vmem>>, vector<1x1x16xf32>
    %782 = vector.shape_cast %781 : vector<1x1x16xf32> to vector<1x16xf32>
    %783 = vector.shape_cast %780 : vector<1x16xf32> to vector<1x1x16xf32>
    tpu.vector_store %arg14[%c6_323, %c3_324, %c0_325], %783 {strides = array<i32>} : memref<7x7x16xf32, #tpu.memory_space<vmem>>, vector<1x1x16xf32>,
    %784 = vector.extract_strided_slice %759 {offsets = [8, 0], sizes = [1, 16], strides = [1, 1]} : vector<14x16xf32> to vector<1x16xf32>
    %785 = vector.extract_strided_slice %759 {offsets = [9, 0], sizes = [1, 16], strides = [1, 1]} : vector<14x16xf32> to vector<1x16xf32>
    %786 = arith.maximumf %784, %785 : vector<1x16xf32>
    %c6_326 = arith.constant 6 : index
    %c4_327 = arith.constant 4 : index
    %c0_328 = arith.constant 0 : index
    %787 = vector.load %arg14[%c6_326, %c4_327, %c0_328] : memref<7x7x16xf32, #tpu.memory_space<vmem>>, vector<1x1x16xf32>
    %788 = vector.shape_cast %787 : vector<1x1x16xf32> to vector<1x16xf32>
    %789 = vector.shape_cast %786 : vector<1x16xf32> to vector<1x1x16xf32>
    tpu.vector_store %arg14[%c6_326, %c4_327, %c0_328], %789 {strides = array<i32>} : memref<7x7x16xf32, #tpu.memory_space<vmem>>, vector<1x1x16xf32>,
    %790 = vector.extract_strided_slice %759 {offsets = [10, 0], sizes = [1, 16], strides = [1, 1]} : vector<14x16xf32> to vector<1x16xf32>
    %791 = vector.extract_strided_slice %759 {offsets = [11, 0], sizes = [1, 16], strides = [1, 1]} : vector<14x16xf32> to vector<1x16xf32>
    %792 = arith.maximumf %790, %791 : vector<1x16xf32>
    %c6_329 = arith.constant 6 : index
    %c5_330 = arith.constant 5 : index
    %c0_331 = arith.constant 0 : index
    %793 = vector.load %arg14[%c6_329, %c5_330, %c0_331] : memref<7x7x16xf32, #tpu.memory_space<vmem>>, vector<1x1x16xf32>
    %794 = vector.shape_cast %793 : vector<1x1x16xf32> to vector<1x16xf32>
    %795 = vector.shape_cast %792 : vector<1x16xf32> to vector<1x1x16xf32>
    tpu.vector_store %arg14[%c6_329, %c5_330, %c0_331], %795 {strides = array<i32>} : memref<7x7x16xf32, #tpu.memory_space<vmem>>, vector<1x1x16xf32>,
    %796 = vector.extract_strided_slice %759 {offsets = [12, 0], sizes = [1, 16], strides = [1, 1]} : vector<14x16xf32> to vector<1x16xf32>
    %797 = vector.extract_strided_slice %759 {offsets = [13, 0], sizes = [1, 16], strides = [1, 1]} : vector<14x16xf32> to vector<1x16xf32>
    %798 = arith.maximumf %796, %797 : vector<1x16xf32>
    %c6_332 = arith.constant 6 : index
    %c6_333 = arith.constant 6 : index
    %c0_334 = arith.constant 0 : index
    %799 = vector.load %arg14[%c6_332, %c6_333, %c0_334] : memref<7x7x16xf32, #tpu.memory_space<vmem>>, vector<1x1x16xf32>
    %800 = vector.shape_cast %799 : vector<1x1x16xf32> to vector<1x16xf32>
    %801 = vector.shape_cast %798 : vector<1x16xf32> to vector<1x1x16xf32>
    tpu.vector_store %arg14[%c6_332, %c6_333, %c0_334], %801 {strides = array<i32>} : memref<7x7x16xf32, #tpu.memory_space<vmem>>, vector<1x1x16xf32>,
    %c0_335 = arith.constant 0 : index
    %c0_336 = arith.constant 0 : index
    %c0_337 = arith.constant 0 : index
    %802 = vector.load %arg14[%c0_335, %c0_336, %c0_337] : memref<7x7x16xf32, #tpu.memory_space<vmem>>, vector<1x7x16xf32>
    %803 = vector.shape_cast %802 : vector<1x7x16xf32> to vector<7x16xf32>
    %c1_338 = arith.constant 1 : index
    %c0_339 = arith.constant 0 : index
    %c0_340 = arith.constant 0 : index
    %804 = vector.load %arg14[%c1_338, %c0_339, %c0_340] : memref<7x7x16xf32, #tpu.memory_space<vmem>>, vector<1x7x16xf32>
    %805 = vector.shape_cast %804 : vector<1x7x16xf32> to vector<7x16xf32>
    %c2_341 = arith.constant 2 : index
    %c0_342 = arith.constant 0 : index
    %c0_343 = arith.constant 0 : index
    %806 = vector.load %arg14[%c2_341, %c0_342, %c0_343] : memref<7x7x16xf32, #tpu.memory_space<vmem>>, vector<1x7x16xf32>
    %807 = vector.shape_cast %806 : vector<1x7x16xf32> to vector<7x16xf32>
    %c3_344 = arith.constant 3 : index
    %c0_345 = arith.constant 0 : index
    %c0_346 = arith.constant 0 : index
    %808 = vector.load %arg14[%c3_344, %c0_345, %c0_346] : memref<7x7x16xf32, #tpu.memory_space<vmem>>, vector<1x7x16xf32>
    %809 = vector.shape_cast %808 : vector<1x7x16xf32> to vector<7x16xf32>
    %c4_347 = arith.constant 4 : index
    %c0_348 = arith.constant 0 : index
    %c0_349 = arith.constant 0 : index
    %810 = vector.load %arg14[%c4_347, %c0_348, %c0_349] : memref<7x7x16xf32, #tpu.memory_space<vmem>>, vector<1x7x16xf32>
    %811 = vector.shape_cast %810 : vector<1x7x16xf32> to vector<7x16xf32>
    %c5_350 = arith.constant 5 : index
    %c0_351 = arith.constant 0 : index
    %c0_352 = arith.constant 0 : index
    %812 = vector.load %arg14[%c5_350, %c0_351, %c0_352] : memref<7x7x16xf32, #tpu.memory_space<vmem>>, vector<1x7x16xf32>
    %813 = vector.shape_cast %812 : vector<1x7x16xf32> to vector<7x16xf32>
    %c0_353 = arith.constant 0 : index
    %c0_354 = arith.constant 0 : index
    %c0_355 = arith.constant 0 : index
    %c0_356 = arith.constant 0 : index
    %814 = vector.load %arg4[%c0_353, %c0_354, %c0_355, %c0_356] : memref<3x3x16x32xf32, #tpu.memory_space<vmem>>, vector<1x1x16x32xf32>
    %815 = vector.shape_cast %814 : vector<1x1x16x32xf32> to vector<16x32xf32>
    %c0_357 = arith.constant 0 : index
    %c1_358 = arith.constant 1 : index
    %c0_359 = arith.constant 0 : index
    %c0_360 = arith.constant 0 : index
    %816 = vector.load %arg4[%c0_357, %c1_358, %c0_359, %c0_360] : memref<3x3x16x32xf32, #tpu.memory_space<vmem>>, vector<1x1x16x32xf32>
    %817 = vector.shape_cast %816 : vector<1x1x16x32xf32> to vector<16x32xf32>
    %c0_361 = arith.constant 0 : index
    %c2_362 = arith.constant 2 : index
    %c0_363 = arith.constant 0 : index
    %c0_364 = arith.constant 0 : index
    %818 = vector.load %arg4[%c0_361, %c2_362, %c0_363, %c0_364] : memref<3x3x16x32xf32, #tpu.memory_space<vmem>>, vector<1x1x16x32xf32>
    %819 = vector.shape_cast %818 : vector<1x1x16x32xf32> to vector<16x32xf32>
    %c1_365 = arith.constant 1 : index
    %c0_366 = arith.constant 0 : index
    %c0_367 = arith.constant 0 : index
    %c0_368 = arith.constant 0 : index
    %820 = vector.load %arg4[%c1_365, %c0_366, %c0_367, %c0_368] : memref<3x3x16x32xf32, #tpu.memory_space<vmem>>, vector<1x1x16x32xf32>
    %821 = vector.shape_cast %820 : vector<1x1x16x32xf32> to vector<16x32xf32>
    %c1_369 = arith.constant 1 : index
    %c1_370 = arith.constant 1 : index
    %c0_371 = arith.constant 0 : index
    %c0_372 = arith.constant 0 : index
    %822 = vector.load %arg4[%c1_369, %c1_370, %c0_371, %c0_372] : memref<3x3x16x32xf32, #tpu.memory_space<vmem>>, vector<1x1x16x32xf32>
    %823 = vector.shape_cast %822 : vector<1x1x16x32xf32> to vector<16x32xf32>
    %c1_373 = arith.constant 1 : index
    %c2_374 = arith.constant 2 : index
    %c0_375 = arith.constant 0 : index
    %c0_376 = arith.constant 0 : index
    %824 = vector.load %arg4[%c1_373, %c2_374, %c0_375, %c0_376] : memref<3x3x16x32xf32, #tpu.memory_space<vmem>>, vector<1x1x16x32xf32>
    %825 = vector.shape_cast %824 : vector<1x1x16x32xf32> to vector<16x32xf32>
    %c2_377 = arith.constant 2 : index
    %c0_378 = arith.constant 0 : index
    %c0_379 = arith.constant 0 : index
    %c0_380 = arith.constant 0 : index
    %826 = vector.load %arg4[%c2_377, %c0_378, %c0_379, %c0_380] : memref<3x3x16x32xf32, #tpu.memory_space<vmem>>, vector<1x1x16x32xf32>
    %827 = vector.shape_cast %826 : vector<1x1x16x32xf32> to vector<16x32xf32>
    %c2_381 = arith.constant 2 : index
    %c1_382 = arith.constant 1 : index
    %c0_383 = arith.constant 0 : index
    %c0_384 = arith.constant 0 : index
    %828 = vector.load %arg4[%c2_381, %c1_382, %c0_383, %c0_384] : memref<3x3x16x32xf32, #tpu.memory_space<vmem>>, vector<1x1x16x32xf32>
    %829 = vector.shape_cast %828 : vector<1x1x16x32xf32> to vector<16x32xf32>
    %c2_385 = arith.constant 2 : index
    %c2_386 = arith.constant 2 : index
    %c0_387 = arith.constant 0 : index
    %c0_388 = arith.constant 0 : index
    %830 = vector.load %arg4[%c2_385, %c2_386, %c0_387, %c0_388] : memref<3x3x16x32xf32, #tpu.memory_space<vmem>>, vector<1x1x16x32xf32>
    %831 = vector.shape_cast %830 : vector<1x1x16x32xf32> to vector<16x32xf32>
    %c0_389 = arith.constant 0 : index
    %c0_390 = arith.constant 0 : index
    %832 = vector.load %arg5[%c0_389, %c0_390] : memref<1x32xf32, #tpu.memory_space<vmem>>, vector<1x32xf32>
    %cst_391 = arith.constant 0.000000e+00 : f32
    %833 = vector.broadcast %cst_391 : f32 to vector<5x32xf32>
    %834 = vector.extract_strided_slice %803 {offsets = [0, 0], sizes = [5, 16], strides = [1, 1]} : vector<7x16xf32> to vector<5x16xf32>
    %cst_392 = arith.constant dense<0.000000e+00> : vector<5x32xf32>
    %835 = tpu.matmul %834, %815, %cst_392 {dimension_numbers = #tpu.dot_dimension_numbers<[1], [0], [0], [1], [0, 0, 1, 1], [], []>} : vector<5x16xf32>, vector<16x32xf32>, vector<5x32xf32> -> vector<5x32xf32>
    %836 = arith.addf %833, %835 : vector<5x32xf32>
    %837 = vector.extract_strided_slice %803 {offsets = [1, 0], sizes = [5, 16], strides = [1, 1]} : vector<7x16xf32> to vector<5x16xf32>
    %cst_393 = arith.constant dense<0.000000e+00> : vector<5x32xf32>
    %838 = tpu.matmul %837, %817, %cst_393 {dimension_numbers = #tpu.dot_dimension_numbers<[1], [0], [0], [1], [0, 0, 1, 1], [], []>} : vector<5x16xf32>, vector<16x32xf32>, vector<5x32xf32> -> vector<5x32xf32>
    %839 = arith.addf %836, %838 : vector<5x32xf32>
    %840 = vector.extract_strided_slice %803 {offsets = [2, 0], sizes = [5, 16], strides = [1, 1]} : vector<7x16xf32> to vector<5x16xf32>
    %cst_394 = arith.constant dense<0.000000e+00> : vector<5x32xf32>
    %841 = tpu.matmul %840, %819, %cst_394 {dimension_numbers = #tpu.dot_dimension_numbers<[1], [0], [0], [1], [0, 0, 1, 1], [], []>} : vector<5x16xf32>, vector<16x32xf32>, vector<5x32xf32> -> vector<5x32xf32>
    %842 = arith.addf %839, %841 : vector<5x32xf32>
    %843 = vector.extract_strided_slice %805 {offsets = [0, 0], sizes = [5, 16], strides = [1, 1]} : vector<7x16xf32> to vector<5x16xf32>
    %cst_395 = arith.constant dense<0.000000e+00> : vector<5x32xf32>
    %844 = tpu.matmul %843, %821, %cst_395 {dimension_numbers = #tpu.dot_dimension_numbers<[1], [0], [0], [1], [0, 0, 1, 1], [], []>} : vector<5x16xf32>, vector<16x32xf32>, vector<5x32xf32> -> vector<5x32xf32>
    %845 = arith.addf %842, %844 : vector<5x32xf32>
    %846 = vector.extract_strided_slice %805 {offsets = [1, 0], sizes = [5, 16], strides = [1, 1]} : vector<7x16xf32> to vector<5x16xf32>
    %cst_396 = arith.constant dense<0.000000e+00> : vector<5x32xf32>
    %847 = tpu.matmul %846, %823, %cst_396 {dimension_numbers = #tpu.dot_dimension_numbers<[1], [0], [0], [1], [0, 0, 1, 1], [], []>} : vector<5x16xf32>, vector<16x32xf32>, vector<5x32xf32> -> vector<5x32xf32>
    %848 = arith.addf %845, %847 : vector<5x32xf32>
    %849 = vector.extract_strided_slice %805 {offsets = [2, 0], sizes = [5, 16], strides = [1, 1]} : vector<7x16xf32> to vector<5x16xf32>
    %cst_397 = arith.constant dense<0.000000e+00> : vector<5x32xf32>
    %850 = tpu.matmul %849, %825, %cst_397 {dimension_numbers = #tpu.dot_dimension_numbers<[1], [0], [0], [1], [0, 0, 1, 1], [], []>} : vector<5x16xf32>, vector<16x32xf32>, vector<5x32xf32> -> vector<5x32xf32>
    %851 = arith.addf %848, %850 : vector<5x32xf32>
    %852 = vector.extract_strided_slice %807 {offsets = [0, 0], sizes = [5, 16], strides = [1, 1]} : vector<7x16xf32> to vector<5x16xf32>
    %cst_398 = arith.constant dense<0.000000e+00> : vector<5x32xf32>
    %853 = tpu.matmul %852, %827, %cst_398 {dimension_numbers = #tpu.dot_dimension_numbers<[1], [0], [0], [1], [0, 0, 1, 1], [], []>} : vector<5x16xf32>, vector<16x32xf32>, vector<5x32xf32> -> vector<5x32xf32>
    %854 = arith.addf %851, %853 : vector<5x32xf32>
    %855 = vector.extract_strided_slice %807 {offsets = [1, 0], sizes = [5, 16], strides = [1, 1]} : vector<7x16xf32> to vector<5x16xf32>
    %cst_399 = arith.constant dense<0.000000e+00> : vector<5x32xf32>
    %856 = tpu.matmul %855, %829, %cst_399 {dimension_numbers = #tpu.dot_dimension_numbers<[1], [0], [0], [1], [0, 0, 1, 1], [], []>} : vector<5x16xf32>, vector<16x32xf32>, vector<5x32xf32> -> vector<5x32xf32>
    %857 = arith.addf %854, %856 : vector<5x32xf32>
    %858 = vector.extract_strided_slice %807 {offsets = [2, 0], sizes = [5, 16], strides = [1, 1]} : vector<7x16xf32> to vector<5x16xf32>
    %cst_400 = arith.constant dense<0.000000e+00> : vector<5x32xf32>
    %859 = tpu.matmul %858, %831, %cst_400 {dimension_numbers = #tpu.dot_dimension_numbers<[1], [0], [0], [1], [0, 0, 1, 1], [], []>} : vector<5x16xf32>, vector<16x32xf32>, vector<5x32xf32> -> vector<5x32xf32>
    %860 = arith.addf %857, %859 : vector<5x32xf32>
    %861 = vector.broadcast %832 : vector<1x32xf32> to vector<5x32xf32>
    %862 = arith.addf %860, %861 : vector<5x32xf32>
    %cst_401 = arith.constant 0.000000e+00 : f32
    %863 = vector.broadcast %cst_401 : f32 to vector<5x32xf32>
    %864 = arith.maximumf %862, %863 : vector<5x32xf32>
    %cst_402 = arith.constant 0.000000e+00 : f32
    %865 = vector.broadcast %cst_402 : f32 to vector<5x32xf32>
    %866 = vector.extract_strided_slice %805 {offsets = [0, 0], sizes = [5, 16], strides = [1, 1]} : vector<7x16xf32> to vector<5x16xf32>
    %cst_403 = arith.constant dense<0.000000e+00> : vector<5x32xf32>
    %867 = tpu.matmul %866, %815, %cst_403 {dimension_numbers = #tpu.dot_dimension_numbers<[1], [0], [0], [1], [0, 0, 1, 1], [], []>} : vector<5x16xf32>, vector<16x32xf32>, vector<5x32xf32> -> vector<5x32xf32>
    %868 = arith.addf %865, %867 : vector<5x32xf32>
    %869 = vector.extract_strided_slice %805 {offsets = [1, 0], sizes = [5, 16], strides = [1, 1]} : vector<7x16xf32> to vector<5x16xf32>
    %cst_404 = arith.constant dense<0.000000e+00> : vector<5x32xf32>
    %870 = tpu.matmul %869, %817, %cst_404 {dimension_numbers = #tpu.dot_dimension_numbers<[1], [0], [0], [1], [0, 0, 1, 1], [], []>} : vector<5x16xf32>, vector<16x32xf32>, vector<5x32xf32> -> vector<5x32xf32>
    %871 = arith.addf %868, %870 : vector<5x32xf32>
    %872 = vector.extract_strided_slice %805 {offsets = [2, 0], sizes = [5, 16], strides = [1, 1]} : vector<7x16xf32> to vector<5x16xf32>
    %cst_405 = arith.constant dense<0.000000e+00> : vector<5x32xf32>
    %873 = tpu.matmul %872, %819, %cst_405 {dimension_numbers = #tpu.dot_dimension_numbers<[1], [0], [0], [1], [0, 0, 1, 1], [], []>} : vector<5x16xf32>, vector<16x32xf32>, vector<5x32xf32> -> vector<5x32xf32>
    %874 = arith.addf %871, %873 : vector<5x32xf32>
    %875 = vector.extract_strided_slice %807 {offsets = [0, 0], sizes = [5, 16], strides = [1, 1]} : vector<7x16xf32> to vector<5x16xf32>
    %cst_406 = arith.constant dense<0.000000e+00> : vector<5x32xf32>
    %876 = tpu.matmul %875, %821, %cst_406 {dimension_numbers = #tpu.dot_dimension_numbers<[1], [0], [0], [1], [0, 0, 1, 1], [], []>} : vector<5x16xf32>, vector<16x32xf32>, vector<5x32xf32> -> vector<5x32xf32>
    %877 = arith.addf %874, %876 : vector<5x32xf32>
    %878 = vector.extract_strided_slice %807 {offsets = [1, 0], sizes = [5, 16], strides = [1, 1]} : vector<7x16xf32> to vector<5x16xf32>
    %cst_407 = arith.constant dense<0.000000e+00> : vector<5x32xf32>
    %879 = tpu.matmul %878, %823, %cst_407 {dimension_numbers = #tpu.dot_dimension_numbers<[1], [0], [0], [1], [0, 0, 1, 1], [], []>} : vector<5x16xf32>, vector<16x32xf32>, vector<5x32xf32> -> vector<5x32xf32>
    %880 = arith.addf %877, %879 : vector<5x32xf32>
    %881 = vector.extract_strided_slice %807 {offsets = [2, 0], sizes = [5, 16], strides = [1, 1]} : vector<7x16xf32> to vector<5x16xf32>
    %cst_408 = arith.constant dense<0.000000e+00> : vector<5x32xf32>
    %882 = tpu.matmul %881, %825, %cst_408 {dimension_numbers = #tpu.dot_dimension_numbers<[1], [0], [0], [1], [0, 0, 1, 1], [], []>} : vector<5x16xf32>, vector<16x32xf32>, vector<5x32xf32> -> vector<5x32xf32>
    %883 = arith.addf %880, %882 : vector<5x32xf32>
    %884 = vector.extract_strided_slice %809 {offsets = [0, 0], sizes = [5, 16], strides = [1, 1]} : vector<7x16xf32> to vector<5x16xf32>
    %cst_409 = arith.constant dense<0.000000e+00> : vector<5x32xf32>
    %885 = tpu.matmul %884, %827, %cst_409 {dimension_numbers = #tpu.dot_dimension_numbers<[1], [0], [0], [1], [0, 0, 1, 1], [], []>} : vector<5x16xf32>, vector<16x32xf32>, vector<5x32xf32> -> vector<5x32xf32>
    %886 = arith.addf %883, %885 : vector<5x32xf32>
    %887 = vector.extract_strided_slice %809 {offsets = [1, 0], sizes = [5, 16], strides = [1, 1]} : vector<7x16xf32> to vector<5x16xf32>
    %cst_410 = arith.constant dense<0.000000e+00> : vector<5x32xf32>
    %888 = tpu.matmul %887, %829, %cst_410 {dimension_numbers = #tpu.dot_dimension_numbers<[1], [0], [0], [1], [0, 0, 1, 1], [], []>} : vector<5x16xf32>, vector<16x32xf32>, vector<5x32xf32> -> vector<5x32xf32>
    %889 = arith.addf %886, %888 : vector<5x32xf32>
    %890 = vector.extract_strided_slice %809 {offsets = [2, 0], sizes = [5, 16], strides = [1, 1]} : vector<7x16xf32> to vector<5x16xf32>
    %cst_411 = arith.constant dense<0.000000e+00> : vector<5x32xf32>
    %891 = tpu.matmul %890, %831, %cst_411 {dimension_numbers = #tpu.dot_dimension_numbers<[1], [0], [0], [1], [0, 0, 1, 1], [], []>} : vector<5x16xf32>, vector<16x32xf32>, vector<5x32xf32> -> vector<5x32xf32>
    %892 = arith.addf %889, %891 : vector<5x32xf32>
    %893 = vector.broadcast %832 : vector<1x32xf32> to vector<5x32xf32>
    %894 = arith.addf %892, %893 : vector<5x32xf32>
    %cst_412 = arith.constant 0.000000e+00 : f32
    %895 = vector.broadcast %cst_412 : f32 to vector<5x32xf32>
    %896 = arith.maximumf %894, %895 : vector<5x32xf32>
    %cst_413 = arith.constant 0.000000e+00 : f32
    %897 = vector.broadcast %cst_413 : f32 to vector<5x32xf32>
    %898 = vector.extract_strided_slice %807 {offsets = [0, 0], sizes = [5, 16], strides = [1, 1]} : vector<7x16xf32> to vector<5x16xf32>
    %cst_414 = arith.constant dense<0.000000e+00> : vector<5x32xf32>
    %899 = tpu.matmul %898, %815, %cst_414 {dimension_numbers = #tpu.dot_dimension_numbers<[1], [0], [0], [1], [0, 0, 1, 1], [], []>} : vector<5x16xf32>, vector<16x32xf32>, vector<5x32xf32> -> vector<5x32xf32>
    %900 = arith.addf %897, %899 : vector<5x32xf32>
    %901 = vector.extract_strided_slice %807 {offsets = [1, 0], sizes = [5, 16], strides = [1, 1]} : vector<7x16xf32> to vector<5x16xf32>
    %cst_415 = arith.constant dense<0.000000e+00> : vector<5x32xf32>
    %902 = tpu.matmul %901, %817, %cst_415 {dimension_numbers = #tpu.dot_dimension_numbers<[1], [0], [0], [1], [0, 0, 1, 1], [], []>} : vector<5x16xf32>, vector<16x32xf32>, vector<5x32xf32> -> vector<5x32xf32>
    %903 = arith.addf %900, %902 : vector<5x32xf32>
    %904 = vector.extract_strided_slice %807 {offsets = [2, 0], sizes = [5, 16], strides = [1, 1]} : vector<7x16xf32> to vector<5x16xf32>
    %cst_416 = arith.constant dense<0.000000e+00> : vector<5x32xf32>
    %905 = tpu.matmul %904, %819, %cst_416 {dimension_numbers = #tpu.dot_dimension_numbers<[1], [0], [0], [1], [0, 0, 1, 1], [], []>} : vector<5x16xf32>, vector<16x32xf32>, vector<5x32xf32> -> vector<5x32xf32>
    %906 = arith.addf %903, %905 : vector<5x32xf32>
    %907 = vector.extract_strided_slice %809 {offsets = [0, 0], sizes = [5, 16], strides = [1, 1]} : vector<7x16xf32> to vector<5x16xf32>
    %cst_417 = arith.constant dense<0.000000e+00> : vector<5x32xf32>
    %908 = tpu.matmul %907, %821, %cst_417 {dimension_numbers = #tpu.dot_dimension_numbers<[1], [0], [0], [1], [0, 0, 1, 1], [], []>} : vector<5x16xf32>, vector<16x32xf32>, vector<5x32xf32> -> vector<5x32xf32>
    %909 = arith.addf %906, %908 : vector<5x32xf32>
    %910 = vector.extract_strided_slice %809 {offsets = [1, 0], sizes = [5, 16], strides = [1, 1]} : vector<7x16xf32> to vector<5x16xf32>
    %cst_418 = arith.constant dense<0.000000e+00> : vector<5x32xf32>
    %911 = tpu.matmul %910, %823, %cst_418 {dimension_numbers = #tpu.dot_dimension_numbers<[1], [0], [0], [1], [0, 0, 1, 1], [], []>} : vector<5x16xf32>, vector<16x32xf32>, vector<5x32xf32> -> vector<5x32xf32>
    %912 = arith.addf %909, %911 : vector<5x32xf32>
    %913 = vector.extract_strided_slice %809 {offsets = [2, 0], sizes = [5, 16], strides = [1, 1]} : vector<7x16xf32> to vector<5x16xf32>
    %cst_419 = arith.constant dense<0.000000e+00> : vector<5x32xf32>
    %914 = tpu.matmul %913, %825, %cst_419 {dimension_numbers = #tpu.dot_dimension_numbers<[1], [0], [0], [1], [0, 0, 1, 1], [], []>} : vector<5x16xf32>, vector<16x32xf32>, vector<5x32xf32> -> vector<5x32xf32>
    %915 = arith.addf %912, %914 : vector<5x32xf32>
    %916 = vector.extract_strided_slice %811 {offsets = [0, 0], sizes = [5, 16], strides = [1, 1]} : vector<7x16xf32> to vector<5x16xf32>
    %cst_420 = arith.constant dense<0.000000e+00> : vector<5x32xf32>
    %917 = tpu.matmul %916, %827, %cst_420 {dimension_numbers = #tpu.dot_dimension_numbers<[1], [0], [0], [1], [0, 0, 1, 1], [], []>} : vector<5x16xf32>, vector<16x32xf32>, vector<5x32xf32> -> vector<5x32xf32>
    %918 = arith.addf %915, %917 : vector<5x32xf32>
    %919 = vector.extract_strided_slice %811 {offsets = [1, 0], sizes = [5, 16], strides = [1, 1]} : vector<7x16xf32> to vector<5x16xf32>
    %cst_421 = arith.constant dense<0.000000e+00> : vector<5x32xf32>
    %920 = tpu.matmul %919, %829, %cst_421 {dimension_numbers = #tpu.dot_dimension_numbers<[1], [0], [0], [1], [0, 0, 1, 1], [], []>} : vector<5x16xf32>, vector<16x32xf32>, vector<5x32xf32> -> vector<5x32xf32>
    %921 = arith.addf %918, %920 : vector<5x32xf32>
    %922 = vector.extract_strided_slice %811 {offsets = [2, 0], sizes = [5, 16], strides = [1, 1]} : vector<7x16xf32> to vector<5x16xf32>
    %cst_422 = arith.constant dense<0.000000e+00> : vector<5x32xf32>
    %923 = tpu.matmul %922, %831, %cst_422 {dimension_numbers = #tpu.dot_dimension_numbers<[1], [0], [0], [1], [0, 0, 1, 1], [], []>} : vector<5x16xf32>, vector<16x32xf32>, vector<5x32xf32> -> vector<5x32xf32>
    %924 = arith.addf %921, %923 : vector<5x32xf32>
    %925 = vector.broadcast %832 : vector<1x32xf32> to vector<5x32xf32>
    %926 = arith.addf %924, %925 : vector<5x32xf32>
    %cst_423 = arith.constant 0.000000e+00 : f32
    %927 = vector.broadcast %cst_423 : f32 to vector<5x32xf32>
    %928 = arith.maximumf %926, %927 : vector<5x32xf32>
    %cst_424 = arith.constant 0.000000e+00 : f32
    %929 = vector.broadcast %cst_424 : f32 to vector<5x32xf32>
    %930 = vector.extract_strided_slice %809 {offsets = [0, 0], sizes = [5, 16], strides = [1, 1]} : vector<7x16xf32> to vector<5x16xf32>
    %cst_425 = arith.constant dense<0.000000e+00> : vector<5x32xf32>
    %931 = tpu.matmul %930, %815, %cst_425 {dimension_numbers = #tpu.dot_dimension_numbers<[1], [0], [0], [1], [0, 0, 1, 1], [], []>} : vector<5x16xf32>, vector<16x32xf32>, vector<5x32xf32> -> vector<5x32xf32>
    %932 = arith.addf %929, %931 : vector<5x32xf32>
    %933 = vector.extract_strided_slice %809 {offsets = [1, 0], sizes = [5, 16], strides = [1, 1]} : vector<7x16xf32> to vector<5x16xf32>
    %cst_426 = arith.constant dense<0.000000e+00> : vector<5x32xf32>
    %934 = tpu.matmul %933, %817, %cst_426 {dimension_numbers = #tpu.dot_dimension_numbers<[1], [0], [0], [1], [0, 0, 1, 1], [], []>} : vector<5x16xf32>, vector<16x32xf32>, vector<5x32xf32> -> vector<5x32xf32>
    %935 = arith.addf %932, %934 : vector<5x32xf32>
    %936 = vector.extract_strided_slice %809 {offsets = [2, 0], sizes = [5, 16], strides = [1, 1]} : vector<7x16xf32> to vector<5x16xf32>
    %cst_427 = arith.constant dense<0.000000e+00> : vector<5x32xf32>
    %937 = tpu.matmul %936, %819, %cst_427 {dimension_numbers = #tpu.dot_dimension_numbers<[1], [0], [0], [1], [0, 0, 1, 1], [], []>} : vector<5x16xf32>, vector<16x32xf32>, vector<5x32xf32> -> vector<5x32xf32>
    %938 = arith.addf %935, %937 : vector<5x32xf32>
    %939 = vector.extract_strided_slice %811 {offsets = [0, 0], sizes = [5, 16], strides = [1, 1]} : vector<7x16xf32> to vector<5x16xf32>
    %cst_428 = arith.constant dense<0.000000e+00> : vector<5x32xf32>
    %940 = tpu.matmul %939, %821, %cst_428 {dimension_numbers = #tpu.dot_dimension_numbers<[1], [0], [0], [1], [0, 0, 1, 1], [], []>} : vector<5x16xf32>, vector<16x32xf32>, vector<5x32xf32> -> vector<5x32xf32>
    %941 = arith.addf %938, %940 : vector<5x32xf32>
    %942 = vector.extract_strided_slice %811 {offsets = [1, 0], sizes = [5, 16], strides = [1, 1]} : vector<7x16xf32> to vector<5x16xf32>
    %cst_429 = arith.constant dense<0.000000e+00> : vector<5x32xf32>
    %943 = tpu.matmul %942, %823, %cst_429 {dimension_numbers = #tpu.dot_dimension_numbers<[1], [0], [0], [1], [0, 0, 1, 1], [], []>} : vector<5x16xf32>, vector<16x32xf32>, vector<5x32xf32> -> vector<5x32xf32>
    %944 = arith.addf %941, %943 : vector<5x32xf32>
    %945 = vector.extract_strided_slice %811 {offsets = [2, 0], sizes = [5, 16], strides = [1, 1]} : vector<7x16xf32> to vector<5x16xf32>
    %cst_430 = arith.constant dense<0.000000e+00> : vector<5x32xf32>
    %946 = tpu.matmul %945, %825, %cst_430 {dimension_numbers = #tpu.dot_dimension_numbers<[1], [0], [0], [1], [0, 0, 1, 1], [], []>} : vector<5x16xf32>, vector<16x32xf32>, vector<5x32xf32> -> vector<5x32xf32>
    %947 = arith.addf %944, %946 : vector<5x32xf32>
    %948 = vector.extract_strided_slice %813 {offsets = [0, 0], sizes = [5, 16], strides = [1, 1]} : vector<7x16xf32> to vector<5x16xf32>
    %cst_431 = arith.constant dense<0.000000e+00> : vector<5x32xf32>
    %949 = tpu.matmul %948, %827, %cst_431 {dimension_numbers = #tpu.dot_dimension_numbers<[1], [0], [0], [1], [0, 0, 1, 1], [], []>} : vector<5x16xf32>, vector<16x32xf32>, vector<5x32xf32> -> vector<5x32xf32>
    %950 = arith.addf %947, %949 : vector<5x32xf32>
    %951 = vector.extract_strided_slice %813 {offsets = [1, 0], sizes = [5, 16], strides = [1, 1]} : vector<7x16xf32> to vector<5x16xf32>
    %cst_432 = arith.constant dense<0.000000e+00> : vector<5x32xf32>
    %952 = tpu.matmul %951, %829, %cst_432 {dimension_numbers = #tpu.dot_dimension_numbers<[1], [0], [0], [1], [0, 0, 1, 1], [], []>} : vector<5x16xf32>, vector<16x32xf32>, vector<5x32xf32> -> vector<5x32xf32>
    %953 = arith.addf %950, %952 : vector<5x32xf32>
    %954 = vector.extract_strided_slice %813 {offsets = [2, 0], sizes = [5, 16], strides = [1, 1]} : vector<7x16xf32> to vector<5x16xf32>
    %cst_433 = arith.constant dense<0.000000e+00> : vector<5x32xf32>
    %955 = tpu.matmul %954, %831, %cst_433 {dimension_numbers = #tpu.dot_dimension_numbers<[1], [0], [0], [1], [0, 0, 1, 1], [], []>} : vector<5x16xf32>, vector<16x32xf32>, vector<5x32xf32> -> vector<5x32xf32>
    %956 = arith.addf %953, %955 : vector<5x32xf32>
    %957 = vector.broadcast %832 : vector<1x32xf32> to vector<5x32xf32>
    %958 = arith.addf %956, %957 : vector<5x32xf32>
    %cst_434 = arith.constant 0.000000e+00 : f32
    %959 = vector.broadcast %cst_434 : f32 to vector<5x32xf32>
    %960 = arith.maximumf %958, %959 : vector<5x32xf32>
    %c0_435 = arith.constant 0 : index
    %c0_436 = arith.constant 0 : index
    %c0_437 = arith.constant 0 : index
    %c0_438 = arith.constant 0 : index
    %961 = vector.load %arg6[%c0_435, %c0_436, %c0_437, %c0_438] : memref<3x3x32x64xf32, #tpu.memory_space<vmem>>, vector<1x1x32x64xf32>
    %962 = vector.shape_cast %961 : vector<1x1x32x64xf32> to vector<32x64xf32>
    %c0_439 = arith.constant 0 : index
    %c1_440 = arith.constant 1 : index
    %c0_441 = arith.constant 0 : index
    %c0_442 = arith.constant 0 : index
    %963 = vector.load %arg6[%c0_439, %c1_440, %c0_441, %c0_442] : memref<3x3x32x64xf32, #tpu.memory_space<vmem>>, vector<1x1x32x64xf32>
    %964 = vector.shape_cast %963 : vector<1x1x32x64xf32> to vector<32x64xf32>
    %c0_443 = arith.constant 0 : index
    %c2_444 = arith.constant 2 : index
    %c0_445 = arith.constant 0 : index
    %c0_446 = arith.constant 0 : index
    %965 = vector.load %arg6[%c0_443, %c2_444, %c0_445, %c0_446] : memref<3x3x32x64xf32, #tpu.memory_space<vmem>>, vector<1x1x32x64xf32>
    %966 = vector.shape_cast %965 : vector<1x1x32x64xf32> to vector<32x64xf32>
    %c1_447 = arith.constant 1 : index
    %c0_448 = arith.constant 0 : index
    %c0_449 = arith.constant 0 : index
    %c0_450 = arith.constant 0 : index
    %967 = vector.load %arg6[%c1_447, %c0_448, %c0_449, %c0_450] : memref<3x3x32x64xf32, #tpu.memory_space<vmem>>, vector<1x1x32x64xf32>
    %968 = vector.shape_cast %967 : vector<1x1x32x64xf32> to vector<32x64xf32>
    %c1_451 = arith.constant 1 : index
    %c1_452 = arith.constant 1 : index
    %c0_453 = arith.constant 0 : index
    %c0_454 = arith.constant 0 : index
    %969 = vector.load %arg6[%c1_451, %c1_452, %c0_453, %c0_454] : memref<3x3x32x64xf32, #tpu.memory_space<vmem>>, vector<1x1x32x64xf32>
    %970 = vector.shape_cast %969 : vector<1x1x32x64xf32> to vector<32x64xf32>
    %c1_455 = arith.constant 1 : index
    %c2_456 = arith.constant 2 : index
    %c0_457 = arith.constant 0 : index
    %c0_458 = arith.constant 0 : index
    %971 = vector.load %arg6[%c1_455, %c2_456, %c0_457, %c0_458] : memref<3x3x32x64xf32, #tpu.memory_space<vmem>>, vector<1x1x32x64xf32>
    %972 = vector.shape_cast %971 : vector<1x1x32x64xf32> to vector<32x64xf32>
    %c2_459 = arith.constant 2 : index
    %c0_460 = arith.constant 0 : index
    %c0_461 = arith.constant 0 : index
    %c0_462 = arith.constant 0 : index
    %973 = vector.load %arg6[%c2_459, %c0_460, %c0_461, %c0_462] : memref<3x3x32x64xf32, #tpu.memory_space<vmem>>, vector<1x1x32x64xf32>
    %974 = vector.shape_cast %973 : vector<1x1x32x64xf32> to vector<32x64xf32>
    %c2_463 = arith.constant 2 : index
    %c1_464 = arith.constant 1 : index
    %c0_465 = arith.constant 0 : index
    %c0_466 = arith.constant 0 : index
    %975 = vector.load %arg6[%c2_463, %c1_464, %c0_465, %c0_466] : memref<3x3x32x64xf32, #tpu.memory_space<vmem>>, vector<1x1x32x64xf32>
    %976 = vector.shape_cast %975 : vector<1x1x32x64xf32> to vector<32x64xf32>
    %c2_467 = arith.constant 2 : index
    %c2_468 = arith.constant 2 : index
    %c0_469 = arith.constant 0 : index
    %c0_470 = arith.constant 0 : index
    %977 = vector.load %arg6[%c2_467, %c2_468, %c0_469, %c0_470] : memref<3x3x32x64xf32, #tpu.memory_space<vmem>>, vector<1x1x32x64xf32>
    %978 = vector.shape_cast %977 : vector<1x1x32x64xf32> to vector<32x64xf32>
    %c0_471 = arith.constant 0 : index
    %c0_472 = arith.constant 0 : index
    %979 = vector.load %arg7[%c0_471, %c0_472] : memref<1x64xf32, #tpu.memory_space<vmem>>, vector<1x64xf32>
    %cst_473 = arith.constant 0.000000e+00 : f32
    %980 = vector.broadcast %cst_473 : f32 to vector<3x64xf32>
    %981 = vector.extract_strided_slice %864 {offsets = [0, 0], sizes = [3, 32], strides = [1, 1]} : vector<5x32xf32> to vector<3x32xf32>
    %cst_474 = arith.constant dense<0.000000e+00> : vector<3x64xf32>
    %982 = tpu.matmul %981, %962, %cst_474 {dimension_numbers = #tpu.dot_dimension_numbers<[1], [0], [0], [1], [0, 0, 1, 1], [], []>} : vector<3x32xf32>, vector<32x64xf32>, vector<3x64xf32> -> vector<3x64xf32>
    %983 = arith.addf %980, %982 : vector<3x64xf32>
    %984 = vector.extract_strided_slice %864 {offsets = [1, 0], sizes = [3, 32], strides = [1, 1]} : vector<5x32xf32> to vector<3x32xf32>
    %cst_475 = arith.constant dense<0.000000e+00> : vector<3x64xf32>
    %985 = tpu.matmul %984, %964, %cst_475 {dimension_numbers = #tpu.dot_dimension_numbers<[1], [0], [0], [1], [0, 0, 1, 1], [], []>} : vector<3x32xf32>, vector<32x64xf32>, vector<3x64xf32> -> vector<3x64xf32>
    %986 = arith.addf %983, %985 : vector<3x64xf32>
    %987 = vector.extract_strided_slice %864 {offsets = [2, 0], sizes = [3, 32], strides = [1, 1]} : vector<5x32xf32> to vector<3x32xf32>
    %cst_476 = arith.constant dense<0.000000e+00> : vector<3x64xf32>
    %988 = tpu.matmul %987, %966, %cst_476 {dimension_numbers = #tpu.dot_dimension_numbers<[1], [0], [0], [1], [0, 0, 1, 1], [], []>} : vector<3x32xf32>, vector<32x64xf32>, vector<3x64xf32> -> vector<3x64xf32>
    %989 = arith.addf %986, %988 : vector<3x64xf32>
    %990 = vector.extract_strided_slice %896 {offsets = [0, 0], sizes = [3, 32], strides = [1, 1]} : vector<5x32xf32> to vector<3x32xf32>
    %cst_477 = arith.constant dense<0.000000e+00> : vector<3x64xf32>
    %991 = tpu.matmul %990, %968, %cst_477 {dimension_numbers = #tpu.dot_dimension_numbers<[1], [0], [0], [1], [0, 0, 1, 1], [], []>} : vector<3x32xf32>, vector<32x64xf32>, vector<3x64xf32> -> vector<3x64xf32>
    %992 = arith.addf %989, %991 : vector<3x64xf32>
    %993 = vector.extract_strided_slice %896 {offsets = [1, 0], sizes = [3, 32], strides = [1, 1]} : vector<5x32xf32> to vector<3x32xf32>
    %cst_478 = arith.constant dense<0.000000e+00> : vector<3x64xf32>
    %994 = tpu.matmul %993, %970, %cst_478 {dimension_numbers = #tpu.dot_dimension_numbers<[1], [0], [0], [1], [0, 0, 1, 1], [], []>} : vector<3x32xf32>, vector<32x64xf32>, vector<3x64xf32> -> vector<3x64xf32>
    %995 = arith.addf %992, %994 : vector<3x64xf32>
    %996 = vector.extract_strided_slice %896 {offsets = [2, 0], sizes = [3, 32], strides = [1, 1]} : vector<5x32xf32> to vector<3x32xf32>
    %cst_479 = arith.constant dense<0.000000e+00> : vector<3x64xf32>
    %997 = tpu.matmul %996, %972, %cst_479 {dimension_numbers = #tpu.dot_dimension_numbers<[1], [0], [0], [1], [0, 0, 1, 1], [], []>} : vector<3x32xf32>, vector<32x64xf32>, vector<3x64xf32> -> vector<3x64xf32>
    %998 = arith.addf %995, %997 : vector<3x64xf32>
    %999 = vector.extract_strided_slice %928 {offsets = [0, 0], sizes = [3, 32], strides = [1, 1]} : vector<5x32xf32> to vector<3x32xf32>
    %cst_480 = arith.constant dense<0.000000e+00> : vector<3x64xf32>
    %1000 = tpu.matmul %999, %974, %cst_480 {dimension_numbers = #tpu.dot_dimension_numbers<[1], [0], [0], [1], [0, 0, 1, 1], [], []>} : vector<3x32xf32>, vector<32x64xf32>, vector<3x64xf32> -> vector<3x64xf32>
    %1001 = arith.addf %998, %1000 : vector<3x64xf32>
    %1002 = vector.extract_strided_slice %928 {offsets = [1, 0], sizes = [3, 32], strides = [1, 1]} : vector<5x32xf32> to vector<3x32xf32>
    %cst_481 = arith.constant dense<0.000000e+00> : vector<3x64xf32>
    %1003 = tpu.matmul %1002, %976, %cst_481 {dimension_numbers = #tpu.dot_dimension_numbers<[1], [0], [0], [1], [0, 0, 1, 1], [], []>} : vector<3x32xf32>, vector<32x64xf32>, vector<3x64xf32> -> vector<3x64xf32>
    %1004 = arith.addf %1001, %1003 : vector<3x64xf32>
    %1005 = vector.extract_strided_slice %928 {offsets = [2, 0], sizes = [3, 32], strides = [1, 1]} : vector<5x32xf32> to vector<3x32xf32>
    %cst_482 = arith.constant dense<0.000000e+00> : vector<3x64xf32>
    %1006 = tpu.matmul %1005, %978, %cst_482 {dimension_numbers = #tpu.dot_dimension_numbers<[1], [0], [0], [1], [0, 0, 1, 1], [], []>} : vector<3x32xf32>, vector<32x64xf32>, vector<3x64xf32> -> vector<3x64xf32>
    %1007 = arith.addf %1004, %1006 : vector<3x64xf32>
    %1008 = vector.broadcast %979 : vector<1x64xf32> to vector<3x64xf32>
    %1009 = arith.addf %1007, %1008 : vector<3x64xf32>
    %cst_483 = arith.constant 0.000000e+00 : f32
    %1010 = vector.broadcast %cst_483 : f32 to vector<3x64xf32>
    %1011 = arith.maximumf %1009, %1010 : vector<3x64xf32>
    %cst_484 = arith.constant 0.000000e+00 : f32
    %1012 = vector.broadcast %cst_484 : f32 to vector<3x64xf32>
    %1013 = vector.extract_strided_slice %896 {offsets = [0, 0], sizes = [3, 32], strides = [1, 1]} : vector<5x32xf32> to vector<3x32xf32>
    %cst_485 = arith.constant dense<0.000000e+00> : vector<3x64xf32>
    %1014 = tpu.matmul %1013, %962, %cst_485 {dimension_numbers = #tpu.dot_dimension_numbers<[1], [0], [0], [1], [0, 0, 1, 1], [], []>} : vector<3x32xf32>, vector<32x64xf32>, vector<3x64xf32> -> vector<3x64xf32>
    %1015 = arith.addf %1012, %1014 : vector<3x64xf32>
    %1016 = vector.extract_strided_slice %896 {offsets = [1, 0], sizes = [3, 32], strides = [1, 1]} : vector<5x32xf32> to vector<3x32xf32>
    %cst_486 = arith.constant dense<0.000000e+00> : vector<3x64xf32>
    %1017 = tpu.matmul %1016, %964, %cst_486 {dimension_numbers = #tpu.dot_dimension_numbers<[1], [0], [0], [1], [0, 0, 1, 1], [], []>} : vector<3x32xf32>, vector<32x64xf32>, vector<3x64xf32> -> vector<3x64xf32>
    %1018 = arith.addf %1015, %1017 : vector<3x64xf32>
    %1019 = vector.extract_strided_slice %896 {offsets = [2, 0], sizes = [3, 32], strides = [1, 1]} : vector<5x32xf32> to vector<3x32xf32>
    %cst_487 = arith.constant dense<0.000000e+00> : vector<3x64xf32>
    %1020 = tpu.matmul %1019, %966, %cst_487 {dimension_numbers = #tpu.dot_dimension_numbers<[1], [0], [0], [1], [0, 0, 1, 1], [], []>} : vector<3x32xf32>, vector<32x64xf32>, vector<3x64xf32> -> vector<3x64xf32>
    %1021 = arith.addf %1018, %1020 : vector<3x64xf32>
    %1022 = vector.extract_strided_slice %928 {offsets = [0, 0], sizes = [3, 32], strides = [1, 1]} : vector<5x32xf32> to vector<3x32xf32>
    %cst_488 = arith.constant dense<0.000000e+00> : vector<3x64xf32>
    %1023 = tpu.matmul %1022, %968, %cst_488 {dimension_numbers = #tpu.dot_dimension_numbers<[1], [0], [0], [1], [0, 0, 1, 1], [], []>} : vector<3x32xf32>, vector<32x64xf32>, vector<3x64xf32> -> vector<3x64xf32>
    %1024 = arith.addf %1021, %1023 : vector<3x64xf32>
    %1025 = vector.extract_strided_slice %928 {offsets = [1, 0], sizes = [3, 32], strides = [1, 1]} : vector<5x32xf32> to vector<3x32xf32>
    %cst_489 = arith.constant dense<0.000000e+00> : vector<3x64xf32>
    %1026 = tpu.matmul %1025, %970, %cst_489 {dimension_numbers = #tpu.dot_dimension_numbers<[1], [0], [0], [1], [0, 0, 1, 1], [], []>} : vector<3x32xf32>, vector<32x64xf32>, vector<3x64xf32> -> vector<3x64xf32>
    %1027 = arith.addf %1024, %1026 : vector<3x64xf32>
    %1028 = vector.extract_strided_slice %928 {offsets = [2, 0], sizes = [3, 32], strides = [1, 1]} : vector<5x32xf32> to vector<3x32xf32>
    %cst_490 = arith.constant dense<0.000000e+00> : vector<3x64xf32>
    %1029 = tpu.matmul %1028, %972, %cst_490 {dimension_numbers = #tpu.dot_dimension_numbers<[1], [0], [0], [1], [0, 0, 1, 1], [], []>} : vector<3x32xf32>, vector<32x64xf32>, vector<3x64xf32> -> vector<3x64xf32>
    %1030 = arith.addf %1027, %1029 : vector<3x64xf32>
    %1031 = vector.extract_strided_slice %960 {offsets = [0, 0], sizes = [3, 32], strides = [1, 1]} : vector<5x32xf32> to vector<3x32xf32>
    %cst_491 = arith.constant dense<0.000000e+00> : vector<3x64xf32>
    %1032 = tpu.matmul %1031, %974, %cst_491 {dimension_numbers = #tpu.dot_dimension_numbers<[1], [0], [0], [1], [0, 0, 1, 1], [], []>} : vector<3x32xf32>, vector<32x64xf32>, vector<3x64xf32> -> vector<3x64xf32>
    %1033 = arith.addf %1030, %1032 : vector<3x64xf32>
    %1034 = vector.extract_strided_slice %960 {offsets = [1, 0], sizes = [3, 32], strides = [1, 1]} : vector<5x32xf32> to vector<3x32xf32>
    %cst_492 = arith.constant dense<0.000000e+00> : vector<3x64xf32>
    %1035 = tpu.matmul %1034, %976, %cst_492 {dimension_numbers = #tpu.dot_dimension_numbers<[1], [0], [0], [1], [0, 0, 1, 1], [], []>} : vector<3x32xf32>, vector<32x64xf32>, vector<3x64xf32> -> vector<3x64xf32>
    %1036 = arith.addf %1033, %1035 : vector<3x64xf32>
    %1037 = vector.extract_strided_slice %960 {offsets = [2, 0], sizes = [3, 32], strides = [1, 1]} : vector<5x32xf32> to vector<3x32xf32>
    %cst_493 = arith.constant dense<0.000000e+00> : vector<3x64xf32>
    %1038 = tpu.matmul %1037, %978, %cst_493 {dimension_numbers = #tpu.dot_dimension_numbers<[1], [0], [0], [1], [0, 0, 1, 1], [], []>} : vector<3x32xf32>, vector<32x64xf32>, vector<3x64xf32> -> vector<3x64xf32>
    %1039 = arith.addf %1036, %1038 : vector<3x64xf32>
    %1040 = vector.broadcast %979 : vector<1x64xf32> to vector<3x64xf32>
    %1041 = arith.addf %1039, %1040 : vector<3x64xf32>
    %cst_494 = arith.constant 0.000000e+00 : f32
    %1042 = vector.broadcast %cst_494 : f32 to vector<3x64xf32>
    %1043 = arith.maximumf %1041, %1042 : vector<3x64xf32>
    %1044 = arith.maximumf %1011, %1043 : vector<3x64xf32>
    %1045 = vector.extract_strided_slice %1044 {offsets = [0, 0], sizes = [1, 64], strides = [1, 1]} : vector<3x64xf32> to vector<1x64xf32>
    %1046 = vector.extract_strided_slice %1044 {offsets = [1, 0], sizes = [1, 64], strides = [1, 1]} : vector<3x64xf32> to vector<1x64xf32>
    %1047 = arith.maximumf %1045, %1046 : vector<1x64xf32>
    %c0_495 = arith.constant 0 : index
    %c0_496 = arith.constant 0 : index
    %c0_497 = arith.constant 0 : index
    %1048 = vector.load %arg15[%c0_495, %c0_496, %c0_497] : memref<1x1x64xf32, #tpu.memory_space<vmem>>, vector<1x1x64xf32>
    %1049 = vector.shape_cast %1048 : vector<1x1x64xf32> to vector<1x64xf32>
    %1050 = vector.shape_cast %1047 : vector<1x64xf32> to vector<1x1x64xf32>
    tpu.vector_store %arg15[%c0_495, %c0_496, %c0_497], %1050 {strides = array<i32>} : memref<1x1x64xf32, #tpu.memory_space<vmem>>, vector<1x1x64xf32>,
    %c0_498 = arith.constant 0 : index
    %c0_499 = arith.constant 0 : index
    %c0_500 = arith.constant 0 : index
    %1051 = vector.load %arg15[%c0_498, %c0_499, %c0_500] : memref<1x1x64xf32, #tpu.memory_space<vmem>>, vector<1x1x64xf32>
    %1052 = vector.shape_cast %1051 : vector<1x1x64xf32> to vector<1x64xf32>
    %c0_501 = arith.constant 0 : index
    %c0_502 = arith.constant 0 : index
    %1053 = vector.load %arg8[%c0_501, %c0_502] : memref<64x128xf32, #tpu.memory_space<vmem>>, vector<64x128xf32>
    %cst_503 = arith.constant dense<0.000000e+00> : vector<1x128xf32>
    %1054 = tpu.matmul %1052, %1053, %cst_503 {dimension_numbers = #tpu.dot_dimension_numbers<[1], [0], [0], [1], [0, 0, 1, 1], [], []>} : vector<1x64xf32>, vector<64x128xf32>, vector<1x128xf32> -> vector<1x128xf32>
    %c0_504 = arith.constant 0 : index
    %c0_505 = arith.constant 0 : index
    %1055 = vector.load %arg9[%c0_504, %c0_505] : memref<1x128xf32, #tpu.memory_space<vmem>>, vector<1x128xf32>
    %1056 = arith.addf %1054, %1055 : vector<1x128xf32>
    %cst_506 = arith.constant 0.000000e+00 : f32
    %1057 = vector.broadcast %cst_506 : f32 to vector<1x128xf32>
    %1058 = arith.maximumf %1056, %1057 : vector<1x128xf32>
    %c0_507 = arith.constant 0 : index
    %c0_508 = arith.constant 0 : index
    %1059 = vector.load %arg10[%c0_507, %c0_508] : memref<128x128xf32, #tpu.memory_space<vmem>>, vector<128x128xf32>
    %cst_509 = arith.constant dense<0.000000e+00> : vector<1x128xf32>
    %1060 = tpu.matmul %1058, %1059, %cst_509 {dimension_numbers = #tpu.dot_dimension_numbers<[1], [0], [0], [1], [0, 0, 1, 1], [], []>} : vector<1x128xf32>, vector<128x128xf32>, vector<1x128xf32> -> vector<1x128xf32>
    %c0_510 = arith.constant 0 : index
    %c0_511 = arith.constant 0 : index
    %1061 = vector.load %arg11[%c0_510, %c0_511] : memref<1x128xf32, #tpu.memory_space<vmem>>, vector<1x128xf32>
    %1062 = arith.addf %1060, %1061 : vector<1x128xf32>
    %c0_512 = arith.constant 0 : index
    %c0_513 = arith.constant 0 : index
    %c0_514 = arith.constant 0 : index
    %1063 = vector.load %arg12[%c0_512, %c0_513, %c0_514] : memref<1x1x128xf32, #tpu.memory_space<vmem>>, vector<1x1x128xf32>
    %1064 = vector.shape_cast %1063 : vector<1x1x128xf32> to vector<1x128xf32>
    %1065 = vector.shape_cast %1062 : vector<1x128xf32> to vector<1x1x128xf32>
    tpu.vector_store %arg12[%c0_512, %c0_513, %c0_514], %1065 {strides = array<i32>} : memref<1x1x128xf32, #tpu.memory_space<vmem>>, vector<1x1x128xf32>,
    %1066 = tpu.iota {dimensions = array<i32: 1>} : vector<1x128xi32>
    %c4_i32 = arith.constant 4 : i32
    %1067 = vector.broadcast %c4_i32 : i32 to vector<1x128xi32>
    %1068 = arith.cmpi slt, %1066, %1067 : vector<1x128xi32>
    %cst_515 = arith.constant 0xFF800000 : f32
    %1069 = vector.broadcast %cst_515 : f32 to vector<1x128xf32>
    %1070 = arith.select %1068, %1062, %1069 : vector<1x128xi1>, vector<1x128xf32>
    %cst_516 = arith.constant dense<0xFF800000> : vector<1xf32>
    %1071 = vector.multi_reduction <maximumf>, %1070, %cst_516 [1] : vector<1x128xf32> to vector<1xf32>
    %1072 = vector.shape_cast %1071 : vector<1xf32> to vector<1x1xf32>
    %1073 = vector.broadcast %1072 : vector<1x1xf32> to vector<1x128xf32>
    %1074 = arith.subf %1070, %1073 : vector<1x128xf32>
    %1075 = math.exp %1074 : vector<1x128xf32>
    %cst_517 = arith.constant dense<0.000000e+00> : vector<1xf32>
    %1076 = vector.multi_reduction <add>, %1075, %cst_517 [1] : vector<1x128xf32> to vector<1xf32>
    %1077 = vector.shape_cast %1076 : vector<1xf32> to vector<1x1xf32>
    %1078 = math.log %1077 : vector<1x1xf32>
    %1079 = arith.addf %1072, %1078 : vector<1x1xf32>
    %1080 = vector.broadcast %1079 : vector<1x1xf32> to vector<1x128xf32>
    %1081 = arith.subf %1062, %1080 : vector<1x128xf32>
    %c0_518 = arith.constant 0 : index
    %c0_519 = arith.constant 0 : index
    %c0_520 = arith.constant 0 : index
    %1082 = vector.load %arg13[%c0_518, %c0_519, %c0_520] : memref<1x1x128xf32, #tpu.memory_space<vmem>>, vector<1x1x128xf32>
    %1083 = vector.shape_cast %1082 : vector<1x1x128xf32> to vector<1x128xf32>
    %1084 = vector.shape_cast %1081 : vector<1x128xf32> to vector<1x1x128xf32>
    tpu.vector_store %arg13[%c0_518, %c0_519, %c0_520], %1084 {strides = array<i32>} : memref<1x1x128xf32, #tpu.memory_space<vmem>>, vector<1x1x128xf32>,
    return
  }
  func.func @transform_0(%arg0: i32) -> (i32, i32, i32, i32) {
    %c0_i32 = arith.constant 0 : i32
    %c0_i32_0 = arith.constant 0 : i32
    %c0_i32_1 = arith.constant 0 : i32
    %c0_i32_2 = arith.constant 0 : i32
    return %arg0, %c0_i32, %c0_i32_0, %c0_i32_1 : i32, i32, i32, i32
  }
  func.func @transform_1(%arg0: i32) -> (i32, i32, i32, i32) {
    %c0_i32 = arith.constant 0 : i32
    %c0_i32_0 = arith.constant 0 : i32
    %c0_i32_1 = arith.constant 0 : i32
    %c0_i32_2 = arith.constant 0 : i32
    %c0_i32_3 = arith.constant 0 : i32
    return %c0_i32, %c0_i32_0, %c0_i32_1, %c0_i32_2 : i32, i32, i32, i32
  }
  func.func @transform_2(%arg0: i32) -> (i32, i32) {
    %c0_i32 = arith.constant 0 : i32
    %c0_i32_0 = arith.constant 0 : i32
    %c0_i32_1 = arith.constant 0 : i32
    return %c0_i32, %c0_i32_0 : i32, i32
  }
  func.func @transform_3(%arg0: i32) -> (i32, i32, i32, i32) {
    %c0_i32 = arith.constant 0 : i32
    %c0_i32_0 = arith.constant 0 : i32
    %c0_i32_1 = arith.constant 0 : i32
    %c0_i32_2 = arith.constant 0 : i32
    %c0_i32_3 = arith.constant 0 : i32
    return %c0_i32, %c0_i32_0, %c0_i32_1, %c0_i32_2 : i32, i32, i32, i32
  }
  func.func @transform_4(%arg0: i32) -> (i32, i32) {
    %c0_i32 = arith.constant 0 : i32
    %c0_i32_0 = arith.constant 0 : i32
    %c0_i32_1 = arith.constant 0 : i32
    return %c0_i32, %c0_i32_0 : i32, i32
  }
  func.func @transform_5(%arg0: i32) -> (i32, i32, i32, i32) {
    %c0_i32 = arith.constant 0 : i32
    %c0_i32_0 = arith.constant 0 : i32
    %c0_i32_1 = arith.constant 0 : i32
    %c0_i32_2 = arith.constant 0 : i32
    %c0_i32_3 = arith.constant 0 : i32
    return %c0_i32, %c0_i32_0, %c0_i32_1, %c0_i32_2 : i32, i32, i32, i32
  }
  func.func @transform_6(%arg0: i32) -> (i32, i32) {
    %c0_i32 = arith.constant 0 : i32
    %c0_i32_0 = arith.constant 0 : i32
    %c0_i32_1 = arith.constant 0 : i32
    return %c0_i32, %c0_i32_0 : i32, i32
  }
  func.func @transform_7(%arg0: i32) -> (i32, i32) {
    %c0_i32 = arith.constant 0 : i32
    %c0_i32_0 = arith.constant 0 : i32
    %c0_i32_1 = arith.constant 0 : i32
    return %c0_i32, %c0_i32_0 : i32, i32
  }
  func.func @transform_8(%arg0: i32) -> (i32, i32) {
    %c0_i32 = arith.constant 0 : i32
    %c0_i32_0 = arith.constant 0 : i32
    %c0_i32_1 = arith.constant 0 : i32
    return %c0_i32, %c0_i32_0 : i32, i32
  }
  func.func @transform_9(%arg0: i32) -> (i32, i32) {
    %c0_i32 = arith.constant 0 : i32
    %c0_i32_0 = arith.constant 0 : i32
    %c0_i32_1 = arith.constant 0 : i32
    return %c0_i32, %c0_i32_0 : i32, i32
  }
  func.func @transform_10(%arg0: i32) -> (i32, i32) {
    %c0_i32 = arith.constant 0 : i32
    %c0_i32_0 = arith.constant 0 : i32
    %c0_i32_1 = arith.constant 0 : i32
    return %c0_i32, %c0_i32_0 : i32, i32
  }
  func.func @transform_11(%arg0: i32) -> (i32, i32, i32) {
    %c0_i32 = arith.constant 0 : i32
    %c0_i32_0 = arith.constant 0 : i32
    %c0_i32_1 = arith.constant 0 : i32
    return %arg0, %c0_i32, %c0_i32_0 : i32, i32, i32
  }
  func.func @transform_12(%arg0: i32) -> (i32, i32, i32) {
    %c0_i32 = arith.constant 0 : i32
    %c0_i32_0 = arith.constant 0 : i32
    %c0_i32_1 = arith.constant 0 : i32
    return %arg0, %c0_i32, %c0_i32_0 : i32, i32, i32
  }
}

</mosaic_0001>

<bundles_post_ra>
// kernel: target_forward.1
= control target key start
LH: loop header
LB: loop body
LE: loop exit
PB: predicated region body
PF: predicated region fallthrough
CT: control target
= control target key end

     0   :  { %18 = vsyncpa [#allocation5], 0  ;;  %s20151_s0 = inlined_call_operand.vmem [shape: f32[2,16,16,3], index: 0, kind: input, shape index: {}]   ;;  %s20152_s1 = inlined_call_operand.hbm [shape: f32[3,3,3,16], index: 1, kind: input, shape index: {}]   ;;  %s20153_s2 = inlined_call_operand.vmem [shape: f32[1,16], index: 2, kind: input, shape index: {}]   ;;  %s20154_s3 = inlined_call_operand.vmem [shape: f32[3,3,16,32], index: 3, kind: input, shape index: {}]   ;;  %s20155_s4 = inlined_call_operand.vmem [shape: f32[1,32], index: 4, kind: input, shape index: {}]   ;;  %s20156_s5 = inlined_call_operand.vmem [shape: f32[3,3,32,64], index: 5, kind: input, shape index: {}]   ;;  %s20157_s6 = inlined_call_operand.hbm [shape: f32[1,64], index: 6, kind: input, shape index: {}]   ;;  %s20158_s7 = inlined_call_operand.vmem [shape: f32[64,128], index: 7, kind: input, shape index: {}]   ;;  %s20159_s8 = inlined_call_operand.vmem [shape: f32[1,128], index: 8, kind: input, shape index: {}]   ;;  %s20160_s9 = inlined_call_operand.vmem [shape: f32[128,128], index: 9, kind: input, shape index: {}]   ;;  %s20161_s10 = inlined_call_operand.vmem [shape: f32[1,128], index: 10, kind: input, shape index: {}]   ;;  %s20162_s11 = inlined_call_operand.hbm [shape: f32[2,1,128], index: 11, kind: output, shape index: {0}]   ;;  %s20163_s12 = inlined_call_operand.hbm [shape: f32[2,1,128], index: 12, kind: output, shape index: {1}]  }
   0x1   :  { %19 = vsyncpa [#allocation8], 0 }
   0x2   :  { %20 = vsyncpa [#allocation6], 0 }
   0x3   :  { %22 = vsyncpa [#allocation6 + $0x1], 0 }
   0x4   :  { %23 = vsyncpa [#allocation11], 0 }
   0x5   :  { %25 = vsyncpa [#allocation11 + $0x1], 0  ;;  %s18066_s21 = smov 0   ;;  %s18068_s22 = smov 0  }
   0x6   :  { %s18070_s23 = smov 0   ;;  %s18072_s24 = smov 0  }
   0x7 LB: > { %20173 = sst [smem:[#allocation16_spill]] %s17978_s21  ;;  %s18087_s25 = sadd.s32 4294967295, %s17990_s24   ;;  %s17990_s24 = sphi %s18072_s24, %s20193_s24   ;;  %s17986_s23 = sphi %s18070_s23, %s20195_s23   ;;  %s17982_s22 = sphi %s18068_s22, %s20197_s22   ;;  %s17978_s21 = sphi %s18066_s21, %s20196_s21  }
   0x8   : > { %20174 = sst [smem:[#allocation17_spill]] %s17986_s23  ;;  %s15037_s26 = sadd.s32 4294967294, %s17990_s24  }
   0x9   : > { %20175 = sst [smem:[#allocation18_spill]] %s17990_s24  ;;  %s18091_s27 = sadd.s32 1, %s17990_s24  }
   0xa   : > { %20176 = sst [smem:[#allocation19_spill]] %s18091_s27  ;;  %s274_s28 = sadd.s32 1, %s17986_s23 }
   0xb   : > { %s271_s29 = ssub.s32 %s17990_s24, %s18091_s27  ;;  %p284_p0 = scmp.ne.s32.totalorder %s17986_s23, %s17982_s22 }
   0xc   : > { %p272_p1 = scmp.eq.s32.totalorder %s271_s29, 0  ;;  %p285_p2 = scmp.eq.s32.totalorder %s18087_s25, 1 }
   0xd   : > { %p290_p3 = scmp.ne.s32.totalorder %s17982_s22, %s17978_s21  ;;  %p291_p4 = scmp.eq.s32.totalorder %s15037_s26, 1 }
   0xe   : > { %s18102_s30 = scalar_select %p272_p1, %s17986_s23, %s274_s28  }
   0xf   : > { %p18104_p5 = por %p285_p2, %p284_p0  ;;  %p18108_p6 = por %p291_p4, %p290_p3 }
  0x10   : > { %20177 = sst [smem:[#allocation20_spill]] %s18102_s30  ;;  %p15038_p7 = scmp.ge.s32.totalorder %s17990_s24, 1 }
  0x11   : > { %s20178_s13 = scalar_select %p18104_p5, 1, 0 }
  0x12   : > { %s20179_s14 = scalar_select %p18108_p6, 1, 0 }
  0x13   : > { %p324_p8 = scmp.lt.s32.totalorder %s17990_s24, 3  ;;  %p20167_p9 = scmp.eq.s32.totalorder %s18087_s25, 0 }
  0x14   : > { %20180 = sst [smem:[#allocation21_spill]] %s20179_s14  ;;  %s17992_s16 = smov [#allocation4]  }
  0x15   : > { %p18115_p10 = pnand %p15038_p7, %p324_p8  ;;  %s336_s17 = sshll.u32 %s17992_s16, 4  ;;  %s337_s17 = int_to_ptr.vmem [resolvable:$true] %s336_s17 }
  0x16   : > { %s17993_s19 = smov [#allocation7]   ;;  %s17832_s29 = scalar_lea.hbm %s20152_s1, 576 }
  0x17   : > { %s20181_s15 = scalar_select %p18115_p10, 1, 0 }
  0x18   : > { %p17760_p11 = pneg %p18115_p10  ;;  %s362_s20 = sshll.u32 %s17993_s19, 4  ;;  %s18127_s20 = int_to_ptr.vmem [resolvable:$true] %s362_s20 }
  0x19   : > { %p17833_p13 = scmp.ne.s32.totalorder %s20152_s1, %s17832_s29  ;;  %p17839_p3 = scmp.lt.u32.totalorder %s17832_s29, %s20152_s1 }
  0x1a   : > { %p18123_p12 = pnand %p20167_p9, %p17760_p11 }
  0x1c   : > { %p17834_p0 = pneg %p18123_p12 }
  0x1e   : > { %p17835_p1 = pnand %p17834_p0, %p17833_p13 }
  0x20   : > { %p17836_p2 = pneg %p17835_p1 }
  0x22   : > { %p17841_p4 = pnand %p17839_p3, %p17836_p2 }
  0x24   : > { %17844 = shalt.err (!%p17841_p4)
}
  0x25   : > { %s17845_s19 = scalar_lea.vmem %s337_s17, 576  ;;  %p17853_p9 = scmp.lt.s32.totalorder %s337_s17, %s337_s17 }
  0x26   : > { %p17846_p7 = scmp.ne.s32.totalorder %s337_s17, %s17845_s19  ;;  %p17854_p6 = scmp.lt.s32.totalorder %s17845_s19, %s17845_s19 }
  0x28   : > { %p17848_p8 = pnand %p17846_p7, %p17834_p0  ;;  %p17855_p5 = por %p17854_p6, %p17853_p9 }
  0x2a   : > { %p17849_p11 = pneg %p17848_p8 }
  0x2c   : > { %p17856_p10 = pnand %p17855_p5, %p17849_p11 }
  0x2e   : > { %17859 = shalt.err (!%p17856_p10)
}
  0x2f   : > { %s17994_s30 = smov 64   ;;  %s17995_s26 = smov 4  }
  0x30   : > { %17763 = dma.hbm_to_vmem [thread:$0]  (!%p18123_p12), %s20152_s1, 576, %s337_s17, [#allocation5], %s17994_s30, %s17994_s30, %s17995_s26  }
  0x31   : > { %s17860_s16 = scalar_lea.hbm %s20157_s6, 16 }
  0x32   : > { %p17861_p13 = scmp.ne.s32.totalorder %s20157_s6, %s17860_s16  ;;  %p17867_p9 = scmp.lt.u32.totalorder %s17860_s16, %s20157_s6 }
  0x34   : > { %p17863_p5 = pnand %p17861_p13, %p17834_p0 }
  0x36   : > { %p17864_p6 = pneg %p17863_p5 }
  0x38   : > { %p17869_p10 = pnand %p17867_p9, %p17864_p6 }
  0x3a   : > { %17872 = shalt.err (!%p17869_p10)
}
  0x3b   : > { %s17873_s17 = scalar_lea.vmem %s18127_s20, 16  ;;  %s17880_s21 = scalar_lea.vmem %s18127_s20, 32 }
  0x3c   : > { %p17874_p1 = scmp.ne.s32.totalorder %s18127_s20, %s17873_s17  ;;  %p17881_p4 = scmp.lt.s32.totalorder %s18127_s20, %s18127_s20 }
  0x3d   : > { %p17882_p7 = scmp.lt.s32.totalorder %s17880_s21, %s17873_s17 }
  0x3e   : > { %p17876_p2 = pnand %p17874_p1, %p17834_p0 }
  0x3f   : > { %p17883_p8 = por %p17882_p7, %p17881_p4 }
  0x40   : > { %p17877_p3 = pneg %p17876_p2 }
  0x42   : > { %p17884_p11 = pnand %p17883_p8, %p17877_p3 }
  0x44   : > { %17887 = shalt.err (!%p17884_p11)
}
  0x45   : > { %17766 = dma.hbm_to_vmem [thread:$0]  (!%p18123_p12), %s20157_s6, 16, %s18127_s20, [#allocation8]  }
  0x46   : > { %p20183_p13 = scmp.ne.s32.totalorder %s20181_s15, 0 }
  0x47   : > { %p20184_p0 = scmp.eq.s32.totalorder (!%p20183_p13), %s18087_s25, 0 }
  0x48   : > { %395 = sbr.rel (%p20183_p13) target bundleno = 1958 (0x7a6), region = 64 }
  0x4f   : > { %17961 = dma.done.wait (%p20184_p0), [#allocation5], 576   ;;  %p20185_p5 = pmov %p20184_p0 }
  0x50   : > { %p20186_p6 = pmov %p20184_p0 }
  0x51   : > { %17963 = vsyncadd (%p20185_p5), [#allocation5], 4294966720 }
  0x52   : > { %17965 = dma.done.wait (%p20186_p6), [#allocation8], 16   ;;  %p20187_p9 = pmov %p20184_p0 }
  0x53   : > { %p444_p10 = scmp.lt.s32.totalorder %s18087_s25, 1  ;;  %vm510_vm0 = vcmask 1042432   ;;  %v18194_v0 = vld [vmem:[#allocation4 + $0x4] sm:$0x7]  ;;  %vm501_vm1 = vcmask 1046528   ;;  %vm505_vm2 = vcmask 23552  }
  0x54   : > { %17967 = vsyncadd (%p20187_p9), [#allocation8], 4294967280  ;;  %16138 = vmatprep.subr.msk.mxu0 %vm510_vm0, %v18194_v0  ;;  %16183 = vmatprep.subr.msk.mxu1 %vm510_vm0, %v18194_v0  ;;  %v18202_v5 = vld [vmem:[#allocation4] sm:$0x7]  ;;  %v18219_v12 = vld [vmem:[#allocation4 + $0x8] sm:$0x7] }
  0x55   : > { %s445_s18 = scalar_select %p444_p10, %s18087_s25, 1  ;;  %16139 = vmatpush3.msk.msra.mxu0 %vm510_vm0, %v18194_v0  ;;  %16184 = vmatpush3.msk.msra.mxu1 %vm510_vm0, %v18194_v0  ;;  %vm671_vm3 = vcmask 1045504   ;;  %v18234_v18 = vld [vmem:[#allocation4 + $0xc] sm:$0x7]  ;;  %v18249_v20 = vld [vmem:[#allocation4 + $0x10] sm:$0x7] }
  0x56   : > { %16143 = vmatprep.subr.msk.mxu0 %vm510_vm0, %v18202_v5  ;;  %16188 = vmatprep.subr.msk.mxu1 %vm510_vm0, %v18202_v5  ;;  %v18274_v25 = vld [vmem:[#allocation4 + $0x14] sm:$0x7]  ;;  %v18295_v29 = vld [vmem:[#allocation4 + $0x18] sm:$0x7]  ;;  %v18312_v31 = vld [vmem:[#allocation4 + $0x1c] sm:$0x7] }
  0x57   : > { %s15535_s20 = sshll.u32 %s445_s18, 8  ;;  %v18333_v36 = vld [vmem:[#allocation4 + $0x20] sm:$0x7]  ;;  %vm10564_vm4 = vcmask 122880   ;;  %vm10566_vm5 = vcmask 124930   ;;  %vm10568_vm6 = vcmask 126980  }
  0x58   : > { %s18192_s26 = scalar_lea.vmem %s20151_s0, %s15535_s20  ;;  %vm10570_vm7 = vcmask 129030   ;;  %vm10722_vm8 = vcmask 130048   ;;  %vm17997_vm9 = vmmov 0   ;;  %vm13384_vm10 = vcmask 261120   ;;  %s15531_s29 = sshll.u32 %s18087_s25, 4 }
  0x59   : > { %v449_v1 = vld [vmem:[%s18192_s26] sm:$0xff]  ;;  %v450_v2 = vld [vmem:[%s18192_s26 + $0x8] sm:$0xff]  ;;  %v451_v6 = vld [vmem:[%s18192_s26 + $0x10] sm:$0xff]  ;;  %vm14708_vm11 = vcmask 516096   ;;  %vm14720_vm12 = vcmask 523264   ;;  %vm14887_vm14 = vcmask 1040384   ;;  %s20082_s17 = scalar_lea.hbm %s20162_s11, %s15531_s29 }
  0x5a   : > { %v502_v3 = vrot.slane %v449_v1, 1  ;;  %v503_v4 = vrot.slane %v450_v2, 1  ;;  %v452_v7 = vld [vmem:[%s18192_s26 + $0x18] sm:$0xff]  ;;  %v845_v8 = vrot.slane %v451_v6, 1  ;;  %v672_v13 = vrot.slane %v449_v1, 2  ;;  %v18252_v21 = vld [vmem:[%s18192_s26 + $0x20] sm:$0xff] }
  0x5b   : > { %v846_v9 = vrot.slane %v452_v7, 1  ;;  %v673_v14 = vrot.slane %v450_v2, 2  ;;  %v932_v15 = vrot.slane %v451_v6, 2  ;;  %v933_v16 = vrot.slane %v452_v7, 2  ;;  %v18265_v22 = vld [vmem:[%s18192_s26 + $0x28] sm:$0xff]  ;;  %v455_v32 = vld [vmem:[%s18192_s26 + $0x30] sm:$0xff] }
  0x5c   : > { %v504_v10 = vsel %vm501_vm1, %v502_v3, %v503_v4  ;;  %v1105_v23 = vrot.slane %v18252_v21, 1  ;;  %v18271_v24 = vrot.slane %v18265_v22, 1  ;;  %v1192_v27 = vrot.slane %v18252_v21, 2  ;;  %v456_v33 = vld [vmem:[%s18192_s26 + $0x38] sm:$0xff]  ;;  %v18411_v41 = vld [vmem:[%s18192_s26 + $0x40] sm:$0xff]  ;;  %v18425_v42 = vld [vmem:[%s18192_s26 + $0x48] sm:$0xff] }
  0x5d   : > { %16140 = vmatprep.mubr.msk.f32.mxu0 %vm505_vm2, %v504_v10  ;;  %v847_v11 = vsel %vm501_vm1, %v845_v8, %v846_v9  ;;  %v674_v17 = vsel %vm671_vm3, %v672_v13, %v673_v14  ;;  %v934_v19 = vsel %vm671_vm3, %v932_v15, %v933_v16  ;;  %v18292_v28 = vrot.slane %v18265_v22, 2  ;;  %v459_v49 = vld [vmem:[%s18192_s26 + $0x50] sm:$0xff]  ;;  %v460_v50 = vld [vmem:[%s18192_s26 + $0x58] sm:$0xff]  ;;  %v18559_v57 = vld [vmem:[%s18192_s26 + $0x60] sm:$0xff]  ;;  %p20188_p1 = scmp.ne.s32.totalorder %s20178_s13, 0  ;;  %s17999_s18 = smov [#allocation9]  }
  0x5e   : > { %16185 = vmatprep.mubr.msk.f32.mxu1 %vm505_vm2, %v847_v11  ;;  %16141 = vmatmul.mubr.msk.f32.vlgmr.msra.gmra.mrb[0].mxu0 %vm505_vm2, %v503_v4  ;;  %v1107_v26 = vsel %vm501_vm1, %v1105_v23, %v18271_v24  ;;  %v1830_v34 = vrot.slane %v455_v32, 1  ;;  %v18329_v35 = vrot.slane %v456_v33, 1  ;;  %v1914_v38 = vrot.slane %v455_v32, 2  ;;  %v18573_v58 = vld [vmem:[%s18192_s26 + $0x68] sm:$0xff]  ;;  %v464_v3 = vld [vmem:[%s18192_s26 + $0x78] sm:$0xff]  ;;  %s17892_s20 = sshll.u32 %s17999_s18, 4  ;;  %s17893_s20 = int_to_ptr.vmem [resolvable:$false] %s17892_s20 }
  0x5f   : > { %16144 = vmatpush3.msk.msra.mxu0 %vm510_vm0, %v18202_v5  ;;  %16186 = vmatmul.mubr.msk.f32.vlgmr.msra.gmra.mrb[0].mxu1 %vm505_vm2, %v846_v9  ;;  %v1194_v30 = vsel %vm671_vm3, %v1192_v27, %v18292_v28  ;;  %v18348_v39 = vrot.slane %v456_v33, 2  ;;  %v2543_v43 = vrot.slane %v18411_v41, 1  ;;  %v2544_v44 = vrot.slane %v18425_v42, 1  ;;  %v18721_v13 = vld [vmem:[%s18192_s26 + $0x88] sm:$0xff]  ;;  %v18781_v23 = vld [vmem:[%s18192_s26 + $0x98] sm:$0xff]  ;;  %s17894_s15 = scalar_lea.vmem %s17893_s20, 32 }
  0x60   : > { %16189 = vmatpush3.msk.msra.mxu1 %vm510_vm0, %v18202_v5  ;;  %16145 = vmatprep.mubr.msk.f32.mxu0 %vm505_vm2, %v449_v1  ;;  %v1832_v37 = vsel %vm501_vm1, %v1830_v34, %v18329_v35  ;;  %v2627_v46 = vrot.slane %v18411_v41, 2  ;;  %v18447_v47 = vrot.slane %v18425_v42, 2  ;;  %v3256_v51 = vrot.slane %v459_v49, 1 }
  0x61   : > { %16148 = vmatprep.subr.msk.mxu0 %vm510_vm0, %v18219_v12  ;;  %16190 = vmatprep.mubr.msk.f32.mxu1 %vm505_vm2, %v451_v6  ;;  %v1916_v40 = vsel %vm671_vm3, %v1914_v38, %v18348_v39  ;;  %v2545_v45 = vsel %vm501_vm1, %v2543_v43, %v2544_v44  ;;  %v18481_v52 = vrot.slane %v460_v50, 1  ;;  %v3340_v54 = vrot.slane %v459_v49, 2 }
  0x62   : > { %16193 = vmatprep.subr.msk.mxu1 %vm510_vm0, %v18219_v12  ;;  %v2629_v48 = vsel %vm671_vm3, %v2627_v46, %v18447_v47  ;;  %v18498_v55 = vrot.slane %v460_v50, 2  ;;  %v3969_v59 = vrot.slane %v18559_v57, 1  ;;  %v3970_v60 = vrot.slane %v18573_v58, 1 }
  0x63   : > { %v3258_v53 = vsel %vm501_vm1, %v3256_v51, %v18481_v52  ;;  %v4053_v62 = vrot.slane %v18559_v57, 2  ;;  %v18595_v63 = vrot.slane %v18573_v58, 2  ;;  %v5396_v15 = vrot.slane %v18721_v13, 1 }
  0x64   : > { %v3342_v56 = vsel %vm671_vm3, %v3340_v54, %v18498_v55  ;;  %v3971_v61 = vsel %vm501_vm1, %v3969_v59, %v3970_v60  ;;  %v18911_v54 = vld [vmem:[%s18192_s26 + $0xa8] sm:$0xff] }
  0x65   : > { %v4055_v1 = vsel %vm671_vm3, %v4053_v62, %v18595_v63  ;;  %v18935_v59 = vrot.slane %v18911_v54, 2  ;;  %v18974_v62 = vld [vmem:[%s18192_s26 + $0xb8] sm:$0xff] }
  0x66   : > { %16146 = vmatmul.mubr.msk.f32.vlgmr.msra.gmra.mrb[0].mxu0 %vm505_vm2, %v450_v2  ;;  %v463_v2 = vld [vmem:[%s18192_s26 + $0x70] sm:$0xff] }
  0x67   : > { %16149 = vmatpush3.msk.msra.mxu0 %vm510_vm0, %v18219_v12  ;;  %16191 = vmatmul.mubr.msk.f32.vlgmr.msra.gmra.mrb[0].mxu1 %vm505_vm2, %v452_v7  ;;  %v4682_v4 = vrot.slane %v463_v2, 1  ;;  %v4766_v8 = vrot.slane %v463_v2, 2 }
  0x68   : > { %16194 = vmatpush3.msk.msra.mxu1 %vm510_vm0, %v18219_v12  ;;  %16150 = vmatprep.mubr.msk.f32.mxu0 %vm505_vm2, %v674_v17 }
  0x69   : > { %16153 = vmatprep.subr.msk.mxu0 %vm510_vm0, %v18234_v18  ;;  %16195 = vmatprep.mubr.msk.f32.mxu1 %vm505_vm2, %v934_v19 }
  0x6a   : > { %16198 = vmatprep.subr.msk.mxu1 %vm510_vm0, %v18234_v18 }
  0x6e   : > { %16151 = vmatmul.mubr.msk.f32.vlgmr.msra.gmra.mrb[0].mxu0 %vm505_vm2, %v673_v14 }
  0x6f   : > { %16154 = vmatpush3.msk.msra.mxu0 %vm510_vm0, %v18234_v18  ;;  %16196 = vmatmul.mubr.msk.f32.vlgmr.msra.gmra.mrb[0].mxu1 %vm505_vm2, %v933_v16 }
  0x70   : > { %16199 = vmatpush3.msk.msra.mxu1 %vm510_vm0, %v18234_v18  ;;  %16155 = vmatprep.mubr.msk.f32.mxu0 %vm505_vm2, %v451_v6  ;;  %v18629_v6 = vrot.slane %v464_v3, 1 }
  0x71   : > { %16158 = vmatprep.subr.msk.mxu0 %vm510_vm0, %v18249_v20  ;;  %16200 = vmatprep.mubr.msk.f32.mxu1 %vm505_vm2, %v18252_v21 }
  0x72   : > { %16203 = vmatprep.subr.msk.mxu1 %vm510_vm0, %v18249_v20 }
  0x76   : > { %16156 = vmatmul.mubr.msk.f32.vlgmr.msra.gmra.mrb[0].mxu0 %vm505_vm2, %v452_v7  ;;  %v4684_v7 = vsel %vm501_vm1, %v4682_v4, %v18629_v6  ;;  %v19003_v4 = vrot.slane %v18974_v62, 2 }
  0x77   : > { %16159 = vmatpush3.msk.msra.mxu0 %vm510_vm0, %v18249_v20  ;;  %16201 = vmatmul.mubr.msk.f32.vlgmr.msra.gmra.mrb[0].mxu1 %vm505_vm2, %v18265_v22 }
  0x78   : > { %16204 = vmatpush3.msk.msra.mxu1 %vm510_vm0, %v18249_v20  ;;  %16160 = vmatprep.mubr.msk.f32.mxu0 %vm505_vm2, %v847_v11  ;;  %v18707_v11 = vld [vmem:[%s18192_s26 + $0x80] sm:$0xff] }
  0x79   : > { %16163 = vmatprep.subr.msk.mxu0 %vm510_vm0, %v18274_v25  ;;  %16205 = vmatprep.mubr.msk.f32.mxu1 %vm505_vm2, %v1107_v26  ;;  %v5395_v14 = vrot.slane %v18707_v11, 1  ;;  %v5479_v17 = vrot.slane %v18707_v11, 2 }
  0x7a   : > { %16208 = vmatprep.subr.msk.mxu1 %vm510_vm0, %v18274_v25 }
  0x7e   : > { %16161 = vmatmul.mubr.msk.f32.vlgmr.msra.gmra.mrb[0].mxu0 %vm505_vm2, %v846_v9  ;;  %v18646_v9 = vrot.slane %v464_v3, 2 }
  0x7f   : > { %16164 = vmatpush3.msk.msra.mxu0 %vm510_vm0, %v18274_v25  ;;  %16206 = vmatmul.mubr.msk.f32.vlgmr.msra.gmra.mrb[0].mxu1 %vm505_vm2, %v18271_v24 }
  0x80   : > { %16209 = vmatpush3.msk.msra.mxu1 %vm510_vm0, %v18274_v25  ;;  %16165 = vmatprep.mubr.msk.f32.mxu0 %vm505_vm2, %v934_v19  ;;  %v4768_v10 = vsel %vm671_vm3, %v4766_v8, %v18646_v9  ;;  %v18743_v19 = vrot.slane %v18721_v13, 2 }
  0x81   : > { %16168 = vmatprep.subr.msk.mxu0 %vm510_vm0, %v18295_v29  ;;  %16210 = vmatprep.mubr.msk.f32.mxu1 %vm505_vm2, %v1194_v30 }
  0x82   : > { %16213 = vmatprep.subr.msk.mxu1 %vm510_vm0, %v18295_v29 }
  0x86   : > { %16166 = vmatmul.mubr.msk.f32.vlgmr.msra.gmra.mrb[0].mxu0 %vm505_vm2, %v933_v16  ;;  %v5397_v16 = vsel %vm501_vm1, %v5395_v14, %v5396_v15 }
  0x87   : > { %16169 = vmatpush3.msk.msra.mxu0 %vm510_vm0, %v18295_v29  ;;  %16211 = vmatmul.mubr.msk.f32.vlgmr.msra.gmra.mrb[0].mxu1 %vm505_vm2, %v18292_v28 }
  0x88   : > { %16214 = vmatpush3.msk.msra.mxu1 %vm510_vm0, %v18295_v29  ;;  %16170 = vmatprep.mubr.msk.f32.mxu0 %vm505_vm2, %v18252_v21 }
  0x89   : > { %16173 = vmatprep.subr.msk.mxu0 %vm510_vm0, %v18312_v31  ;;  %16215 = vmatprep.mubr.msk.f32.mxu1 %vm505_vm2, %v455_v32 }
  0x8a   : > { %16218 = vmatprep.subr.msk.mxu1 %vm510_vm0, %v18312_v31 }
  0x8e   : > { %16171 = vmatmul.mubr.msk.f32.vlgmr.msra.gmra.mrb[0].mxu0 %vm505_vm2, %v18265_v22 }
  0x8f   : > { %16174 = vmatpush3.msk.msra.mxu0 %vm510_vm0, %v18312_v31  ;;  %16216 = vmatmul.mubr.msk.f32.vlgmr.msra.gmra.mrb[0].mxu1 %vm505_vm2, %v456_v33 }
  0x90   : > { %16219 = vmatpush3.msk.msra.mxu1 %vm510_vm0, %v18312_v31  ;;  %16175 = vmatprep.mubr.msk.f32.mxu0 %vm505_vm2, %v1107_v26 }
  0x91   : > { %16178 = vmatprep.subr.msk.mxu0 %vm510_vm0, %v18333_v36  ;;  %16220 = vmatprep.mubr.msk.f32.mxu1 %vm505_vm2, %v1832_v37 }
  0x92   : > { %16223 = vmatprep.subr.msk.mxu1 %vm510_vm0, %v18333_v36 }
  0x96   : > { %16176 = vmatmul.mubr.msk.f32.vlgmr.msra.gmra.mrb[0].mxu0 %vm505_vm2, %v18271_v24 }
  0x97   : > { %16179 = vmatpush3.msk.msra.mxu0 %vm510_vm0, %v18333_v36  ;;  %16221 = vmatmul.mubr.msk.f32.vlgmr.msra.gmra.mrb[0].mxu1 %vm505_vm2, %v18329_v35 }
  0x98   : > { %16224 = vmatpush3.msk.msra.mxu1 %vm510_vm0, %v18333_v36  ;;  %16180 = vmatprep.mubr.msk.f32.mxu0 %vm505_vm2, %v1194_v30 }
  0x99   : > { %16225 = vmatprep.mubr.msk.f32.mxu1 %vm505_vm2, %v1916_v40  ;;  %16228 = vmatprep.subr.msk.mxu0 %vm510_vm0, %v18194_v0 }
  0x9a   : > { %16273 = vmatprep.subr.msk.mxu1 %vm510_vm0, %v18194_v0 }
  0x9e   : > { %16181 = vmatmul.mubr.msk.f32.vlgmr.msra.gmra.mrb[0].mxu0 %vm505_vm2, %v18292_v28 }
  0x9f   : > { %16226 = vmatmul.mubr.msk.f32.vlgmr.msra.gmra.mrb[0].mxu1 %vm505_vm2, %v18348_v39  ;;  %16229 = vmatpush3.msk.msra.mxu0 %vm510_vm0, %v18194_v0 }
  0xa0   : > { %16274 = vmatpush3.msk.msra.mxu1 %vm510_vm0, %v18194_v0  ;;  %16230 = vmatprep.mubr.msk.f32.mxu0 %vm505_vm2, %v1107_v26  ;;  %v18787_v26 = vrot.slane %v18781_v23, 1 }
  0xa1   : > { %16233 = vmatprep.subr.msk.mxu0 %vm510_vm0, %v18202_v5  ;;  %16275 = vmatprep.mubr.msk.f32.mxu1 %vm505_vm2, %v1832_v37 }
  0xa2   : > { %16278 = vmatprep.subr.msk.mxu1 %vm510_vm0, %v18202_v5  ;;  %16231 = vmatmul.mubr.msk.f32.vlgmr.msra.gmra.mrb[2].mxu0 %vm505_vm2, %v18271_v24 }
  0xa3   : > { %16234 = vmatpush3.msk.msra.mxu0 %vm510_vm0, %v18202_v5  ;;  %16276 = vmatmul.mubr.msk.f32.vlgmr.msra.gmra.mrb[2].mxu1 %vm505_vm2, %v18329_v35 }
  0xa4   : > { %16279 = vmatpush3.msk.msra.mxu1 %vm510_vm0, %v18202_v5  ;;  %16235 = vmatprep.mubr.msk.f32.mxu0 %vm505_vm2, %v18252_v21  ;;  %v18749_v21 = vsel %vm671_vm3, %v5479_v17, %v18743_v19 }
  0xa5   : > { %16238 = vmatprep.subr.msk.mxu0 %vm510_vm0, %v18219_v12  ;;  %16280 = vmatprep.mubr.msk.f32.mxu1 %vm505_vm2, %v455_v32 }
  0xa6   : > { %16283 = vmatprep.subr.msk.mxu1 %vm510_vm0, %v18219_v12 }
  0xaa   : > { %16236 = vmatmul.mubr.msk.f32.vlgmr.msra.gmra.mrb[2].mxu0 %vm505_vm2, %v18265_v22  ;;  %v18766_v22 = vld [vmem:[%s18192_s26 + $0x90] sm:$0xff] }
  0xab   : > { %16239 = vmatpush3.msk.msra.mxu0 %vm510_vm0, %v18219_v12  ;;  %16281 = vmatmul.mubr.msk.f32.vlgmr.msra.gmra.mrb[2].mxu1 %vm505_vm2, %v456_v33  ;;  %v6108_v24 = vrot.slane %v18766_v22, 1 }
  0xac   : > { %16284 = vmatpush3.msk.msra.mxu1 %vm510_vm0, %v18219_v12  ;;  %16240 = vmatprep.mubr.msk.f32.mxu0 %vm505_vm2, %v1194_v30  ;;  %v18810_v30 = vrot.slane %v18781_v23, 2 }
  0xad   : > { %16243 = vmatprep.subr.msk.mxu0 %vm510_vm0, %v18234_v18  ;;  %16285 = vmatprep.mubr.msk.f32.mxu1 %vm505_vm2, %v1916_v40  ;;  %v18793_v27 = vsel %vm501_vm1, %v6108_v24, %v18787_v26 }
  0xae   : > { %16288 = vmatprep.subr.msk.mxu1 %vm510_vm0, %v18234_v18 }
  0xb2   : > { %16241 = vmatmul.mubr.msk.f32.vlgmr.msra.gmra.mrb[2].mxu0 %vm505_vm2, %v18292_v28  ;;  %v6192_v28 = vrot.slane %v18766_v22, 2 }
  0xb3   : > { %16244 = vmatpush3.msk.msra.mxu0 %vm510_vm0, %v18234_v18  ;;  %16286 = vmatmul.mubr.msk.f32.vlgmr.msra.gmra.mrb[2].mxu1 %vm505_vm2, %v18348_v39 }
  0xb4   : > { %16289 = vmatpush3.msk.msra.mxu1 %vm510_vm0, %v18234_v18  ;;  %16245 = vmatprep.mubr.msk.f32.mxu0 %vm505_vm2, %v455_v32  ;;  %v18815_v32 = vsel %vm671_vm3, %v6192_v28, %v18810_v30  ;;  %v19101_v28 = vld [vmem:[%s18192_s26 + $0xc8] sm:$0xff] }
  0xb5   : > { %16248 = vmatprep.subr.msk.mxu0 %vm510_vm0, %v18249_v20  ;;  %16290 = vmatprep.mubr.msk.f32.mxu1 %vm505_vm2, %v18411_v41 }
  0xb6   : > { %16293 = vmatprep.subr.msk.mxu1 %vm510_vm0, %v18249_v20 }
  0xba   : > { %16246 = vmatmul.mubr.msk.f32.vlgmr.msra.gmra.mrb[2].mxu0 %vm505_vm2, %v456_v33  ;;  %v18854_v33 = vld [vmem:[%s20153_s2] ss:$0 sm:$0xff] }
  0xbb   : > { %16249 = vmatpush3.msk.msra.mxu0 %vm510_vm0, %v18249_v20  ;;  %16291 = vmatmul.mubr.msk.f32.vlgmr.msra.gmra.mrb[2].mxu1 %vm505_vm2, %v18425_v42 }
  0xbc   : > { %16294 = vmatpush3.msk.msra.mxu1 %vm510_vm0, %v18249_v20  ;;  %16250 = vmatprep.mubr.msk.f32.mxu0 %vm505_vm2, %v1832_v37 }
  0xbd   : > { %16253 = vmatprep.subr.msk.mxu0 %vm510_vm0, %v18274_v25  ;;  %16295 = vmatprep.mubr.msk.f32.mxu1 %vm505_vm2, %v2545_v45 }
  0xbe   : > { %16298 = vmatprep.subr.msk.mxu1 %vm510_vm0, %v18274_v25 }
  0xc2   : > { %16251 = vmatmul.mubr.msk.f32.vlgmr.msra.gmra.mrb[2].mxu0 %vm505_vm2, %v18329_v35 }
  0xc3   : > { %16254 = vmatpush3.msk.msra.mxu0 %vm510_vm0, %v18274_v25  ;;  %16296 = vmatmul.mubr.msk.f32.vlgmr.msra.gmra.mrb[2].mxu1 %vm505_vm2, %v2544_v44 }
  0xc4   : > { %16299 = vmatpush3.msk.msra.mxu1 %vm510_vm0, %v18274_v25  ;;  %16255 = vmatprep.mubr.msk.f32.mxu0 %vm505_vm2, %v1916_v40 }
  0xc5   : > { %16258 = vmatprep.subr.msk.mxu0 %vm510_vm0, %v18295_v29  ;;  %16300 = vmatprep.mubr.msk.f32.mxu1 %vm505_vm2, %v2629_v48 }
  0xc6   : > { %16303 = vmatprep.subr.msk.mxu1 %vm510_vm0, %v18295_v29 }
  0xca   : > { %16256 = vmatmul.mubr.msk.f32.vlgmr.msra.gmra.mrb[2].mxu0 %vm505_vm2, %v18348_v39 }
  0xcb   : > { %16259 = vmatpush3.msk.msra.mxu0 %vm510_vm0, %v18295_v29  ;;  %16301 = vmatmul.mubr.msk.f32.vlgmr.msra.gmra.mrb[2].mxu1 %vm505_vm2, %v18447_v47 }
  0xcc   : > { %16304 = vmatpush3.msk.msra.mxu1 %vm510_vm0, %v18295_v29  ;;  %16260 = vmatprep.mubr.msk.f32.mxu0 %vm505_vm2, %v18411_v41 }
  0xcd   : > { %16263 = vmatprep.subr.msk.mxu0 %vm510_vm0, %v18312_v31  ;;  %16305 = vmatprep.mubr.msk.f32.mxu1 %vm505_vm2, %v459_v49 }
  0xce   : > { %16308 = vmatprep.subr.msk.mxu1 %vm510_vm0, %v18312_v31 }
  0xd2   : > { %16261 = vmatmul.mubr.msk.f32.vlgmr.msra.gmra.mrb[2].mxu0 %vm505_vm2, %v18425_v42 }
  0xd3   : > { %16264 = vmatpush3.msk.msra.mxu0 %vm510_vm0, %v18312_v31  ;;  %16306 = vmatmul.mubr.msk.f32.vlgmr.msra.gmra.mrb[2].mxu1 %vm505_vm2, %v460_v50 }
  0xd4   : > { %16309 = vmatpush3.msk.msra.mxu1 %vm510_vm0, %v18312_v31  ;;  %16265 = vmatprep.mubr.msk.f32.mxu0 %vm505_vm2, %v2545_v45 }
  0xd5   : > { %16268 = vmatprep.subr.msk.mxu0 %vm510_vm0, %v18333_v36  ;;  %16310 = vmatprep.mubr.msk.f32.mxu1 %vm505_vm2, %v3258_v53 }
  0xd6   : > { %16313 = vmatprep.subr.msk.mxu1 %vm510_vm0, %v18333_v36 }
  0xda   : > { %16266 = vmatmul.mubr.msk.f32.vlgmr.msra.gmra.mrb[2].mxu0 %vm505_vm2, %v2544_v44 }
  0xdb   : > { %16269 = vmatpush3.msk.msra.mxu0 %vm510_vm0, %v18333_v36  ;;  %16311 = vmatmul.mubr.msk.f32.vlgmr.msra.gmra.mrb[2].mxu1 %vm505_vm2, %v18481_v52 }
  0xdc   : > { %16314 = vmatpush3.msk.msra.mxu1 %vm510_vm0, %v18333_v36  ;;  %16270 = vmatprep.mubr.msk.f32.mxu0 %vm505_vm2, %v2629_v48 }
  0xdd   : > { %16315 = vmatprep.mubr.msk.f32.mxu1 %vm505_vm2, %v3342_v56  ;;  %16318 = vmatprep.subr.msk.mxu0 %vm510_vm0, %v18194_v0 }
  0xde   : > { %16363 = vmatprep.subr.msk.mxu1 %vm510_vm0, %v18194_v0 }
  0xe2   : > { %16271 = vmatmul.mubr.msk.f32.vlgmr.msra.gmra.mrb[2].mxu0 %vm505_vm2, %v18447_v47 }
  0xe3   : > { %16316 = vmatmul.mubr.msk.f32.vlgmr.msra.gmra.mrb[2].mxu1 %vm505_vm2, %v18498_v55  ;;  %16319 = vmatpush3.msk.msra.mxu0 %vm510_vm0, %v18194_v0 }
  0xe4   : > { %16364 = vmatpush3.msk.msra.mxu1 %vm510_vm0, %v18194_v0  ;;  %16320 = vmatprep.mubr.msk.f32.mxu0 %vm505_vm2, %v2545_v45 }
  0xe5   : > { %16323 = vmatprep.subr.msk.mxu0 %vm510_vm0, %v18202_v5  ;;  %16365 = vmatprep.mubr.msk.f32.mxu1 %vm505_vm2, %v3258_v53 }
  0xe6   : > { %16368 = vmatprep.subr.msk.mxu1 %vm510_vm0, %v18202_v5  ;;  %16321 = vmatmul.mubr.msk.f32.vlgmr.msra.gmra.mrb[4].mxu0 %vm505_vm2, %v2544_v44 }
  0xe7   : > { %16324 = vmatpush3.msk.msra.mxu0 %vm510_vm0, %v18202_v5  ;;  %16366 = vmatmul.mubr.msk.f32.vlgmr.msra.gmra.mrb[4].mxu1 %vm505_vm2, %v18481_v52 }
  0xe8   : > { %16369 = vmatpush3.msk.msra.mxu1 %vm510_vm0, %v18202_v5  ;;  %16325 = vmatprep.mubr.msk.f32.mxu0 %vm505_vm2, %v18411_v41 }
  0xe9   : > { %16328 = vmatprep.subr.msk.mxu0 %vm510_vm0, %v18219_v12  ;;  %16370 = vmatprep.mubr.msk.f32.mxu1 %vm505_vm2, %v459_v49 }
  0xea   : > { %16373 = vmatprep.subr.msk.mxu1 %vm510_vm0, %v18219_v12 }
  0xee   : > { %16326 = vmatmul.mubr.msk.f32.vlgmr.msra.gmra.mrb[4].mxu0 %vm505_vm2, %v18425_v42 }
  0xef   : > { %16329 = vmatpush3.msk.msra.mxu0 %vm510_vm0, %v18219_v12  ;;  %16371 = vmatmul.mubr.msk.f32.vlgmr.msra.gmra.mrb[4].mxu1 %vm505_vm2, %v460_v50 }
  0xf0   : > { %16374 = vmatpush3.msk.msra.mxu1 %vm510_vm0, %v18219_v12  ;;  %16330 = vmatprep.mubr.msk.f32.mxu0 %vm505_vm2, %v2629_v48 }
  0xf1   : > { %16333 = vmatprep.subr.msk.mxu0 %vm510_vm0, %v18234_v18  ;;  %16375 = vmatprep.mubr.msk.f32.mxu1 %vm505_vm2, %v3342_v56 }
  0xf2   : > { %16378 = vmatprep.subr.msk.mxu1 %vm510_vm0, %v18234_v18 }
  0xf6   : > { %16331 = vmatmul.mubr.msk.f32.vlgmr.msra.gmra.mrb[4].mxu0 %vm505_vm2, %v18447_v47 }
  0xf7   : > { %16334 = vmatpush3.msk.msra.mxu0 %vm510_vm0, %v18234_v18  ;;  %16376 = vmatmul.mubr.msk.f32.vlgmr.msra.gmra.mrb[4].mxu1 %vm505_vm2, %v18498_v55 }
  0xf8   : > { %16379 = vmatpush3.msk.msra.mxu1 %vm510_vm0, %v18234_v18  ;;  %16335 = vmatprep.mubr.msk.f32.mxu0 %vm505_vm2, %v459_v49 }
  0xf9   : > { %16338 = vmatprep.subr.msk.mxu0 %vm510_vm0, %v18249_v20  ;;  %16380 = vmatprep.mubr.msk.f32.mxu1 %vm505_vm2, %v18559_v57 }
  0xfa   : > { %16383 = vmatprep.subr.msk.mxu1 %vm510_vm0, %v18249_v20 }
  0xfe   : > { %16336 = vmatmul.mubr.msk.f32.vlgmr.msra.gmra.mrb[4].mxu0 %vm505_vm2, %v460_v50 }
  0xff   : > { %16339 = vmatpush3.msk.msra.mxu0 %vm510_vm0, %v18249_v20  ;;  %16381 = vmatmul.mubr.msk.f32.vlgmr.msra.gmra.mrb[4].mxu1 %vm505_vm2, %v18573_v58 }
 0x100   : > { %16384 = vmatpush3.msk.msra.mxu1 %vm510_vm0, %v18249_v20  ;;  %16340 = vmatprep.mubr.msk.f32.mxu0 %vm505_vm2, %v3258_v53  ;;  %v18896_v53 = vld [vmem:[%s18192_s26 + $0xa0] sm:$0xff] }
 0x101   : > { %16343 = vmatprep.subr.msk.mxu0 %vm510_vm0, %v18274_v25  ;;  %16385 = vmatprep.mubr.msk.f32.mxu1 %vm505_vm2, %v3971_v61 }
 0x102   : > { %16388 = vmatprep.subr.msk.mxu1 %vm510_vm0, %v18274_v25 }
 0x106   : > { %16341 = vmatmul.mubr.msk.f32.vlgmr.msra.gmra.mrb[4].mxu0 %vm505_vm2, %v18481_v52 }
 0x107   : > { %16344 = vmatpush3.msk.msra.mxu0 %vm510_vm0, %v18274_v25  ;;  %16386 = vmatmul.mubr.msk.f32.vlgmr.msra.gmra.mrb[4].mxu1 %vm505_vm2, %v3970_v60 }
 0x108   : > { %16389 = vmatpush3.msk.msra.mxu1 %vm510_vm0, %v18274_v25  ;;  %16345 = vmatprep.mubr.msk.f32.mxu0 %vm505_vm2, %v3342_v56  ;;  %v6822_v56 = vrot.slane %v18911_v54, 1 }
 0x109   : > { %16348 = vmatprep.subr.msk.mxu0 %vm510_vm0, %v18295_v29  ;;  %16390 = vmatprep.mubr.msk.f32.mxu1 %vm505_vm2, %v4055_v1 }
 0x10a   : > { %16393 = vmatprep.subr.msk.mxu1 %vm510_vm0, %v18295_v29 }
 0x10e   : > { %16346 = vmatmul.mubr.msk.f32.vlgmr.msra.gmra.mrb[4].mxu0 %vm505_vm2, %v18498_v55  ;;  %v6821_v55 = vrot.slane %v18896_v53, 1 }
 0x10f   : > { %16349 = vmatpush3.msk.msra.mxu0 %vm510_vm0, %v18295_v29  ;;  %16391 = vmatmul.mubr.msk.f32.vlgmr.msra.gmra.mrb[4].mxu1 %vm505_vm2, %v18595_v63 }
 0x110   : > { %16394 = vmatpush3.msk.msra.mxu1 %vm510_vm0, %v18295_v29  ;;  %16350 = vmatprep.mubr.msk.f32.mxu0 %vm505_vm2, %v18559_v57 }
 0x111   : > { %16353 = vmatprep.subr.msk.mxu0 %vm510_vm0, %v18312_v31  ;;  %16395 = vmatprep.mubr.msk.f32.mxu1 %vm505_vm2, %v463_v2 }
 0x112   : > { %16398 = vmatprep.subr.msk.mxu1 %vm510_vm0, %v18312_v31 }
 0x116   : > { %16351 = vmatmul.mubr.msk.f32.vlgmr.msra.gmra.mrb[4].mxu0 %vm505_vm2, %v18573_v58 }
 0x117   : > { %16354 = vmatpush3.msk.msra.mxu0 %vm510_vm0, %v18312_v31  ;;  %16396 = vmatmul.mubr.msk.f32.vlgmr.msra.gmra.mrb[4].mxu1 %vm505_vm2, %v464_v3 }
 0x118   : > { %16399 = vmatpush3.msk.msra.mxu1 %vm510_vm0, %v18312_v31  ;;  %16355 = vmatprep.mubr.msk.f32.mxu0 %vm505_vm2, %v3971_v61 }
 0x119   : > { %16358 = vmatprep.subr.msk.mxu0 %vm510_vm0, %v18333_v36  ;;  %16400 = vmatprep.mubr.msk.f32.mxu1 %vm505_vm2, %v4684_v7 }
 0x11a   : > { %16403 = vmatprep.subr.msk.mxu1 %vm510_vm0, %v18333_v36 }
 0x11e   : > { %16356 = vmatmul.mubr.msk.f32.vlgmr.msra.gmra.mrb[4].mxu0 %vm505_vm2, %v3970_v60 }
 0x11f   : > { %16359 = vmatpush3.msk.msra.mxu0 %vm510_vm0, %v18333_v36  ;;  %16401 = vmatmul.mubr.msk.f32.vlgmr.msra.gmra.mrb[4].mxu1 %vm505_vm2, %v18629_v6 }
 0x120   : > { %16404 = vmatpush3.msk.msra.mxu1 %vm510_vm0, %v18333_v36  ;;  %16360 = vmatprep.mubr.msk.f32.mxu0 %vm505_vm2, %v4055_v1 }
 0x121   : > { %16405 = vmatprep.mubr.msk.f32.mxu1 %vm505_vm2, %v4768_v10  ;;  %16408 = vmatprep.subr.msk.mxu0 %vm510_vm0, %v18194_v0 }
 0x122   : > { %16453 = vmatprep.subr.msk.mxu1 %vm510_vm0, %v18194_v0 }
 0x126   : > { %16361 = vmatmul.mubr.msk.f32.vlgmr.msra.gmra.mrb[4].mxu0 %vm505_vm2, %v18595_v63 }
 0x127   : > { %16406 = vmatmul.mubr.msk.f32.vlgmr.msra.gmra.mrb[4].mxu1 %vm505_vm2, %v18646_v9  ;;  %16409 = vmatpush3.msk.msra.mxu0 %vm510_vm0, %v18194_v0 }
 0x128   : > { %16454 = vmatpush3.msk.msra.mxu1 %vm510_vm0, %v18194_v0  ;;  %16410 = vmatprep.mubr.msk.f32.mxu0 %vm505_vm2, %v3971_v61  ;;  %v18959_v61 = vld [vmem:[%s18192_s26 + $0xb0] sm:$0xff] }
 0x129   : > { %16413 = vmatprep.subr.msk.mxu0 %vm510_vm0, %v18202_v5  ;;  %16455 = vmatprep.mubr.msk.f32.mxu1 %vm505_vm2, %v4684_v7 }
 0x12a   : > { %16458 = vmatprep.subr.msk.mxu1 %vm510_vm0, %v18202_v5  ;;  %16411 = vmatmul.mubr.msk.f32.vlgmr.msra.gmra.mrb[6].mxu0 %vm505_vm2, %v3970_v60 }
 0x12b   : > { %16414 = vmatpush3.msk.msra.mxu0 %vm510_vm0, %v18202_v5  ;;  %16456 = vmatmul.mubr.msk.f32.vlgmr.msra.gmra.mrb[6].mxu1 %vm505_vm2, %v18629_v6 }
 0x12c   : > { %16459 = vmatpush3.msk.msra.mxu1 %vm510_vm0, %v18202_v5  ;;  %16415 = vmatprep.mubr.msk.f32.mxu0 %vm505_vm2, %v18559_v57  ;;  %v6823_v57 = vsel %vm501_vm1, %v6821_v55, %v6822_v56 }
 0x12d   : > { %16418 = vmatprep.subr.msk.mxu0 %vm510_vm0, %v18219_v12  ;;  %16460 = vmatprep.mubr.msk.f32.mxu1 %vm505_vm2, %v463_v2 }
 0x12e   : > { %16463 = vmatprep.subr.msk.mxu1 %vm510_vm0, %v18219_v12 }
 0x132   : > { %16416 = vmatmul.mubr.msk.f32.vlgmr.msra.gmra.mrb[6].mxu0 %vm505_vm2, %v18573_v58  ;;  %v6905_v58 = vrot.slane %v18896_v53, 2 }
 0x133   : > { %16419 = vmatpush3.msk.msra.mxu0 %vm510_vm0, %v18219_v12  ;;  %16461 = vmatmul.mubr.msk.f32.vlgmr.msra.gmra.mrb[6].mxu1 %vm505_vm2, %v464_v3 }
 0x134   : > { %16464 = vmatpush3.msk.msra.mxu1 %vm510_vm0, %v18219_v12  ;;  %16420 = vmatprep.mubr.msk.f32.mxu0 %vm505_vm2, %v4055_v1  ;;  %v18941_v60 = vsel %vm671_vm3, %v6905_v58, %v18935_v59  ;;  %v18980_v1 = vrot.slane %v18974_v62, 1 }
 0x135   : > { %16423 = vmatprep.subr.msk.mxu0 %vm510_vm0, %v18234_v18  ;;  %16465 = vmatprep.mubr.msk.f32.mxu1 %vm505_vm2, %v4768_v10 }
 0x136   : > { %16468 = vmatprep.subr.msk.mxu1 %vm510_vm0, %v18234_v18 }
 0x13a   : > { %16421 = vmatmul.mubr.msk.f32.vlgmr.msra.gmra.mrb[6].mxu0 %vm505_vm2, %v18595_v63  ;;  %v7534_v63 = vrot.slane %v18959_v61, 1 }
 0x13b   : > { %16424 = vmatpush3.msk.msra.mxu0 %vm510_vm0, %v18234_v18  ;;  %16466 = vmatmul.mubr.msk.f32.vlgmr.msra.gmra.mrb[6].mxu1 %vm505_vm2, %v18646_v9 }
 0x13c   : > { %16469 = vmatpush3.msk.msra.mxu1 %vm510_vm0, %v18234_v18  ;;  %16425 = vmatprep.mubr.msk.f32.mxu0 %vm505_vm2, %v463_v2  ;;  %v18986_v2 = vsel %vm501_vm1, %v7534_v63, %v18980_v1 }
 0x13d   : > { %16428 = vmatprep.subr.msk.mxu0 %vm510_vm0, %v18249_v20  ;;  %16470 = vmatprep.mubr.msk.f32.mxu1 %vm505_vm2, %v18707_v11 }
 0x13e   : > { %16473 = vmatprep.subr.msk.mxu1 %vm510_vm0, %v18249_v20 }
 0x142   : > { %16426 = vmatmul.mubr.msk.f32.vlgmr.msra.gmra.mrb[6].mxu0 %vm505_vm2, %v464_v3  ;;  %v7618_v3 = vrot.slane %v18959_v61, 2 }
 0x143   : > { %16429 = vmatpush3.msk.msra.mxu0 %vm510_vm0, %v18249_v20  ;;  %16471 = vmatmul.mubr.msk.f32.vlgmr.msra.gmra.mrb[6].mxu1 %vm505_vm2, %v18721_v13 }
 0x144   : > { %16474 = vmatpush3.msk.msra.mxu1 %vm510_vm0, %v18249_v20  ;;  %16430 = vmatprep.mubr.msk.f32.mxu0 %vm505_vm2, %v4684_v7 }
 0x145   : > { %16433 = vmatprep.subr.msk.mxu0 %vm510_vm0, %v18274_v25  ;;  %16475 = vmatprep.mubr.msk.f32.mxu1 %vm505_vm2, %v5397_v16 }
 0x146   : > { %16478 = vmatprep.subr.msk.mxu1 %vm510_vm0, %v18274_v25 }
 0x14a   : > { %16431 = vmatmul.mubr.msk.f32.vlgmr.msra.gmra.mrb[6].mxu0 %vm505_vm2, %v18629_v6  ;;  %v19008_v6 = vsel %vm671_vm3, %v7618_v3, %v19003_v4  ;;  %v478_v3 = vld [vmem:[%s18192_s26 + $0xe8] sm:$0xff] }
 0x14b   : > { %16434 = vmatpush3.msk.msra.mxu0 %vm510_vm0, %v18274_v25  ;;  %16476 = vmatmul.mubr.msk.f32.vlgmr.msra.gmra.mrb[6].mxu1 %vm505_vm2, %v5396_v15 }
 0x14c   : > { %16479 = vmatpush3.msk.msra.mxu1 %vm510_vm0, %v18274_v25  ;;  %16435 = vmatprep.mubr.msk.f32.mxu0 %vm505_vm2, %v4768_v10 }
 0x14d   : > { %16438 = vmatprep.subr.msk.mxu0 %vm510_vm0, %v18295_v29  ;;  %16480 = vmatprep.mubr.msk.f32.mxu1 %vm505_vm2, %v18749_v21 }
 0x14e   : > { %16483 = vmatprep.subr.msk.mxu1 %vm510_vm0, %v18295_v29 }
 0x152   : > { %16436 = vmatmul.mubr.msk.f32.vlgmr.msra.gmra.mrb[6].mxu0 %vm505_vm2, %v18646_v9 }
 0x153   : > { %16439 = vmatpush3.msk.msra.mxu0 %vm510_vm0, %v18295_v29  ;;  %16481 = vmatmul.mubr.msk.f32.vlgmr.msra.gmra.mrb[6].mxu1 %vm505_vm2, %v18743_v19 }
 0x154   : > { %16484 = vmatpush3.msk.msra.mxu1 %vm510_vm0, %v18295_v29  ;;  %16440 = vmatprep.mubr.msk.f32.mxu0 %vm505_vm2, %v18707_v11 }
 0x155   : > { %16443 = vmatprep.subr.msk.mxu0 %vm510_vm0, %v18312_v31  ;;  %16485 = vmatprep.mubr.msk.f32.mxu1 %vm505_vm2, %v18766_v22 }
 0x156   : > { %16488 = vmatprep.subr.msk.mxu1 %vm510_vm0, %v18312_v31 }
 0x15a   : > { %16441 = vmatmul.mubr.msk.f32.vlgmr.msra.gmra.mrb[6].mxu0 %vm505_vm2, %v18721_v13 }
 0x15b   : > { %16444 = vmatpush3.msk.msra.mxu0 %vm510_vm0, %v18312_v31  ;;  %16486 = vmatmul.mubr.msk.f32.vlgmr.msra.gmra.mrb[6].mxu1 %vm505_vm2, %v18781_v23 }
 0x15c   : > { %16489 = vmatpush3.msk.msra.mxu1 %vm510_vm0, %v18312_v31  ;;  %16445 = vmatprep.mubr.msk.f32.mxu0 %vm505_vm2, %v5397_v16 }
 0x15d   : > { %16448 = vmatprep.subr.msk.mxu0 %vm510_vm0, %v18333_v36  ;;  %16490 = vmatprep.mubr.msk.f32.mxu1 %vm505_vm2, %v18793_v27 }
 0x15e   : > { %16493 = vmatprep.subr.msk.mxu1 %vm510_vm0, %v18333_v36 }
 0x162   : > { %16446 = vmatmul.mubr.msk.f32.vlgmr.msra.gmra.mrb[6].mxu0 %vm505_vm2, %v5396_v15 }
 0x163   : > { %16449 = vmatpush3.msk.msra.mxu0 %vm510_vm0, %v18333_v36  ;;  %16491 = vmatmul.mubr.msk.f32.vlgmr.msra.gmra.mrb[6].mxu1 %vm505_vm2, %v18787_v26 }
 0x164   : > { %16494 = vmatpush3.msk.msra.mxu1 %vm510_vm0, %v18333_v36  ;;  %16450 = vmatprep.mubr.msk.f32.mxu0 %vm505_vm2, %v18749_v21 }
 0x165   : > { %16495 = vmatprep.mubr.msk.f32.mxu1 %vm505_vm2, %v18815_v32  ;;  %16498 = vmatprep.subr.msk.mxu0 %vm510_vm0, %v18194_v0 }
 0x166   : > { %16543 = vmatprep.subr.msk.mxu1 %vm510_vm0, %v18194_v0 }
 0x16a   : > { %16451 = vmatmul.mubr.msk.f32.vlgmr.msra.gmra.mrb[6].mxu0 %vm505_vm2, %v18743_v19 }
 0x16b   : > { %16496 = vmatmul.mubr.msk.f32.vlgmr.msra.gmra.mrb[6].mxu1 %vm505_vm2, %v18810_v30  ;;  %16499 = vmatpush3.msk.msra.mxu0 %vm510_vm0, %v18194_v0 }
 0x16c   : > { %16544 = vmatpush3.msk.msra.mxu1 %vm510_vm0, %v18194_v0  ;;  %16500 = vmatprep.mubr.msk.f32.mxu0 %vm505_vm2, %v5397_v16 }
 0x16d   : > { %16503 = vmatprep.subr.msk.mxu0 %vm510_vm0, %v18202_v5  ;;  %16545 = vmatprep.mubr.msk.f32.mxu1 %vm505_vm2, %v18793_v27 }
 0x16e   : > { %16548 = vmatprep.subr.msk.mxu1 %vm510_vm0, %v18202_v5  ;;  %16501 = vmatmul.mubr.msk.f32.vlgmr.msra.gmra.mrb[8].mxu0 %vm505_vm2, %v5396_v15 }
 0x16f   : > { %16504 = vmatpush3.msk.msra.mxu0 %vm510_vm0, %v18202_v5  ;;  %16546 = vmatmul.mubr.msk.f32.vlgmr.msra.gmra.mrb[8].mxu1 %vm505_vm2, %v18787_v26 }
 0x170   : > { %16549 = vmatpush3.msk.msra.mxu1 %vm510_vm0, %v18202_v5  ;;  %16505 = vmatprep.mubr.msk.f32.mxu0 %vm505_vm2, %v18707_v11 }
 0x171   : > { %v16182_v34 = vpop.f32.mrb[0].mxu0  ;;  %16508 = vmatprep.subr.msk.mxu0 %vm510_vm0, %v18219_v12  ;;  %16550 = vmatprep.mubr.msk.f32.mxu1 %vm505_vm2, %v18766_v22 }
 0x172   : > { %v1286_v35 = vadd.f32 %v16182_v34, %v18854_v33  ;;  %v16227_v37 = vpop.f32.mrb[0].mxu1  ;;  %v1268_v38 = vpop.f32.mrb[1].mxu0  ;;  %16553 = vmatprep.subr.msk.mxu1 %vm510_vm0, %v18219_v12  ;;  %v19113_v34 = vld [vmem:[#allocation4 + $0x10] sm:$0x7] }
 0x173   : > { %v1999_v39 = vadd.f32 %v16227_v37, %v18854_v33  ;;  %v1285_v40 = vadd.f32 %v18854_v33, %v1268_v38  ;;  %v1987_v41 = vpop.f32.mrb[1].mxu1  ;;  %v19142_v38 = vld [vmem:[#allocation4 + $0x14] sm:$0x7] }
 0x174   : > { %v1288_v42 = vmax.f32 %v1286_v35, 0.0  ;;  %v1998_v43 = vadd.f32 %v18854_v33, %v1987_v41  ;;  %v19130_v35 = vrot.slane %v19101_v28, 2 }
 0x175   : > { %v2001_v44 = vmax.f32 %v1999_v39, 0.0  ;;  %v1287_v45 = vmax.f32 %v1285_v40, 0.0  ;;  %v19172_v39 = vld [vmem:[%s18192_s26 + $0xd8] sm:$0xff] }
 0x176   : > { %v2000_v46 = vmax.f32 %v1998_v43, 0.0  ;;  %16506 = vmatmul.mubr.msk.f32.vlgmr.msra.gmra.mrb[8].mxu0 %vm505_vm2, %v18721_v13  ;;  %v19178_v41 = vrot.slane %v19172_v39, 1  ;;  %v19203_v43 = vrot.slane %v19172_v39, 2 }
 0x177   : > { %v10559_v47 = vmax.f32 %v1288_v42, %v2001_v44  ;;  %16509 = vmatpush3.msk.msra.mxu0 %vm510_vm0, %v18219_v12  ;;  %16551 = vmatmul.mubr.msk.f32.vlgmr.msra.gmra.mrb[8].mxu1 %vm505_vm2, %v18781_v23  ;;  %v19190_v42 = vld [vmem:[#allocation4 + $0x1c] sm:$0x7] }
 0x178   : > { %v10558_v48 = vmax.f32 %v1287_v45, %v2000_v46  ;;  %16554 = vmatpush3.msk.msra.mxu1 %vm510_vm0, %v18219_v12  ;;  %16510 = vmatprep.mubr.msk.f32.mxu0 %vm505_vm2, %v18749_v21  ;;  %v17826_v45 = vld [vmem:[#allocation4 + $0x4] sm:$0x7] }
 0x179   : > { %v10573_v49 = vrot.slane %v10559_v47, 1  ;;  %16513 = vmatprep.subr.msk.mxu0 %vm510_vm0, %v18234_v18  ;;  %16555 = vmatprep.mubr.msk.f32.mxu1 %vm505_vm2, %v18815_v32 }
 0x17a   : > { %v10561_v50 = vrot.slane %v10558_v48, 1  ;;  %16558 = vmatprep.subr.msk.mxu1 %vm510_vm0, %v18234_v18 }
 0x17b   : > { %v10575_v51 = vmax.f32 %v10559_v47, %v10573_v49  ;;  %v17828_v47 = vld [vmem:[#allocation4 + $0x8] sm:$0x7] }
 0x17c   : > { %v10563_v52 = vmax.f32 %v10558_v48, %v10561_v50 }
 0x17d   : > { %10576 = vst.msk [vmem:[#allocation2 + $0x4] sm:$0x1] %vm10564_vm4, %v10575_v51 }
 0x17e   : > { %10577 = vst.msk [vmem:[#allocation2 + $0x3] sm:$0x4] %vm10566_vm5, %v10575_v51  ;;  %10567 = vst.msk [vmem:[#allocation2 - $0x1] sm:$0x4] %vm10566_vm5, %v10563_v52  ;;  %16511 = vmatmul.mubr.msk.f32.vlgmr.msra.gmra.mrb[8].mxu0 %vm505_vm2, %v18743_v19 }
 0x17f   : > { %10578 = vst.msk [vmem:[#allocation2 + $0x2] sm:$0x10] %vm10568_vm6, %v10575_v51  ;;  %10569 = vst.msk [vmem:[#allocation2 - $0x2] sm:$0x10] %vm10568_vm6, %v10563_v52  ;;  %16514 = vmatpush3.msk.msra.mxu0 %vm510_vm0, %v18234_v18  ;;  %16556 = vmatmul.mubr.msk.f32.vlgmr.msra.gmra.mrb[8].mxu1 %vm505_vm2, %v18810_v30 }
 0x180   : > { %10565 = vst.msk [vmem:[#allocation2] sm:$0x1] %vm10564_vm4, %v10563_v52  ;;  %16559 = vmatpush3.msk.msra.mxu1 %vm510_vm0, %v18234_v18  ;;  %16515 = vmatprep.mubr.msk.f32.mxu0 %vm505_vm2, %v18766_v22 }
 0x181   : > { %10571 = vst.msk [vmem:[#allocation2 - $0x3] sm:$0x40] %vm10570_vm7, %v10563_v52  ;;  %16518 = vmatprep.subr.msk.mxu0 %vm510_vm0, %v18249_v20  ;;  %16560 = vmatprep.mubr.msk.f32.mxu1 %vm505_vm2, %v18896_v53 }
 0x182   : > { %16563 = vmatprep.subr.msk.mxu1 %vm510_vm0, %v18249_v20 }
 0x186   : > { %16516 = vmatmul.mubr.msk.f32.vlgmr.msra.gmra.mrb[8].mxu0 %vm505_vm2, %v18781_v23 }
 0x187   : > { %16519 = vmatpush3.msk.msra.mxu0 %vm510_vm0, %v18249_v20  ;;  %16561 = vmatmul.mubr.msk.f32.vlgmr.msra.gmra.mrb[8].mxu1 %vm505_vm2, %v18911_v54 }
 0x188   : > { %16564 = vmatpush3.msk.msra.mxu1 %vm510_vm0, %v18249_v20  ;;  %16520 = vmatprep.mubr.msk.f32.mxu0 %vm505_vm2, %v18793_v27  ;;  %v19090_v27 = vld [vmem:[#allocation4 + $0xc] sm:$0x7] }
 0x189   : > { %16523 = vmatprep.subr.msk.mxu0 %vm510_vm0, %v18274_v25  ;;  %16565 = vmatprep.mubr.msk.f32.mxu1 %vm505_vm2, %v6823_v57 }
 0x18a   : > { %16568 = vmatprep.subr.msk.mxu1 %vm510_vm0, %v18274_v25 }
 0x18e   : > { %16521 = vmatmul.mubr.msk.f32.vlgmr.msra.gmra.mrb[8].mxu0 %vm505_vm2, %v18787_v26 }
 0x18f   : > { %16524 = vmatpush3.msk.msra.mxu0 %vm510_vm0, %v18274_v25  ;;  %16566 = vmatmul.mubr.msk.f32.vlgmr.msra.gmra.mrb[8].mxu1 %vm505_vm2, %v6822_v56 }
 0x190   : > { %16569 = vmatpush3.msk.msra.mxu1 %vm510_vm0, %v18274_v25  ;;  %16525 = vmatprep.mubr.msk.f32.mxu0 %vm505_vm2, %v18815_v32 }
 0x191   : > { %16528 = vmatprep.subr.msk.mxu0 %vm510_vm0, %v18295_v29  ;;  %16570 = vmatprep.mubr.msk.f32.mxu1 %vm505_vm2, %v18941_v60 }
 0x192   : > { %16573 = vmatprep.subr.msk.mxu1 %vm510_vm0, %v18295_v29 }
 0x196   : > { %16526 = vmatmul.mubr.msk.f32.vlgmr.msra.gmra.mrb[8].mxu0 %vm505_vm2, %v18810_v30  ;;  %v19107_v30 = vrot.slane %v19101_v28, 1 }
 0x197   : > { %16529 = vmatpush3.msk.msra.mxu0 %vm510_vm0, %v18295_v29  ;;  %16571 = vmatmul.mubr.msk.f32.vlgmr.msra.gmra.mrb[8].mxu1 %vm505_vm2, %v18935_v59 }
 0x198   : > { %16574 = vmatpush3.msk.msra.mxu1 %vm510_vm0, %v18295_v29  ;;  %16530 = vmatprep.mubr.msk.f32.mxu0 %vm505_vm2, %v18896_v53 }
 0x199   : > { %16533 = vmatprep.subr.msk.mxu0 %vm510_vm0, %v18312_v31  ;;  %16575 = vmatprep.mubr.msk.f32.mxu1 %vm505_vm2, %v18959_v61 }
 0x19a   : > { %16578 = vmatprep.subr.msk.mxu1 %vm510_vm0, %v18312_v31 }
 0x19e   : > { %16531 = vmatmul.mubr.msk.f32.vlgmr.msra.gmra.mrb[8].mxu0 %vm505_vm2, %v18911_v54 }
 0x19f   : > { %16534 = vmatpush3.msk.msra.mxu0 %vm510_vm0, %v18312_v31  ;;  %16576 = vmatmul.mubr.msk.f32.vlgmr.msra.gmra.mrb[8].mxu1 %vm505_vm2, %v18974_v62 }
 0x1a0   : > { %16579 = vmatpush3.msk.msra.mxu1 %vm510_vm0, %v18312_v31  ;;  %16535 = vmatprep.mubr.msk.f32.mxu0 %vm505_vm2, %v6823_v57 }
 0x1a1   : > { %16538 = vmatprep.subr.msk.mxu0 %vm510_vm0, %v18333_v36  ;;  %16580 = vmatprep.mubr.msk.f32.mxu1 %vm505_vm2, %v18986_v2 }
 0x1a2   : > { %16583 = vmatprep.subr.msk.mxu1 %vm510_vm0, %v18333_v36 }
 0x1a6   : > { %16536 = vmatmul.mubr.msk.f32.vlgmr.msra.gmra.mrb[8].mxu0 %vm505_vm2, %v6822_v56 }
 0x1a7   : > { %16539 = vmatpush3.msk.msra.mxu0 %vm510_vm0, %v18333_v36  ;;  %16581 = vmatmul.mubr.msk.f32.vlgmr.msra.gmra.mrb[8].mxu1 %vm505_vm2, %v18980_v1 }
 0x1a8   : > { %16584 = vmatpush3.msk.msra.mxu1 %vm510_vm0, %v18333_v36  ;;  %16540 = vmatprep.mubr.msk.f32.mxu0 %vm505_vm2, %v18941_v60 }
 0x1a9   : > { %16585 = vmatprep.mubr.msk.f32.mxu1 %vm505_vm2, %v19008_v6  ;;  %16588 = vmatprep.subr.msk.mxu0 %vm510_vm0, %v18194_v0 }
 0x1aa   : > { %16633 = vmatprep.subr.msk.mxu1 %vm510_vm0, %v18194_v0 }
 0x1ae   : > { %16541 = vmatmul.mubr.msk.f32.vlgmr.msra.gmra.mrb[8].mxu0 %vm505_vm2, %v18935_v59 }
 0x1af   : > { %16586 = vmatmul.mubr.msk.f32.vlgmr.msra.gmra.mrb[8].mxu1 %vm505_vm2, %v19003_v4  ;;  %16589 = vmatpush3.msk.msra.mxu0 %vm510_vm0, %v18194_v0 }
 0x1b0   : > { %16634 = vmatpush3.msk.msra.mxu1 %vm510_vm0, %v18194_v0  ;;  %16590 = vmatprep.mubr.msk.f32.mxu0 %vm505_vm2, %v6823_v57 }
 0x1b1   : > { %16593 = vmatprep.subr.msk.mxu0 %vm510_vm0, %v18202_v5  ;;  %16635 = vmatprep.mubr.msk.f32.mxu1 %vm505_vm2, %v18986_v2 }
 0x1b2   : > { %16638 = vmatprep.subr.msk.mxu1 %vm510_vm0, %v18202_v5  ;;  %16591 = vmatmul.mubr.msk.f32.vlgmr.msra.gmra.mrb[10].mxu0 %vm505_vm2, %v6822_v56 }
 0x1b3   : > { %16594 = vmatpush3.msk.msra.mxu0 %vm510_vm0, %v18202_v5  ;;  %16636 = vmatmul.mubr.msk.f32.vlgmr.msra.gmra.mrb[10].mxu1 %vm505_vm2, %v18980_v1 }
 0x1b4   : > { %16639 = vmatpush3.msk.msra.mxu1 %vm510_vm0, %v18202_v5  ;;  %16595 = vmatprep.mubr.msk.f32.mxu0 %vm505_vm2, %v18896_v53 }
 0x1b5   : > { %v16272_v0 = vpop.f32.mrb[2].mxu0  ;;  %16598 = vmatprep.subr.msk.mxu0 %vm510_vm0, %v18219_v12  ;;  %16640 = vmatprep.mubr.msk.f32.mxu1 %vm505_vm2, %v18959_v61 }
 0x1b6   : > { %v2712_v7 = vadd.f32 %v16272_v0, %v18854_v33  ;;  %v16317_v8 = vpop.f32.mrb[2].mxu1  ;;  %v2700_v9 = vpop.f32.mrb[3].mxu0  ;;  %16643 = vmatprep.subr.msk.mxu1 %vm510_vm0, %v18219_v12 }
 0x1b7   : > { %v3425_v10 = vadd.f32 %v16317_v8, %v18854_v33  ;;  %v2711_v5 = vadd.f32 %v18854_v33, %v2700_v9  ;;  %v3413_v11 = vpop.f32.mrb[3].mxu1  ;;  %v9758_v8 = vrot.slane %v478_v3, 2 }
 0x1b8   : > { %v2714_v13 = vmax.f32 %v2712_v7, 0.0  ;;  %v3424_v14 = vadd.f32 %v18854_v33, %v3413_v11  ;;  %v480_v11 = vld [vmem:[%s18192_s26 + $0xf8] sm:$0xff] }
 0x1b9   : > { %v3427_v15 = vmax.f32 %v3425_v10, 0.0  ;;  %v2713_v16 = vmax.f32 %v2711_v5, 0.0  ;;  %v17829_v10 = vld [vmem:[#allocation4 + $0x18] sm:$0x7] }
 0x1ba   : > { %v3426_v17 = vmax.f32 %v3424_v14, 0.0  ;;  %16596 = vmatmul.mubr.msk.f32.vlgmr.msra.gmra.mrb[10].mxu0 %vm505_vm2, %v18911_v54  ;;  %v479_v5 = vld [vmem:[%s18192_s26 + $0xf0] sm:$0xff]  ;;  %v10387_v14 = vrot.slane %v480_v11, 1 }
 0x1bb   : > { %v10580_v19 = vmax.f32 %v2714_v13, %v3427_v15  ;;  %16599 = vmatpush3.msk.msra.mxu0 %vm510_vm0, %v18219_v12  ;;  %16641 = vmatmul.mubr.msk.f32.vlgmr.msra.gmra.mrb[10].mxu1 %vm505_vm2, %v18974_v62  ;;  %v10386_v13 = vrot.slane %v479_v5, 1 }
 0x1bc   : > { %v10579_v21 = vmax.f32 %v2713_v16, %v3426_v17  ;;  %16644 = vmatpush3.msk.msra.mxu1 %vm510_vm0, %v18219_v12  ;;  %16600 = vmatprep.mubr.msk.f32.mxu0 %vm505_vm2, %v18941_v60  ;;  %v19084_v12 = vld [vmem:[%s18192_s26 + $0xc0] sm:$0xff]  ;;  %v17830_v16 = vld [vmem:[#allocation4 + $0x20] sm:$0x7]  ;;  %v10470_v17 = vrot.slane %v479_v5, 2 }
 0x1bd   : > { %v10591_v22 = vrot.slane %v10580_v19, 1  ;;  %16603 = vmatprep.subr.msk.mxu0 %vm510_vm0, %v18234_v18  ;;  %16645 = vmatprep.mubr.msk.f32.mxu1 %vm505_vm2, %v19008_v6  ;;  %v10388_v15 = vsel %vm501_vm1, %v10386_v13, %v10387_v14 }
 0x1be   : > { %v10582_v23 = vrot.slane %v10579_v21, 1  ;;  %16648 = vmatprep.subr.msk.mxu1 %vm510_vm0, %v18234_v18 }
 0x1bf   : > { %v10593_v24 = vmax.f32 %v10580_v19, %v10591_v22  ;;  %v10471_v19 = vrot.slane %v480_v11, 2  ;;  %v15426_v22 = vld [vmem:[%s20154_s3 + $0x10] sm:$0xff] }
 0x1c0   : > { %v10584_v26 = vmax.f32 %v10579_v21, %v10582_v23  ;;  %v15427_v23 = vld [vmem:[%s20154_s3 + $0x18] sm:$0xff] }
 0x1c1   : > { %10594 = vst.msk [vmem:[#allocation2 + $0xc] sm:$0x1] %vm10564_vm4, %v10593_v24  ;;  %v10472_v21 = vsel %vm671_vm3, %v10470_v17, %v10471_v19 }
 0x1c2   : > { %10595 = vst.msk [vmem:[#allocation2 + $0xb] sm:$0x4] %vm10566_vm5, %v10593_v24  ;;  %10587 = vst.msk [vmem:[#allocation2 + $0x7] sm:$0x4] %vm10566_vm5, %v10584_v26  ;;  %16601 = vmatmul.mubr.msk.f32.vlgmr.msra.gmra.mrb[10].mxu0 %vm505_vm2, %v18935_v59 }
 0x1c3   : > { %10596 = vst.msk [vmem:[#allocation2 + $0xa] sm:$0x10] %vm10568_vm6, %v10593_v24  ;;  %10588 = vst.msk [vmem:[#allocation2 + $0x6] sm:$0x10] %vm10568_vm6, %v10584_v26  ;;  %16604 = vmatpush3.msk.msra.mxu0 %vm510_vm0, %v18234_v18  ;;  %16646 = vmatmul.mubr.msk.f32.vlgmr.msra.gmra.mrb[10].mxu1 %vm505_vm2, %v19003_v4  ;;  %v8247_v18 = vrot.slane %v19084_v12, 1  ;;  %v17996_v24 = vmov 0.0|0.0  }
 0x1c4   : > { %10586 = vst.msk [vmem:[#allocation2 + $0x8] sm:$0x1] %vm10564_vm4, %v10584_v26  ;;  %16649 = vmatpush3.msk.msra.mxu1 %vm510_vm0, %v19090_v27  ;;  %16605 = vmatprep.mubr.msk.f32.mxu0 %vm505_vm2, %v18959_v61 }
 0x1c5   : > { %10589 = vst.msk [vmem:[#allocation2 + $0x5] sm:$0x40] %vm10570_vm7, %v10584_v26  ;;  %16608 = vmatprep.subr.msk.mxu0 %vm510_vm0, %v18249_v20  ;;  %16650 = vmatprep.mubr.msk.f32.mxu1 %vm505_vm2, %v19084_v12  ;;  %v8249_v32 = vsel %vm501_vm1, %v8247_v18, %v19107_v30  ;;  %v10693_v26 = vld [vmem:[%s20154_s3] sm:$0xff] }
 0x1c6   : > { %16653 = vmatprep.subr.msk.mxu1 %vm510_vm0, %v18249_v20  ;;  %v8331_v20 = vrot.slane %v19084_v12, 2  ;;  %v15428_v18 = vld [vmem:[%s20154_s3 + $0x20] sm:$0xff] }
 0x1c8   : > { %v19136_v37 = vsel %vm671_vm3, %v8331_v20, %v19130_v35  ;;  %v15431_v20 = vld [vmem:[%s20154_s3 + $0x38] sm:$0xff] }
 0x1ca   : > { %16606 = vmatmul.mubr.msk.f32.vlgmr.msra.gmra.mrb[10].mxu0 %vm505_vm2, %v18974_v62 }
 0x1cb   : > { %16609 = vmatpush3.msk.msra.mxu0 %vm510_vm0, %v19113_v34  ;;  %16651 = vmatmul.mubr.msk.f32.vlgmr.msra.gmra.mrb[10].mxu1 %vm505_vm2, %v19101_v28 }
 0x1cc   : > { %16654 = vmatpush3.msk.msra.mxu1 %vm510_vm0, %v19113_v34  ;;  %16610 = vmatprep.mubr.msk.f32.mxu0 %vm505_vm2, %v18986_v2  ;;  %v477_v2 = vld [vmem:[%s18192_s26 + $0xe0] sm:$0xff] }
 0x1cd   : > { %16613 = vmatprep.subr.msk.mxu0 %vm510_vm0, %v18274_v25  ;;  %16655 = vmatprep.mubr.msk.f32.mxu1 %vm505_vm2, %v8249_v32  ;;  %v9757_v7 = vrot.slane %v477_v2, 2 }
 0x1ce   : > { %16658 = vmatprep.subr.msk.mxu1 %vm510_vm0, %v18274_v25 }
 0x1cf   : > { %v9759_v9 = vsel %vm671_vm3, %v9757_v7, %v9758_v8 }
 0x1d2   : > { %16611 = vmatmul.mubr.msk.f32.vlgmr.msra.gmra.mrb[10].mxu0 %vm505_vm2, %v18980_v1 }
 0x1d3   : > { %16614 = vmatpush3.msk.msra.mxu0 %vm510_vm0, %v18274_v25  ;;  %16656 = vmatmul.mubr.msk.f32.vlgmr.msra.gmra.mrb[10].mxu1 %vm505_vm2, %v19107_v30  ;;  %v19157_v25 = vld [vmem:[%s18192_s26 + $0xd0] sm:$0xff]  ;;  %s20070_s26 = sand.u32 1, %s17982_s22  }
 0x1d4   : > { %16659 = vmatpush3.msk.msra.mxu1 %vm510_vm0, %v19142_v38  ;;  %16615 = vmatprep.mubr.msk.f32.mxu0 %vm505_vm2, %v19008_v6  ;;  %v8960_v40 = vrot.slane %v19157_v25, 1  ;;  %v9674_v6 = vrot.slane %v478_v3, 1  ;;  %s437_s28 = scalar_lea.vmem [#allocation9], %s20070_s26  ;;  %s14903_s24 = scalar_lea.sflag [#allocation6], %s20070_s26 }
 0x1d5   : > { %16618 = vmatprep.subr.msk.mxu0 %vm510_vm0, %v18295_v29  ;;  %16660 = vmatprep.mubr.msk.f32.mxu1 %vm505_vm2, %v19136_v37  ;;  %s14919_s21 = sshll.u32 %s437_s28, 4  ;;  %s14920_s21 = int_to_ptr.vmem [resolvable:$true] %s14919_s21 }
 0x1d6   : > { %16663 = vmatprep.subr.msk.mxu1 %vm510_vm0, %v18295_v29  ;;  %s17888_s14 = scalar_lea.vmem %s14920_s21, 16  ;;  %p17895_p4 = scmp.lt.s32.totalorder %s14920_s21, %s17893_s20 }
 0x1d7   : > { %p17889_p12 = scmp.ne.s32.totalorder %s14920_s21, %s17888_s14  ;;  %p17896_p7 = scmp.lt.s32.totalorder %s17894_s15, %s17888_s14 }
 0x1d9   : > { %p17890_p2 = pnand %p17889_p12, %p20188_p1  ;;  %p17897_p8 = por %p17896_p7, %p17895_p4 }
 0x1da   : > { %16616 = vmatmul.mubr.msk.f32.vlgmr.msra.gmra.mrb[10].mxu0 %vm505_vm2, %v19003_v4  ;;  %v9673_v4 = vrot.slane %v477_v2, 1 }
 0x1db   : > { %16619 = vmatpush3.msk.msra.mxu0 %vm510_vm0, %v18295_v29  ;;  %16661 = vmatmul.mubr.msk.f32.vlgmr.msra.gmra.mrb[10].mxu1 %vm505_vm2, %v19130_v35  ;;  %p17891_p3 = pneg %p17890_p2 }
 0x1dc   : > { %16664 = vmatpush3.msk.msra.mxu1 %vm510_vm0, %v18295_v29  ;;  %16620 = vmatprep.mubr.msk.f32.mxu0 %vm505_vm2, %v19084_v12  ;;  %v19184_v29 = vsel %vm501_vm1, %v8960_v40, %v19178_v41  ;;  %v9675_v0 = vsel %vm501_vm1, %v9673_v4, %v9674_v6  ;;  %v15433_v40 = vld [vmem:[%s20154_s3 + $0x48] sm:$0xff] }
 0x1dd   : > { %16623 = vmatprep.subr.msk.mxu0 %vm510_vm0, %v18312_v31  ;;  %16665 = vmatprep.mubr.msk.f32.mxu1 %vm505_vm2, %v19157_v25  ;;  %p17898_p11 = pnand %p17897_p8, %p17891_p3 }
 0x1de   : > { %16668 = vmatprep.subr.msk.mxu1 %vm510_vm0, %v18312_v31 }
 0x1e2   : > { %16621 = vmatmul.mubr.msk.f32.vlgmr.msra.gmra.mrb[10].mxu0 %vm505_vm2, %v19101_v28 }
 0x1e3   : > { %16624 = vmatpush3.msk.msra.mxu0 %vm510_vm0, %v18312_v31  ;;  %16666 = vmatmul.mubr.msk.f32.vlgmr.msra.gmra.mrb[10].mxu1 %vm505_vm2, %v19172_v39  ;;  %v9044_v31 = vrot.slane %v19157_v25, 2 }
 0x1e4   : > { %16669 = vmatpush3.msk.msra.mxu1 %vm510_vm0, %v19190_v42  ;;  %16625 = vmatprep.mubr.msk.f32.mxu0 %vm505_vm2, %v8249_v32 }
 0x1e5   : > { %16628 = vmatprep.subr.msk.mxu0 %vm510_vm0, %v18333_v36  ;;  %16670 = vmatprep.mubr.msk.f32.mxu1 %vm505_vm2, %v19184_v29  ;;  %v19209_v44 = vsel %vm671_vm3, %v9044_v31, %v19203_v43 }
 0x1e6   : > { %16673 = vmatprep.subr.msk.mxu1 %vm510_vm0, %v18333_v36 }
 0x1ea   : > { %16626 = vmatmul.mubr.msk.f32.vlgmr.msra.gmra.mrb[10].mxu0 %vm505_vm2, %v19107_v30 }
 0x1eb   : > { %16629 = vmatpush3.msk.msra.mxu0 %vm510_vm0, %v18333_v36  ;;  %16671 = vmatmul.mubr.msk.f32.vlgmr.msra.gmra.mrb[10].mxu1 %vm505_vm2, %v19178_v41 }
 0x1ec   : > { %16674 = vmatpush3.msk.msra.mxu1 %vm510_vm0, %v18333_v36  ;;  %16630 = vmatprep.mubr.msk.f32.mxu0 %vm505_vm2, %v19136_v37  ;;  %v17827_v36 = vld [vmem:[#allocation4] sm:$0x7] }
 0x1ed   : > { %16675 = vmatprep.mubr.msk.f32.mxu1 %vm505_vm2, %v19209_v44  ;;  %16678 = vmatprep.subr.msk.mxu0 %vm510_vm0, %v17826_v45 }
 0x1ee   : > { %16723 = vmatprep.subr.msk.mxu1 %vm510_vm0, %v17826_v45 }
 0x1f2   : > { %16631 = vmatmul.mubr.msk.f32.vlgmr.msra.gmra.mrb[10].mxu0 %vm505_vm2, %v19130_v35 }
 0x1f3   : > { %16676 = vmatmul.mubr.msk.f32.vlgmr.msra.gmra.mrb[10].mxu1 %vm505_vm2, %v19203_v43  ;;  %16679 = vmatpush3.msk.msra.mxu0 %vm510_vm0, %v17826_v45 }
 0x1f4   : > { %16680 = vmatprep.mubr.msk.f32.mxu0 %vm505_vm2, %v8249_v32  ;;  %16724 = vmatpush3.msk.msra.mxu1 %vm510_vm0, %v17826_v45  ;;  %v10687_v32 = vld [vmem:[#allocation2] sm:$0x7f]  ;;  %v15437_v45 = vld [vmem:[%s20154_s3 + $0x68] sm:$0xff] }
 0x1f5   : > { %16725 = vmatprep.mubr.msk.f32.mxu1 %vm505_vm2, %v19184_v29  ;;  %16683 = vmatprep.subr.msk.mxu0 %vm510_vm0, %v17827_v36  ;;  %v10867_v31 = vrot.slane %v10687_v32, 2 }
 0x1f6   : > { %16681 = vmatmul.mubr.msk.f32.vlgmr.msra.gmra.mrb[12].mxu0 %vm505_vm2, %v19107_v30  ;;  %16728 = vmatprep.subr.msk.mxu1 %vm510_vm0, %v17827_v36  ;;  %v15429_v30 = vld [vmem:[%s20154_s3 + $0x28] sm:$0xff] }
 0x1f7   : > { %16726 = vmatmul.mubr.msk.f32.vlgmr.msra.gmra.mrb[12].mxu1 %vm505_vm2, %v19178_v41  ;;  %16684 = vmatpush3.msk.msra.mxu0 %vm510_vm0, %v17827_v36 }
 0x1f8   : > { %16685 = vmatprep.mubr.msk.f32.mxu0 %vm505_vm2, %v19084_v12  ;;  %16729 = vmatpush3.msk.msra.mxu1 %vm510_vm0, %v17827_v36  ;;  %v10694_v12 = vld [vmem:[%s20154_s3 + $0x8] sm:$0xff] }
 0x1f9   : > { %v16362_v46 = vpop.f32.mrb[4].mxu0  ;;  %16730 = vmatprep.mubr.msk.f32.mxu1 %vm505_vm2, %v19157_v25  ;;  %16688 = vmatprep.subr.msk.mxu0 %vm510_vm0, %v17828_v47 }
 0x1fa   : > { %v4138_v48 = vadd.f32 %v16362_v46, %v18854_v33  ;;  %v16407_v49 = vpop.f32.mrb[4].mxu1  ;;  %v4126_v50 = vpop.f32.mrb[5].mxu0  ;;  %16733 = vmatprep.subr.msk.mxu1 %vm510_vm0, %v17828_v47  ;;  %v19421_v46 = vld [vmem:[#allocation2 + $0x8] sm:$0x7f] }
 0x1fb   : > { %v4851_v51 = vadd.f32 %v16407_v49, %v18854_v33  ;;  %v4137_v52 = vadd.f32 %v18854_v33, %v4126_v50  ;;  %v4839_v53 = vpop.f32.mrb[5].mxu1 }
 0x1fc   : > { %v4140_v54 = vmax.f32 %v4138_v48, 0.0  ;;  %v4850_v55 = vadd.f32 %v18854_v33, %v4839_v53  ;;  %v15439_v48 = vld [vmem:[%s20154_s3 + $0x78] sm:$0xff] }
 0x1fd   : > { %v4853_v56 = vmax.f32 %v4851_v51, 0.0  ;;  %v4139_v57 = vmax.f32 %v4137_v52, 0.0 }
 0x1fe   : > { %v4852_v58 = vmax.f32 %v4850_v55, 0.0  ;;  %16686 = vmatmul.mubr.msk.f32.vlgmr.msra.gmra.mrb[12].mxu0 %vm505_vm2, %v19101_v28  ;;  %v19363_v28 = vpack.c.bf16 %v10694_v12, %v10693_v26 }
 0x1ff   : > { %v10598_v59 = vmax.f32 %v4140_v54, %v4853_v56  ;;  %16731 = vmatmul.mubr.msk.f32.vlgmr.msra.gmra.mrb[12].mxu1 %vm505_vm2, %v19172_v39  ;;  %16689 = vmatpush3.msk.msra.mxu0 %vm510_vm0, %v17828_v47 }
 0x200   : > { %v10597_v60 = vmax.f32 %v4139_v57, %v4852_v58  ;;  %16690 = vmatprep.mubr.msk.f32.mxu0 %vm505_vm2, %v19136_v37  ;;  %16734 = vmatpush3.msk.msra.mxu1 %vm510_vm0, %v17828_v47  ;;  %v17998_v37 = vmov 0.0   ;;  %v15438_v47 = vld [vmem:[%s20154_s3 + $0x70] sm:$0xff]  ;;  %v11015_v58 = vrot.slane %v19421_v46, 1 }
 0x201   : > { %v10609_v61 = vrot.slane %v10598_v59, 1  ;;  %16735 = vmatprep.mubr.msk.f32.mxu1 %vm505_vm2, %v19209_v44  ;;  %16693 = vmatprep.subr.msk.mxu0 %vm510_vm0, %v19090_v27 }
 0x202   : > { %v10600_v62 = vrot.slane %v10597_v60, 1  ;;  %16738 = vmatprep.subr.msk.mxu1 %vm510_vm0, %v19090_v27 }
 0x203   : > { %v10611_v63 = vmax.f32 %v10598_v59, %v10609_v61  ;;  %v19445_v59 = vpack.c.bf16 %v15439_v48, %v15438_v47  ;;  %v15441_v61 = vld [vmem:[%s20154_s3 + $0x88] sm:$0xff] }
 0x204   : > { %v10602_v1 = vmax.f32 %v10597_v60, %v10600_v62  ;;  %v15440_v60 = vld [vmem:[%s20154_s3 + $0x80] sm:$0xff] }
 0x205   : > { %10612 = vst.msk [vmem:[#allocation2 + $0x14] sm:$0x1] %vm10564_vm4, %v10611_v63 }
 0x206   : > { %10613 = vst.msk [vmem:[#allocation2 + $0x13] sm:$0x4] %vm10566_vm5, %v10611_v63  ;;  %10605 = vst.msk [vmem:[#allocation2 + $0xf] sm:$0x4] %vm10566_vm5, %v10602_v1  ;;  %16691 = vmatmul.mubr.msk.f32.vlgmr.msra.gmra.mrb[12].mxu0 %vm505_vm2, %v19130_v35  ;;  %v19380_v35 = vpack.c.bf16 %v15429_v30, %v15428_v18  ;;  %v19600_v18 = vld [vmem:[%s20153_s2] ss:$0 sm:$0xff] }
 0x207   : > { %10614 = vst.msk [vmem:[#allocation2 + $0x12] sm:$0x10] %vm10568_vm6, %v10611_v63  ;;  %10606 = vst.msk [vmem:[#allocation2 + $0xe] sm:$0x10] %vm10568_vm6, %v10602_v1  ;;  %16736 = vmatmul.mubr.msk.f32.vlgmr.msra.gmra.mrb[12].mxu1 %vm505_vm2, %v19203_v43  ;;  %16694 = vmatpush3.msk.msra.mxu0 %vm510_vm0, %v19090_v27 }
 0x208   : > { %10604 = vst.msk [vmem:[#allocation2 + $0x10] sm:$0x1] %vm10564_vm4, %v10602_v1  ;;  %16695 = vmatprep.mubr.msk.f32.mxu0 %vm505_vm2, %v19157_v25  ;;  %16739 = vmatpush3.msk.msra.mxu1 %vm510_vm0, %v19090_v27  ;;  %v19361_v27 = vpack.c.bf16 %v15427_v23, %v15426_v22 }
 0x209   : > { %10607 = vst.msk [vmem:[#allocation2 + $0xd] sm:$0x40] %vm10570_vm7, %v10602_v1  ;;  %16740 = vmatprep.mubr.msk.f32.mxu1 %vm505_vm2, %v477_v2  ;;  %16698 = vmatprep.subr.msk.mxu0 %vm510_vm0, %v19113_v34  ;;  %v11089_v1 = vrot.slane %v19421_v46, 2 }
 0x20a   : > { %16743 = vmatprep.subr.msk.mxu1 %vm510_vm0, %v19113_v34 }
 0x20e   : > { %16696 = vmatmul.mubr.msk.f32.vlgmr.msra.gmra.mrb[12].mxu0 %vm505_vm2, %v19172_v39  ;;  %v15432_v39 = vld [vmem:[%s20154_s3 + $0x40] sm:$0xff] }
 0x20f   : > { %16741 = vmatmul.mubr.msk.f32.vlgmr.msra.gmra.mrb[12].mxu1 %vm505_vm2, %v478_v3  ;;  %16699 = vmatpush3.msk.msra.mxu0 %vm510_vm0, %v19113_v34 }
 0x210   : > { %16700 = vmatprep.mubr.msk.f32.mxu0 %vm505_vm2, %v19184_v29  ;;  %16744 = vmatpush3.msk.msra.mxu1 %vm510_vm0, %v19113_v34  ;;  %v15430_v34 = vld [vmem:[%s20154_s3 + $0x30] sm:$0xff]  ;;  %v15435_v29 = vld [vmem:[%s20154_s3 + $0x58] sm:$0xff] }
 0x211   : > { %16745 = vmatprep.mubr.msk.f32.mxu1 %vm505_vm2, %v9675_v0  ;;  %16703 = vmatprep.subr.msk.mxu0 %vm510_vm0, %v19142_v38  ;;  %v19385_v25 = vpack.c.bf16 %v15431_v20, %v15430_v34 }
 0x212   : > { %16748 = vmatprep.subr.msk.mxu1 %vm510_vm0, %v19142_v38 }
 0x216   : > { %16701 = vmatmul.mubr.msk.f32.vlgmr.msra.gmra.mrb[12].mxu0 %vm505_vm2, %v19178_v41  ;;  %v15434_v41 = vld [vmem:[%s20154_s3 + $0x50] sm:$0xff] }
 0x217   : > { %16746 = vmatmul.mubr.msk.f32.vlgmr.msra.gmra.mrb[12].mxu1 %vm505_vm2, %v9674_v6  ;;  %16704 = vmatpush3.msk.msra.mxu0 %vm510_vm0, %v19142_v38 }
 0x218   : > { %16705 = vmatprep.mubr.msk.f32.mxu0 %vm505_vm2, %v19209_v44  ;;  %16749 = vmatpush3.msk.msra.mxu1 %vm510_vm0, %v19142_v38  ;;  %v10721_v38 = vrot.slane %v10687_v32, 1  ;;  %v15436_v44 = vld [vmem:[%s20154_s3 + $0x60] sm:$0xff] }
 0x219   : > { %16750 = vmatprep.mubr.msk.f32.mxu1 %vm505_vm2, %v9759_v9  ;;  %16708 = vmatprep.subr.msk.mxu0 %vm510_vm0, %v17829_v10  ;;  %v19438_v55 = vpack.c.bf16 %v15437_v45, %v15436_v44 }
 0x21a   : > { %16753 = vmatprep.subr.msk.mxu1 %vm510_vm0, %v17829_v10 }
 0x21e   : > { %16706 = vmatmul.mubr.msk.f32.vlgmr.msra.gmra.mrb[12].mxu0 %vm505_vm2, %v19203_v43  ;;  %v19411_v43 = vpack.c.bf16 %v15435_v29, %v15434_v41 }
 0x21f   : > { %16751 = vmatmul.mubr.msk.f32.vlgmr.msra.gmra.mrb[12].mxu1 %vm505_vm2, %v9758_v8  ;;  %16709 = vmatpush3.msk.msra.mxu0 %vm510_vm0, %v17829_v10 }
 0x220   : > { %16710 = vmatprep.mubr.msk.f32.mxu0 %vm505_vm2, %v477_v2  ;;  %16754 = vmatpush3.msk.msra.mxu1 %vm510_vm0, %v17829_v10 }
 0x221   : > { %16755 = vmatprep.mubr.msk.f32.mxu1 %vm505_vm2, %v479_v5  ;;  %16713 = vmatprep.subr.msk.mxu0 %vm510_vm0, %v19190_v42 }
 0x222   : > { %16758 = vmatprep.subr.msk.mxu1 %vm510_vm0, %v19190_v42 }
 0x226   : > { %16711 = vmatmul.mubr.msk.f32.vlgmr.msra.gmra.mrb[12].mxu0 %vm505_vm2, %v478_v3  ;;  %v19459_v3 = vld [vmem:[#allocation2 + $0x10] sm:$0x7f] }
 0x227   : > { %16756 = vmatmul.mubr.msk.f32.vlgmr.msra.gmra.mrb[12].mxu1 %vm505_vm2, %v480_v11  ;;  %16714 = vmatpush3.msk.msra.mxu0 %vm510_vm0, %v19190_v42  ;;  %v11311_v11 = vrot.slane %v19459_v3, 2 }
 0x228   : > { %16715 = vmatprep.mubr.msk.f32.mxu0 %vm505_vm2, %v9675_v0  ;;  %16759 = vmatpush3.msk.msra.mxu1 %vm510_vm0, %v19190_v42  ;;  %v19406_v42 = vpack.c.bf16 %v15433_v40, %v15432_v39 }
 0x229   : > { %16760 = vmatprep.mubr.msk.f32.mxu1 %vm505_vm2, %v10388_v15  ;;  %16718 = vmatprep.subr.msk.mxu0 %vm510_vm0, %v17830_v16 }
 0x22a   : > { %16763 = vmatprep.subr.msk.mxu1 %vm510_vm0, %v17830_v16 }
 0x22e   : > { %16716 = vmatmul.mubr.msk.f32.vlgmr.msra.gmra.mrb[12].mxu0 %vm505_vm2, %v9674_v6  ;;  %v19463_v6 = vpack.c.bf16 %v15441_v61, %v15440_v60  ;;  %v15488_v60 = vld [vmem:[%s20156_s5 + $0x68] sm:$0xff] }
 0x22f   : > { %16761 = vmatmul.mubr.msk.f32.vlgmr.msra.gmra.mrb[12].mxu1 %vm505_vm2, %v10387_v14  ;;  %16719 = vmatpush3.msk.msra.mxu0 %vm510_vm0, %v17830_v16 }
 0x230   : > { %16720 = vmatprep.mubr.msk.f32.mxu0 %vm505_vm2, %v9759_v9  ;;  %16764 = vmatpush3.msk.msra.mxu1 %vm510_vm0, %v17830_v16 }
 0x231   : > { %16765 = vmatprep.mubr.msk.f32.mxu1 %vm505_vm2, %v10472_v21  ;;  %17272 = vmatprep.subr.bf16.mxu0 %v17996_v24 }
 0x232   : > { %17275 = vmatprep.subr.bf16.mxu1 %v17996_v24 }
 0x236   : > { %16721 = vmatmul.mubr.msk.f32.vlgmr.msra.gmra.mrb[12].mxu0 %vm505_vm2, %v9758_v8  ;;  %v19471_v8 = vrot.slane %v19459_v3, 1 }
 0x237   : > { %16766 = vmatmul.mubr.msk.f32.vlgmr.msra.gmra.mrb[12].mxu1 %vm505_vm2, %v10471_v19  ;;  %17274 = vmatpush3.bf16.msra.mxu0 %v19361_v27 }
 0x238   : > { %17277 = vmatpush3.bf16.msra.mxu1 %v19363_v28  ;;  %16772 = vmatprep.mubr.msk.f32.mxu0 %vm17997_vm9, %v17998_v37 }
 0x239   : > { %16779 = vmatprep.mubr.msk.f32.mxu1 %vm17997_vm9, %v17998_v37  ;;  %17278 = vmatprep.subr.bf16.mxu0 %v17996_v24 }
 0x23a   : > { %16773 = vmatmul.mubr.msk.f32.vlgmr.msra.gmra.mrb[14].mxu0 %vm10722_vm8, %v10721_v38  ;;  %17281 = vmatprep.subr.bf16.mxu1 %v17996_v24 }
 0x23b   : > { %16780 = vmatmul.mubr.msk.f32.vlgmr.msra.gmra.mrb[14].mxu1 %vm10722_vm8, %v10687_v32  ;;  %17280 = vmatpush3.bf16.msra.mxu0 %v19380_v35 }
 0x23c   : > { %17283 = vmatpush3.bf16.msra.mxu1 %v19385_v25  ;;  %16786 = vmatprep.mubr.msk.f32.mxu0 %vm17997_vm9, %v17998_v37 }
 0x23d   : > { %v16452_v36 = vpop.f32.mrb[6].mxu0  ;;  %16793 = vmatprep.mubr.msk.f32.mxu1 %vm17997_vm9, %v17998_v37  ;;  %17284 = vmatprep.subr.bf16.mxu0 %v17996_v24 }
 0x23e   : > { %v5564_v49 = vadd.f32 %v16452_v36, %v18854_v33  ;;  %v16497_v50 = vpop.f32.mrb[6].mxu1  ;;  %v5552_v51 = vpop.f32.mrb[7].mxu0  ;;  %16787 = vmatmul.mubr.msk.f32.vlgmr.msra.gmra.mrb[16].mxu0 %vm10722_vm8, %v10867_v31  ;;  %17287 = vmatprep.subr.bf16.mxu1 %v17996_v24 }
 0x23f   : > { %v6277_v52 = vadd.f32 %v16497_v50, %v18854_v33  ;;  %v5563_v53 = vadd.f32 %v18854_v33, %v5552_v51  ;;  %v6265_v54 = vpop.f32.mrb[7].mxu1  ;;  %16794 = vmatmul.mubr.msk.f32.vlgmr.msra.gmra.mrb[16].mxu1 %vm10722_vm8, %v19421_v46  ;;  %17286 = vmatpush3.bf16.msra.mxu0 %v19406_v42 }
 0x240   : > { %v5566_v56 = vmax.f32 %v5564_v49, 0.0  ;;  %v6276_v57 = vadd.f32 %v18854_v33, %v6265_v54  ;;  %17289 = vmatpush3.bf16.msra.mxu1 %v19411_v43  ;;  %16800 = vmatprep.mubr.msk.f32.mxu0 %vm17997_vm9, %v17998_v37 }
 0x241   : > { %v6279_v62 = vmax.f32 %v6277_v52, 0.0  ;;  %v5565_v63 = vmax.f32 %v5563_v53, 0.0  ;;  %16807 = vmatprep.mubr.msk.f32.mxu1 %vm17997_vm9, %v17998_v37  ;;  %17290 = vmatprep.subr.bf16.mxu0 %v17996_v24 }
 0x242   : > { %v6278_v2 = vmax.f32 %v6276_v57, 0.0  ;;  %16801 = vmatmul.mubr.msk.f32.vlgmr.msra.gmra.mrb[18].mxu0 %vm10722_vm8, %v11015_v58  ;;  %17293 = vmatprep.subr.bf16.mxu1 %v17996_v24  ;;  %v15479_v57 = vld [vmem:[%s20156_s5 + $0x20] sm:$0xff] }
 0x243   : > { %v10616_v4 = vmax.f32 %v5566_v56, %v6279_v62  ;;  %16808 = vmatmul.mubr.msk.f32.vlgmr.msra.gmra.mrb[18].mxu1 %vm10722_vm8, %v11089_v1  ;;  %17292 = vmatpush3.bf16.msra.mxu0 %v19438_v55 }
 0x244   : > { %v10615_v0 = vmax.f32 %v5565_v63, %v6278_v2  ;;  %17295 = vmatpush3.bf16.msra.mxu1 %v19445_v59  ;;  %16814 = vmatprep.mubr.msk.f32.mxu0 %vm17997_vm9, %v17998_v37  ;;  %v15482_v2 = vld [vmem:[%s20156_s5 + $0x38] sm:$0xff] }
 0x245   : > { %v10627_v7 = vrot.slane %v10616_v4, 1  ;;  %16821 = vmatprep.mubr.msk.f32.mxu1 %vm17997_vm9, %v17998_v37  ;;  %17296 = vmatprep.subr.bf16.mxu0 %v17996_v24 }
 0x246   : > { %v10618_v9 = vrot.slane %v10615_v0, 1  ;;  %16815 = vmatmul.mubr.msk.f32.vlgmr.msra.gmra.mrb[20].mxu0 %vm10722_vm8, %v19459_v3  ;;  %17299 = vmatprep.subr.bf16.mxu1 %v17996_v24 }
 0x247   : > { %v10629_v10 = vmax.f32 %v10616_v4, %v10627_v7  ;;  %16822 = vmatmul.mubr.msk.f32.vlgmr.msra.gmra.mrb[20].mxu1 %vm10722_vm8, %v19471_v8  ;;  %17298 = vmatpush3.bf16.msra.mxu0 %v19463_v6  ;;  %v15490_v7 = vld [vmem:[%s20156_s5 + $0x78] sm:$0xff] }
 0x248   : > { %v10620_v5 = vmax.f32 %v10615_v0, %v10618_v9  ;;  %17301 = vmatpush3.bf16.msra.mxu1 %v19361_v27  ;;  %16828 = vmatprep.mubr.msk.f32.mxu0 %vm17997_vm9, %v17998_v37  ;;  %v15489_v0 = vld [vmem:[%s20156_s5 + $0x70] sm:$0xff] }
 0x249   : > { %10630 = vst.msk [vmem:[#allocation2 + $0x1c] sm:$0x1] %vm10564_vm4, %v10629_v10  ;;  %16835 = vmatprep.mubr.msk.f32.mxu1 %vm17997_vm9, %v17998_v37  ;;  %17302 = vmatprep.subr.bf16.mxu0 %v17996_v24 }
 0x24a   : > { %10631 = vst.msk [vmem:[#allocation2 + $0x1b] sm:$0x4] %vm10566_vm5, %v10629_v10  ;;  %10623 = vst.msk [vmem:[#allocation2 + $0x17] sm:$0x4] %vm10566_vm5, %v10620_v5  ;;  %16829 = vmatmul.mubr.msk.f32.vlgmr.msra.gmra.mrb[22].mxu0 %vm10722_vm8, %v11311_v11  ;;  %17305 = vmatprep.subr.bf16.mxu1 %v17996_v24 }
 0x24b   : > { %10632 = vst.msk [vmem:[#allocation2 + $0x1a] sm:$0x10] %vm10568_vm6, %v10629_v10  ;;  %10624 = vst.msk [vmem:[#allocation2 + $0x16] sm:$0x10] %vm10568_vm6, %v10620_v5  ;;  %16836 = vmatmul.mubr.msk.f32.vlgmr.msra.gmra.mrb[22].mxu1 %vm10722_vm8, %v11015_v58  ;;  %17304 = vmatpush3.bf16.msra.mxu0 %v19363_v28  ;;  %v15480_v58 = vld [vmem:[%s20156_s5 + $0x28] sm:$0xff] }
 0x24c   : > { %10622 = vst.msk [vmem:[#allocation2 + $0x18] sm:$0x1] %vm10564_vm4, %v10620_v5  ;;  %17307 = vmatpush3.bf16.msra.mxu1 %v19380_v35  ;;  %16842 = vmatprep.mubr.msk.f32.mxu0 %vm17997_vm9, %v17998_v37  ;;  %v19681_v62 = vpack.c.bf16 %v15480_v58, %v15479_v57 }
 0x24d   : > { %10625 = vst.msk [vmem:[#allocation2 + $0x15] sm:$0x40] %vm10570_vm7, %v10620_v5  ;;  %16849 = vmatprep.mubr.msk.f32.mxu1 %vm17997_vm9, %v17998_v37  ;;  %17308 = vmatprep.subr.bf16.mxu0 %v17996_v24 }
 0x24e   : > { %16843 = vmatmul.mubr.msk.f32.vlgmr.msra.gmra.mrb[24].mxu0 %vm10722_vm8, %v19421_v46  ;;  %17311 = vmatprep.subr.bf16.mxu1 %v17996_v24 }
 0x24f   : > { %16850 = vmatmul.mubr.msk.f32.vlgmr.msra.gmra.mrb[24].mxu1 %vm10722_vm8, %v11089_v1  ;;  %17310 = vmatpush3.bf16.msra.mxu0 %v19385_v25  ;;  %v15481_v1 = vld [vmem:[%s20156_s5 + $0x30] sm:$0xff] }
 0x250   : > { %17313 = vmatpush3.bf16.msra.mxu1 %v19406_v42  ;;  %16856 = vmatprep.mubr.msk.f32.mxu0 %vm17997_vm9, %v17998_v37 }
 0x251   : > { %16863 = vmatprep.mubr.msk.f32.mxu1 %vm17997_vm9, %v17998_v37  ;;  %17314 = vmatprep.subr.bf16.mxu0 %v17996_v24 }
 0x252   : > { %16857 = vmatmul.mubr.msk.f32.vlgmr.msra.gmra.mrb[26].mxu0 %vm10722_vm8, %v19459_v3  ;;  %17317 = vmatprep.subr.bf16.mxu1 %v17996_v24 }
 0x253   : > { %16864 = vmatmul.mubr.msk.f32.vlgmr.msra.gmra.mrb[26].mxu1 %vm10722_vm8, %v19471_v8  ;;  %17316 = vmatpush3.bf16.msra.mxu0 %v19411_v43 }
 0x254   : > { %17319 = vmatpush3.bf16.msra.mxu1 %v19438_v55  ;;  %16870 = vmatprep.mubr.msk.f32.mxu0 %vm17997_vm9, %v17998_v37  ;;  %v19526_v13 = vld [vmem:[#allocation2 + $0x18] sm:$0x7f] }
 0x255   : > { %16877 = vmatprep.mubr.msk.f32.mxu1 %vm17997_vm9, %v17998_v37  ;;  %17320 = vmatprep.subr.bf16.mxu0 %v17996_v24  ;;  %v19538_v14 = vrot.slane %v19526_v13, 1  ;;  %v19543_v15 = vrot.slane %v19526_v13, 2 }
 0x256   : > { %16871 = vmatmul.mubr.msk.f32.vlgmr.msra.gmra.mrb[28].mxu0 %vm10722_vm8, %v11311_v11  ;;  %17323 = vmatprep.subr.bf16.mxu1 %v17996_v24 }
 0x257   : > { %16878 = vmatmul.mubr.msk.f32.vlgmr.msra.gmra.mrb[28].mxu1 %vm10722_vm8, %v19526_v13  ;;  %17322 = vmatpush3.bf16.msra.mxu0 %v19445_v59 }
 0x258   : > { %17325 = vmatpush3.bf16.msra.mxu1 %v19463_v6  ;;  %16884 = vmatprep.mubr.msk.f32.mxu0 %vm17997_vm9, %v17998_v37 }
 0x259   : > { %16891 = vmatprep.mubr.msk.f32.mxu1 %vm17997_vm9, %v17998_v37  ;;  %17326 = vmatprep.subr.bf16.mxu0 %v17996_v24 }
 0x25a   : > { %16885 = vmatmul.mubr.msk.f32.vlgmr.msra.gmra.mrb[30].mxu0 %vm10722_vm8, %v19538_v14  ;;  %17329 = vmatprep.subr.bf16.mxu1 %v17996_v24 }
 0x25b   : > { %16892 = vmatmul.mubr.msk.f32.vlgmr.msra.gmra.mrb[30].mxu1 %vm10722_vm8, %v19543_v15  ;;  %17328 = vmatpush3.bf16.msra.mxu0 %v19361_v27 }
 0x25c   : > { %17331 = vmatpush3.bf16.msra.mxu1 %v19363_v28  ;;  %16898 = vmatprep.mubr.msk.f32.mxu0 %vm17997_vm9, %v17998_v37 }
 0x25d   : > { %16905 = vmatprep.mubr.msk.f32.mxu1 %vm17997_vm9, %v17998_v37  ;;  %17332 = vmatprep.subr.bf16.mxu0 %v17996_v24 }
 0x25e   : > { %16899 = vmatmul.mubr.msk.f32.vlgmr.msra.gmra.mrb[32].mxu0 %vm10722_vm8, %v19471_v8  ;;  %17335 = vmatprep.subr.bf16.mxu1 %v17996_v24  ;;  %v19711_v8 = vpack.c.bf16 %v15490_v7, %v15489_v0 }
 0x25f   : > { %16906 = vmatmul.mubr.msk.f32.vlgmr.msra.gmra.mrb[32].mxu1 %vm10722_vm8, %v19459_v3  ;;  %17334 = vmatpush3.bf16.msra.mxu0 %v19380_v35 }
 0x260   : > { %17337 = vmatpush3.bf16.msra.mxu1 %v19385_v25  ;;  %16912 = vmatprep.mubr.msk.f32.mxu0 %vm17997_vm9, %v17998_v37 }
 0x261   : > { %16919 = vmatprep.mubr.msk.f32.mxu1 %vm17997_vm9, %v17998_v37  ;;  %17338 = vmatprep.subr.bf16.mxu0 %v17996_v24 }
 0x262   : > { %16913 = vmatmul.mubr.msk.f32.vlgmr.msra.gmra.mrb[34].mxu0 %vm10722_vm8, %v11311_v11  ;;  %17341 = vmatprep.subr.bf16.mxu1 %v17996_v24 }
 0x263   : > { %16920 = vmatmul.mubr.msk.f32.vlgmr.msra.gmra.mrb[34].mxu1 %vm10722_vm8, %v19526_v13  ;;  %17340 = vmatpush3.bf16.msra.mxu0 %v19406_v42 }
 0x264   : > { %17343 = vmatpush3.bf16.msra.mxu1 %v19411_v43  ;;  %16926 = vmatprep.mubr.msk.f32.mxu0 %vm17997_vm9, %v17998_v37 }
 0x265   : > { %16933 = vmatprep.mubr.msk.f32.mxu1 %vm17997_vm9, %v17998_v37  ;;  %17344 = vmatprep.subr.bf16.mxu0 %v17996_v24 }
 0x266   : > { %16927 = vmatmul.mubr.msk.f32.vlgmr.msra.gmra.mrb[36].mxu0 %vm10722_vm8, %v19538_v14  ;;  %17347 = vmatprep.subr.bf16.mxu1 %v17996_v24 }
 0x267   : > { %16934 = vmatmul.mubr.msk.f32.vlgmr.msra.gmra.mrb[36].mxu1 %vm10722_vm8, %v19543_v15  ;;  %17346 = vmatpush3.bf16.msra.mxu0 %v19438_v55 }
 0x268   : > { %16940 = vmatprep.mubr.msk.f32.mxu0 %vm17997_vm9, %v17998_v37  ;;  %17349 = vmatpush3.bf16.msra.mxu1 %v19445_v59 }
 0x269   : > { %17350 = vmatprep.subr.bf16.mxu0 %v17996_v24  ;;  %16947 = vmatprep.mubr.msk.f32.mxu1 %vm17997_vm9, %v17998_v37 }
 0x26a   : > { %17353 = vmatprep.subr.bf16.mxu1 %v17996_v24 }
 0x281   : > { %v16542_v16 = vpop.f32.mrb[8].mxu0 }
 0x282   : > { %v6990_v17 = vadd.f32 %v16542_v16, %v18854_v33  ;;  %v16587_v19 = vpop.f32.mrb[8].mxu1  ;;  %v6978_v21 = vpop.f32.mrb[9].mxu0 }
 0x283   : > { %v7703_v22 = vadd.f32 %v16587_v19, %v18854_v33  ;;  %v6989_v23 = vadd.f32 %v18854_v33, %v6978_v21  ;;  %v7691_v26 = vpop.f32.mrb[9].mxu1 }
 0x284   : > { %v6992_v12 = vmax.f32 %v6990_v17, 0.0  ;;  %v7702_v30 = vadd.f32 %v19600_v18, %v7691_v26 }
 0x285   : > { %v7705_v32 = vmax.f32 %v7703_v22, 0.0  ;;  %v6991_v34 = vmax.f32 %v6989_v23, 0.0 }
 0x286   : > { %v7704_v20 = vmax.f32 %v7702_v30, 0.0 }
 0x287   : > { %v10634_v38 = vmax.f32 %v6992_v12, %v7705_v32 }
 0x288   : > { %v10633_v39 = vmax.f32 %v6991_v34, %v7704_v20 }
 0x289   : > { %v10645_v40 = vrot.slane %v10634_v38, 1 }
 0x28a   : > { %v10636_v41 = vrot.slane %v10633_v39, 1 }
 0x28b   : > { %v10647_v29 = vmax.f32 %v10634_v38, %v10645_v40 }
 0x28c   : > { %v10638_v31 = vmax.f32 %v10633_v39, %v10636_v41 }
 0x28d   : > { %10648 = vst.msk [vmem:[#allocation2 + $0x24] sm:$0x1] %vm10564_vm4, %v10647_v29 }
 0x28e   : > { %10649 = vst.msk [vmem:[#allocation2 + $0x23] sm:$0x4] %vm10566_vm5, %v10647_v29  ;;  %10641 = vst.msk [vmem:[#allocation2 + $0x1f] sm:$0x4] %vm10566_vm5, %v10638_v31 }
 0x28f   : > { %10650 = vst.msk [vmem:[#allocation2 + $0x22] sm:$0x10] %vm10568_vm6, %v10647_v29  ;;  %10642 = vst.msk [vmem:[#allocation2 + $0x1e] sm:$0x10] %vm10568_vm6, %v10638_v31 }
 0x290   : > { %10640 = vst.msk [vmem:[#allocation2 + $0x20] sm:$0x1] %vm10564_vm4, %v10638_v31 }
 0x291   : > { %10643 = vst.msk [vmem:[#allocation2 + $0x1d] sm:$0x40] %vm10570_vm7, %v10638_v31 }
 0x298   : > { %v10691_v33 = vld [vmem:[#allocation2 + $0x20] sm:$0x7f] }
 0x299   : > { %16941 = vmatmul.mubr.msk.f32.vlgmr.msra.gmra.mrb[38].mxu0 %vm10722_vm8, %v10691_v33  ;;  %v12539_v44 = vrot.slane %v10691_v33, 1  ;;  %v12613_v45 = vrot.slane %v10691_v33, 2 }
 0x29a   : > { %17352 = vmatpush3.bf16.msra.mxu0 %v19463_v6  ;;  %16954 = vmatprep.mubr.msk.f32.mxu0 %vm17997_vm9, %v17998_v37 }
 0x29b   : > { %16948 = vmatmul.mubr.msk.f32.vlgmr.msra.gmra.mrb[38].mxu1 %vm10722_vm8, %v12539_v44  ;;  %17356 = vmatprep.subr.bf16.mxu0 %v17996_v24 }
 0x29c   : > { %17355 = vmatpush3.bf16.msra.mxu1 %v19361_v27  ;;  %16961 = vmatprep.mubr.msk.f32.mxu1 %vm17997_vm9, %v17998_v37 }
 0x29d   : > { %16955 = vmatmul.mubr.msk.f32.vlgmr.msra.gmra.mrb[40].mxu0 %vm10722_vm8, %v12613_v45  ;;  %17359 = vmatprep.subr.bf16.mxu1 %v17996_v24 }
 0x29e   : > { %17358 = vmatpush3.bf16.msra.mxu0 %v19363_v28  ;;  %16968 = vmatprep.mubr.msk.f32.mxu0 %vm17997_vm9, %v17998_v37 }
 0x29f   : > { %16962 = vmatmul.mubr.msk.f32.vlgmr.msra.gmra.mrb[40].mxu1 %vm10722_vm8, %v19538_v14  ;;  %17362 = vmatprep.subr.bf16.mxu0 %v17996_v24 }
 0x2a0   : > { %17361 = vmatpush3.bf16.msra.mxu1 %v19380_v35  ;;  %16975 = vmatprep.mubr.msk.f32.mxu1 %vm17997_vm9, %v17998_v37 }
 0x2a1   : > { %16969 = vmatmul.mubr.msk.f32.vlgmr.msra.gmra.mrb[42].mxu0 %vm10722_vm8, %v19526_v13  ;;  %17365 = vmatprep.subr.bf16.mxu1 %v17996_v24 }
 0x2a2   : > { %17364 = vmatpush3.bf16.msra.mxu0 %v19385_v25  ;;  %16982 = vmatprep.mubr.msk.f32.mxu0 %vm17997_vm9, %v17998_v37 }
 0x2a3   : > { %16976 = vmatmul.mubr.msk.f32.vlgmr.msra.gmra.mrb[42].mxu1 %vm10722_vm8, %v19543_v15  ;;  %17368 = vmatprep.subr.bf16.mxu0 %v17996_v24 }
 0x2a4   : > { %17367 = vmatpush3.bf16.msra.mxu1 %v19406_v42  ;;  %16989 = vmatprep.mubr.msk.f32.mxu1 %vm17997_vm9, %v17998_v37 }
 0x2a5   : > { %16983 = vmatmul.mubr.msk.f32.vlgmr.msra.gmra.mrb[44].mxu0 %vm10722_vm8, %v10691_v33  ;;  %17371 = vmatprep.subr.bf16.mxu1 %v17996_v24 }
 0x2a6   : > { %17370 = vmatpush3.bf16.msra.mxu0 %v19411_v43  ;;  %16996 = vmatprep.mubr.msk.f32.mxu0 %vm17997_vm9, %v17998_v37 }
 0x2a7   : > { %16990 = vmatmul.mubr.msk.f32.vlgmr.msra.gmra.mrb[44].mxu1 %vm10722_vm8, %v12539_v44  ;;  %17374 = vmatprep.subr.bf16.mxu0 %v17996_v24  ;;  %v19723_v44 = vld [vmem:[%s20155_s4] ss:$0 sm:$0xff] }
 0x2a8   : > { %17373 = vmatpush3.bf16.msra.mxu1 %v19438_v55  ;;  %17003 = vmatprep.mubr.msk.f32.mxu1 %vm17997_vm9, %v17998_v37 }
 0x2a9   : > { %16997 = vmatmul.mubr.msk.f32.vlgmr.msra.gmra.mrb[46].mxu0 %vm10722_vm8, %v12613_v45  ;;  %17377 = vmatprep.subr.bf16.mxu1 %v17996_v24 }
 0x2aa   : > { %17376 = vmatpush3.bf16.msra.mxu0 %v19445_v59  ;;  %17010 = vmatprep.mubr.msk.f32.mxu0 %vm17997_vm9, %v17998_v37  ;;  %v15487_v59 = vld [vmem:[%s20156_s5 + $0x60] sm:$0xff] }
 0x2ab   : > { %17380 = vmatprep.subr.bf16.mxu0 %v17996_v24  ;;  %v19693_v3 = vpack.c.bf16 %v15488_v60, %v15487_v59 }
 0x2c5   : > { %v16632_v27 = vpop.f32.mrb[10].mxu0 }
 0x2c6   : > { %v8416_v28 = vadd.f32 %v19600_v18, %v16632_v27  ;;  %v16677_v35 = vpop.f32.mrb[10].mxu1  ;;  %v8404_v25 = vpop.f32.mrb[11].mxu0 }
 0x2c7   : > { %v9129_v42 = vadd.f32 %v19600_v18, %v16677_v35  ;;  %v8415_v43 = vadd.f32 %v19600_v18, %v8404_v25  ;;  %v9117_v36 = vpop.f32.mrb[11].mxu1 }
 0x2c8   : > { %v8418_v46 = vmax.f32 %v8416_v28, 0.0  ;;  %v9128_v47 = vadd.f32 %v19600_v18, %v9117_v36  ;;  %v13338_v36 = vld [vmem:[%s20156_s5 + $0x8] sm:$0xff] }
 0x2c9   : > { %v9131_v48 = vmax.f32 %v9129_v42, 0.0  ;;  %v8417_v49 = vmax.f32 %v8415_v43, 0.0  ;;  %v13337_v43 = vld [vmem:[%s20156_s5] sm:$0xff] }
 0x2ca   : > { %v9130_v50 = vmax.f32 %v9128_v47, 0.0 }
 0x2cb   : > { %v10652_v51 = vmax.f32 %v8418_v46, %v9131_v48 }
 0x2cc   : > { %v10651_v52 = vmax.f32 %v8417_v49, %v9130_v50 }
 0x2cd   : > { %v10663_v53 = vrot.slane %v10652_v51, 1 }
 0x2ce   : > { %v10654_v54 = vrot.slane %v10651_v52, 1 }
 0x2cf   : > { %v10665_v55 = vmax.f32 %v10652_v51, %v10663_v53 }
 0x2d0   : > { %v10656_v56 = vmax.f32 %v10651_v52, %v10654_v54  ;;  %v19734_v52 = vpack.c.bf16 %v13338_v36, %v13337_v43 }
 0x2d1   : > { %10666 = vst.msk [vmem:[#allocation2 + $0x2c] sm:$0x1] %vm10564_vm4, %v10665_v55 }
 0x2d2   : > { %10667 = vst.msk [vmem:[#allocation2 + $0x2b] sm:$0x4] %vm10566_vm5, %v10665_v55  ;;  %10659 = vst.msk [vmem:[#allocation2 + $0x27] sm:$0x4] %vm10566_vm5, %v10656_v56 }
 0x2d3   : > { %10668 = vst.msk [vmem:[#allocation2 + $0x2a] sm:$0x10] %vm10568_vm6, %v10665_v55  ;;  %10660 = vst.msk [vmem:[#allocation2 + $0x26] sm:$0x10] %vm10568_vm6, %v10656_v56  ;;  %v13339_v55 = vld [vmem:[%s20156_s5 + $0x10] sm:$0xff] }
 0x2d4   : > { %10658 = vst.msk [vmem:[#allocation2 + $0x28] sm:$0x1] %vm10564_vm4, %v10656_v56 }
 0x2d5   : > { %10661 = vst.msk [vmem:[#allocation2 + $0x25] sm:$0x40] %vm10570_vm7, %v10656_v56  ;;  %v13340_v56 = vld [vmem:[%s20156_s5 + $0x18] sm:$0xff] }
 0x2dc   : > { %v10692_v61 = vld [vmem:[#allocation2 + $0x28] sm:$0x7f] }
 0x2dd   : > { %17004 = vmatmul.mubr.msk.f32.vlgmr.msra.gmra.mrb[46].mxu1 %vm10722_vm8, %v10692_v61  ;;  %v13187_v63 = vrot.slane %v10692_v61, 1  ;;  %v13261_v4 = vrot.slane %v10692_v61, 2 }
 0x2de   : > { %17379 = vmatpush3.bf16.msra.mxu1 %v19463_v6  ;;  %17017 = vmatprep.mubr.msk.f32.mxu1 %vm17997_vm9, %v17998_v37  ;;  %v19704_v6 = vpack.c.bf16 %v15482_v2, %v15481_v1  ;;  %v15483_v2 = vld [vmem:[%s20156_s5 + $0x40] sm:$0xff] }
 0x2df   : > { %17011 = vmatmul.mubr.msk.f32.vlgmr.msra.gmra.mrb[48].mxu0 %vm10722_vm8, %v13187_v63  ;;  %17398 = vmatprep.subr.bf16.mxu1 %v17996_v24  ;;  %v19745_v63 = vpack.c.bf16 %v13340_v56, %v13339_v55  ;;  %v15504_v55 = vld [vmem:[%s20156_s5 + $0xe8] sm:$0xff] }
 0x2e0   : > { %17382 = vmatpush3.bf16.msra.mxu0 %v19681_v62  ;;  %17028 = vmatprep.mubr.msk.f32.mxu0 %vm17997_vm9, %v17998_v37 }
 0x2e1   : > { %17018 = vmatmul.mubr.msk.f32.vlgmr.msra.gmra.mrb[48].mxu1 %vm10722_vm8, %v13261_v4  ;;  %17383 = vmatprep.subr.bf16.mxu0 %v17996_v24  ;;  %v15484_v4 = vld [vmem:[%s20156_s5 + $0x48] sm:$0xff] }
 0x2e2   : > { %17400 = vmatpush3.bf16.msra.mxu1 %v19693_v3  ;;  %17061 = vmatprep.mubr.msk.f32.mxu1 %vm17997_vm9, %v17998_v37 }
 0x2e3   : > { %17401 = vmatprep.subr.bf16.mxu1 %v17996_v24 }
 0x2e4   : > { %17385 = vmatpush3.bf16.msra.mxu0 %v19704_v6 }
 0x2e5   : > { %17386 = vmatprep.subr.bf16.mxu0 %v17996_v24 }
 0x2e6   : > { %17403 = vmatpush3.bf16.msra.mxu1 %v19711_v8 }
 0x2e7   : > { %17410 = vmatprep.subr.bf16.mxu1 %v17996_v24 }
 0x309   : > { %v16722_v9 = vpop.f32.mrb[12].mxu0 }
 0x30a   : > { %v16767_v10 = vpop.f32.mrb[12].mxu1  ;;  %v9830_v5 = vpop.f32.mrb[13].mxu0 }
 0x30b   : > { %v10543_v11 = vpop.f32.mrb[13].mxu1 }
 0x30c   : > { %v19757_v11 = vpack.c.bf16 %v15484_v4, %v15483_v2  ;;  %v15501_v2 = vld [vmem:[%s20156_s5 + $0xd0] sm:$0xff] }
 0x30d   : > { %v10791_v13 = vpop.f32.mrb[14].mxu0 }
 0x30e   : > { %v10863_v14 = vpop.f32.mrb[14].mxu1  ;;  %v16774_v15 = vpop.f32.mrb[15].mxu0 }
 0x30f   : > { %v10864_v16 = vadd.f32 %v10863_v14, %v10791_v13  ;;  %v16781_v17 = vpop.f32.mrb[15].mxu1  ;;  %v15485_v14 = vld [vmem:[%s20156_s5 + $0x50] sm:$0xff]  ;;  %v15486_v15 = vld [vmem:[%s20156_s5 + $0x58] sm:$0xff] }
 0x311   : > { %v10936_v19 = vpop.f32.mrb[16].mxu0 }
 0x312   : > { %v10940_v21 = vadd.f32 %v10936_v19, %v10864_v16  ;;  %v11010_v22 = vpop.f32.mrb[16].mxu1  ;;  %v16788_v23 = vpop.f32.mrb[17].mxu0 }
 0x313   : > { %v16795_v26 = vpop.f32.mrb[17].mxu1  ;;  %v19769_v23 = vpack.c.bf16 %v15486_v15, %v15485_v14 }
 0x314   : > { %v11014_v12 = vadd.f32 %v11010_v22, %v10940_v21  ;;  %v15491_v26 = vld [vmem:[%s20156_s5 + $0x80] sm:$0xff] }
 0x315   : > { %v11084_v18 = vpop.f32.mrb[18].mxu0 }
 0x316   : > { %v11088_v30 = vadd.f32 %v11084_v18, %v11014_v12  ;;  %v11158_v32 = vpop.f32.mrb[18].mxu1  ;;  %v16802_v34 = vpop.f32.mrb[19].mxu0  ;;  %v15492_v18 = vld [vmem:[%s20156_s5 + $0x88] sm:$0xff] }
 0x317   : > { %v16809_v20 = vpop.f32.mrb[19].mxu1 }
 0x318   : > { %v11162_v38 = vadd.f32 %v11158_v32, %v11088_v30  ;;  %v15495_v30 = vld [vmem:[%s20156_s5 + $0xa0] sm:$0xff]  ;;  %v15496_v32 = vld [vmem:[%s20156_s5 + $0xa8] sm:$0xff] }
 0x319   : > { %v11232_v39 = vpop.f32.mrb[20].mxu0 }
 0x31a   : > { %v11236_v40 = vadd.f32 %v11232_v39, %v11162_v38  ;;  %v11306_v41 = vpop.f32.mrb[20].mxu1  ;;  %v16816_v29 = vpop.f32.mrb[21].mxu0 }
 0x31b   : > { %v16823_v31 = vpop.f32.mrb[21].mxu1  ;;  %v19788_v29 = vpack.c.bf16 %v15492_v18, %v15491_v26 }
 0x31c   : > { %v11310_v33 = vadd.f32 %v11306_v41, %v11236_v40  ;;  %v19790_v31 = vpack.c.bf16 %v15496_v32, %v15495_v30  ;;  %v15507_v30 = vld [vmem:[%s20156_s5 + $0x100] sm:$0xff]  ;;  %v15508_v32 = vld [vmem:[%s20156_s5 + $0x108] sm:$0xff] }
 0x31d   : > { %v11380_v45 = vpop.f32.mrb[22].mxu0 }
 0x31e   : > { %v11384_v27 = vadd.f32 %v11380_v45, %v11310_v33  ;;  %v11459_v28 = vpop.f32.mrb[22].mxu1  ;;  %v16830_v35 = vpop.f32.mrb[23].mxu0  ;;  %v15493_v33 = vld [vmem:[%s20156_s5 + $0x90] sm:$0xff] }
 0x31f   : > { %v16837_v25 = vpop.f32.mrb[23].mxu1  ;;  %v15497_v35 = vld [vmem:[%s20156_s5 + $0xb0] sm:$0xff] }
 0x320   : > { %v11391_v42 = vadd.f32 %v19723_v44, %v11384_v27  ;;  %v15498_v25 = vld [vmem:[%s20156_s5 + $0xb8] sm:$0xff] }
 0x321   : > { %v11529_v46 = vpop.f32.mrb[24].mxu0 }
 0x322   : > { %v19732_v47 = vmax.f32 %v11391_v42, 0.0  ;;  %v11530_v48 = vadd.f32 %v11529_v46, %v11459_v28  ;;  %v11599_v49 = vpop.f32.mrb[24].mxu1  ;;  %v16844_v50 = vpop.f32.mrb[25].mxu0  ;;  %v15494_v28 = vld [vmem:[%s20156_s5 + $0x98] sm:$0xff] }
 0x323   : > { %v16851_v51 = vpop.f32.mrb[25].mxu1  ;;  %v15499_v50 = vld [vmem:[%s20156_s5 + $0xc0] sm:$0xff] }
 0x324   : > { %v13383_v53 = vrot.slane %v19732_v47, 1  ;;  %v11603_v54 = vadd.f32 %v11599_v49, %v11530_v48  ;;  %v13529_v45 = vrot.slane %v19732_v47, 2  ;;  %v19813_v48 = vpack.c.bf16 %v15494_v28, %v15493_v33  ;;  %v15509_v28 = vld [vmem:[%s20156_s5 + $0x110] sm:$0xff] }
 0x325   : > { %v11670_v57 = vpop.f32.mrb[26].mxu0  ;;  %v19815_v49 = vpack.c.bf16 %v15498_v25, %v15497_v35  ;;  %v15510_v35 = vld [vmem:[%s20156_s5 + $0x118] sm:$0xff] }
 0x326   : > { %v11674_v58 = vadd.f32 %v11670_v57, %v11603_v54  ;;  %v11741_v59 = vpop.f32.mrb[26].mxu1  ;;  %v16858_v60 = vpop.f32.mrb[27].mxu0  ;;  %17029 = vmatmul.mubr.msk.f32.vlgmr.msra.gmra.mrb[50].mxu0 %vm13384_vm10, %v13383_v53  ;;  %v15500_v53 = vld [vmem:[%s20156_s5 + $0xc8] sm:$0xff]  ;;  %v15503_v54 = vld [vmem:[%s20156_s5 + $0xe0] sm:$0xff] }
 0x327   : > { %v16865_v61 = vpop.f32.mrb[27].mxu1  ;;  %17388 = vmatpush3.bf16.msra.mxu0 %v19734_v52  ;;  %17039 = vmatprep.mubr.msk.f32.mxu0 %vm17997_vm9, %v17998_v37 }
 0x328   : > { %v11745_v1 = vadd.f32 %v11741_v59, %v11674_v58  ;;  %17389 = vmatprep.subr.bf16.mxu0 %v17996_v24  ;;  %v19837_v61 = vpack.c.bf16 %v15500_v53, %v15499_v50 }
 0x329   : > { %v11812_v0 = vpop.f32.mrb[28].mxu0 }
 0x32a   : > { %v11816_v7 = vadd.f32 %v11812_v0, %v11745_v1  ;;  %v11886_v9 = vpop.f32.mrb[28].mxu1  ;;  %v16872_v10 = vpop.f32.mrb[29].mxu0  ;;  %v19839_v1 = vpack.c.bf16 %v15504_v55, %v15503_v54 }
 0x32b   : > { %v16879_v5 = vpop.f32.mrb[29].mxu1  ;;  %17391 = vmatpush3.bf16.msra.mxu0 %v19745_v63  ;;  %v15505_v10 = vld [vmem:[%s20156_s5 + $0xf0] sm:$0xff] }
 0x32c   : > { %v11890_v13 = vadd.f32 %v11886_v9, %v11816_v7  ;;  %17392 = vmatprep.subr.bf16.mxu0 %v17996_v24  ;;  %v15502_v9 = vld [vmem:[%s20156_s5 + $0xd8] sm:$0xff] }
 0x32d   : > { %v11960_v16 = vpop.f32.mrb[30].mxu0  ;;  %v15506_v5 = vld [vmem:[%s20156_s5 + $0xf8] sm:$0xff] }
 0x32e   : > { %v11964_v17 = vadd.f32 %v11960_v16, %v11890_v13  ;;  %v12034_v19 = vpop.f32.mrb[30].mxu1  ;;  %17040 = vmatmul.mubr.msk.f32.vlgmr.msra.gmra.mrb[52].mxu0 %vm13384_vm10, %v19732_v47  ;;  %v16886_v21 = vpop.f32.mrb[31].mxu0  ;;  %v19865_v13 = vpack.c.bf16 %v15502_v9, %v15501_v2  ;;  %v19867_v14 = vpack.c.bf16 %v15506_v5, %v15505_v10 }
 0x32f   : > { %v16893_v22 = vpop.f32.mrb[31].mxu1  ;;  %17394 = vmatpush3.bf16.msra.mxu0 %v19757_v11  ;;  %17050 = vmatprep.mubr.msk.f32.mxu0 %vm17997_vm9, %v17998_v37 }
 0x330   : > { %v12038_v12 = vadd.f32 %v12034_v19, %v11964_v17  ;;  %17395 = vmatprep.subr.bf16.mxu0 %v17996_v24 }
 0x331   : > { %v12107_v34 = vpop.f32.mrb[32].mxu0 }
 0x332   : > { %v12039_v20 = vadd.f32 %v19723_v44, %v12038_v12  ;;  %v12177_v38 = vpop.f32.mrb[32].mxu1  ;;  %v16900_v39 = vpop.f32.mrb[33].mxu0 }
 0x333   : > { %v12178_v40 = vadd.f32 %v12177_v38, %v12107_v34  ;;  %v16907_v41 = vpop.f32.mrb[33].mxu1  ;;  %17397 = vmatpush3.bf16.msra.mxu0 %v19769_v23 }
 0x334   : > { %v19796_v27 = vmax.f32 %v12039_v20, 0.0  ;;  %17404 = vmatprep.subr.bf16.mxu0 %v17996_v24 }
 0x335   : > { %v12247_v42 = vpop.f32.mrb[34].mxu0 }
 0x336   : > { %v12251_v43 = vadd.f32 %v12247_v42, %v12178_v40  ;;  %v12318_v36 = vpop.f32.mrb[34].mxu1  ;;  %17051 = vmatmul.mubr.msk.f32.vlgmr.msra.gmra.mrb[54].mxu0 %vm13384_vm10, %v13529_v45  ;;  %v16914_v46 = vpop.f32.mrb[35].mxu0  ;;  %17062 = vmatmul.mubr.msk.f32.vlgmr.msra.gmra.mrb[50].mxu1 %vm13384_vm10, %v19796_v27  ;;  %v13677_v4 = vrot.slane %v19796_v27, 1  ;;  %v13751_v0 = vrot.slane %v19796_v27, 2  ;;  %v19886_v40 = vpack.c.bf16 %v15508_v32, %v15507_v30  ;;  %v14715_v30 = vld [vmem:[%s20158_s7 + $0x20] sm:$0xff]  ;;  %v14716_v32 = vld [vmem:[%s20158_s7 + $0x28] sm:$0xff] }
 0x337   : > { %v16921_v47 = vpop.f32.mrb[35].mxu1  ;;  %17406 = vmatpush3.bf16.msra.mxu0 %v19788_v29  ;;  %17412 = vmatpush3.bf16.msra.mxu1 %v19790_v31 }
 0x338   : > { %v12322_v51 = vadd.f32 %v12318_v36, %v12251_v43  ;;  %17407 = vmatprep.subr.bf16.mxu0 %v17996_v24  ;;  %17413 = vmatprep.subr.bf16.mxu1 %v17996_v24  ;;  %v19900_v47 = vpack.c.bf16 %v15510_v35, %v15509_v28  ;;  %v14798_v28 = vld [vmem:[%s20160_s9 + $0x18] sm:$0xff] }
 0x339   : > { %v12389_v56 = vpop.f32.mrb[36].mxu0  ;;  %17072 = vmatprep.mubr.msk.f32.mxu0 %vm17997_vm9, %v17998_v37  ;;  %17083 = vmatprep.mubr.msk.f32.mxu1 %vm17997_vm9, %v17998_v37 }
 0x33a   : > { %v12393_v57 = vadd.f32 %v12389_v56, %v12322_v51  ;;  %v12460_v58 = vpop.f32.mrb[36].mxu1  ;;  %v16928_v59 = vpop.f32.mrb[37].mxu0 }
 0x33b   : > { %v16935_v60 = vpop.f32.mrb[37].mxu1  ;;  %17409 = vmatpush3.bf16.msra.mxu0 %v19813_v48  ;;  %17415 = vmatpush3.bf16.msra.mxu1 %v19815_v49 }
 0x33c   : > { %v12464_v7 = vadd.f32 %v12460_v58, %v12393_v57  ;;  %17416 = vmatprep.subr.bf16.mxu0 %v17996_v24  ;;  %17422 = vmatprep.subr.bf16.mxu1 %v17996_v24 }
 0x33e   : > { %17073 = vmatmul.mubr.msk.f32.vlgmr.msra.gmra.mrb[56].mxu0 %vm13384_vm10, %v13677_v4  ;;  %17084 = vmatmul.mubr.msk.f32.vlgmr.msra.gmra.mrb[52].mxu1 %vm13384_vm10, %v13751_v0 }
 0x33f   : > { %17418 = vmatpush3.bf16.msra.mxu0 %v19837_v61  ;;  %17424 = vmatpush3.bf16.msra.mxu1 %v19839_v1 }
 0x340   : > { %17419 = vmatprep.subr.bf16.mxu0 %v17996_v24  ;;  %17425 = vmatprep.subr.bf16.mxu1 %v17996_v24 }
 0x341   : > { %17094 = vmatprep.mubr.msk.f32.mxu0 %vm17997_vm9, %v17998_v37  ;;  %17105 = vmatprep.mubr.msk.f32.mxu1 %vm17997_vm9, %v17998_v37 }
 0x343   : > { %17421 = vmatpush3.bf16.msra.mxu0 %v19865_v13  ;;  %17427 = vmatpush3.bf16.msra.mxu1 %v19867_v14 }
 0x344   : > { %17428 = vmatprep.subr.bf16.mxu0 %v17996_v24  ;;  %17434 = vmatprep.subr.bf16.mxu1 %v17996_v24 }
 0x36c   : > { %v12534_v15 = vpop.f32.mrb[38].mxu0 }
 0x36d   : > { %v12538_v16 = vadd.f32 %v12534_v15, %v12464_v7  ;;  %v16942_v17 = vpop.f32.mrb[39].mxu0 }
 0x36e   : > { %v12608_v19 = vpop.f32.mrb[38].mxu1 }
 0x36f   : > { %v12612_v21 = vadd.f32 %v12608_v19, %v12538_v16  ;;  %v16949_v22 = vpop.f32.mrb[39].mxu1 }
 0x370   : > { %v12682_v26 = vpop.f32.mrb[40].mxu0 }
 0x371   : > { %v12686_v12 = vadd.f32 %v12682_v26, %v12612_v21  ;;  %v16956_v18 = vpop.f32.mrb[41].mxu0  ;;  %v14712_v21 = vld [vmem:[%s20158_s7 + $0x8] sm:$0xff]  ;;  %v14713_v26 = vld [vmem:[%s20158_s7 + $0x10] sm:$0xff] }
 0x372   : > { %v12755_v34 = vpop.f32.mrb[40].mxu1 }
 0x373   : > { %v12687_v20 = vadd.f32 %v19723_v44, %v12686_v12  ;;  %v16963_v38 = vpop.f32.mrb[41].mxu1  ;;  %v14714_v12 = vld [vmem:[%s20158_s7 + $0x18] sm:$0xff] }
 0x374   : > { %v12825_v39 = vpop.f32.mrb[42].mxu0  ;;  %v17492_v18 = vpack.c.bf16 %v14714_v12, %v14713_v26  ;;  %v14718_v38 = vld [vmem:[%s20158_s7 + $0x38] sm:$0xff] }
 0x375   : > { %v19888_v41 = vmax.f32 %v12687_v20, 0.0  ;;  %v12826_v33 = vadd.f32 %v12825_v39, %v12755_v34  ;;  %v16970_v45 = vpop.f32.mrb[43].mxu0  ;;  %v17495_v34 = vpack.c.bf16 %v14716_v32, %v14715_v30  ;;  %v14717_v20 = vld [vmem:[%s20158_s7 + $0x30] sm:$0xff] }
 0x376   : > { %v12895_v25 = vpop.f32.mrb[42].mxu1  ;;  %v17498_v39 = vpack.c.bf16 %v14718_v38, %v14717_v20 }
 0x377   : > { %v13899_v42 = vrot.slane %v19888_v41, 1  ;;  %v12899_v43 = vadd.f32 %v12895_v25, %v12826_v33  ;;  %v16977_v36 = vpop.f32.mrb[43].mxu1  ;;  %17095 = vmatmul.mubr.msk.f32.vlgmr.msra.gmra.mrb[58].mxu0 %vm13384_vm10, %v19888_v41  ;;  %v13973_v57 = vrot.slane %v19888_v41, 2  ;;  %v14797_v33 = vld [vmem:[%s20160_s9 + $0x10] sm:$0xff]  ;;  %v14799_v25 = vld [vmem:[%s20160_s9 + $0x20] sm:$0xff] }
 0x378   : > { %17430 = vmatpush3.bf16.msra.mxu0 %v19886_v40  ;;  %v12966_v46 = vpop.f32.mrb[44].mxu0  ;;  %17116 = vmatprep.mubr.msk.f32.mxu0 %vm17997_vm9, %v17998_v37  ;;  %v17504_v35 = vpack.c.bf16 %v14798_v28, %v14797_v33  ;;  %v14801_v36 = vld [vmem:[%s20160_s9 + $0x30] sm:$0xff]  ;;  %v14810_v33 = vld [vmem:[%s20160_s9 + $0x78] sm:$0xff]  ;;  %v14719_v28 = vld [vmem:[%s20159_s8] sm:$0x1] }
 0x379   : > { %v12970_v50 = vadd.f32 %v12966_v46, %v12899_v43  ;;  %v16984_v51 = vpop.f32.mrb[45].mxu0  ;;  %17106 = vmatmul.mubr.msk.f32.vlgmr.msra.gmra.mrb[54].mxu1 %vm13384_vm10, %v13899_v42  ;;  %17431 = vmatprep.subr.bf16.mxu0 %v17996_v24  ;;  %v14802_v46 = vld [vmem:[%s20160_s9 + $0x38] sm:$0xff] }
 0x37a   : > { %17436 = vmatpush3.bf16.msra.mxu1 %v19681_v62  ;;  %v13037_v53 = vpop.f32.mrb[44].mxu1  ;;  %17127 = vmatprep.mubr.msk.f32.mxu1 %vm17997_vm9, %v17998_v37  ;;  %v14804_v51 = vld [vmem:[%s20160_s9 + $0x48] sm:$0xff] }
 0x37b   : > { %v13041_v54 = vadd.f32 %v13037_v53, %v12970_v50  ;;  %v16991_v55 = vpop.f32.mrb[45].mxu1  ;;  %17437 = vmatprep.subr.bf16.mxu1 %v17996_v24  ;;  %v14803_v50 = vld [vmem:[%s20160_s9 + $0x40] sm:$0xff] }
 0x37c   : > { %17433 = vmatpush3.bf16.msra.mxu0 %v19900_v47  ;;  %v13108_v56 = vpop.f32.mrb[46].mxu0  ;;  %v17513_v53 = vpack.c.bf16 %v14804_v51, %v14803_v50  ;;  %v14806_v55 = vld [vmem:[%s20160_s9 + $0x58] sm:$0xff] }
 0x37d   : > { %v13112_v58 = vadd.f32 %v13108_v56, %v13041_v54  ;;  %v16998_v59 = vpop.f32.mrb[47].mxu0  ;;  %17440 = vmatprep.subr.bf16.mxu0 %v17996_v24  ;;  %v14805_v54 = vld [vmem:[%s20160_s9 + $0x50] sm:$0xff] }
 0x37e   : > { %17439 = vmatpush3.bf16.msra.mxu1 %v19704_v6  ;;  %v17516_v56 = vpack.c.bf16 %v14806_v55, %v14805_v54 }
 0x37f   : > { %17117 = vmatmul.mubr.msk.f32.vlgmr.msra.gmra.mrb[60].mxu0 %vm13384_vm10, %v13973_v57  ;;  %17446 = vmatprep.subr.bf16.mxu1 %v17996_v24 }
 0x380   : > { %17442 = vmatpush3.bf16.msra.mxu0 %v19734_v52  ;;  %17138 = vmatprep.mubr.msk.f32.mxu0 %vm17997_vm9, %v17998_v37 }
 0x381   : > { %17128 = vmatmul.mubr.msk.f32.vlgmr.msra.gmra.mrb[56].mxu1 %vm13384_vm10, %v13677_v4  ;;  %17443 = vmatprep.subr.bf16.mxu0 %v17996_v24 }
 0x382   : > { %17448 = vmatpush3.bf16.msra.mxu1 %v19757_v11  ;;  %17149 = vmatprep.mubr.msk.f32.mxu1 %vm17997_vm9, %v17998_v37 }
 0x383   : > { %17449 = vmatprep.subr.bf16.mxu1 %v17996_v24 }
 0x384   : > { %17445 = vmatpush3.bf16.msra.mxu0 %v19745_v63 }
 0x385   : > { %17452 = vmatprep.subr.bf16.mxu0 %v17996_v24 }
 0x386   : > { %17451 = vmatpush3.bf16.msra.mxu1 %v19769_v23 }
 0x387   : > { %17139 = vmatmul.mubr.msk.f32.vlgmr.msra.gmra.mrb[62].mxu0 %vm13384_vm10, %v19796_v27  ;;  %17458 = vmatprep.subr.bf16.mxu1 %v17996_v24 }
 0x388   : > { %17454 = vmatpush3.bf16.msra.mxu0 %v19693_v3  ;;  %17160 = vmatprep.mubr.msk.f32.mxu0 %vm17997_vm9, %v17998_v37 }
 0x389   : > { %17150 = vmatmul.mubr.msk.f32.vlgmr.msra.gmra.mrb[58].mxu1 %vm13384_vm10, %v13751_v0  ;;  %17455 = vmatprep.subr.bf16.mxu0 %v17996_v24 }
 0x38a   : > { %17460 = vmatpush3.bf16.msra.mxu1 %v19788_v29  ;;  %17171 = vmatprep.mubr.msk.f32.mxu1 %vm17997_vm9, %v17998_v37 }
 0x38b   : > { %17461 = vmatprep.subr.bf16.mxu1 %v17996_v24 }
 0x38c   : > { %17457 = vmatpush3.bf16.msra.mxu0 %v19711_v8 }
 0x38d   : > { %17464 = vmatprep.subr.bf16.mxu0 %v17996_v24 }
 0x38e   : > { %17463 = vmatpush3.bf16.msra.mxu1 %v19813_v48 }
 0x38f   : > { %17161 = vmatmul.mubr.msk.f32.vlgmr.msra.gmra.mrb[64].mxu0 %vm13384_vm10, %v19888_v41  ;;  %17470 = vmatprep.subr.bf16.mxu1 %v17996_v24  ;;  %v14796_v41 = vld [vmem:[%s20160_s9 + $0x8] sm:$0xff] }
 0x390   : > { %17466 = vmatpush3.bf16.msra.mxu0 %v19790_v31  ;;  %17182 = vmatprep.mubr.msk.f32.mxu0 %vm17997_vm9, %v17998_v37 }
 0x391   : > { %17172 = vmatmul.mubr.msk.f32.vlgmr.msra.gmra.mrb[60].mxu1 %vm13384_vm10, %v13899_v42  ;;  %17467 = vmatprep.subr.bf16.mxu0 %v17996_v24  ;;  %v14800_v42 = vld [vmem:[%s20160_s9 + $0x28] sm:$0xff] }
 0x392   : > { %17472 = vmatpush3.bf16.msra.mxu1 %v19837_v61  ;;  %17193 = vmatprep.mubr.msk.f32.mxu1 %vm17997_vm9, %v17998_v37  ;;  %v17507_v43 = vpack.c.bf16 %v14800_v42, %v14799_v25 }
 0x393   : > { %17473 = vmatprep.subr.bf16.mxu1 %v17996_v24 }
 0x394   : > { %17469 = vmatpush3.bf16.msra.mxu0 %v19815_v49 }
 0x395   : > { %17476 = vmatprep.subr.bf16.mxu0 %v17996_v24 }
 0x396   : > { %17475 = vmatpush3.bf16.msra.mxu1 %v19865_v13 }
 0x397   : > { %17183 = vmatmul.mubr.msk.f32.vlgmr.msra.gmra.mrb[66].mxu0 %vm13384_vm10, %v13973_v57  ;;  %17482 = vmatprep.subr.bf16.mxu1 %v17996_v24  ;;  %v14807_v57 = vld [vmem:[%s20160_s9 + $0x60] sm:$0xff] }
 0x398   : > { %17478 = vmatpush3.bf16.msra.mxu0 %v19839_v1  ;;  %17204 = vmatprep.mubr.msk.f32.mxu0 %vm17997_vm9, %v17998_v37 }
 0x399   : > { %17479 = vmatprep.subr.bf16.mxu0 %v17996_v24 }
 0x39c   : > { %17481 = vmatpush3.bf16.msra.mxu0 %v19867_v14 }
 0x39d   : > { %17488 = vmatprep.subr.bf16.mxu0 %v17996_v24 }
 0x3b0   : > { %v13182_v62 = vpop.f32.mrb[46].mxu1 }
 0x3b1   : > { %v13186_v3 = vadd.f32 %v13182_v62, %v13112_v58  ;;  %v17005_v6 = vpop.f32.mrb[47].mxu1  ;;  %v14808_v58 = vld [vmem:[%s20160_s9 + $0x68] sm:$0xff] }
 0x3b2   : > { %v13256_v8 = vpop.f32.mrb[48].mxu0  ;;  %v17519_v59 = vpack.c.bf16 %v14808_v58, %v14807_v57 }
 0x3b3   : > { %v13260_v52 = vadd.f32 %v13256_v8, %v13186_v3  ;;  %v17012_v63 = vpop.f32.mrb[49].mxu0 }
 0x3b4   : > { %v13330_v11 = vpop.f32.mrb[48].mxu1 }
 0x3b5   : > { %v13334_v23 = vadd.f32 %v13330_v11, %v13260_v52  ;;  %v17019_v29 = vpop.f32.mrb[49].mxu1 }
 0x3b7   : > { %v13335_v31 = vadd.f32 %v19723_v44, %v13334_v23 }
 0x3b9   : > { %v13336_v27 = vmax.f32 %v13335_v31, 0.0 }
 0x3bb   : > { %v14553_v48 = vrot.slane %v13336_v27, 1  ;;  %17194 = vmatmul.mubr.msk.f32.vlgmr.msra.gmra.mrb[62].mxu1 %vm13384_vm10, %v13336_v27  ;;  %v14627_v49 = vrot.slane %v13336_v27, 2 }
 0x3bc   : > { %17484 = vmatpush3.bf16.msra.mxu1 %v19886_v40  ;;  %17215 = vmatprep.mubr.msk.f32.mxu1 %vm17997_vm9, %v17998_v37  ;;  %v14795_v40 = vld [vmem:[%s20160_s9] sm:$0xff] }
 0x3bd   : > { %17205 = vmatmul.mubr.msk.f32.vlgmr.msra.gmra.mrb[68].mxu0 %vm13384_vm10, %v14553_v48  ;;  %17485 = vmatprep.subr.bf16.mxu1 %v17996_v24  ;;  %v17501_v45 = vpack.c.bf16 %v14796_v41, %v14795_v40  ;;  %v14809_v41 = vld [vmem:[%s20160_s9 + $0x70] sm:$0xff] }
 0x3be   : > { %17234 = vmatprep.mubr.msk.f32.mxu0 %vm17997_vm9, %v17998_v37 }
 0x3c0   : > { %17487 = vmatpush3.bf16.msra.mxu1 %v19900_v47  ;;  %v17510_v47 = vpack.c.bf16 %v14802_v46, %v14801_v36  ;;  %v14883_v36 = vlaneseq }
 0x3c1   : > { %17500 = vmatprep.subr.bf16.mxu1 %v17996_v24 }
 0x3c2   : > { %v14884_v46 = vand.u32 127, %v14883_v36 }
 0x3c3   : > { %17216 = vmatmul.mubr.msk.f32.vlgmr.msra.gmra.mrb[64].mxu1 %vm13384_vm10, %v14627_v49 }
 0x3c4   : > { %17269 = vmatprep.mubr.msk.f32.mxu1 %vm17997_vm9, %v17998_v37  ;;  %v14711_v37 = vld [vmem:[%s20158_s7] sm:$0xff]  ;;  %17502 = vmatpush3.bf16.msra.mxu1 %v17501_v45  ;;  %v17522_v45 = vpack.c.bf16 %v14810_v33, %v14809_v41  ;;  %vm14885_vm13 = vcmp.lt.s32.totalorder %v14884_v46, 4 }
 0x3c5   : > { %v17489_v22 = vpack.c.bf16 %v14712_v21, %v14711_v37  ;;  %17503 = vmatprep.subr.bf16.mxu1 %v17996_v24  ;;  %v15520_v21 = vld [vmem:[#allocation7] ss:$0 sm:$0xff] }
 0x3c7   : > { %17490 = vmatpush3.bf16.msra.mxu0 %v17489_v22 }
 0x3c8   : > { %17491 = vmatprep.subr.bf16.mxu0 %v17996_v24  ;;  %17505 = vmatpush3.bf16.msra.mxu1 %v17504_v35 }
 0x3c9   : > { %17506 = vmatprep.subr.bf16.mxu1 %v17996_v24 }
 0x3cb   : > { %17493 = vmatpush3.bf16.msra.mxu0 %v17492_v18 }
 0x3cc   : > { %17494 = vmatprep.subr.bf16.mxu0 %v17996_v24  ;;  %17508 = vmatpush3.bf16.msra.mxu1 %v17507_v43 }
 0x3cd   : > { %17509 = vmatprep.subr.bf16.mxu1 %v17996_v24 }
 0x3cf   : > { %17496 = vmatpush3.bf16.msra.mxu0 %v17495_v34 }
 0x3d0   : > { %17497 = vmatprep.subr.bf16.mxu0 %v17996_v24  ;;  %17511 = vmatpush3.bf16.msra.mxu1 %v17510_v47  ;;  %v14811_v47 = vld [vmem:[%s20161_s10] sm:$0x1] }
 0x3d1   : > { %17512 = vmatprep.subr.bf16.mxu1 %v17996_v24 }
 0x3d3   : > { %17499 = vmatpush3.bf16.msra.mxu0 %v17498_v39 }
 0x3d4   : > { %17514 = vmatpush3.bf16.msra.mxu1 %v17513_v53 }
 0x3d5   : > { %17515 = vmatprep.subr.bf16.mxu1 %v17996_v24 }
 0x3d8   : > { %17517 = vmatpush3.bf16.msra.mxu1 %v17516_v56 }
 0x3d9   : > { %17518 = vmatprep.subr.bf16.mxu1 %v17996_v24 }
 0x3dc   : > { %17520 = vmatpush3.bf16.msra.mxu1 %v17519_v59 }
 0x3dd   : > { %17521 = vmatprep.subr.bf16.mxu1 %v17996_v24 }
 0x3e0   : > { %17523 = vmatpush3.bf16.msra.mxu1 %v17522_v45 }
 0x3f9   : > { %v13453_v44 = vpop.f32.mrb[50].mxu0 }
 0x3fa   : > { %v17030_v60 = vpop.f32.mrb[51].mxu0 }
 0x401   : > { %v13525_v61 = vpop.f32.mrb[52].mxu0 }
 0x402   : > { %v13526_v1 = vadd.f32 %v13525_v61, %v13453_v44  ;;  %v17041_v2 = vpop.f32.mrb[53].mxu0 }
 0x409   : > { %v13598_v4 = vpop.f32.mrb[54].mxu0  ;;  %v13672_v0 = vpop.f32.mrb[50].mxu1 }
 0x40a   : > { %v13602_v7 = vadd.f32 %v13598_v4, %v13526_v1  ;;  %v17052_v9 = vpop.f32.mrb[55].mxu0  ;;  %v17063_v10 = vpop.f32.mrb[51].mxu1 }
 0x40c   : > { %v13676_v5 = vadd.f32 %v13672_v0, %v13602_v7 }
 0x411   : > { %v13746_v13 = vpop.f32.mrb[56].mxu0  ;;  %v13820_v14 = vpop.f32.mrb[52].mxu1 }
 0x412   : > { %v13750_v15 = vadd.f32 %v13746_v13, %v13676_v5  ;;  %v17074_v16 = vpop.f32.mrb[57].mxu0  ;;  %v17085_v17 = vpop.f32.mrb[53].mxu1 }
 0x414   : > { %v13824_v19 = vadd.f32 %v13820_v14, %v13750_v15 }
 0x44a   : > { %v13894_v62 = vpop.f32.mrb[58].mxu0 }
 0x44b   : > { %v13898_v3 = vadd.f32 %v13894_v62, %v13824_v19  ;;  %v17096_v6 = vpop.f32.mrb[59].mxu0 }
 0x44c   : > { %v13968_v8 = vpop.f32.mrb[54].mxu1 }
 0x44d   : > { %v13972_v52 = vadd.f32 %v13968_v8, %v13898_v3  ;;  %v17107_v63 = vpop.f32.mrb[55].mxu1 }
 0x452   : > { %v14042_v11 = vpop.f32.mrb[60].mxu0 }
 0x453   : > { %v14046_v23 = vadd.f32 %v14042_v11, %v13972_v52  ;;  %v17118_v29 = vpop.f32.mrb[61].mxu0 }
 0x454   : > { %v14121_v31 = vpop.f32.mrb[56].mxu1 }
 0x455   : > { %v17129_v27 = vpop.f32.mrb[57].mxu1  ;;  %v14053_v26 = vadd.f32 %v15520_v21, %v14046_v23 }
 0x457   : > { %v14054_v32 = vmax.f32 %v14053_v26, 0.0 }
 0x45a   : > { %v14191_v48 = vpop.f32.mrb[62].mxu0 }
 0x45b   : > { %v14192_v49 = vadd.f32 %v14191_v48, %v14121_v31  ;;  %v17140_v44 = vpop.f32.mrb[63].mxu0 }
 0x45c   : > { %v14261_v60 = vpop.f32.mrb[58].mxu1 }
 0x45d   : > { %v14265_v61 = vadd.f32 %v14261_v60, %v14192_v49  ;;  %v17151_v1 = vpop.f32.mrb[59].mxu1 }
 0x462   : > { %v14332_v2 = vpop.f32.mrb[64].mxu0 }
 0x463   : > { %v14336_v4 = vadd.f32 %v14332_v2, %v14265_v61  ;;  %v17162_v24 = vpop.f32.mrb[65].mxu0 }
 0x464   : > { %v14403_v0 = vpop.f32.mrb[60].mxu1 }
 0x465   : > { %v14407_v7 = vadd.f32 %v14403_v0, %v14336_v4  ;;  %v17173_v9 = vpop.f32.mrb[61].mxu1 }
 0x46a   : > { %v14474_v10 = vpop.f32.mrb[66].mxu0 }
 0x46b   : > { %v14478_v5 = vadd.f32 %v14474_v10, %v14407_v7  ;;  %v17184_v13 = vpop.f32.mrb[67].mxu0 }
 0x48e   : > { %v14548_v14 = vpop.f32.mrb[62].mxu1 }
 0x48f   : > { %v14552_v15 = vadd.f32 %v14548_v14, %v14478_v5  ;;  %v17195_v16 = vpop.f32.mrb[63].mxu1 }
 0x490   : > { %v14622_v17 = vpop.f32.mrb[68].mxu0 }
 0x491   : > { %v14626_v19 = vadd.f32 %v14622_v17, %v14552_v15  ;;  %v17206_v37 = vpop.f32.mrb[69].mxu0 }
 0x496   : > { %v14696_v22 = vpop.f32.mrb[64].mxu1 }
 0x497   : > { %v14700_v12 = vadd.f32 %v14696_v22, %v14626_v19  ;;  %v17217_v18 = vpop.f32.mrb[65].mxu1 }
 0x499   : > { %v14701_v30 = vadd.f32 %v15520_v21, %v14700_v12 }
 0x49b   : > { %v14702_v34 = vmax.f32 %v14701_v30, 0.0 }
 0x49d   : > { %v14703_v20 = vmax.f32 %v14054_v32, %v14702_v34 }
 0x49f   : > { %v14705_v38 = vrot.slane %v14703_v20, 1 }
 0x4a1   : > { %v14707_v39 = vmax.f32 %v14703_v20, %v14705_v38 }
 0x4a3   : > { %14709 = vst.msk [vmem:[#allocation3] sm:$0x1] %vm14708_vm11, %v14707_v39 }
 0x4aa   : > { %v14710_v40 = vld [vmem:[#allocation3] sm:$0x1] }
 0x4ab   : > { %17235 = vmatmul.mubr.msk.f32.vlgmr.msra.gmra.mrb[70].mxu0 %vm14720_vm12, %v14710_v40 }
 0x57e   : > { %v14790_v35 = vpop.f32.mrb[70].mxu0 }
 0x57f   : > { %v14791_v25 = vadd.f32 %v14790_v35, %v14719_v28  ;;  %v17236_v42 = vpop.f32.mrb[71].mxu0 }
 0x581   : > { %v14794_v43 = vmax.f32 %v14791_v25, 0.0 }
 0x583   : > { %17270 = vmatmul.mubr.f32.vlgmr.msra.gmra.mrb[66].mxu1 %v14794_v43 }
 0x656   : > { %v14878_v50 = vpop.f32.mrb[66].mxu1 }
 0x657   : > { %v14879_v51 = vadd.f32 %v14878_v50, %v14811_v47  ;;  %v17271_v53 = vpop.f32.mrb[67].mxu1 }
 0x659   : > { %14882 = vst [vmem:[%s437_s28] sm:$0x1] %v14879_v51  ;;  %v14886_v54 = vsel %vm14885_vm13, %v14879_v51, -inf }
 0x65a   : > { %v14888_v55 = vsel %vm14887_vm14, %v14886_v54, -inf }
 0x65b   : > { %14889 = vmax.xlane.f32.xlu0 %v14888_v55 }
 0x6e8   : > { %v14890_v56 = vpop.xlane.xlu0 %14889 }
 0x6e9   : > { %v14891_v57 = vsub.f32 %v14886_v54, %v14890_v56 }
 0x6eb   : > { %v14892_v58 = vmul.f32 1.442695, %v14891_v57 }
 0x6ed   : > { %17818 = vpow2.f32 %v14892_v58 }
 0x6f7   : > { %v17819_v59 = vpop.eup %17818 }
 0x6f8   : > { %v14894_v62 = vsel %vm14887_vm14, %v17819_v59, 0.0 }
 0x6f9   : > { %14895 = vadd.xlane.f32.xlu0 %v14894_v62 }
 0x6fa   : > { %17901 = shalt.err (!%p17898_p11)
}
 0x6fb   : > { %s17902_s30 = scalar_lea.hbm %s20082_s17, 16  ;;  %s17906_s28 = scalar_lea.hbm %s20162_s11, 32 }
 0x6fc   : > { %p17903_p13 = scmp.ne.s32.totalorder %s20082_s17, %s17902_s30  ;;  %p17907_p6 = scmp.lt.u32.totalorder %s20082_s17, %s20162_s11 }
 0x6fd   : > { %p17908_p9 = scmp.lt.u32.totalorder %s17906_s28, %s17902_s30  ;;  %p17910_p12 = scmp.lt.u32.totalorder %s17902_s30, %s20082_s17 }
 0x6fe   : > { %p17904_p0 = pnand %p17903_p13, %p20188_p1 }
 0x6ff   : > { %p17909_p10 = por %p17908_p9, %p17907_p6 }
 0x700   : > { %p17905_p5 = pneg %p17904_p0 }
 0x701   : > { %p17911_p2 = por %p17910_p12, %p17909_p10 }
 0x703   : > { %p17912_p3 = pnand %p17911_p2, %p17905_p5 }
 0x705   : > { %17915 = shalt.err (!%p17912_p3)
}
 0x706   : > { %17756 = dma.vmem_to_hbm [thread:$0]  (%p20188_p1), %s14920_s21, 16, %s20082_s17, %s14903_s24  }
 0x707   : > { %s443_s14 = scalar_lea.vmem [#allocation10], %s20070_s26  ;;  %s20108_s30 = scalar_lea.hbm %s20163_s12, %s15531_s29 }
 0x708   : > { %s14932_s18 = sshll.u32 %s443_s14, 4  ;;  %s14907_s17 = scalar_lea.sflag [#allocation11], %s20070_s26  ;;  %s20110_s18 = int_to_ptr.vmem [resolvable:$true] %s14932_s18 }
 0x709   : > { %s17916_s21 = scalar_lea.vmem %s20110_s18, 16  ;;  %s18000_s24 = smov [#allocation10]  }
 0x70a   : > { %p17917_p4 = scmp.ne.s32.totalorder %s20110_s18, %s17916_s21  ;;  %s17920_s23 = sshll.u32 %s18000_s24, 4  ;;  %s17921_s23 = int_to_ptr.vmem [resolvable:$false] %s17920_s23 }
 0x70b   : > { %s17922_s25 = scalar_lea.vmem %s17921_s23, 32  ;;  %p17923_p11 = scmp.lt.s32.totalorder %s20110_s18, %s17921_s23 }
 0x70c   : > { %p17918_p7 = pnand %p17917_p4, %p20188_p1  ;;  %p17924_p13 = scmp.lt.s32.totalorder %s17922_s25, %s17916_s21 }
 0x70e   : > { %p17919_p8 = pneg %p17918_p7  ;;  %p17925_p0 = por %p17924_p13, %p17923_p11 }
 0x710   : > { %p17926_p5 = pnand %p17925_p0, %p17919_p8 }
 0x786   : > { %v14896_v3 = vpop.xlane.xlu0 %14895 }
 0x787   : > { %17820 = vlog2.f32 %v14896_v3 }
 0x791   : > { %v17821_v6 = vpop.eup %17820 }
 0x792   : > { %v14898_v8 = vmul.f32 0.6931472, %v17821_v6 }
 0x794   : > { %v14899_v52 = vadd.f32 %v14898_v8, %v14890_v56 }
 0x796   : > { %v14900_v63 = vsub.f32 %v14879_v51, %v14899_v52 }
 0x798   : > { %14901 = vst [vmem:[%s443_s14] sm:$0x1] %v14900_v63 }
 0x799   : > { %17929 = shalt.err (!%p17926_p5)
}
 0x79a   : > { %s17930_s26 = scalar_lea.hbm %s20108_s30, 16  ;;  %s17934_s28 = scalar_lea.hbm %s20163_s12, 32 }
 0x79b   : > { %p17931_p6 = scmp.ne.s32.totalorder %s20108_s30, %s17930_s26  ;;  %p17935_p12 = scmp.lt.u32.totalorder %s20108_s30, %s20163_s12 }
 0x79c   : > { %p17936_p2 = scmp.lt.u32.totalorder %s17934_s28, %s17930_s26  ;;  %p17938_p4 = scmp.lt.u32.totalorder %s17930_s26, %s20108_s30 }
 0x79d   : > { %p17932_p9 = pnand %p17931_p6, %p20188_p1 }
 0x79e   : > { %p17937_p3 = por %p17936_p2, %p17935_p12 }
 0x79f   : > { %p17933_p10 = pneg %p17932_p9 }
 0x7a0   : > { %p17939_p7 = por %p17938_p4, %p17937_p3 }
 0x7a2   : > { %p17940_p8 = pnand %p17939_p7, %p17933_p10 }
 0x7a4   : > { %17943 = shalt.err (!%p17940_p8)
}
 0x7a5   : > { %17757 = dma.vmem_to_hbm [thread:$0]  (%p20188_p1), %s20110_s18, 16, %s20108_s30, %s14907_s17  }
 0x7a6 PF: > { %s20189_s14 = sld [smem:[#allocation18_spill]]  ;;  %s20190_s20 = sld [smem:[#allocation16_spill]] }
 0x7a7   : > { %s20191_s15 = sld [smem:[#allocation21_spill]] }
 0x7ac   : > { %p17778_p11 = scmp.ge.s32.totalorder %s20189_s14, 2  ;;  %s14944_s21 = sand.u32 1, %s20190_s20  }
 0x7ad   : > { %p20192_p13 = scmp.ne.s32.totalorder %s20191_s15, 0  ;;  %s14945_s24 = scalar_lea.sflag [#allocation6], %s14944_s21 }
 0x7af   : > { %p17768_p0 = pnand %p17778_p11, %p20192_p13 }
 0x7b1   : > { %17969 = dma.done.wait (!%p17768_p0), %s14945_s24, 16  }
 0x7b2   : > { %17971 = vsyncadd (!%p17768_p0), %s14945_s24, 4294967280  ;;  %s14953_s23 = scalar_lea.sflag [#allocation11], %s14944_s21 }
 0x7b3   : > { %17973 = dma.done.wait (!%p17768_p0), %s14953_s23, 16  }
 0x7b4   : > { %17975 = vsyncadd (!%p17768_p0), %s14953_s23, 4294967280  ;;  %s20193_s24 = sld [smem:[#allocation19_spill]]  ;;  %s20194_s13 = sld [smem:[#allocation17_spill]] }
 0x7b5   : > { %s20195_s23 = sld [smem:[#allocation20_spill]]  ;;  %s20196_s21 = smov %s17982_s22 }
 0x7ba   : > { %p28_p1 = scmp.ge.s32.totalorder %s20193_s24, 4   ;;  %s20197_s22 = smov %s20194_s13 }
 0x7bc   :  { %30 = sbr.rel (!%p28_p1) target bundleno = 7 (0x7), region = 155 }
 0x7c3   :  { %14957 = vsyncpa [#allocation5], 1 }
 0x7c4   :  { %14959 = vsyncpa [#allocation5 + $0x1], 1 }
 0x7c5   :  { %14960 = vsyncpa [#allocation8], 1 }
 0x7c6   :  { %14961 = vsyncpa [#allocation6], 1 }
 0x7c7   :  { %14963 = vsyncpa [#allocation6 + $0x1], 1 }
 0x7c8   :  { %14964 = vsyncpa [#allocation11], 1 }
 0x7c9   :  { %14966 = vsyncpa [#allocation11 + $0x1], 1 }

</bundles_post_ra>
